<compile_context>
chip_gen: v7x
topology: tpu7x:2x2x1
jax: 0.10.0
libtpu: 0.0.40
codegen_flags: <defaults>
</compile_context>

<pallas_src>
import functools

import jax
import jax.numpy as jnp
from jax import lax
from jax.experimental import pallas as pl
from jax.experimental.pallas import tpu as pltpu

LANE = 128
MAX_UNROLL_T = 16   # wavefront full-unroll only for small static T


def _lstm_kernel(*refs, hidden_dim, n_layers, batch, seq_len, compute_dtype):
    """Full stacked-LSTM recurrence + final FC in a single kernel invocation.

    Ref layout (all VMEM):
      x_ref        (T*B, F)      compute_dtype   timestep-major rows
      wih0_ref     (F, 4H)       compute_dtype   gate order (i, f, o, g)
      whh0_ref     (H, 4H)       compute_dtype
      b0_ref       (1, 4H)       f32             (b_ih + b_hh, reordered)
      per layer l in 1..n_layers-1:
        wih_ref    (H, 4H)       compute_dtype   (kept separate: no concat!)
        whh_ref    (H, 4H)       compute_dtype
        b_ref      (1, 4H)       f32
      wfc_ref      (H, O_pad)    compute_dtype
      bfc_ref      (1, O_pad)    f32
      out_ref      (B, O_pad)    f32
      xproj_scr    (T*B, 4H)     f32 scratch (hoisted layer-0 projection)
    """
    H = hidden_dim
    B = batch
    T = seq_len
    L = n_layers

    it = iter(refs)
    x_ref = next(it)
    wih0_ref = next(it)
    whh0_ref = next(it)
    b0_ref = next(it)
    wih_refs, whh_refs, b_refs = [], [], []
    for _ in range(L - 1):
        wih_refs.append(next(it))
        whh_refs.append(next(it))
        b_refs.append(next(it))
    wfc_ref = next(it)
    bfc_ref = next(it)
    out_ref = next(it)
    xproj_scr = next(it)

    # ---- Hoisted layer-0 input projection: one MXU-filling matmul, bias
    # folded in once (instead of T tiny M=B matmuls inside the recurrence). ----
    xproj_scr[...] = (jnp.dot(x_ref[...], wih0_ref[...],
                              preferred_element_type=jnp.float32)
                      + b0_ref[...])                          # (T*B, 4H) f32

    # Pre-broadcast biases once (broadcast_in_dim is not CSE'd inside loops).
    biases = [jnp.broadcast_to(b[...], (B, 4 * H)) for b in b_refs]

    def gate_act(gates):
        # Gate column order is (i, f, o, g).
        # sigmoid(x) = 0.5*tanh(0.5*x) + 0.5 -> exactly one EUP op per element.
        sig = 0.5 * jnp.tanh(0.5 * gates[:, :3 * H]) + 0.5
        i_g = sig[:, 0 * H:1 * H]
        f_g = sig[:, 1 * H:2 * H]
        o_g = sig[:, 2 * H:3 * H]
        g_g = jnp.tanh(gates[:, 3 * H:4 * H])
        return i_g, f_g, o_g, g_g

    def cell(gates, c_prev):
        """gates: (B,4H) f32 pre-activations; c_prev: (B,H) f32."""
        i_g, f_g, o_g, g_g = gate_act(gates)
        c_new = f_g * c_prev + i_g * g_g                       # f32 cell state
        h_new = o_g * jnp.tanh(c_new)
        # h is carried in compute_dtype: cast ONCE here, not at every consumer.
        return h_new.astype(compute_dtype), c_new

    def gates_l0(t_row, h0):
        # Layer 0: input part precomputed, only the recurrent dot remains.
        return (xproj_scr[pl.ds(t_row, B), :]
                + jnp.dot(h0, whh0_ref[...], preferred_element_type=jnp.float32))

    def gates_lx(l, h_below, h_l):
        # Two dots summed (no concat): both land in the same f32 accumulator
        # (in-place on v7x's MRB; on v5e/v6e still cheaper than the concat's
        # vst+vld on the critical path).
        return (jnp.dot(h_below, wih_refs[l - 1][...],
                        preferred_element_type=jnp.float32)
                + jnp.dot(h_l, whh_refs[l - 1][...],
                          preferred_element_type=jnp.float32)
                + biases[l - 1])

    h = [jnp.zeros((B, H), compute_dtype) for _ in range(L)]
    c = [jnp.zeros((B, H), jnp.float32) for _ in range(L)]

    if T <= MAX_UNROLL_T:
        # ---- Wavefront (diagonal) schedule, fully unrolled. ----
        # Cell (t, l) depends only on (t-1, l) and (t, l-1), so all cells with
        # t + l == d are independent: compute them together for cross-layer ILP.
        for d in range(T + L - 1):
            updates = []
            for l in range(L):
                t = d - l
                if t < 0 or t >= T:
                    continue
                if l == 0:
                    gates = gates_l0(t * B, h[0])
                else:
                    gates = gates_lx(l, h[l - 1], h[l])
                updates.append((l, cell(gates, c[l])))
            # Commit after the whole diagonal (snapshot semantics).
            for l, (h_new, c_new) in updates:
                h[l] = h_new
                c[l] = c_new
        h_last = h[L - 1]
    else:
        # ---- Large-T fallback: non-unrolled time loop, layers sequential. ----
        def step(t, carry):
            hs, cs = carry                      # h: bf16 tuples, c: f32 tuples
            new_h, new_c = [], []
            row = pl.multiple_of(t * B, B)
            h0, c0 = cell(gates_l0(row, hs[0]), cs[0])
            new_h.append(h0)
            new_c.append(c0)
            cur = h0
            for l in range(1, L):
                hl, cl = cell(gates_lx(l, cur, hs[l]), cs[l])
                new_h.append(hl)
                new_c.append(cl)
                cur = hl
            return tuple(new_h), tuple(new_c)

        hs, _ = lax.fori_loop(0, T, step, (tuple(h), tuple(c)))
        h_last = hs[L - 1]

    # Final FC on the top layer's last hidden state (bf16 x bf16, f32 accum,
    # lane-dense padded output).
    out_ref[...] = (jnp.dot(h_last, wfc_ref[...],
                            preferred_element_type=jnp.float32) + bfc_ref[...])


# ----------------------------------------------------------------------------
# Parameters (PyTorch layout) + one-time packing for the kernel.
# ----------------------------------------------------------------------------
def init_params(key, input_size, output_size, hidden_dim=128, n_layers=3):
    """nn.LSTM / nn.Linear-shaped params (uniform +-1/sqrt(H)), gate order (i,f,g,o)."""
    H = hidden_dim
    params = {}
    k = 1.0 / jnp.sqrt(jnp.float32(H))
    keys = jax.random.split(key, 4 * n_layers + 2)
    ki = 0
    for l in range(n_layers):
        in_sz = input_size if l == 0 else H
        w_ih = jax.random.uniform(keys[ki], (4 * H, in_sz), jnp.float32, -k, k); ki += 1
        w_hh = jax.random.uniform(keys[ki], (4 * H, H), jnp.float32, -k, k);     ki += 1
        b_ih = jax.random.uniform(keys[ki], (4 * H,), jnp.float32, -k, k);        ki += 1
        b_hh = jax.random.uniform(keys[ki], (4 * H,), jnp.float32, -k, k);        ki += 1
        params[f"w_ih_{l}"] = w_ih
        params[f"w_hh_{l}"] = w_hh
        params[f"b_{l}"] = b_ih + b_hh
    params["w_fc"] = jax.random.uniform(keys[ki], (output_size, H), jnp.float32, -k, k); ki += 1
    params["b_fc"] = jax.random.uniform(keys[ki], (output_size,), jnp.float32, -k, k)
    return params


def _reorder_gates(w, H):
    """PyTorch gate block order (i, f, g, o) -> kernel order (i, f, o, g) along axis 0."""
    return jnp.concatenate([w[0:H], w[H:2 * H], w[3 * H:4 * H], w[2 * H:3 * H]], axis=0)


def prepare_params(params, hidden_dim=128, n_layers=3, compute_dtype=jnp.bfloat16):
    """One-time packing: gate reorder, transpose, bf16 cast, O padding.

    W_ih / W_hh are kept SEPARATE (no [W_ih; W_hh] fusion): the kernel sums two
    dots instead of concatenating activations in the inner loop.
    """
    H = hidden_dim
    O = params["b_fc"].shape[0]
    O_pad = max(LANE, ((O + LANE - 1) // LANE) * LANE)

    packed = []
    # Layer 0 kept separate: its input projection is hoisted out of the loop.
    packed.append(jnp.transpose(_reorder_gates(params["w_ih_0"], H)).astype(compute_dtype))
    packed.append(jnp.transpose(_reorder_gates(params["w_hh_0"], H)).astype(compute_dtype))
    packed.append(_reorder_gates(params["b_0"], H).reshape(1, 4 * H).astype(jnp.float32))
    for l in range(1, n_layers):
        packed.append(jnp.transpose(_reorder_gates(params[f"w_ih_{l}"], H)).astype(compute_dtype))
        packed.append(jnp.transpose(_reorder_gates(params[f"w_hh_{l}"], H)).astype(compute_dtype))
        packed.append(_reorder_gates(params[f"b_{l}"], H).reshape(1, 4 * H).astype(jnp.float32))
    w_fc_t = jnp.transpose(params["w_fc"])                               # (H, O)
    packed.append(jnp.zeros((H, O_pad), jnp.float32).at[:, :O].set(w_fc_t)
                  .astype(compute_dtype))                                # bf16 FC weight
    packed.append(jnp.zeros((1, O_pad), jnp.float32).at[:, :O].set(params["b_fc"].reshape(1, O)))

    return {"weights": [jax.device_put(w) for w in packed],
            "output_size": O, "output_pad": O_pad}


# ----------------------------------------------------------------------------
# Forward pass.
# ----------------------------------------------------------------------------
def lstm_forward(x, prepared, hidden_dim=128, n_layers=3, compute_dtype=jnp.bfloat16):
    """Pallas forward equivalent to LSTM.forward(x) (batch_first)."""
    if x.ndim == 2:                        # matches the `unsqueeze(1)` branch
        x = x[:, None, :]
    B, T, F = x.shape
    H = hidden_dim
    O = prepared["output_size"]
    O_pad = prepared["output_pad"]

    # (B, T, F) -> (T, B, F) -> (T*B, F): timestep-major rows so the layer-0
    # input projection is a single big matmul inside the kernel.
    x_flat = jnp.transpose(x, (1, 0, 2)).reshape(T * B, F).astype(compute_dtype)

    vmem = pl.BlockSpec(memory_space=pltpu.MemorySpace.VMEM)
    kernel = functools.partial(_lstm_kernel, hidden_dim=H, n_layers=n_layers,
                               batch=B, seq_len=T, compute_dtype=compute_dtype)

    inputs = [x_flat] + list(prepared["weights"])
    out = pl.pallas_call(
        kernel,
        out_shape=jax.ShapeDtypeStruct((B, O_pad), jnp.float32),
        in_specs=[vmem] * len(inputs),
        out_specs=vmem,
        scratch_shapes=[pltpu.VMEM((T * B, 4 * H), jnp.float32)],   # hoisted x-projection
        compiler_params=pltpu.CompilerParams(vmem_limit_bytes=32 * 1024 * 1024),
    )(*inputs)
    # TODO(synk): on v7x, shard the batch across the two TensorCores with a
    # grid=(2,) "parallel" axis once B >= 16, and T-chunk x_flat / xproj via a
    # BlockSpec grid (vs. 64 MiB physical VMEM) for long sequences.
    return out[:, :O]


def lstm_reference(x, params, hidden_dim=128, n_layers=3):
    """Pure-JAX f32 reference (PyTorch gate order / layout) for verification."""
    if x.ndim == 2:
        x = x[:, None, :]
    B, T, _ = x.shape
    H = hidden_dim
    h = [jnp.zeros((B, H), jnp.float32) for _ in range(n_layers)]
    c = [jnp.zeros((B, H), jnp.float32) for _ in range(n_layers)]
    for t in range(T):
        cur = x[:, t, :]
        for l in range(n_layers):
            gates = (cur @ params[f"w_ih_{l}"].T
                     + h[l] @ params[f"w_hh_{l}"].T
                     + params[f"b_{l}"])
            i_g = jax.nn.sigmoid(gates[:, 0 * H:1 * H])
            f_g = jax.nn.sigmoid(gates[:, 1 * H:2 * H])
            g_g = jnp.tanh(gates[:, 2 * H:3 * H])
            o_g = jax.nn.sigmoid(gates[:, 3 * H:4 * H])
            c[l] = f_g * c[l] + i_g * g_g
            h[l] = o_g * jnp.tanh(c[l])
            cur = h[l]
    return h[-1] @ params["w_fc"].T + params["b_fc"]


if __name__ == "__main__":
    B, T = 8, 8
    input_size, output_size = 16, 8
    hidden_dim, n_layers = 128, 3

    key = jax.random.PRNGKey(0)
    kx, kp = jax.random.split(key)
    x = jax.random.normal(kx, (B, T, input_size), jnp.float32)
    params = init_params(kp, input_size, output_size, hidden_dim, n_layers)
    prepared = prepare_params(params, hidden_dim, n_layers)   # one-time packing

    out = lstm_forward(x, prepared, hidden_dim, n_layers)
    out = jax.block_until_ready(out)

    ref = lstm_reference(x, params, hidden_dim, n_layers)
    assert out.shape == (B, output_size)
    # bf16 matmul inputs / bf16 h-carry (f32 gate accumulation & cell state)
    # vs. the pure-f32 reference.
    assert jnp.allclose(out, ref, atol=3e-2, rtol=3e-2), "mismatch vs reference"

    print("KERNEL_OK")
</pallas_src>

<mosaic_0001>
module attributes {stable_mosaic.version = 11 : i64} {
  func.func @_lstm_kernel(%arg0: memref<64x16xbf16, #tpu.memory_space<vmem>>, %arg1: memref<16x512xbf16, #tpu.memory_space<vmem>>, %arg2: memref<128x512xbf16, #tpu.memory_space<vmem>>, %arg3: memref<1x512xf32, #tpu.memory_space<vmem>>, %arg4: memref<128x512xbf16, #tpu.memory_space<vmem>>, %arg5: memref<128x512xbf16, #tpu.memory_space<vmem>>, %arg6: memref<1x512xf32, #tpu.memory_space<vmem>>, %arg7: memref<128x512xbf16, #tpu.memory_space<vmem>>, %arg8: memref<128x512xbf16, #tpu.memory_space<vmem>>, %arg9: memref<1x512xf32, #tpu.memory_space<vmem>>, %arg10: memref<128x128xbf16, #tpu.memory_space<vmem>>, %arg11: memref<1x128xf32, #tpu.memory_space<vmem>>, %arg12: memref<8x128xf32, #tpu.memory_space<vmem>>, %arg13: memref<64x512xf32, #tpu.memory_space<vmem>>) attributes {dimension_semantics = [], scalar_prefetch = 0 : i64, scratch_operands = 1 : i64, tpu.core_type = #tpu.core_type<tc>} {
    %c0 = arith.constant 0 : index
    %c0_0 = arith.constant 0 : index
    %0 = vector.load %arg0[%c0, %c0_0] : memref<64x16xbf16, #tpu.memory_space<vmem>>, vector<64x16xbf16>
    %c0_1 = arith.constant 0 : index
    %c0_2 = arith.constant 0 : index
    %1 = vector.load %arg1[%c0_1, %c0_2] : memref<16x512xbf16, #tpu.memory_space<vmem>>, vector<16x512xbf16>
    %cst = arith.constant dense<0.000000e+00> : vector<64x512xf32>
    %2 = tpu.matmul %0, %1, %cst {dimension_numbers = #tpu.dot_dimension_numbers<[1], [0], [0], [1], [0, 0, 1, 1], [], []>} : vector<64x16xbf16>, vector<16x512xbf16>, vector<64x512xf32> -> vector<64x512xf32>
    %c0_3 = arith.constant 0 : index
    %c0_4 = arith.constant 0 : index
    %3 = vector.load %arg3[%c0_3, %c0_4] : memref<1x512xf32, #tpu.memory_space<vmem>>, vector<1x512xf32>
    %4 = vector.broadcast %3 : vector<1x512xf32> to vector<64x512xf32>
    %5 = arith.addf %2, %4 : vector<64x512xf32>
    %c0_5 = arith.constant 0 : index
    %c0_6 = arith.constant 0 : index
    %6 = vector.load %arg13[%c0_5, %c0_6] : memref<64x512xf32, #tpu.memory_space<vmem>>, vector<64x512xf32>
    tpu.vector_store %arg13[%c0_5, %c0_6], %5 {strides = array<i32>} : memref<64x512xf32, #tpu.memory_space<vmem>>, vector<64x512xf32>,
    %c0_7 = arith.constant 0 : index
    %c0_8 = arith.constant 0 : index
    %7 = vector.load %arg6[%c0_7, %c0_8] : memref<1x512xf32, #tpu.memory_space<vmem>>, vector<1x512xf32>
    %8 = vector.shape_cast %7 : vector<1x512xf32> to vector<1x512xf32>
    %9 = vector.broadcast %8 : vector<1x512xf32> to vector<8x512xf32>
    %c0_9 = arith.constant 0 : index
    %c0_10 = arith.constant 0 : index
    %10 = vector.load %arg9[%c0_9, %c0_10] : memref<1x512xf32, #tpu.memory_space<vmem>>, vector<1x512xf32>
    %11 = vector.shape_cast %10 : vector<1x512xf32> to vector<1x512xf32>
    %12 = vector.broadcast %11 : vector<1x512xf32> to vector<8x512xf32>
    %cst_11 = arith.constant 0.000000e+00 : bf16
    %13 = vector.broadcast %cst_11 : bf16 to vector<8x128xbf16>
    %cst_12 = arith.constant 0.000000e+00 : bf16
    %14 = vector.broadcast %cst_12 : bf16 to vector<8x128xbf16>
    %cst_13 = arith.constant 0.000000e+00 : bf16
    %15 = vector.broadcast %cst_13 : bf16 to vector<8x128xbf16>
    %cst_14 = arith.constant 0.000000e+00 : f32
    %16 = vector.broadcast %cst_14 : f32 to vector<8x128xf32>
    %cst_15 = arith.constant 0.000000e+00 : f32
    %17 = vector.broadcast %cst_15 : f32 to vector<8x128xf32>
    %cst_16 = arith.constant 0.000000e+00 : f32
    %18 = vector.broadcast %cst_16 : f32 to vector<8x128xf32>
    %c0_17 = arith.constant 0 : index
    %c0_18 = arith.constant 0 : index
    %19 = vector.load %arg13[%c0_17, %c0_18] : memref<64x512xf32, #tpu.memory_space<vmem>>, vector<8x512xf32>
    %c0_19 = arith.constant 0 : index
    %c0_20 = arith.constant 0 : index
    %20 = vector.load %arg2[%c0_19, %c0_20] : memref<128x512xbf16, #tpu.memory_space<vmem>>, vector<128x512xbf16>
    %cst_21 = arith.constant dense<0.000000e+00> : vector<8x512xf32>
    %21 = tpu.matmul %13, %20, %cst_21 {dimension_numbers = #tpu.dot_dimension_numbers<[1], [0], [0], [1], [0, 0, 1, 1], [], []>} : vector<8x128xbf16>, vector<128x512xbf16>, vector<8x512xf32> -> vector<8x512xf32>
    %22 = arith.addf %19, %21 : vector<8x512xf32>
    %23 = vector.extract_strided_slice %22 {offsets = [0, 0], sizes = [8, 384], strides = [1, 1]} : vector<8x512xf32> to vector<8x384xf32>
    %cst_22 = arith.constant 5.000000e-01 : f32
    %24 = vector.broadcast %cst_22 : f32 to vector<8x384xf32>
    %25 = arith.mulf %24, %23 : vector<8x384xf32>
    %26 = math.tanh %25 : vector<8x384xf32>
    %cst_23 = arith.constant 5.000000e-01 : f32
    %27 = vector.broadcast %cst_23 : f32 to vector<8x384xf32>
    %28 = arith.mulf %27, %26 : vector<8x384xf32>
    %cst_24 = arith.constant 5.000000e-01 : f32
    %29 = vector.broadcast %cst_24 : f32 to vector<8x384xf32>
    %30 = arith.addf %28, %29 : vector<8x384xf32>
    %31 = vector.extract_strided_slice %30 {offsets = [0, 0], sizes = [8, 128], strides = [1, 1]} : vector<8x384xf32> to vector<8x128xf32>
    %32 = vector.extract_strided_slice %30 {offsets = [0, 128], sizes = [8, 128], strides = [1, 1]} : vector<8x384xf32> to vector<8x128xf32>
    %33 = vector.extract_strided_slice %30 {offsets = [0, 256], sizes = [8, 128], strides = [1, 1]} : vector<8x384xf32> to vector<8x128xf32>
    %34 = vector.extract_strided_slice %22 {offsets = [0, 384], sizes = [8, 128], strides = [1, 1]} : vector<8x512xf32> to vector<8x128xf32>
    %35 = math.tanh %34 : vector<8x128xf32>
    %36 = arith.mulf %32, %16 : vector<8x128xf32>
    %37 = arith.mulf %31, %35 : vector<8x128xf32>
    %38 = arith.addf %36, %37 : vector<8x128xf32>
    %39 = math.tanh %38 : vector<8x128xf32>
    %40 = arith.mulf %33, %39 : vector<8x128xf32>
    %41 = arith.truncf %40 : vector<8x128xf32> to vector<8x128xbf16>
    %c8 = arith.constant 8 : index
    %c0_25 = arith.constant 0 : index
    %42 = vector.load %arg13[%c8, %c0_25] : memref<64x512xf32, #tpu.memory_space<vmem>>, vector<8x512xf32>
    %c0_26 = arith.constant 0 : index
    %c0_27 = arith.constant 0 : index
    %43 = vector.load %arg2[%c0_26, %c0_27] : memref<128x512xbf16, #tpu.memory_space<vmem>>, vector<128x512xbf16>
    %cst_28 = arith.constant dense<0.000000e+00> : vector<8x512xf32>
    %44 = tpu.matmul %41, %43, %cst_28 {dimension_numbers = #tpu.dot_dimension_numbers<[1], [0], [0], [1], [0, 0, 1, 1], [], []>} : vector<8x128xbf16>, vector<128x512xbf16>, vector<8x512xf32> -> vector<8x512xf32>
    %45 = arith.addf %42, %44 : vector<8x512xf32>
    %46 = vector.extract_strided_slice %45 {offsets = [0, 0], sizes = [8, 384], strides = [1, 1]} : vector<8x512xf32> to vector<8x384xf32>
    %cst_29 = arith.constant 5.000000e-01 : f32
    %47 = vector.broadcast %cst_29 : f32 to vector<8x384xf32>
    %48 = arith.mulf %47, %46 : vector<8x384xf32>
    %49 = math.tanh %48 : vector<8x384xf32>
    %cst_30 = arith.constant 5.000000e-01 : f32
    %50 = vector.broadcast %cst_30 : f32 to vector<8x384xf32>
    %51 = arith.mulf %50, %49 : vector<8x384xf32>
    %cst_31 = arith.constant 5.000000e-01 : f32
    %52 = vector.broadcast %cst_31 : f32 to vector<8x384xf32>
    %53 = arith.addf %51, %52 : vector<8x384xf32>
    %54 = vector.extract_strided_slice %53 {offsets = [0, 0], sizes = [8, 128], strides = [1, 1]} : vector<8x384xf32> to vector<8x128xf32>
    %55 = vector.extract_strided_slice %53 {offsets = [0, 128], sizes = [8, 128], strides = [1, 1]} : vector<8x384xf32> to vector<8x128xf32>
    %56 = vector.extract_strided_slice %53 {offsets = [0, 256], sizes = [8, 128], strides = [1, 1]} : vector<8x384xf32> to vector<8x128xf32>
    %57 = vector.extract_strided_slice %45 {offsets = [0, 384], sizes = [8, 128], strides = [1, 1]} : vector<8x512xf32> to vector<8x128xf32>
    %58 = math.tanh %57 : vector<8x128xf32>
    %59 = arith.mulf %55, %38 : vector<8x128xf32>
    %60 = arith.mulf %54, %58 : vector<8x128xf32>
    %61 = arith.addf %59, %60 : vector<8x128xf32>
    %62 = math.tanh %61 : vector<8x128xf32>
    %63 = arith.mulf %56, %62 : vector<8x128xf32>
    %64 = arith.truncf %63 : vector<8x128xf32> to vector<8x128xbf16>
    %c0_32 = arith.constant 0 : index
    %c0_33 = arith.constant 0 : index
    %65 = vector.load %arg4[%c0_32, %c0_33] : memref<128x512xbf16, #tpu.memory_space<vmem>>, vector<128x512xbf16>
    %cst_34 = arith.constant dense<0.000000e+00> : vector<8x512xf32>
    %66 = tpu.matmul %41, %65, %cst_34 {dimension_numbers = #tpu.dot_dimension_numbers<[1], [0], [0], [1], [0, 0, 1, 1], [], []>} : vector<8x128xbf16>, vector<128x512xbf16>, vector<8x512xf32> -> vector<8x512xf32>
    %c0_35 = arith.constant 0 : index
    %c0_36 = arith.constant 0 : index
    %67 = vector.load %arg5[%c0_35, %c0_36] : memref<128x512xbf16, #tpu.memory_space<vmem>>, vector<128x512xbf16>
    %cst_37 = arith.constant dense<0.000000e+00> : vector<8x512xf32>
    %68 = tpu.matmul %14, %67, %cst_37 {dimension_numbers = #tpu.dot_dimension_numbers<[1], [0], [0], [1], [0, 0, 1, 1], [], []>} : vector<8x128xbf16>, vector<128x512xbf16>, vector<8x512xf32> -> vector<8x512xf32>
    %69 = arith.addf %66, %68 : vector<8x512xf32>
    %70 = arith.addf %69, %9 : vector<8x512xf32>
    %71 = vector.extract_strided_slice %70 {offsets = [0, 0], sizes = [8, 384], strides = [1, 1]} : vector<8x512xf32> to vector<8x384xf32>
    %cst_38 = arith.constant 5.000000e-01 : f32
    %72 = vector.broadcast %cst_38 : f32 to vector<8x384xf32>
    %73 = arith.mulf %72, %71 : vector<8x384xf32>
    %74 = math.tanh %73 : vector<8x384xf32>
    %cst_39 = arith.constant 5.000000e-01 : f32
    %75 = vector.broadcast %cst_39 : f32 to vector<8x384xf32>
    %76 = arith.mulf %75, %74 : vector<8x384xf32>
    %cst_40 = arith.constant 5.000000e-01 : f32
    %77 = vector.broadcast %cst_40 : f32 to vector<8x384xf32>
    %78 = arith.addf %76, %77 : vector<8x384xf32>
    %79 = vector.extract_strided_slice %78 {offsets = [0, 0], sizes = [8, 128], strides = [1, 1]} : vector<8x384xf32> to vector<8x128xf32>
    %80 = vector.extract_strided_slice %78 {offsets = [0, 128], sizes = [8, 128], strides = [1, 1]} : vector<8x384xf32> to vector<8x128xf32>
    %81 = vector.extract_strided_slice %78 {offsets = [0, 256], sizes = [8, 128], strides = [1, 1]} : vector<8x384xf32> to vector<8x128xf32>
    %82 = vector.extract_strided_slice %70 {offsets = [0, 384], sizes = [8, 128], strides = [1, 1]} : vector<8x512xf32> to vector<8x128xf32>
    %83 = math.tanh %82 : vector<8x128xf32>
    %84 = arith.mulf %80, %17 : vector<8x128xf32>
    %85 = arith.mulf %79, %83 : vector<8x128xf32>
    %86 = arith.addf %84, %85 : vector<8x128xf32>
    %87 = math.tanh %86 : vector<8x128xf32>
    %88 = arith.mulf %81, %87 : vector<8x128xf32>
    %89 = arith.truncf %88 : vector<8x128xf32> to vector<8x128xbf16>
    %c16 = arith.constant 16 : index
    %c0_41 = arith.constant 0 : index
    %90 = vector.load %arg13[%c16, %c0_41] : memref<64x512xf32, #tpu.memory_space<vmem>>, vector<8x512xf32>
    %c0_42 = arith.constant 0 : index
    %c0_43 = arith.constant 0 : index
    %91 = vector.load %arg2[%c0_42, %c0_43] : memref<128x512xbf16, #tpu.memory_space<vmem>>, vector<128x512xbf16>
    %cst_44 = arith.constant dense<0.000000e+00> : vector<8x512xf32>
    %92 = tpu.matmul %64, %91, %cst_44 {dimension_numbers = #tpu.dot_dimension_numbers<[1], [0], [0], [1], [0, 0, 1, 1], [], []>} : vector<8x128xbf16>, vector<128x512xbf16>, vector<8x512xf32> -> vector<8x512xf32>
    %93 = arith.addf %90, %92 : vector<8x512xf32>
    %94 = vector.extract_strided_slice %93 {offsets = [0, 0], sizes = [8, 384], strides = [1, 1]} : vector<8x512xf32> to vector<8x384xf32>
    %cst_45 = arith.constant 5.000000e-01 : f32
    %95 = vector.broadcast %cst_45 : f32 to vector<8x384xf32>
    %96 = arith.mulf %95, %94 : vector<8x384xf32>
    %97 = math.tanh %96 : vector<8x384xf32>
    %cst_46 = arith.constant 5.000000e-01 : f32
    %98 = vector.broadcast %cst_46 : f32 to vector<8x384xf32>
    %99 = arith.mulf %98, %97 : vector<8x384xf32>
    %cst_47 = arith.constant 5.000000e-01 : f32
    %100 = vector.broadcast %cst_47 : f32 to vector<8x384xf32>
    %101 = arith.addf %99, %100 : vector<8x384xf32>
    %102 = vector.extract_strided_slice %101 {offsets = [0, 0], sizes = [8, 128], strides = [1, 1]} : vector<8x384xf32> to vector<8x128xf32>
    %103 = vector.extract_strided_slice %101 {offsets = [0, 128], sizes = [8, 128], strides = [1, 1]} : vector<8x384xf32> to vector<8x128xf32>
    %104 = vector.extract_strided_slice %101 {offsets = [0, 256], sizes = [8, 128], strides = [1, 1]} : vector<8x384xf32> to vector<8x128xf32>
    %105 = vector.extract_strided_slice %93 {offsets = [0, 384], sizes = [8, 128], strides = [1, 1]} : vector<8x512xf32> to vector<8x128xf32>
    %106 = math.tanh %105 : vector<8x128xf32>
    %107 = arith.mulf %103, %61 : vector<8x128xf32>
    %108 = arith.mulf %102, %106 : vector<8x128xf32>
    %109 = arith.addf %107, %108 : vector<8x128xf32>
    %110 = math.tanh %109 : vector<8x128xf32>
    %111 = arith.mulf %104, %110 : vector<8x128xf32>
    %112 = arith.truncf %111 : vector<8x128xf32> to vector<8x128xbf16>
    %c0_48 = arith.constant 0 : index
    %c0_49 = arith.constant 0 : index
    %113 = vector.load %arg4[%c0_48, %c0_49] : memref<128x512xbf16, #tpu.memory_space<vmem>>, vector<128x512xbf16>
    %cst_50 = arith.constant dense<0.000000e+00> : vector<8x512xf32>
    %114 = tpu.matmul %64, %113, %cst_50 {dimension_numbers = #tpu.dot_dimension_numbers<[1], [0], [0], [1], [0, 0, 1, 1], [], []>} : vector<8x128xbf16>, vector<128x512xbf16>, vector<8x512xf32> -> vector<8x512xf32>
    %c0_51 = arith.constant 0 : index
    %c0_52 = arith.constant 0 : index
    %115 = vector.load %arg5[%c0_51, %c0_52] : memref<128x512xbf16, #tpu.memory_space<vmem>>, vector<128x512xbf16>
    %cst_53 = arith.constant dense<0.000000e+00> : vector<8x512xf32>
    %116 = tpu.matmul %89, %115, %cst_53 {dimension_numbers = #tpu.dot_dimension_numbers<[1], [0], [0], [1], [0, 0, 1, 1], [], []>} : vector<8x128xbf16>, vector<128x512xbf16>, vector<8x512xf32> -> vector<8x512xf32>
    %117 = arith.addf %114, %116 : vector<8x512xf32>
    %118 = arith.addf %117, %9 : vector<8x512xf32>
    %119 = vector.extract_strided_slice %118 {offsets = [0, 0], sizes = [8, 384], strides = [1, 1]} : vector<8x512xf32> to vector<8x384xf32>
    %cst_54 = arith.constant 5.000000e-01 : f32
    %120 = vector.broadcast %cst_54 : f32 to vector<8x384xf32>
    %121 = arith.mulf %120, %119 : vector<8x384xf32>
    %122 = math.tanh %121 : vector<8x384xf32>
    %cst_55 = arith.constant 5.000000e-01 : f32
    %123 = vector.broadcast %cst_55 : f32 to vector<8x384xf32>
    %124 = arith.mulf %123, %122 : vector<8x384xf32>
    %cst_56 = arith.constant 5.000000e-01 : f32
    %125 = vector.broadcast %cst_56 : f32 to vector<8x384xf32>
    %126 = arith.addf %124, %125 : vector<8x384xf32>
    %127 = vector.extract_strided_slice %126 {offsets = [0, 0], sizes = [8, 128], strides = [1, 1]} : vector<8x384xf32> to vector<8x128xf32>
    %128 = vector.extract_strided_slice %126 {offsets = [0, 128], sizes = [8, 128], strides = [1, 1]} : vector<8x384xf32> to vector<8x128xf32>
    %129 = vector.extract_strided_slice %126 {offsets = [0, 256], sizes = [8, 128], strides = [1, 1]} : vector<8x384xf32> to vector<8x128xf32>
    %130 = vector.extract_strided_slice %118 {offsets = [0, 384], sizes = [8, 128], strides = [1, 1]} : vector<8x512xf32> to vector<8x128xf32>
    %131 = math.tanh %130 : vector<8x128xf32>
    %132 = arith.mulf %128, %86 : vector<8x128xf32>
    %133 = arith.mulf %127, %131 : vector<8x128xf32>
    %134 = arith.addf %132, %133 : vector<8x128xf32>
    %135 = math.tanh %134 : vector<8x128xf32>
    %136 = arith.mulf %129, %135 : vector<8x128xf32>
    %137 = arith.truncf %136 : vector<8x128xf32> to vector<8x128xbf16>
    %c0_57 = arith.constant 0 : index
    %c0_58 = arith.constant 0 : index
    %138 = vector.load %arg7[%c0_57, %c0_58] : memref<128x512xbf16, #tpu.memory_space<vmem>>, vector<128x512xbf16>
    %cst_59 = arith.constant dense<0.000000e+00> : vector<8x512xf32>
    %139 = tpu.matmul %89, %138, %cst_59 {dimension_numbers = #tpu.dot_dimension_numbers<[1], [0], [0], [1], [0, 0, 1, 1], [], []>} : vector<8x128xbf16>, vector<128x512xbf16>, vector<8x512xf32> -> vector<8x512xf32>
    %c0_60 = arith.constant 0 : index
    %c0_61 = arith.constant 0 : index
    %140 = vector.load %arg8[%c0_60, %c0_61] : memref<128x512xbf16, #tpu.memory_space<vmem>>, vector<128x512xbf16>
    %cst_62 = arith.constant dense<0.000000e+00> : vector<8x512xf32>
    %141 = tpu.matmul %15, %140, %cst_62 {dimension_numbers = #tpu.dot_dimension_numbers<[1], [0], [0], [1], [0, 0, 1, 1], [], []>} : vector<8x128xbf16>, vector<128x512xbf16>, vector<8x512xf32> -> vector<8x512xf32>
    %142 = arith.addf %139, %141 : vector<8x512xf32>
    %143 = arith.addf %142, %12 : vector<8x512xf32>
    %144 = vector.extract_strided_slice %143 {offsets = [0, 0], sizes = [8, 384], strides = [1, 1]} : vector<8x512xf32> to vector<8x384xf32>
    %cst_63 = arith.constant 5.000000e-01 : f32
    %145 = vector.broadcast %cst_63 : f32 to vector<8x384xf32>
    %146 = arith.mulf %145, %144 : vector<8x384xf32>
    %147 = math.tanh %146 : vector<8x384xf32>
    %cst_64 = arith.constant 5.000000e-01 : f32
    %148 = vector.broadcast %cst_64 : f32 to vector<8x384xf32>
    %149 = arith.mulf %148, %147 : vector<8x384xf32>
    %cst_65 = arith.constant 5.000000e-01 : f32
    %150 = vector.broadcast %cst_65 : f32 to vector<8x384xf32>
    %151 = arith.addf %149, %150 : vector<8x384xf32>
    %152 = vector.extract_strided_slice %151 {offsets = [0, 0], sizes = [8, 128], strides = [1, 1]} : vector<8x384xf32> to vector<8x128xf32>
    %153 = vector.extract_strided_slice %151 {offsets = [0, 128], sizes = [8, 128], strides = [1, 1]} : vector<8x384xf32> to vector<8x128xf32>
    %154 = vector.extract_strided_slice %151 {offsets = [0, 256], sizes = [8, 128], strides = [1, 1]} : vector<8x384xf32> to vector<8x128xf32>
    %155 = vector.extract_strided_slice %143 {offsets = [0, 384], sizes = [8, 128], strides = [1, 1]} : vector<8x512xf32> to vector<8x128xf32>
    %156 = math.tanh %155 : vector<8x128xf32>
    %157 = arith.mulf %153, %18 : vector<8x128xf32>
    %158 = arith.mulf %152, %156 : vector<8x128xf32>
    %159 = arith.addf %157, %158 : vector<8x128xf32>
    %160 = math.tanh %159 : vector<8x128xf32>
    %161 = arith.mulf %154, %160 : vector<8x128xf32>
    %162 = arith.truncf %161 : vector<8x128xf32> to vector<8x128xbf16>
    %c24 = arith.constant 24 : index
    %c0_66 = arith.constant 0 : index
    %163 = vector.load %arg13[%c24, %c0_66] : memref<64x512xf32, #tpu.memory_space<vmem>>, vector<8x512xf32>
    %c0_67 = arith.constant 0 : index
    %c0_68 = arith.constant 0 : index
    %164 = vector.load %arg2[%c0_67, %c0_68] : memref<128x512xbf16, #tpu.memory_space<vmem>>, vector<128x512xbf16>
    %cst_69 = arith.constant dense<0.000000e+00> : vector<8x512xf32>
    %165 = tpu.matmul %112, %164, %cst_69 {dimension_numbers = #tpu.dot_dimension_numbers<[1], [0], [0], [1], [0, 0, 1, 1], [], []>} : vector<8x128xbf16>, vector<128x512xbf16>, vector<8x512xf32> -> vector<8x512xf32>
    %166 = arith.addf %163, %165 : vector<8x512xf32>
    %167 = vector.extract_strided_slice %166 {offsets = [0, 0], sizes = [8, 384], strides = [1, 1]} : vector<8x512xf32> to vector<8x384xf32>
    %cst_70 = arith.constant 5.000000e-01 : f32
    %168 = vector.broadcast %cst_70 : f32 to vector<8x384xf32>
    %169 = arith.mulf %168, %167 : vector<8x384xf32>
    %170 = math.tanh %169 : vector<8x384xf32>
    %cst_71 = arith.constant 5.000000e-01 : f32
    %171 = vector.broadcast %cst_71 : f32 to vector<8x384xf32>
    %172 = arith.mulf %171, %170 : vector<8x384xf32>
    %cst_72 = arith.constant 5.000000e-01 : f32
    %173 = vector.broadcast %cst_72 : f32 to vector<8x384xf32>
    %174 = arith.addf %172, %173 : vector<8x384xf32>
    %175 = vector.extract_strided_slice %174 {offsets = [0, 0], sizes = [8, 128], strides = [1, 1]} : vector<8x384xf32> to vector<8x128xf32>
    %176 = vector.extract_strided_slice %174 {offsets = [0, 128], sizes = [8, 128], strides = [1, 1]} : vector<8x384xf32> to vector<8x128xf32>
    %177 = vector.extract_strided_slice %174 {offsets = [0, 256], sizes = [8, 128], strides = [1, 1]} : vector<8x384xf32> to vector<8x128xf32>
    %178 = vector.extract_strided_slice %166 {offsets = [0, 384], sizes = [8, 128], strides = [1, 1]} : vector<8x512xf32> to vector<8x128xf32>
    %179 = math.tanh %178 : vector<8x128xf32>
    %180 = arith.mulf %176, %109 : vector<8x128xf32>
    %181 = arith.mulf %175, %179 : vector<8x128xf32>
    %182 = arith.addf %180, %181 : vector<8x128xf32>
    %183 = math.tanh %182 : vector<8x128xf32>
    %184 = arith.mulf %177, %183 : vector<8x128xf32>
    %185 = arith.truncf %184 : vector<8x128xf32> to vector<8x128xbf16>
    %c0_73 = arith.constant 0 : index
    %c0_74 = arith.constant 0 : index
    %186 = vector.load %arg4[%c0_73, %c0_74] : memref<128x512xbf16, #tpu.memory_space<vmem>>, vector<128x512xbf16>
    %cst_75 = arith.constant dense<0.000000e+00> : vector<8x512xf32>
    %187 = tpu.matmul %112, %186, %cst_75 {dimension_numbers = #tpu.dot_dimension_numbers<[1], [0], [0], [1], [0, 0, 1, 1], [], []>} : vector<8x128xbf16>, vector<128x512xbf16>, vector<8x512xf32> -> vector<8x512xf32>
    %c0_76 = arith.constant 0 : index
    %c0_77 = arith.constant 0 : index
    %188 = vector.load %arg5[%c0_76, %c0_77] : memref<128x512xbf16, #tpu.memory_space<vmem>>, vector<128x512xbf16>
    %cst_78 = arith.constant dense<0.000000e+00> : vector<8x512xf32>
    %189 = tpu.matmul %137, %188, %cst_78 {dimension_numbers = #tpu.dot_dimension_numbers<[1], [0], [0], [1], [0, 0, 1, 1], [], []>} : vector<8x128xbf16>, vector<128x512xbf16>, vector<8x512xf32> -> vector<8x512xf32>
    %190 = arith.addf %187, %189 : vector<8x512xf32>
    %191 = arith.addf %190, %9 : vector<8x512xf32>
    %192 = vector.extract_strided_slice %191 {offsets = [0, 0], sizes = [8, 384], strides = [1, 1]} : vector<8x512xf32> to vector<8x384xf32>
    %cst_79 = arith.constant 5.000000e-01 : f32
    %193 = vector.broadcast %cst_79 : f32 to vector<8x384xf32>
    %194 = arith.mulf %193, %192 : vector<8x384xf32>
    %195 = math.tanh %194 : vector<8x384xf32>
    %cst_80 = arith.constant 5.000000e-01 : f32
    %196 = vector.broadcast %cst_80 : f32 to vector<8x384xf32>
    %197 = arith.mulf %196, %195 : vector<8x384xf32>
    %cst_81 = arith.constant 5.000000e-01 : f32
    %198 = vector.broadcast %cst_81 : f32 to vector<8x384xf32>
    %199 = arith.addf %197, %198 : vector<8x384xf32>
    %200 = vector.extract_strided_slice %199 {offsets = [0, 0], sizes = [8, 128], strides = [1, 1]} : vector<8x384xf32> to vector<8x128xf32>
    %201 = vector.extract_strided_slice %199 {offsets = [0, 128], sizes = [8, 128], strides = [1, 1]} : vector<8x384xf32> to vector<8x128xf32>
    %202 = vector.extract_strided_slice %199 {offsets = [0, 256], sizes = [8, 128], strides = [1, 1]} : vector<8x384xf32> to vector<8x128xf32>
    %203 = vector.extract_strided_slice %191 {offsets = [0, 384], sizes = [8, 128], strides = [1, 1]} : vector<8x512xf32> to vector<8x128xf32>
    %204 = math.tanh %203 : vector<8x128xf32>
    %205 = arith.mulf %201, %134 : vector<8x128xf32>
    %206 = arith.mulf %200, %204 : vector<8x128xf32>
    %207 = arith.addf %205, %206 : vector<8x128xf32>
    %208 = math.tanh %207 : vector<8x128xf32>
    %209 = arith.mulf %202, %208 : vector<8x128xf32>
    %210 = arith.truncf %209 : vector<8x128xf32> to vector<8x128xbf16>
    %c0_82 = arith.constant 0 : index
    %c0_83 = arith.constant 0 : index
    %211 = vector.load %arg7[%c0_82, %c0_83] : memref<128x512xbf16, #tpu.memory_space<vmem>>, vector<128x512xbf16>
    %cst_84 = arith.constant dense<0.000000e+00> : vector<8x512xf32>
    %212 = tpu.matmul %137, %211, %cst_84 {dimension_numbers = #tpu.dot_dimension_numbers<[1], [0], [0], [1], [0, 0, 1, 1], [], []>} : vector<8x128xbf16>, vector<128x512xbf16>, vector<8x512xf32> -> vector<8x512xf32>
    %c0_85 = arith.constant 0 : index
    %c0_86 = arith.constant 0 : index
    %213 = vector.load %arg8[%c0_85, %c0_86] : memref<128x512xbf16, #tpu.memory_space<vmem>>, vector<128x512xbf16>
    %cst_87 = arith.constant dense<0.000000e+00> : vector<8x512xf32>
    %214 = tpu.matmul %162, %213, %cst_87 {dimension_numbers = #tpu.dot_dimension_numbers<[1], [0], [0], [1], [0, 0, 1, 1], [], []>} : vector<8x128xbf16>, vector<128x512xbf16>, vector<8x512xf32> -> vector<8x512xf32>
    %215 = arith.addf %212, %214 : vector<8x512xf32>
    %216 = arith.addf %215, %12 : vector<8x512xf32>
    %217 = vector.extract_strided_slice %216 {offsets = [0, 0], sizes = [8, 384], strides = [1, 1]} : vector<8x512xf32> to vector<8x384xf32>
    %cst_88 = arith.constant 5.000000e-01 : f32
    %218 = vector.broadcast %cst_88 : f32 to vector<8x384xf32>
    %219 = arith.mulf %218, %217 : vector<8x384xf32>
    %220 = math.tanh %219 : vector<8x384xf32>
    %cst_89 = arith.constant 5.000000e-01 : f32
    %221 = vector.broadcast %cst_89 : f32 to vector<8x384xf32>
    %222 = arith.mulf %221, %220 : vector<8x384xf32>
    %cst_90 = arith.constant 5.000000e-01 : f32
    %223 = vector.broadcast %cst_90 : f32 to vector<8x384xf32>
    %224 = arith.addf %222, %223 : vector<8x384xf32>
    %225 = vector.extract_strided_slice %224 {offsets = [0, 0], sizes = [8, 128], strides = [1, 1]} : vector<8x384xf32> to vector<8x128xf32>
    %226 = vector.extract_strided_slice %224 {offsets = [0, 128], sizes = [8, 128], strides = [1, 1]} : vector<8x384xf32> to vector<8x128xf32>
    %227 = vector.extract_strided_slice %224 {offsets = [0, 256], sizes = [8, 128], strides = [1, 1]} : vector<8x384xf32> to vector<8x128xf32>
    %228 = vector.extract_strided_slice %216 {offsets = [0, 384], sizes = [8, 128], strides = [1, 1]} : vector<8x512xf32> to vector<8x128xf32>
    %229 = math.tanh %228 : vector<8x128xf32>
    %230 = arith.mulf %226, %159 : vector<8x128xf32>
    %231 = arith.mulf %225, %229 : vector<8x128xf32>
    %232 = arith.addf %230, %231 : vector<8x128xf32>
    %233 = math.tanh %232 : vector<8x128xf32>
    %234 = arith.mulf %227, %233 : vector<8x128xf32>
    %235 = arith.truncf %234 : vector<8x128xf32> to vector<8x128xbf16>
    %c32 = arith.constant 32 : index
    %c0_91 = arith.constant 0 : index
    %236 = vector.load %arg13[%c32, %c0_91] : memref<64x512xf32, #tpu.memory_space<vmem>>, vector<8x512xf32>
    %c0_92 = arith.constant 0 : index
    %c0_93 = arith.constant 0 : index
    %237 = vector.load %arg2[%c0_92, %c0_93] : memref<128x512xbf16, #tpu.memory_space<vmem>>, vector<128x512xbf16>
    %cst_94 = arith.constant dense<0.000000e+00> : vector<8x512xf32>
    %238 = tpu.matmul %185, %237, %cst_94 {dimension_numbers = #tpu.dot_dimension_numbers<[1], [0], [0], [1], [0, 0, 1, 1], [], []>} : vector<8x128xbf16>, vector<128x512xbf16>, vector<8x512xf32> -> vector<8x512xf32>
    %239 = arith.addf %236, %238 : vector<8x512xf32>
    %240 = vector.extract_strided_slice %239 {offsets = [0, 0], sizes = [8, 384], strides = [1, 1]} : vector<8x512xf32> to vector<8x384xf32>
    %cst_95 = arith.constant 5.000000e-01 : f32
    %241 = vector.broadcast %cst_95 : f32 to vector<8x384xf32>
    %242 = arith.mulf %241, %240 : vector<8x384xf32>
    %243 = math.tanh %242 : vector<8x384xf32>
    %cst_96 = arith.constant 5.000000e-01 : f32
    %244 = vector.broadcast %cst_96 : f32 to vector<8x384xf32>
    %245 = arith.mulf %244, %243 : vector<8x384xf32>
    %cst_97 = arith.constant 5.000000e-01 : f32
    %246 = vector.broadcast %cst_97 : f32 to vector<8x384xf32>
    %247 = arith.addf %245, %246 : vector<8x384xf32>
    %248 = vector.extract_strided_slice %247 {offsets = [0, 0], sizes = [8, 128], strides = [1, 1]} : vector<8x384xf32> to vector<8x128xf32>
    %249 = vector.extract_strided_slice %247 {offsets = [0, 128], sizes = [8, 128], strides = [1, 1]} : vector<8x384xf32> to vector<8x128xf32>
    %250 = vector.extract_strided_slice %247 {offsets = [0, 256], sizes = [8, 128], strides = [1, 1]} : vector<8x384xf32> to vector<8x128xf32>
    %251 = vector.extract_strided_slice %239 {offsets = [0, 384], sizes = [8, 128], strides = [1, 1]} : vector<8x512xf32> to vector<8x128xf32>
    %252 = math.tanh %251 : vector<8x128xf32>
    %253 = arith.mulf %249, %182 : vector<8x128xf32>
    %254 = arith.mulf %248, %252 : vector<8x128xf32>
    %255 = arith.addf %253, %254 : vector<8x128xf32>
    %256 = math.tanh %255 : vector<8x128xf32>
    %257 = arith.mulf %250, %256 : vector<8x128xf32>
    %258 = arith.truncf %257 : vector<8x128xf32> to vector<8x128xbf16>
    %c0_98 = arith.constant 0 : index
    %c0_99 = arith.constant 0 : index
    %259 = vector.load %arg4[%c0_98, %c0_99] : memref<128x512xbf16, #tpu.memory_space<vmem>>, vector<128x512xbf16>
    %cst_100 = arith.constant dense<0.000000e+00> : vector<8x512xf32>
    %260 = tpu.matmul %185, %259, %cst_100 {dimension_numbers = #tpu.dot_dimension_numbers<[1], [0], [0], [1], [0, 0, 1, 1], [], []>} : vector<8x128xbf16>, vector<128x512xbf16>, vector<8x512xf32> -> vector<8x512xf32>
    %c0_101 = arith.constant 0 : index
    %c0_102 = arith.constant 0 : index
    %261 = vector.load %arg5[%c0_101, %c0_102] : memref<128x512xbf16, #tpu.memory_space<vmem>>, vector<128x512xbf16>
    %cst_103 = arith.constant dense<0.000000e+00> : vector<8x512xf32>
    %262 = tpu.matmul %210, %261, %cst_103 {dimension_numbers = #tpu.dot_dimension_numbers<[1], [0], [0], [1], [0, 0, 1, 1], [], []>} : vector<8x128xbf16>, vector<128x512xbf16>, vector<8x512xf32> -> vector<8x512xf32>
    %263 = arith.addf %260, %262 : vector<8x512xf32>
    %264 = arith.addf %263, %9 : vector<8x512xf32>
    %265 = vector.extract_strided_slice %264 {offsets = [0, 0], sizes = [8, 384], strides = [1, 1]} : vector<8x512xf32> to vector<8x384xf32>
    %cst_104 = arith.constant 5.000000e-01 : f32
    %266 = vector.broadcast %cst_104 : f32 to vector<8x384xf32>
    %267 = arith.mulf %266, %265 : vector<8x384xf32>
    %268 = math.tanh %267 : vector<8x384xf32>
    %cst_105 = arith.constant 5.000000e-01 : f32
    %269 = vector.broadcast %cst_105 : f32 to vector<8x384xf32>
    %270 = arith.mulf %269, %268 : vector<8x384xf32>
    %cst_106 = arith.constant 5.000000e-01 : f32
    %271 = vector.broadcast %cst_106 : f32 to vector<8x384xf32>
    %272 = arith.addf %270, %271 : vector<8x384xf32>
    %273 = vector.extract_strided_slice %272 {offsets = [0, 0], sizes = [8, 128], strides = [1, 1]} : vector<8x384xf32> to vector<8x128xf32>
    %274 = vector.extract_strided_slice %272 {offsets = [0, 128], sizes = [8, 128], strides = [1, 1]} : vector<8x384xf32> to vector<8x128xf32>
    %275 = vector.extract_strided_slice %272 {offsets = [0, 256], sizes = [8, 128], strides = [1, 1]} : vector<8x384xf32> to vector<8x128xf32>
    %276 = vector.extract_strided_slice %264 {offsets = [0, 384], sizes = [8, 128], strides = [1, 1]} : vector<8x512xf32> to vector<8x128xf32>
    %277 = math.tanh %276 : vector<8x128xf32>
    %278 = arith.mulf %274, %207 : vector<8x128xf32>
    %279 = arith.mulf %273, %277 : vector<8x128xf32>
    %280 = arith.addf %278, %279 : vector<8x128xf32>
    %281 = math.tanh %280 : vector<8x128xf32>
    %282 = arith.mulf %275, %281 : vector<8x128xf32>
    %283 = arith.truncf %282 : vector<8x128xf32> to vector<8x128xbf16>
    %c0_107 = arith.constant 0 : index
    %c0_108 = arith.constant 0 : index
    %284 = vector.load %arg7[%c0_107, %c0_108] : memref<128x512xbf16, #tpu.memory_space<vmem>>, vector<128x512xbf16>
    %cst_109 = arith.constant dense<0.000000e+00> : vector<8x512xf32>
    %285 = tpu.matmul %210, %284, %cst_109 {dimension_numbers = #tpu.dot_dimension_numbers<[1], [0], [0], [1], [0, 0, 1, 1], [], []>} : vector<8x128xbf16>, vector<128x512xbf16>, vector<8x512xf32> -> vector<8x512xf32>
    %c0_110 = arith.constant 0 : index
    %c0_111 = arith.constant 0 : index
    %286 = vector.load %arg8[%c0_110, %c0_111] : memref<128x512xbf16, #tpu.memory_space<vmem>>, vector<128x512xbf16>
    %cst_112 = arith.constant dense<0.000000e+00> : vector<8x512xf32>
    %287 = tpu.matmul %235, %286, %cst_112 {dimension_numbers = #tpu.dot_dimension_numbers<[1], [0], [0], [1], [0, 0, 1, 1], [], []>} : vector<8x128xbf16>, vector<128x512xbf16>, vector<8x512xf32> -> vector<8x512xf32>
    %288 = arith.addf %285, %287 : vector<8x512xf32>
    %289 = arith.addf %288, %12 : vector<8x512xf32>
    %290 = vector.extract_strided_slice %289 {offsets = [0, 0], sizes = [8, 384], strides = [1, 1]} : vector<8x512xf32> to vector<8x384xf32>
    %cst_113 = arith.constant 5.000000e-01 : f32
    %291 = vector.broadcast %cst_113 : f32 to vector<8x384xf32>
    %292 = arith.mulf %291, %290 : vector<8x384xf32>
    %293 = math.tanh %292 : vector<8x384xf32>
    %cst_114 = arith.constant 5.000000e-01 : f32
    %294 = vector.broadcast %cst_114 : f32 to vector<8x384xf32>
    %295 = arith.mulf %294, %293 : vector<8x384xf32>
    %cst_115 = arith.constant 5.000000e-01 : f32
    %296 = vector.broadcast %cst_115 : f32 to vector<8x384xf32>
    %297 = arith.addf %295, %296 : vector<8x384xf32>
    %298 = vector.extract_strided_slice %297 {offsets = [0, 0], sizes = [8, 128], strides = [1, 1]} : vector<8x384xf32> to vector<8x128xf32>
    %299 = vector.extract_strided_slice %297 {offsets = [0, 128], sizes = [8, 128], strides = [1, 1]} : vector<8x384xf32> to vector<8x128xf32>
    %300 = vector.extract_strided_slice %297 {offsets = [0, 256], sizes = [8, 128], strides = [1, 1]} : vector<8x384xf32> to vector<8x128xf32>
    %301 = vector.extract_strided_slice %289 {offsets = [0, 384], sizes = [8, 128], strides = [1, 1]} : vector<8x512xf32> to vector<8x128xf32>
    %302 = math.tanh %301 : vector<8x128xf32>
    %303 = arith.mulf %299, %232 : vector<8x128xf32>
    %304 = arith.mulf %298, %302 : vector<8x128xf32>
    %305 = arith.addf %303, %304 : vector<8x128xf32>
    %306 = math.tanh %305 : vector<8x128xf32>
    %307 = arith.mulf %300, %306 : vector<8x128xf32>
    %308 = arith.truncf %307 : vector<8x128xf32> to vector<8x128xbf16>
    %c40 = arith.constant 40 : index
    %c0_116 = arith.constant 0 : index
    %309 = vector.load %arg13[%c40, %c0_116] : memref<64x512xf32, #tpu.memory_space<vmem>>, vector<8x512xf32>
    %c0_117 = arith.constant 0 : index
    %c0_118 = arith.constant 0 : index
    %310 = vector.load %arg2[%c0_117, %c0_118] : memref<128x512xbf16, #tpu.memory_space<vmem>>, vector<128x512xbf16>
    %cst_119 = arith.constant dense<0.000000e+00> : vector<8x512xf32>
    %311 = tpu.matmul %258, %310, %cst_119 {dimension_numbers = #tpu.dot_dimension_numbers<[1], [0], [0], [1], [0, 0, 1, 1], [], []>} : vector<8x128xbf16>, vector<128x512xbf16>, vector<8x512xf32> -> vector<8x512xf32>
    %312 = arith.addf %309, %311 : vector<8x512xf32>
    %313 = vector.extract_strided_slice %312 {offsets = [0, 0], sizes = [8, 384], strides = [1, 1]} : vector<8x512xf32> to vector<8x384xf32>
    %cst_120 = arith.constant 5.000000e-01 : f32
    %314 = vector.broadcast %cst_120 : f32 to vector<8x384xf32>
    %315 = arith.mulf %314, %313 : vector<8x384xf32>
    %316 = math.tanh %315 : vector<8x384xf32>
    %cst_121 = arith.constant 5.000000e-01 : f32
    %317 = vector.broadcast %cst_121 : f32 to vector<8x384xf32>
    %318 = arith.mulf %317, %316 : vector<8x384xf32>
    %cst_122 = arith.constant 5.000000e-01 : f32
    %319 = vector.broadcast %cst_122 : f32 to vector<8x384xf32>
    %320 = arith.addf %318, %319 : vector<8x384xf32>
    %321 = vector.extract_strided_slice %320 {offsets = [0, 0], sizes = [8, 128], strides = [1, 1]} : vector<8x384xf32> to vector<8x128xf32>
    %322 = vector.extract_strided_slice %320 {offsets = [0, 128], sizes = [8, 128], strides = [1, 1]} : vector<8x384xf32> to vector<8x128xf32>
    %323 = vector.extract_strided_slice %320 {offsets = [0, 256], sizes = [8, 128], strides = [1, 1]} : vector<8x384xf32> to vector<8x128xf32>
    %324 = vector.extract_strided_slice %312 {offsets = [0, 384], sizes = [8, 128], strides = [1, 1]} : vector<8x512xf32> to vector<8x128xf32>
    %325 = math.tanh %324 : vector<8x128xf32>
    %326 = arith.mulf %322, %255 : vector<8x128xf32>
    %327 = arith.mulf %321, %325 : vector<8x128xf32>
    %328 = arith.addf %326, %327 : vector<8x128xf32>
    %329 = math.tanh %328 : vector<8x128xf32>
    %330 = arith.mulf %323, %329 : vector<8x128xf32>
    %331 = arith.truncf %330 : vector<8x128xf32> to vector<8x128xbf16>
    %c0_123 = arith.constant 0 : index
    %c0_124 = arith.constant 0 : index
    %332 = vector.load %arg4[%c0_123, %c0_124] : memref<128x512xbf16, #tpu.memory_space<vmem>>, vector<128x512xbf16>
    %cst_125 = arith.constant dense<0.000000e+00> : vector<8x512xf32>
    %333 = tpu.matmul %258, %332, %cst_125 {dimension_numbers = #tpu.dot_dimension_numbers<[1], [0], [0], [1], [0, 0, 1, 1], [], []>} : vector<8x128xbf16>, vector<128x512xbf16>, vector<8x512xf32> -> vector<8x512xf32>
    %c0_126 = arith.constant 0 : index
    %c0_127 = arith.constant 0 : index
    %334 = vector.load %arg5[%c0_126, %c0_127] : memref<128x512xbf16, #tpu.memory_space<vmem>>, vector<128x512xbf16>
    %cst_128 = arith.constant dense<0.000000e+00> : vector<8x512xf32>
    %335 = tpu.matmul %283, %334, %cst_128 {dimension_numbers = #tpu.dot_dimension_numbers<[1], [0], [0], [1], [0, 0, 1, 1], [], []>} : vector<8x128xbf16>, vector<128x512xbf16>, vector<8x512xf32> -> vector<8x512xf32>
    %336 = arith.addf %333, %335 : vector<8x512xf32>
    %337 = arith.addf %336, %9 : vector<8x512xf32>
    %338 = vector.extract_strided_slice %337 {offsets = [0, 0], sizes = [8, 384], strides = [1, 1]} : vector<8x512xf32> to vector<8x384xf32>
    %cst_129 = arith.constant 5.000000e-01 : f32
    %339 = vector.broadcast %cst_129 : f32 to vector<8x384xf32>
    %340 = arith.mulf %339, %338 : vector<8x384xf32>
    %341 = math.tanh %340 : vector<8x384xf32>
    %cst_130 = arith.constant 5.000000e-01 : f32
    %342 = vector.broadcast %cst_130 : f32 to vector<8x384xf32>
    %343 = arith.mulf %342, %341 : vector<8x384xf32>
    %cst_131 = arith.constant 5.000000e-01 : f32
    %344 = vector.broadcast %cst_131 : f32 to vector<8x384xf32>
    %345 = arith.addf %343, %344 : vector<8x384xf32>
    %346 = vector.extract_strided_slice %345 {offsets = [0, 0], sizes = [8, 128], strides = [1, 1]} : vector<8x384xf32> to vector<8x128xf32>
    %347 = vector.extract_strided_slice %345 {offsets = [0, 128], sizes = [8, 128], strides = [1, 1]} : vector<8x384xf32> to vector<8x128xf32>
    %348 = vector.extract_strided_slice %345 {offsets = [0, 256], sizes = [8, 128], strides = [1, 1]} : vector<8x384xf32> to vector<8x128xf32>
    %349 = vector.extract_strided_slice %337 {offsets = [0, 384], sizes = [8, 128], strides = [1, 1]} : vector<8x512xf32> to vector<8x128xf32>
    %350 = math.tanh %349 : vector<8x128xf32>
    %351 = arith.mulf %347, %280 : vector<8x128xf32>
    %352 = arith.mulf %346, %350 : vector<8x128xf32>
    %353 = arith.addf %351, %352 : vector<8x128xf32>
    %354 = math.tanh %353 : vector<8x128xf32>
    %355 = arith.mulf %348, %354 : vector<8x128xf32>
    %356 = arith.truncf %355 : vector<8x128xf32> to vector<8x128xbf16>
    %c0_132 = arith.constant 0 : index
    %c0_133 = arith.constant 0 : index
    %357 = vector.load %arg7[%c0_132, %c0_133] : memref<128x512xbf16, #tpu.memory_space<vmem>>, vector<128x512xbf16>
    %cst_134 = arith.constant dense<0.000000e+00> : vector<8x512xf32>
    %358 = tpu.matmul %283, %357, %cst_134 {dimension_numbers = #tpu.dot_dimension_numbers<[1], [0], [0], [1], [0, 0, 1, 1], [], []>} : vector<8x128xbf16>, vector<128x512xbf16>, vector<8x512xf32> -> vector<8x512xf32>
    %c0_135 = arith.constant 0 : index
    %c0_136 = arith.constant 0 : index
    %359 = vector.load %arg8[%c0_135, %c0_136] : memref<128x512xbf16, #tpu.memory_space<vmem>>, vector<128x512xbf16>
    %cst_137 = arith.constant dense<0.000000e+00> : vector<8x512xf32>
    %360 = tpu.matmul %308, %359, %cst_137 {dimension_numbers = #tpu.dot_dimension_numbers<[1], [0], [0], [1], [0, 0, 1, 1], [], []>} : vector<8x128xbf16>, vector<128x512xbf16>, vector<8x512xf32> -> vector<8x512xf32>
    %361 = arith.addf %358, %360 : vector<8x512xf32>
    %362 = arith.addf %361, %12 : vector<8x512xf32>
    %363 = vector.extract_strided_slice %362 {offsets = [0, 0], sizes = [8, 384], strides = [1, 1]} : vector<8x512xf32> to vector<8x384xf32>
    %cst_138 = arith.constant 5.000000e-01 : f32
    %364 = vector.broadcast %cst_138 : f32 to vector<8x384xf32>
    %365 = arith.mulf %364, %363 : vector<8x384xf32>
    %366 = math.tanh %365 : vector<8x384xf32>
    %cst_139 = arith.constant 5.000000e-01 : f32
    %367 = vector.broadcast %cst_139 : f32 to vector<8x384xf32>
    %368 = arith.mulf %367, %366 : vector<8x384xf32>
    %cst_140 = arith.constant 5.000000e-01 : f32
    %369 = vector.broadcast %cst_140 : f32 to vector<8x384xf32>
    %370 = arith.addf %368, %369 : vector<8x384xf32>
    %371 = vector.extract_strided_slice %370 {offsets = [0, 0], sizes = [8, 128], strides = [1, 1]} : vector<8x384xf32> to vector<8x128xf32>
    %372 = vector.extract_strided_slice %370 {offsets = [0, 128], sizes = [8, 128], strides = [1, 1]} : vector<8x384xf32> to vector<8x128xf32>
    %373 = vector.extract_strided_slice %370 {offsets = [0, 256], sizes = [8, 128], strides = [1, 1]} : vector<8x384xf32> to vector<8x128xf32>
    %374 = vector.extract_strided_slice %362 {offsets = [0, 384], sizes = [8, 128], strides = [1, 1]} : vector<8x512xf32> to vector<8x128xf32>
    %375 = math.tanh %374 : vector<8x128xf32>
    %376 = arith.mulf %372, %305 : vector<8x128xf32>
    %377 = arith.mulf %371, %375 : vector<8x128xf32>
    %378 = arith.addf %376, %377 : vector<8x128xf32>
    %379 = math.tanh %378 : vector<8x128xf32>
    %380 = arith.mulf %373, %379 : vector<8x128xf32>
    %381 = arith.truncf %380 : vector<8x128xf32> to vector<8x128xbf16>
    %c48 = arith.constant 48 : index
    %c0_141 = arith.constant 0 : index
    %382 = vector.load %arg13[%c48, %c0_141] : memref<64x512xf32, #tpu.memory_space<vmem>>, vector<8x512xf32>
    %c0_142 = arith.constant 0 : index
    %c0_143 = arith.constant 0 : index
    %383 = vector.load %arg2[%c0_142, %c0_143] : memref<128x512xbf16, #tpu.memory_space<vmem>>, vector<128x512xbf16>
    %cst_144 = arith.constant dense<0.000000e+00> : vector<8x512xf32>
    %384 = tpu.matmul %331, %383, %cst_144 {dimension_numbers = #tpu.dot_dimension_numbers<[1], [0], [0], [1], [0, 0, 1, 1], [], []>} : vector<8x128xbf16>, vector<128x512xbf16>, vector<8x512xf32> -> vector<8x512xf32>
    %385 = arith.addf %382, %384 : vector<8x512xf32>
    %386 = vector.extract_strided_slice %385 {offsets = [0, 0], sizes = [8, 384], strides = [1, 1]} : vector<8x512xf32> to vector<8x384xf32>
    %cst_145 = arith.constant 5.000000e-01 : f32
    %387 = vector.broadcast %cst_145 : f32 to vector<8x384xf32>
    %388 = arith.mulf %387, %386 : vector<8x384xf32>
    %389 = math.tanh %388 : vector<8x384xf32>
    %cst_146 = arith.constant 5.000000e-01 : f32
    %390 = vector.broadcast %cst_146 : f32 to vector<8x384xf32>
    %391 = arith.mulf %390, %389 : vector<8x384xf32>
    %cst_147 = arith.constant 5.000000e-01 : f32
    %392 = vector.broadcast %cst_147 : f32 to vector<8x384xf32>
    %393 = arith.addf %391, %392 : vector<8x384xf32>
    %394 = vector.extract_strided_slice %393 {offsets = [0, 0], sizes = [8, 128], strides = [1, 1]} : vector<8x384xf32> to vector<8x128xf32>
    %395 = vector.extract_strided_slice %393 {offsets = [0, 128], sizes = [8, 128], strides = [1, 1]} : vector<8x384xf32> to vector<8x128xf32>
    %396 = vector.extract_strided_slice %393 {offsets = [0, 256], sizes = [8, 128], strides = [1, 1]} : vector<8x384xf32> to vector<8x128xf32>
    %397 = vector.extract_strided_slice %385 {offsets = [0, 384], sizes = [8, 128], strides = [1, 1]} : vector<8x512xf32> to vector<8x128xf32>
    %398 = math.tanh %397 : vector<8x128xf32>
    %399 = arith.mulf %395, %328 : vector<8x128xf32>
    %400 = arith.mulf %394, %398 : vector<8x128xf32>
    %401 = arith.addf %399, %400 : vector<8x128xf32>
    %402 = math.tanh %401 : vector<8x128xf32>
    %403 = arith.mulf %396, %402 : vector<8x128xf32>
    %404 = arith.truncf %403 : vector<8x128xf32> to vector<8x128xbf16>
    %c0_148 = arith.constant 0 : index
    %c0_149 = arith.constant 0 : index
    %405 = vector.load %arg4[%c0_148, %c0_149] : memref<128x512xbf16, #tpu.memory_space<vmem>>, vector<128x512xbf16>
    %cst_150 = arith.constant dense<0.000000e+00> : vector<8x512xf32>
    %406 = tpu.matmul %331, %405, %cst_150 {dimension_numbers = #tpu.dot_dimension_numbers<[1], [0], [0], [1], [0, 0, 1, 1], [], []>} : vector<8x128xbf16>, vector<128x512xbf16>, vector<8x512xf32> -> vector<8x512xf32>
    %c0_151 = arith.constant 0 : index
    %c0_152 = arith.constant 0 : index
    %407 = vector.load %arg5[%c0_151, %c0_152] : memref<128x512xbf16, #tpu.memory_space<vmem>>, vector<128x512xbf16>
    %cst_153 = arith.constant dense<0.000000e+00> : vector<8x512xf32>
    %408 = tpu.matmul %356, %407, %cst_153 {dimension_numbers = #tpu.dot_dimension_numbers<[1], [0], [0], [1], [0, 0, 1, 1], [], []>} : vector<8x128xbf16>, vector<128x512xbf16>, vector<8x512xf32> -> vector<8x512xf32>
    %409 = arith.addf %406, %408 : vector<8x512xf32>
    %410 = arith.addf %409, %9 : vector<8x512xf32>
    %411 = vector.extract_strided_slice %410 {offsets = [0, 0], sizes = [8, 384], strides = [1, 1]} : vector<8x512xf32> to vector<8x384xf32>
    %cst_154 = arith.constant 5.000000e-01 : f32
    %412 = vector.broadcast %cst_154 : f32 to vector<8x384xf32>
    %413 = arith.mulf %412, %411 : vector<8x384xf32>
    %414 = math.tanh %413 : vector<8x384xf32>
    %cst_155 = arith.constant 5.000000e-01 : f32
    %415 = vector.broadcast %cst_155 : f32 to vector<8x384xf32>
    %416 = arith.mulf %415, %414 : vector<8x384xf32>
    %cst_156 = arith.constant 5.000000e-01 : f32
    %417 = vector.broadcast %cst_156 : f32 to vector<8x384xf32>
    %418 = arith.addf %416, %417 : vector<8x384xf32>
    %419 = vector.extract_strided_slice %418 {offsets = [0, 0], sizes = [8, 128], strides = [1, 1]} : vector<8x384xf32> to vector<8x128xf32>
    %420 = vector.extract_strided_slice %418 {offsets = [0, 128], sizes = [8, 128], strides = [1, 1]} : vector<8x384xf32> to vector<8x128xf32>
    %421 = vector.extract_strided_slice %418 {offsets = [0, 256], sizes = [8, 128], strides = [1, 1]} : vector<8x384xf32> to vector<8x128xf32>
    %422 = vector.extract_strided_slice %410 {offsets = [0, 384], sizes = [8, 128], strides = [1, 1]} : vector<8x512xf32> to vector<8x128xf32>
    %423 = math.tanh %422 : vector<8x128xf32>
    %424 = arith.mulf %420, %353 : vector<8x128xf32>
    %425 = arith.mulf %419, %423 : vector<8x128xf32>
    %426 = arith.addf %424, %425 : vector<8x128xf32>
    %427 = math.tanh %426 : vector<8x128xf32>
    %428 = arith.mulf %421, %427 : vector<8x128xf32>
    %429 = arith.truncf %428 : vector<8x128xf32> to vector<8x128xbf16>
    %c0_157 = arith.constant 0 : index
    %c0_158 = arith.constant 0 : index
    %430 = vector.load %arg7[%c0_157, %c0_158] : memref<128x512xbf16, #tpu.memory_space<vmem>>, vector<128x512xbf16>
    %cst_159 = arith.constant dense<0.000000e+00> : vector<8x512xf32>
    %431 = tpu.matmul %356, %430, %cst_159 {dimension_numbers = #tpu.dot_dimension_numbers<[1], [0], [0], [1], [0, 0, 1, 1], [], []>} : vector<8x128xbf16>, vector<128x512xbf16>, vector<8x512xf32> -> vector<8x512xf32>
    %c0_160 = arith.constant 0 : index
    %c0_161 = arith.constant 0 : index
    %432 = vector.load %arg8[%c0_160, %c0_161] : memref<128x512xbf16, #tpu.memory_space<vmem>>, vector<128x512xbf16>
    %cst_162 = arith.constant dense<0.000000e+00> : vector<8x512xf32>
    %433 = tpu.matmul %381, %432, %cst_162 {dimension_numbers = #tpu.dot_dimension_numbers<[1], [0], [0], [1], [0, 0, 1, 1], [], []>} : vector<8x128xbf16>, vector<128x512xbf16>, vector<8x512xf32> -> vector<8x512xf32>
    %434 = arith.addf %431, %433 : vector<8x512xf32>
    %435 = arith.addf %434, %12 : vector<8x512xf32>
    %436 = vector.extract_strided_slice %435 {offsets = [0, 0], sizes = [8, 384], strides = [1, 1]} : vector<8x512xf32> to vector<8x384xf32>
    %cst_163 = arith.constant 5.000000e-01 : f32
    %437 = vector.broadcast %cst_163 : f32 to vector<8x384xf32>
    %438 = arith.mulf %437, %436 : vector<8x384xf32>
    %439 = math.tanh %438 : vector<8x384xf32>
    %cst_164 = arith.constant 5.000000e-01 : f32
    %440 = vector.broadcast %cst_164 : f32 to vector<8x384xf32>
    %441 = arith.mulf %440, %439 : vector<8x384xf32>
    %cst_165 = arith.constant 5.000000e-01 : f32
    %442 = vector.broadcast %cst_165 : f32 to vector<8x384xf32>
    %443 = arith.addf %441, %442 : vector<8x384xf32>
    %444 = vector.extract_strided_slice %443 {offsets = [0, 0], sizes = [8, 128], strides = [1, 1]} : vector<8x384xf32> to vector<8x128xf32>
    %445 = vector.extract_strided_slice %443 {offsets = [0, 128], sizes = [8, 128], strides = [1, 1]} : vector<8x384xf32> to vector<8x128xf32>
    %446 = vector.extract_strided_slice %443 {offsets = [0, 256], sizes = [8, 128], strides = [1, 1]} : vector<8x384xf32> to vector<8x128xf32>
    %447 = vector.extract_strided_slice %435 {offsets = [0, 384], sizes = [8, 128], strides = [1, 1]} : vector<8x512xf32> to vector<8x128xf32>
    %448 = math.tanh %447 : vector<8x128xf32>
    %449 = arith.mulf %445, %378 : vector<8x128xf32>
    %450 = arith.mulf %444, %448 : vector<8x128xf32>
    %451 = arith.addf %449, %450 : vector<8x128xf32>
    %452 = math.tanh %451 : vector<8x128xf32>
    %453 = arith.mulf %446, %452 : vector<8x128xf32>
    %454 = arith.truncf %453 : vector<8x128xf32> to vector<8x128xbf16>
    %c56 = arith.constant 56 : index
    %c0_166 = arith.constant 0 : index
    %455 = vector.load %arg13[%c56, %c0_166] : memref<64x512xf32, #tpu.memory_space<vmem>>, vector<8x512xf32>
    %c0_167 = arith.constant 0 : index
    %c0_168 = arith.constant 0 : index
    %456 = vector.load %arg2[%c0_167, %c0_168] : memref<128x512xbf16, #tpu.memory_space<vmem>>, vector<128x512xbf16>
    %cst_169 = arith.constant dense<0.000000e+00> : vector<8x512xf32>
    %457 = tpu.matmul %404, %456, %cst_169 {dimension_numbers = #tpu.dot_dimension_numbers<[1], [0], [0], [1], [0, 0, 1, 1], [], []>} : vector<8x128xbf16>, vector<128x512xbf16>, vector<8x512xf32> -> vector<8x512xf32>
    %458 = arith.addf %455, %457 : vector<8x512xf32>
    %459 = vector.extract_strided_slice %458 {offsets = [0, 0], sizes = [8, 384], strides = [1, 1]} : vector<8x512xf32> to vector<8x384xf32>
    %cst_170 = arith.constant 5.000000e-01 : f32
    %460 = vector.broadcast %cst_170 : f32 to vector<8x384xf32>
    %461 = arith.mulf %460, %459 : vector<8x384xf32>
    %462 = math.tanh %461 : vector<8x384xf32>
    %cst_171 = arith.constant 5.000000e-01 : f32
    %463 = vector.broadcast %cst_171 : f32 to vector<8x384xf32>
    %464 = arith.mulf %463, %462 : vector<8x384xf32>
    %cst_172 = arith.constant 5.000000e-01 : f32
    %465 = vector.broadcast %cst_172 : f32 to vector<8x384xf32>
    %466 = arith.addf %464, %465 : vector<8x384xf32>
    %467 = vector.extract_strided_slice %466 {offsets = [0, 0], sizes = [8, 128], strides = [1, 1]} : vector<8x384xf32> to vector<8x128xf32>
    %468 = vector.extract_strided_slice %466 {offsets = [0, 128], sizes = [8, 128], strides = [1, 1]} : vector<8x384xf32> to vector<8x128xf32>
    %469 = vector.extract_strided_slice %466 {offsets = [0, 256], sizes = [8, 128], strides = [1, 1]} : vector<8x384xf32> to vector<8x128xf32>
    %470 = vector.extract_strided_slice %458 {offsets = [0, 384], sizes = [8, 128], strides = [1, 1]} : vector<8x512xf32> to vector<8x128xf32>
    %471 = math.tanh %470 : vector<8x128xf32>
    %472 = arith.mulf %468, %401 : vector<8x128xf32>
    %473 = arith.mulf %467, %471 : vector<8x128xf32>
    %474 = arith.addf %472, %473 : vector<8x128xf32>
    %475 = math.tanh %474 : vector<8x128xf32>
    %476 = arith.mulf %469, %475 : vector<8x128xf32>
    %477 = arith.truncf %476 : vector<8x128xf32> to vector<8x128xbf16>
    %c0_173 = arith.constant 0 : index
    %c0_174 = arith.constant 0 : index
    %478 = vector.load %arg4[%c0_173, %c0_174] : memref<128x512xbf16, #tpu.memory_space<vmem>>, vector<128x512xbf16>
    %cst_175 = arith.constant dense<0.000000e+00> : vector<8x512xf32>
    %479 = tpu.matmul %404, %478, %cst_175 {dimension_numbers = #tpu.dot_dimension_numbers<[1], [0], [0], [1], [0, 0, 1, 1], [], []>} : vector<8x128xbf16>, vector<128x512xbf16>, vector<8x512xf32> -> vector<8x512xf32>
    %c0_176 = arith.constant 0 : index
    %c0_177 = arith.constant 0 : index
    %480 = vector.load %arg5[%c0_176, %c0_177] : memref<128x512xbf16, #tpu.memory_space<vmem>>, vector<128x512xbf16>
    %cst_178 = arith.constant dense<0.000000e+00> : vector<8x512xf32>
    %481 = tpu.matmul %429, %480, %cst_178 {dimension_numbers = #tpu.dot_dimension_numbers<[1], [0], [0], [1], [0, 0, 1, 1], [], []>} : vector<8x128xbf16>, vector<128x512xbf16>, vector<8x512xf32> -> vector<8x512xf32>
    %482 = arith.addf %479, %481 : vector<8x512xf32>
    %483 = arith.addf %482, %9 : vector<8x512xf32>
    %484 = vector.extract_strided_slice %483 {offsets = [0, 0], sizes = [8, 384], strides = [1, 1]} : vector<8x512xf32> to vector<8x384xf32>
    %cst_179 = arith.constant 5.000000e-01 : f32
    %485 = vector.broadcast %cst_179 : f32 to vector<8x384xf32>
    %486 = arith.mulf %485, %484 : vector<8x384xf32>
    %487 = math.tanh %486 : vector<8x384xf32>
    %cst_180 = arith.constant 5.000000e-01 : f32
    %488 = vector.broadcast %cst_180 : f32 to vector<8x384xf32>
    %489 = arith.mulf %488, %487 : vector<8x384xf32>
    %cst_181 = arith.constant 5.000000e-01 : f32
    %490 = vector.broadcast %cst_181 : f32 to vector<8x384xf32>
    %491 = arith.addf %489, %490 : vector<8x384xf32>
    %492 = vector.extract_strided_slice %491 {offsets = [0, 0], sizes = [8, 128], strides = [1, 1]} : vector<8x384xf32> to vector<8x128xf32>
    %493 = vector.extract_strided_slice %491 {offsets = [0, 128], sizes = [8, 128], strides = [1, 1]} : vector<8x384xf32> to vector<8x128xf32>
    %494 = vector.extract_strided_slice %491 {offsets = [0, 256], sizes = [8, 128], strides = [1, 1]} : vector<8x384xf32> to vector<8x128xf32>
    %495 = vector.extract_strided_slice %483 {offsets = [0, 384], sizes = [8, 128], strides = [1, 1]} : vector<8x512xf32> to vector<8x128xf32>
    %496 = math.tanh %495 : vector<8x128xf32>
    %497 = arith.mulf %493, %426 : vector<8x128xf32>
    %498 = arith.mulf %492, %496 : vector<8x128xf32>
    %499 = arith.addf %497, %498 : vector<8x128xf32>
    %500 = math.tanh %499 : vector<8x128xf32>
    %501 = arith.mulf %494, %500 : vector<8x128xf32>
    %502 = arith.truncf %501 : vector<8x128xf32> to vector<8x128xbf16>
    %c0_182 = arith.constant 0 : index
    %c0_183 = arith.constant 0 : index
    %503 = vector.load %arg7[%c0_182, %c0_183] : memref<128x512xbf16, #tpu.memory_space<vmem>>, vector<128x512xbf16>
    %cst_184 = arith.constant dense<0.000000e+00> : vector<8x512xf32>
    %504 = tpu.matmul %429, %503, %cst_184 {dimension_numbers = #tpu.dot_dimension_numbers<[1], [0], [0], [1], [0, 0, 1, 1], [], []>} : vector<8x128xbf16>, vector<128x512xbf16>, vector<8x512xf32> -> vector<8x512xf32>
    %c0_185 = arith.constant 0 : index
    %c0_186 = arith.constant 0 : index
    %505 = vector.load %arg8[%c0_185, %c0_186] : memref<128x512xbf16, #tpu.memory_space<vmem>>, vector<128x512xbf16>
    %cst_187 = arith.constant dense<0.000000e+00> : vector<8x512xf32>
    %506 = tpu.matmul %454, %505, %cst_187 {dimension_numbers = #tpu.dot_dimension_numbers<[1], [0], [0], [1], [0, 0, 1, 1], [], []>} : vector<8x128xbf16>, vector<128x512xbf16>, vector<8x512xf32> -> vector<8x512xf32>
    %507 = arith.addf %504, %506 : vector<8x512xf32>
    %508 = arith.addf %507, %12 : vector<8x512xf32>
    %509 = vector.extract_strided_slice %508 {offsets = [0, 0], sizes = [8, 384], strides = [1, 1]} : vector<8x512xf32> to vector<8x384xf32>
    %cst_188 = arith.constant 5.000000e-01 : f32
    %510 = vector.broadcast %cst_188 : f32 to vector<8x384xf32>
    %511 = arith.mulf %510, %509 : vector<8x384xf32>
    %512 = math.tanh %511 : vector<8x384xf32>
    %cst_189 = arith.constant 5.000000e-01 : f32
    %513 = vector.broadcast %cst_189 : f32 to vector<8x384xf32>
    %514 = arith.mulf %513, %512 : vector<8x384xf32>
    %cst_190 = arith.constant 5.000000e-01 : f32
    %515 = vector.broadcast %cst_190 : f32 to vector<8x384xf32>
    %516 = arith.addf %514, %515 : vector<8x384xf32>
    %517 = vector.extract_strided_slice %516 {offsets = [0, 0], sizes = [8, 128], strides = [1, 1]} : vector<8x384xf32> to vector<8x128xf32>
    %518 = vector.extract_strided_slice %516 {offsets = [0, 128], sizes = [8, 128], strides = [1, 1]} : vector<8x384xf32> to vector<8x128xf32>
    %519 = vector.extract_strided_slice %516 {offsets = [0, 256], sizes = [8, 128], strides = [1, 1]} : vector<8x384xf32> to vector<8x128xf32>
    %520 = vector.extract_strided_slice %508 {offsets = [0, 384], sizes = [8, 128], strides = [1, 1]} : vector<8x512xf32> to vector<8x128xf32>
    %521 = math.tanh %520 : vector<8x128xf32>
    %522 = arith.mulf %518, %451 : vector<8x128xf32>
    %523 = arith.mulf %517, %521 : vector<8x128xf32>
    %524 = arith.addf %522, %523 : vector<8x128xf32>
    %525 = math.tanh %524 : vector<8x128xf32>
    %526 = arith.mulf %519, %525 : vector<8x128xf32>
    %527 = arith.truncf %526 : vector<8x128xf32> to vector<8x128xbf16>
    %c0_191 = arith.constant 0 : index
    %c0_192 = arith.constant 0 : index
    %528 = vector.load %arg4[%c0_191, %c0_192] : memref<128x512xbf16, #tpu.memory_space<vmem>>, vector<128x512xbf16>
    %cst_193 = arith.constant dense<0.000000e+00> : vector<8x512xf32>
    %529 = tpu.matmul %477, %528, %cst_193 {dimension_numbers = #tpu.dot_dimension_numbers<[1], [0], [0], [1], [0, 0, 1, 1], [], []>} : vector<8x128xbf16>, vector<128x512xbf16>, vector<8x512xf32> -> vector<8x512xf32>
    %c0_194 = arith.constant 0 : index
    %c0_195 = arith.constant 0 : index
    %530 = vector.load %arg5[%c0_194, %c0_195] : memref<128x512xbf16, #tpu.memory_space<vmem>>, vector<128x512xbf16>
    %cst_196 = arith.constant dense<0.000000e+00> : vector<8x512xf32>
    %531 = tpu.matmul %502, %530, %cst_196 {dimension_numbers = #tpu.dot_dimension_numbers<[1], [0], [0], [1], [0, 0, 1, 1], [], []>} : vector<8x128xbf16>, vector<128x512xbf16>, vector<8x512xf32> -> vector<8x512xf32>
    %532 = arith.addf %529, %531 : vector<8x512xf32>
    %533 = arith.addf %532, %9 : vector<8x512xf32>
    %534 = vector.extract_strided_slice %533 {offsets = [0, 0], sizes = [8, 384], strides = [1, 1]} : vector<8x512xf32> to vector<8x384xf32>
    %cst_197 = arith.constant 5.000000e-01 : f32
    %535 = vector.broadcast %cst_197 : f32 to vector<8x384xf32>
    %536 = arith.mulf %535, %534 : vector<8x384xf32>
    %537 = math.tanh %536 : vector<8x384xf32>
    %cst_198 = arith.constant 5.000000e-01 : f32
    %538 = vector.broadcast %cst_198 : f32 to vector<8x384xf32>
    %539 = arith.mulf %538, %537 : vector<8x384xf32>
    %cst_199 = arith.constant 5.000000e-01 : f32
    %540 = vector.broadcast %cst_199 : f32 to vector<8x384xf32>
    %541 = arith.addf %539, %540 : vector<8x384xf32>
    %542 = vector.extract_strided_slice %541 {offsets = [0, 0], sizes = [8, 128], strides = [1, 1]} : vector<8x384xf32> to vector<8x128xf32>
    %543 = vector.extract_strided_slice %541 {offsets = [0, 128], sizes = [8, 128], strides = [1, 1]} : vector<8x384xf32> to vector<8x128xf32>
    %544 = vector.extract_strided_slice %541 {offsets = [0, 256], sizes = [8, 128], strides = [1, 1]} : vector<8x384xf32> to vector<8x128xf32>
    %545 = vector.extract_strided_slice %533 {offsets = [0, 384], sizes = [8, 128], strides = [1, 1]} : vector<8x512xf32> to vector<8x128xf32>
    %546 = math.tanh %545 : vector<8x128xf32>
    %547 = arith.mulf %543, %499 : vector<8x128xf32>
    %548 = arith.mulf %542, %546 : vector<8x128xf32>
    %549 = arith.addf %547, %548 : vector<8x128xf32>
    %550 = math.tanh %549 : vector<8x128xf32>
    %551 = arith.mulf %544, %550 : vector<8x128xf32>
    %552 = arith.truncf %551 : vector<8x128xf32> to vector<8x128xbf16>
    %c0_200 = arith.constant 0 : index
    %c0_201 = arith.constant 0 : index
    %553 = vector.load %arg7[%c0_200, %c0_201] : memref<128x512xbf16, #tpu.memory_space<vmem>>, vector<128x512xbf16>
    %cst_202 = arith.constant dense<0.000000e+00> : vector<8x512xf32>
    %554 = tpu.matmul %502, %553, %cst_202 {dimension_numbers = #tpu.dot_dimension_numbers<[1], [0], [0], [1], [0, 0, 1, 1], [], []>} : vector<8x128xbf16>, vector<128x512xbf16>, vector<8x512xf32> -> vector<8x512xf32>
    %c0_203 = arith.constant 0 : index
    %c0_204 = arith.constant 0 : index
    %555 = vector.load %arg8[%c0_203, %c0_204] : memref<128x512xbf16, #tpu.memory_space<vmem>>, vector<128x512xbf16>
    %cst_205 = arith.constant dense<0.000000e+00> : vector<8x512xf32>
    %556 = tpu.matmul %527, %555, %cst_205 {dimension_numbers = #tpu.dot_dimension_numbers<[1], [0], [0], [1], [0, 0, 1, 1], [], []>} : vector<8x128xbf16>, vector<128x512xbf16>, vector<8x512xf32> -> vector<8x512xf32>
    %557 = arith.addf %554, %556 : vector<8x512xf32>
    %558 = arith.addf %557, %12 : vector<8x512xf32>
    %559 = vector.extract_strided_slice %558 {offsets = [0, 0], sizes = [8, 384], strides = [1, 1]} : vector<8x512xf32> to vector<8x384xf32>
    %cst_206 = arith.constant 5.000000e-01 : f32
    %560 = vector.broadcast %cst_206 : f32 to vector<8x384xf32>
    %561 = arith.mulf %560, %559 : vector<8x384xf32>
    %562 = math.tanh %561 : vector<8x384xf32>
    %cst_207 = arith.constant 5.000000e-01 : f32
    %563 = vector.broadcast %cst_207 : f32 to vector<8x384xf32>
    %564 = arith.mulf %563, %562 : vector<8x384xf32>
    %cst_208 = arith.constant 5.000000e-01 : f32
    %565 = vector.broadcast %cst_208 : f32 to vector<8x384xf32>
    %566 = arith.addf %564, %565 : vector<8x384xf32>
    %567 = vector.extract_strided_slice %566 {offsets = [0, 0], sizes = [8, 128], strides = [1, 1]} : vector<8x384xf32> to vector<8x128xf32>
    %568 = vector.extract_strided_slice %566 {offsets = [0, 128], sizes = [8, 128], strides = [1, 1]} : vector<8x384xf32> to vector<8x128xf32>
    %569 = vector.extract_strided_slice %566 {offsets = [0, 256], sizes = [8, 128], strides = [1, 1]} : vector<8x384xf32> to vector<8x128xf32>
    %570 = vector.extract_strided_slice %558 {offsets = [0, 384], sizes = [8, 128], strides = [1, 1]} : vector<8x512xf32> to vector<8x128xf32>
    %571 = math.tanh %570 : vector<8x128xf32>
    %572 = arith.mulf %568, %524 : vector<8x128xf32>
    %573 = arith.mulf %567, %571 : vector<8x128xf32>
    %574 = arith.addf %572, %573 : vector<8x128xf32>
    %575 = math.tanh %574 : vector<8x128xf32>
    %576 = arith.mulf %569, %575 : vector<8x128xf32>
    %577 = arith.truncf %576 : vector<8x128xf32> to vector<8x128xbf16>
    %c0_209 = arith.constant 0 : index
    %c0_210 = arith.constant 0 : index
    %578 = vector.load %arg7[%c0_209, %c0_210] : memref<128x512xbf16, #tpu.memory_space<vmem>>, vector<128x512xbf16>
    %cst_211 = arith.constant dense<0.000000e+00> : vector<8x512xf32>
    %579 = tpu.matmul %552, %578, %cst_211 {dimension_numbers = #tpu.dot_dimension_numbers<[1], [0], [0], [1], [0, 0, 1, 1], [], []>} : vector<8x128xbf16>, vector<128x512xbf16>, vector<8x512xf32> -> vector<8x512xf32>
    %c0_212 = arith.constant 0 : index
    %c0_213 = arith.constant 0 : index
    %580 = vector.load %arg8[%c0_212, %c0_213] : memref<128x512xbf16, #tpu.memory_space<vmem>>, vector<128x512xbf16>
    %cst_214 = arith.constant dense<0.000000e+00> : vector<8x512xf32>
    %581 = tpu.matmul %577, %580, %cst_214 {dimension_numbers = #tpu.dot_dimension_numbers<[1], [0], [0], [1], [0, 0, 1, 1], [], []>} : vector<8x128xbf16>, vector<128x512xbf16>, vector<8x512xf32> -> vector<8x512xf32>
    %582 = arith.addf %579, %581 : vector<8x512xf32>
    %583 = arith.addf %582, %12 : vector<8x512xf32>
    %584 = vector.extract_strided_slice %583 {offsets = [0, 0], sizes = [8, 384], strides = [1, 1]} : vector<8x512xf32> to vector<8x384xf32>
    %cst_215 = arith.constant 5.000000e-01 : f32
    %585 = vector.broadcast %cst_215 : f32 to vector<8x384xf32>
    %586 = arith.mulf %585, %584 : vector<8x384xf32>
    %587 = math.tanh %586 : vector<8x384xf32>
    %cst_216 = arith.constant 5.000000e-01 : f32
    %588 = vector.broadcast %cst_216 : f32 to vector<8x384xf32>
    %589 = arith.mulf %588, %587 : vector<8x384xf32>
    %cst_217 = arith.constant 5.000000e-01 : f32
    %590 = vector.broadcast %cst_217 : f32 to vector<8x384xf32>
    %591 = arith.addf %589, %590 : vector<8x384xf32>
    %592 = vector.extract_strided_slice %591 {offsets = [0, 0], sizes = [8, 128], strides = [1, 1]} : vector<8x384xf32> to vector<8x128xf32>
    %593 = vector.extract_strided_slice %591 {offsets = [0, 128], sizes = [8, 128], strides = [1, 1]} : vector<8x384xf32> to vector<8x128xf32>
    %594 = vector.extract_strided_slice %591 {offsets = [0, 256], sizes = [8, 128], strides = [1, 1]} : vector<8x384xf32> to vector<8x128xf32>
    %595 = vector.extract_strided_slice %583 {offsets = [0, 384], sizes = [8, 128], strides = [1, 1]} : vector<8x512xf32> to vector<8x128xf32>
    %596 = math.tanh %595 : vector<8x128xf32>
    %597 = arith.mulf %593, %574 : vector<8x128xf32>
    %598 = arith.mulf %592, %596 : vector<8x128xf32>
    %599 = arith.addf %597, %598 : vector<8x128xf32>
    %600 = math.tanh %599 : vector<8x128xf32>
    %601 = arith.mulf %594, %600 : vector<8x128xf32>
    %602 = arith.truncf %601 : vector<8x128xf32> to vector<8x128xbf16>
    %c0_218 = arith.constant 0 : index
    %c0_219 = arith.constant 0 : index
    %603 = vector.load %arg10[%c0_218, %c0_219] : memref<128x128xbf16, #tpu.memory_space<vmem>>, vector<128x128xbf16>
    %cst_220 = arith.constant dense<0.000000e+00> : vector<8x128xf32>
    %604 = tpu.matmul %602, %603, %cst_220 {dimension_numbers = #tpu.dot_dimension_numbers<[1], [0], [0], [1], [0, 0, 1, 1], [], []>} : vector<8x128xbf16>, vector<128x128xbf16>, vector<8x128xf32> -> vector<8x128xf32>
    %c0_221 = arith.constant 0 : index
    %c0_222 = arith.constant 0 : index
    %605 = vector.load %arg11[%c0_221, %c0_222] : memref<1x128xf32, #tpu.memory_space<vmem>>, vector<1x128xf32>
    %606 = vector.broadcast %605 : vector<1x128xf32> to vector<8x128xf32>
    %607 = arith.addf %604, %606 : vector<8x128xf32>
    %c0_223 = arith.constant 0 : index
    %c0_224 = arith.constant 0 : index
    %608 = vector.load %arg12[%c0_223, %c0_224] : memref<8x128xf32, #tpu.memory_space<vmem>>, vector<8x128xf32>
    tpu.vector_store %arg12[%c0_223, %c0_224], %607 {strides = array<i32>} : memref<8x128xf32, #tpu.memory_space<vmem>>, vector<8x128xf32>,
    return
  }
}

</mosaic_0001>

<bundles_post_ra>
// kernel: tpu_custom_call.1
= control target key start
LH: loop header
LB: loop body
LE: loop exit
PB: predicated region body
PF: predicated region fallthrough
CT: control target
= control target key end

     0   :  { %17 = vsyncpa [#allocation4], 0  ;;  %s10046_s0 = inlined_call_operand.vmem [shape: bf16[64,16], index: 0, kind: input, shape index: {}]   ;;  %s10047_s1 = inlined_call_operand.hbm [shape: bf16[16,512], index: 1, kind: input, shape index: {}]   ;;  %s10048_s2 = inlined_call_operand.hbm [shape: bf16[128,512], index: 2, kind: input, shape index: {}]   ;;  %s10049_s3 = inlined_call_operand.vmem [shape: f32[1,512], index: 3, kind: input, shape index: {}]   ;;  %s10050_s4 = inlined_call_operand.hbm [shape: bf16[128,512], index: 4, kind: input, shape index: {}]   ;;  %s10051_s5 = inlined_call_operand.hbm [shape: bf16[128,512], index: 5, kind: input, shape index: {}]   ;;  %s10052_s6 = inlined_call_operand.vmem [shape: f32[1,512], index: 6, kind: input, shape index: {}]   ;;  %s10053_s7 = inlined_call_operand.hbm [shape: bf16[128,512], index: 7, kind: input, shape index: {}]   ;;  %s10054_s8 = inlined_call_operand.hbm [shape: bf16[128,512], index: 8, kind: input, shape index: {}]   ;;  %s10055_s9 = inlined_call_operand.vmem [shape: f32[1,512], index: 9, kind: input, shape index: {}]   ;;  %s10056_s10 = inlined_call_operand.vmem [shape: bf16[128,128], index: 10, kind: input, shape index: {}]   ;;  %s10057_s11 = inlined_call_operand.vmem [shape: f32[1,128], index: 11, kind: input, shape index: {}]   ;;  %s10058_s12 = inlined_call_operand.hbm [shape: f32[8,128], index: 12, kind: output, shape index: {}]  }
   0x1   :  { %18 = vsyncpa [#allocation7], 0 }
   0x2   :  { %19 = vsyncpa [#allocation10], 0 }
   0x3   :  { %20 = vsyncpa [#allocation13], 0 }
   0x4   :  { %21 = vsyncpa [#allocation5], 0  ;;  %s6756_s21 = smov [#allocation6]   ;;  %s6757_s23 = smov [#allocation9]  }
   0x5   :  { %s41_s22 = sshll.u32 %s6756_s21, 4  ;;  %s67_s24 = sshll.u32 %s6757_s23, 4  ;;  %s42_s22 = int_to_ptr.vmem [resolvable:$true] %s41_s22  ;;  %s6833_s24 = int_to_ptr.vmem [resolvable:$true] %s67_s24 }
   0x6   :  { %s6592_s27 = scalar_lea.hbm %s10048_s2, 4096 }
   0x7   :  { %p6593_p0 = scmp.ne.s32.totalorder %s10048_s2, %s6592_s27  ;;  %p6596_p1 = scmp.lt.u32.totalorder %s6592_s27, %s10048_s2 }
   0x9   :  { %p6598_p2 = pnand %p6596_p1, %p6593_p0 }
   0xb   :  { %6601 = shalt.err (!%p6598_p2)
}
   0xc   :  { %s6602_s14 = scalar_lea.vmem %s42_s22, 4096  ;;  %p6607_p4 = scmp.lt.s32.totalorder %s42_s22, %s42_s22 }
   0xd   :  { %p6603_p3 = scmp.ne.s32.totalorder %s42_s22, %s6602_s14  ;;  %p6608_p5 = scmp.lt.s32.totalorder %s6602_s14, %s6602_s14 }
   0xf   :  { %p6609_p6 = por %p6608_p5, %p6607_p4 }
  0x11   :  { %p6610_p7 = pnand %p6609_p6, %p6603_p3 }
  0x13   :  { %6613 = shalt.err (!%p6610_p7)
}
  0x14   :  { %s6758_s15 = smov 256   ;;  %s6759_s16 = smov 16  }
  0x15   :  { %47 = dma.hbm_to_vmem [thread:$0]  %s10048_s2, 4096, %s42_s22, [#allocation7], %s6758_s15, %s6758_s15, %s6759_s16  }
  0x16   :  { %s6614_s21 = scalar_lea.hbm %s10051_s5, 4096 }
  0x17   :  { %p6615_p8 = scmp.ne.s32.totalorder %s10051_s5, %s6614_s21  ;;  %p6618_p9 = scmp.lt.u32.totalorder %s6614_s21, %s10051_s5 }
  0x19   :  { %p6620_p10 = pnand %p6618_p9, %p6615_p8 }
  0x1b   :  { %6623 = shalt.err (!%p6620_p10)
}
  0x1c   :  { %s6624_s28 = scalar_lea.vmem %s6833_s24, 4096  ;;  %p6629_p12 = scmp.lt.s32.totalorder %s6833_s24, %s6833_s24 }
  0x1d   :  { %p6625_p11 = scmp.ne.s32.totalorder %s6833_s24, %s6624_s28  ;;  %p6630_p13 = scmp.lt.s32.totalorder %s6624_s28, %s6624_s28 }
  0x1f   :  { %p6631_p0 = por %p6630_p13, %p6629_p12 }
  0x21   :  { %p6632_p1 = pnand %p6631_p0, %p6625_p11 }
  0x23   :  { %6635 = shalt.err (!%p6632_p1)
}
  0x24   :  { %73 = dma.hbm_to_vmem [thread:$0]  %s10051_s5, 4096, %s6833_s24, [#allocation10], %s6758_s15, %s6758_s15, %s6759_s16  }
  0x25   :  { %s6760_s29 = smov [#allocation3]   ;;  %s6761_s13 = smov [#allocation8]  }
  0x26   :  { %s29_s30 = sshll.u32 %s6760_s29, 4  ;;  %s55_s14 = sshll.u32 %s6761_s13, 4  ;;  %s30_s30 = int_to_ptr.vmem [resolvable:$true] %s29_s30  ;;  %s6870_s14 = int_to_ptr.vmem [resolvable:$true] %s55_s14 }
  0x27   :  { %s6636_s19 = scalar_lea.hbm %s10047_s1, 512 }
  0x28   :  { %p6637_p2 = scmp.ne.s32.totalorder %s10047_s1, %s6636_s19  ;;  %p6640_p3 = scmp.lt.u32.totalorder %s6636_s19, %s10047_s1 }
  0x2a   :  { %p6642_p4 = pnand %p6640_p3, %p6637_p2 }
  0x2c   :  { %6645 = shalt.err (!%p6642_p4)
}
  0x2d   :  { %s6646_s5 = scalar_lea.vmem %s30_s30, 512  ;;  %p6651_p6 = scmp.lt.s32.totalorder %s30_s30, %s30_s30 }
  0x2e   :  { %p6647_p5 = scmp.ne.s32.totalorder %s30_s30, %s6646_s5  ;;  %p6652_p7 = scmp.lt.s32.totalorder %s6646_s5, %s6646_s5 }
  0x30   :  { %p6653_p8 = por %p6652_p7, %p6651_p6 }
  0x32   :  { %p6654_p9 = pnand %p6653_p8, %p6647_p5 }
  0x34   :  { %6657 = shalt.err (!%p6654_p9)
}
  0x35   :  { %35 = dma.hbm_to_vmem [thread:$0]  %s10047_s1, 512, %s30_s30, [#allocation4], %s6758_s15, %s6758_s15, %s6759_s16  }
  0x36   :  { %s6658_s2 = scalar_lea.hbm %s10050_s4, 4096 }
  0x37   :  { %p6659_p10 = scmp.ne.s32.totalorder %s10050_s4, %s6658_s2  ;;  %p6662_p11 = scmp.lt.u32.totalorder %s6658_s2, %s10050_s4 }
  0x39   :  { %p6664_p12 = pnand %p6662_p11, %p6659_p10 }
  0x3b   :  { %6667 = shalt.err (!%p6664_p12)
}
  0x3c   :  { %s6668_s18 = scalar_lea.vmem %s6870_s14, 4096  ;;  %p6673_p0 = scmp.lt.s32.totalorder %s6870_s14, %s6870_s14 }
  0x3d   :  { %p6669_p13 = scmp.ne.s32.totalorder %s6870_s14, %s6668_s18  ;;  %p6674_p1 = scmp.lt.s32.totalorder %s6668_s18, %s6668_s18 }
  0x3f   :  { %p6675_p2 = por %p6674_p1, %p6673_p0 }
  0x41   :  { %p6676_p3 = pnand %p6675_p2, %p6669_p13 }
  0x43   :  { %6679 = shalt.err (!%p6676_p3)
}
  0x44   :  { %61 = dma.hbm_to_vmem [thread:$0]  %s10050_s4, 4096, %s6870_s14, [#allocation7], %s6758_s15, %s6758_s15, %s6759_s16  }
  0x45   :  { %s6762_s19 = smov [#allocation11]   ;;  %s6763_s21 = smov [#allocation12]  }
  0x46   :  { %s81_s20 = sshll.u32 %s6762_s19, 4  ;;  %s93_s23 = sshll.u32 %s6763_s21, 4  ;;  %s82_s20 = int_to_ptr.vmem [resolvable:$true] %s81_s20  ;;  %s6907_s23 = int_to_ptr.vmem [resolvable:$true] %s93_s23 }
  0x47   :  { %s6680_s24 = scalar_lea.hbm %s10053_s7, 4096 }
  0x48   :  { %p6681_p4 = scmp.ne.s32.totalorder %s10053_s7, %s6680_s24  ;;  %p6684_p5 = scmp.lt.u32.totalorder %s6680_s24, %s10053_s7 }
  0x4a   :  { %p6686_p6 = pnand %p6684_p5, %p6681_p4 }
  0x4c   :  { %6689 = shalt.err (!%p6686_p6)
}
  0x4d   :  { %s6690_s4 = scalar_lea.vmem %s82_s20, 4096  ;;  %p6695_p8 = scmp.lt.s32.totalorder %s82_s20, %s82_s20 }
  0x4e   :  { %p6691_p7 = scmp.ne.s32.totalorder %s82_s20, %s6690_s4  ;;  %p6696_p9 = scmp.lt.s32.totalorder %s6690_s4, %s6690_s4 }
  0x50   :  { %p6697_p10 = por %p6696_p9, %p6695_p8 }
  0x52   :  { %p6698_p11 = pnand %p6697_p10, %p6691_p7 }
  0x54   :  { %6701 = shalt.err (!%p6698_p11)
}
  0x55   :  { %87 = dma.hbm_to_vmem [thread:$0]  %s10053_s7, 4096, %s82_s20, [#allocation10], %s6758_s15, %s6758_s15, %s6759_s16  }
  0x56   :  { %s6702_s17 = scalar_lea.hbm %s10054_s8, 4096 }
  0x57   :  { %p6703_p12 = scmp.ne.s32.totalorder %s10054_s8, %s6702_s17  ;;  %p6706_p13 = scmp.lt.u32.totalorder %s6702_s17, %s10054_s8 }
  0x59   :  { %p6708_p0 = pnand %p6706_p13, %p6703_p12 }
  0x5b   :  { %6711 = shalt.err (!%p6708_p0)
}
  0x5c   :  { %s6712_s21 = scalar_lea.vmem %s6907_s23, 4096  ;;  %p6717_p2 = scmp.lt.s32.totalorder %s6907_s23, %s6907_s23 }
  0x5d   :  { %p6713_p1 = scmp.ne.s32.totalorder %s6907_s23, %s6712_s21  ;;  %p6718_p3 = scmp.lt.s32.totalorder %s6712_s21, %s6712_s21 }
  0x5f   :  { %p6719_p4 = por %p6718_p3, %p6717_p2 }
  0x61   :  { %p6720_p5 = pnand %p6719_p4, %p6713_p1 }
  0x63   :  { %6723 = shalt.err (!%p6720_p5)
}
  0x64   :  { %99 = dma.hbm_to_vmem [thread:$0]  %s10054_s8, 4096, %s6907_s23, [#allocation13], %s6758_s15, %s6758_s15, %s6759_s16  }
  0x65   :  { %6746 = dma.done.wait [#allocation4], 512  }
  0x66   :  { %6747 = vsyncadd [#allocation4], 4294966784 }
  0x67   :  { %6748 = dma.done.wait [#allocation7], 8192  }
  0x68   :  { %6749 = vsyncadd [#allocation7], 4294959104 }
  0x69   :  { %6750 = dma.done.wait [#allocation10], 8192  }
  0x6a   :  { %6751 = vsyncadd [#allocation10], 4294959104 }
  0x6b   :  { %6752 = dma.done.wait [#allocation13], 4096  }
  0x6c   :  { %6753 = vsyncadd [#allocation13], 4294963200  ;;  %v10059_v0 = vmov 0   ;;  %v5614_v1 = vld [vmem:[#allocation3 + $0x4] ss:$16 sps:$4 sm:$0xff]   ;;  %vm199_vm0 = vcmask 130048   ;;  %v139_v43 = vlaneseq }
  0x6d   :  { %244 = vmatprep.mubr.bf16.mxu0 %v10059_v0  ;;  %317 = vmatprep.mubr.bf16.mxu1 %v10059_v0  ;;  %v5616_v2 = vld [vmem:[#allocation3 + $0xc] ss:$16 sps:$4 sm:$0xff]   ;;  %v5618_v3 = vld [vmem:[#allocation3] ss:$16 sps:$4 sm:$0xff]   ;;  %v5619_v4 = vld [vmem:[#allocation3 + $0x8] ss:$16 sps:$4 sm:$0xff]  }
  0x6e   :  { %212 = vmatprep.subr.bf16.mxu0 %v5614_v1  ;;  %285 = vmatprep.subr.bf16.mxu1 %v5616_v2  ;;  %v5620_v5 = vld [vmem:[%s10046_s0] sm:$0xff]   ;;  %v6951_v7 = vld [vmem:[#allocation6 + $0xc] ss:$16 sps:$4 sm:$0xff]   ;;  %v6956_v9 = vld [vmem:[#allocation6 + $0x8] ss:$16 sps:$4 sm:$0xff]   ;;  %v140_v44 = vshrl.u32 %v139_v43, 7 }
  0x6f   :  { %213 = vmatpush1.bf16.msra.mxu0 %v5618_v3  ;;  %286 = vmatpush1.bf16.msra.mxu1 %v5619_v4  ;;  %v6949_v6 = vld [vmem:[#allocation6 + $0x4] ss:$16 sps:$4 sm:$0xff]   ;;  %v6953_v8 = vld [vmem:[#allocation6] ss:$16 sps:$4 sm:$0xff]   ;;  %v6964_v11 = vld [vmem:[#allocation6 + $0x2c] ss:$16 sps:$4 sm:$0xff]  }
  0x70   :  { %630 = vmatprep.subr.bf16.mxu0 %v6949_v6  ;;  %v6960_v10 = vld [vmem:[#allocation6 + $0x24] ss:$16 sps:$4 sm:$0xff]   ;;  %671 = vmatprep.subr.bf16.mxu1 %v6951_v7  ;;  %v6966_v12 = vld [vmem:[#allocation6 + $0x20] ss:$16 sps:$4 sm:$0xff]   ;;  %v6968_v13 = vld [vmem:[#allocation6 + $0x28] ss:$16 sps:$4 sm:$0xff]  }
  0x71   :  { %v5633_v14 = vld [vmem:[%s10046_s0 + $0x8] sm:$0xff]   ;;  %v6977_v15 = vld [vmem:[#allocation6 + $0x44] ss:$16 sps:$4 sm:$0xff]   ;;  %v6983_v17 = vld [vmem:[#allocation6 + $0x40] ss:$16 sps:$4 sm:$0xff]   ;;  %v7112_v45 = vsub.s32 2, %v140_v44 }
  0x72   :  { %5396 = vmatmul.mubr.msk.bf16.vlgmr.msra.gmra.mrb[0].mxu0 %vm199_vm0, %v5620_v5  ;;  %5400 = vmatmul.mubr.msk.bf16.vlgmr.msra.gmra.mrb[0].mxu1 %vm199_vm0, %v5620_v5  ;;  %v6980_v16 = vld [vmem:[#allocation6 + $0x4c] ss:$16 sps:$4 sm:$0xff]   ;;  %v6985_v18 = vld [vmem:[#allocation6 + $0x48] ss:$16 sps:$4 sm:$0xff]   ;;  %v6989_v19 = vld [vmem:[#allocation6 + $0x64] ss:$16 sps:$4 sm:$0xff]  }
  0x73   :  { %631 = vmatpush1.bf16.msra.mxu0 %v6953_v8  ;;  %672 = vmatpush1.bf16.msra.mxu1 %v6956_v9  ;;  %v6992_v20 = vld [vmem:[#allocation6 + $0x6c] ss:$16 sps:$4 sm:$0xff]   ;;  %v6996_v21 = vld [vmem:[#allocation6 + $0x60] ss:$16 sps:$4 sm:$0xff]   ;;  %v6999_v22 = vld [vmem:[#allocation6 + $0x68] ss:$16 sps:$4 sm:$0xff]  }
  0x74   :  { %632 = vmatprep.subr.bf16.mxu0 %v6960_v10  ;;  %673 = vmatprep.subr.bf16.mxu1 %v6964_v11  ;;  %v7004_v23 = vld [vmem:[#allocation6 + $0x84] ss:$16 sps:$4 sm:$0xff]   ;;  %v7008_v24 = vld [vmem:[#allocation6 + $0x8c] ss:$16 sps:$4 sm:$0xff]   ;;  %v7014_v26 = vld [vmem:[#allocation6 + $0x80] ss:$16 sps:$4 sm:$0xff]  }
  0x75   :  { %254 = vmatprep.mubr.bf16.mxu0 %v10059_v0  ;;  %327 = vmatprep.mubr.bf16.mxu1 %v10059_v0  ;;  %v5646_v25 = vld [vmem:[%s10046_s0 + $0x10] sm:$0xff]   ;;  %v7018_v27 = vld [vmem:[#allocation6 + $0x88] ss:$16 sps:$4 sm:$0xff]   ;;  %v7023_v29 = vld [vmem:[#allocation6 + $0xac] ss:$16 sps:$4 sm:$0xff]   ;;  %10415 = vst [vmem:[#allocation20_spill] sm:$0xff] %v7112_v45 }
  0x76   :  { %v7020_v28 = vld [vmem:[#allocation6 + $0xa4] ss:$16 sps:$4 sm:$0xff]   ;;  %v7028_v30 = vld [vmem:[#allocation6 + $0xa0] ss:$16 sps:$4 sm:$0xff]   ;;  %v7030_v31 = vld [vmem:[#allocation6 + $0xa8] ss:$16 sps:$4 sm:$0xff]  }
  0x77   :  { %633 = vmatpush1.bf16.msra.mxu0 %v6966_v12  ;;  %674 = vmatpush1.bf16.msra.mxu1 %v6968_v13  ;;  %v5659_v32 = vld [vmem:[%s10046_s0 + $0x18] sm:$0xff]   ;;  %v7038_v33 = vld [vmem:[#allocation6 + $0xc4] ss:$16 sps:$4 sm:$0xff]   ;;  %v7044_v35 = vld [vmem:[#allocation6 + $0xc0] ss:$16 sps:$4 sm:$0xff]   ;;  %v7114_v46 = vsub.s32 3, %v140_v44 }
  0x78   :  { %634 = vmatprep.subr.bf16.mxu0 %v6977_v15  ;;  %675 = vmatprep.subr.bf16.mxu1 %v6980_v16  ;;  %v7042_v34 = vld [vmem:[#allocation6 + $0xcc] ss:$16 sps:$4 sm:$0xff]   ;;  %v7046_v36 = vld [vmem:[#allocation6 + $0xc8] ss:$16 sps:$4 sm:$0xff]   ;;  %v7048_v37 = vld [vmem:[#allocation6 + $0xe4] ss:$16 sps:$4 sm:$0xff]  }
  0x79   :  { %v7051_v38 = vld [vmem:[#allocation6 + $0xec] ss:$16 sps:$4 sm:$0xff]   ;;  %v7056_v39 = vld [vmem:[#allocation6 + $0xe0] ss:$16 sps:$4 sm:$0xff]   ;;  %v7060_v40 = vld [vmem:[#allocation6 + $0xe8] ss:$16 sps:$4 sm:$0xff]  }
  0x7a   :  { %5397 = vmatmul.mubr.msk.bf16.gmra.mrb[4].mxu0 %vm199_vm0, %v5633_v14  ;;  %5401 = vmatmul.mubr.msk.bf16.gmra.mrb[4].mxu1 %vm199_vm0, %v5633_v14  ;;  %v7106_v41 = vld [vmem:[#allocation9 + $0x4] ss:$16 sps:$4 sm:$0xff]   ;;  %v7108_v42 = vld [vmem:[#allocation9 + $0xc] ss:$16 sps:$4 sm:$0xff]   ;;  %v7116_v47 = vsub.s32 0, %v140_v44  ;;  %v7121_v49 = vsub.s32 1, %v140_v44 }
  0x7b   :  { %635 = vmatpush1.bf16.msra.mxu0 %v6983_v17  ;;  %264 = vmatprep.mubr.bf16.mxu0 %v10059_v0  ;;  %v137_v48 = vld [vmem:[%s10049_s3] sm:$0xf]  ;;  %vm6766_vm1 = vmmov 0   ;;  %s6767_s23 = smov [#allocation14]  }
  0x7c   :  { %676 = vmatpush1.bf16.msra.mxu1 %v6985_v18  ;;  %636 = vmatprep.subr.bf16.mxu0 %v6989_v19  ;;  %v7124_v50 = vrot.slane %v137_v48, %v7112_v45  ;;  %v7131_v53 = vrot.slane %v137_v48, %v7114_v46  ;;  %v142_v54 = vrot.slane %v137_v48, %v7116_v47  ;;  %v7320_v45 = vld [vmem:[#allocation8 + $0x2c] ss:$16 sps:$4 sm:$0xff]   ;;  %s5376_s25 = sshll.u32 %s6767_s23, 4  ;;  %s5377_s25 = int_to_ptr.vmem [resolvable:$true] %s5376_s25 }
  0x7d   :  { %677 = vmatprep.subr.bf16.mxu1 %v6992_v20  ;;  %337 = vmatprep.mubr.bf16.mxu1 %v10059_v0  ;;  %v146_v57 = vrot.slane %v137_v48, %v7121_v49  ;;  %10449 = vst [vmem:[#allocation53_spill] sm:$0xff] %v7320_v45  ;;  %s6724_s5 = scalar_lea.vmem %s5377_s25, 128  ;;  %p6729_p7 = scmp.lt.s32.totalorder %s5377_s25, %s5377_s25 }
  0x7e   :  { %p6725_p6 = scmp.ne.s32.totalorder %s5377_s25, %s6724_s5  ;;  %p6730_p8 = scmp.lt.s32.totalorder %s6724_s5, %s6724_s5 }
  0x7f   :  { %637 = vmatpush1.bf16.msra.mxu0 %v6996_v21 }
  0x80   :  { %678 = vmatpush1.bf16.msra.mxu1 %v6999_v22  ;;  %638 = vmatprep.subr.bf16.mxu0 %v7004_v23  ;;  %p6731_p9 = por %p6730_p8, %p6729_p7 }
  0x81   :  { %679 = vmatprep.subr.bf16.mxu1 %v7008_v24 }
  0x82   :  { %5398 = vmatmul.mubr.msk.bf16.gmra.mrb[8].mxu0 %vm199_vm0, %v5646_v25  ;;  %5402 = vmatmul.mubr.msk.bf16.gmra.mrb[8].mxu1 %vm199_vm0, %v5646_v25  ;;  %p6732_p10 = pnand %p6731_p9, %p6725_p6 }
  0x83   :  { %639 = vmatpush1.bf16.msra.mxu0 %v7014_v26  ;;  %274 = vmatprep.mubr.bf16.mxu0 %v10059_v0 }
  0x84   :  { %680 = vmatpush1.bf16.msra.mxu1 %v7018_v27  ;;  %640 = vmatprep.subr.bf16.mxu0 %v7020_v28 }
  0x85   :  { %681 = vmatprep.subr.bf16.mxu1 %v7023_v29  ;;  %347 = vmatprep.mubr.bf16.mxu1 %v10059_v0 }
  0x87   :  { %641 = vmatpush1.bf16.msra.mxu0 %v7028_v30 }
  0x88   :  { %682 = vmatpush1.bf16.msra.mxu1 %v7030_v31  ;;  %642 = vmatprep.subr.bf16.mxu0 %v7038_v33 }
  0x89   :  { %683 = vmatprep.subr.bf16.mxu1 %v7042_v34 }
  0x8a   :  { %5399 = vmatmul.mubr.msk.bf16.gmra.mrb[12].mxu0 %vm199_vm0, %v5659_v32  ;;  %5403 = vmatmul.mubr.msk.bf16.gmra.mrb[12].mxu1 %vm199_vm0, %v5659_v32 }
  0x8b   :  { %643 = vmatpush1.bf16.msra.mxu0 %v7044_v35  ;;  %662 = vmatprep.mubr.bf16.mxu0 %v10059_v0 }
  0x8c   :  { %684 = vmatpush1.bf16.msra.mxu1 %v7046_v36  ;;  %644 = vmatprep.subr.bf16.mxu0 %v7048_v37 }
  0x8d   :  { %685 = vmatprep.subr.bf16.mxu1 %v7051_v38  ;;  %703 = vmatprep.mubr.bf16.mxu1 %v10059_v0 }
  0x8f   :  { %645 = vmatpush1.bf16.msra.mxu0 %v7056_v39 }
  0x90   :  { %686 = vmatpush1.bf16.msra.mxu1 %v7060_v40  ;;  %739 = vmatprep.subr.bf16.mxu0 %v6949_v6 }
  0x91   :  { %780 = vmatprep.subr.bf16.mxu1 %v6951_v7 }
  0x92   :  { %663 = vmatmul.mubr.bf16.vlgmr.msra.gmra.mrb[16].mxu0 %v10059_v0 }
  0x93   :  { %704 = vmatmul.mubr.bf16.vlgmr.msra.gmra.mrb[16].mxu1 %v10059_v0  ;;  %740 = vmatpush1.bf16.msra.mxu0 %v6953_v8 }
  0x94   :  { %781 = vmatpush1.bf16.msra.mxu1 %v6956_v9  ;;  %741 = vmatprep.subr.bf16.mxu0 %v6960_v10 }
  0x95   :  { %782 = vmatprep.subr.bf16.mxu1 %v6964_v11  ;;  %771 = vmatprep.mubr.bf16.mxu0 %v10059_v0 }
  0x96   :  { %812 = vmatprep.mubr.bf16.mxu1 %v10059_v0 }
  0x97   :  { %742 = vmatpush1.bf16.msra.mxu0 %v6966_v12 }
  0x98   :  { %783 = vmatpush1.bf16.msra.mxu1 %v6968_v13  ;;  %743 = vmatprep.subr.bf16.mxu0 %v6977_v15 }
  0x99   :  { %784 = vmatprep.subr.bf16.mxu1 %v6980_v16 }
  0x9b   :  { %744 = vmatpush1.bf16.msra.mxu0 %v6983_v17 }
  0x9c   :  { %785 = vmatpush1.bf16.msra.mxu1 %v6985_v18  ;;  %745 = vmatprep.subr.bf16.mxu0 %v6989_v19 }
  0x9d   :  { %786 = vmatprep.subr.bf16.mxu1 %v6992_v20 }
  0x9f   :  { %746 = vmatpush1.bf16.msra.mxu0 %v6996_v21 }
  0xa0   :  { %787 = vmatpush1.bf16.msra.mxu1 %v6999_v22  ;;  %747 = vmatprep.subr.bf16.mxu0 %v7004_v23 }
  0xa1   :  { %788 = vmatprep.subr.bf16.mxu1 %v7008_v24 }
  0xa3   :  { %748 = vmatpush1.bf16.msra.mxu0 %v7014_v26 }
  0xa4   :  { %789 = vmatpush1.bf16.msra.mxu1 %v7018_v27  ;;  %749 = vmatprep.subr.bf16.mxu0 %v7020_v28 }
  0xa5   :  { %790 = vmatprep.subr.bf16.mxu1 %v7023_v29 }
  0xa7   :  { %750 = vmatpush1.bf16.msra.mxu0 %v7028_v30 }
  0xa8   :  { %791 = vmatpush1.bf16.msra.mxu1 %v7030_v31  ;;  %751 = vmatprep.subr.bf16.mxu0 %v7038_v33 }
  0xa9   :  { %792 = vmatprep.subr.bf16.mxu1 %v7042_v34 }
  0xab   :  { %752 = vmatpush1.bf16.msra.mxu0 %v7044_v35 }
  0xac   :  { %793 = vmatpush1.bf16.msra.mxu1 %v7046_v36  ;;  %753 = vmatprep.subr.bf16.mxu0 %v7048_v37 }
  0xad   :  { %794 = vmatprep.subr.bf16.mxu1 %v7051_v38 }
  0xaf   :  { %754 = vmatpush1.bf16.msra.mxu0 %v7056_v39 }
  0xb0   :  { %795 = vmatpush1.bf16.msra.mxu1 %v7060_v40  ;;  %1068 = vmatprep.subr.bf16.mxu0 %v7106_v41 }
  0xb1   :  { %1109 = vmatprep.subr.bf16.mxu1 %v7108_v42 }
 0x145   :  { %v7126_v51 = vpop.f32.mrb[0].mxu0  ;;  %v7128_v52 = vpop.f32.mrb[0].mxu1 }
 0x146   :  { %v248_v55 = vpop.f32.mrb[1].mxu0  ;;  %v321_v56 = vpop.f32.mrb[1].mxu1 }
 0x147   :  { %v250_v58 = vpop.f32.mrb[2].mxu0  ;;  %v323_v59 = vpop.f32.mrb[2].mxu1 }
 0x148   :  { %v7135_v60 = vadd.f32 %v250_v58, %v142_v54  ;;  %v252_v61 = vpop.f32.mrb[3].mxu0  ;;  %v7138_v62 = vadd.f32 %v323_v59, %v7124_v50  ;;  %v325_v63 = vpop.f32.mrb[3].mxu1 }
 0x149   :  { %v7140_v1 = vadd.f32 %v252_v61, %v146_v57  ;;  %v7143_v2 = vadd.f32 %v325_v63, %v7131_v53 }
 0x14d   :  { %v256_v3 = vpop.f32.mrb[4].mxu0  ;;  %v329_v4 = vpop.f32.mrb[4].mxu1 }
 0x14e   :  { %v7145_v5 = vadd.f32 %v256_v3, %v142_v54  ;;  %v258_v6 = vpop.f32.mrb[5].mxu0  ;;  %v7148_v7 = vadd.f32 %v329_v4, %v7124_v50  ;;  %v331_v8 = vpop.f32.mrb[5].mxu1 }
 0x14f   :  { %v7150_v9 = vadd.f32 %v258_v6, %v146_v57  ;;  %v260_v10 = vpop.f32.mrb[6].mxu0  ;;  %v7153_v11 = vadd.f32 %v331_v8, %v7131_v53  ;;  %v333_v12 = vpop.f32.mrb[6].mxu1 }
 0x150   :  { %10416 = vst [vmem:[#allocation21_spill] sm:$0xff] %v7145_v5  ;;  %10417 = vst [vmem:[#allocation22_spill] sm:$0xff] %v7148_v7  ;;  %v7155_v13 = vadd.f32 %v260_v10, %v142_v54  ;;  %v262_v14 = vpop.f32.mrb[7].mxu0  ;;  %v7158_v15 = vadd.f32 %v333_v12, %v7124_v50  ;;  %v335_v16 = vpop.f32.mrb[7].mxu1  ;;  %v7314_v7 = vld [vmem:[#allocation8 + $0x8] ss:$16 sps:$4 sm:$0xff]  }
 0x151   :  { %10418 = vst [vmem:[#allocation23_spill] sm:$0xff] %v7150_v9  ;;  %10419 = vst [vmem:[#allocation24_spill] sm:$0xff] %v7153_v11  ;;  %v7160_v17 = vadd.f32 %v262_v14, %v146_v57  ;;  %v7163_v18 = vadd.f32 %v335_v16, %v7131_v53  ;;  %v7308_v11 = vld [vmem:[#allocation8 + $0xc] ss:$16 sps:$4 sm:$0xff]   ;;  %v7312_v9 = vld [vmem:[#allocation8] ss:$16 sps:$4 sm:$0xff]  }
 0x152   :  { %10420 = vst [vmem:[#allocation25_spill] sm:$0xff] %v7155_v13  ;;  %10421 = vst [vmem:[#allocation26_spill] sm:$0xff] %v7158_v15  ;;  %v7302_v15 = vld [vmem:[#allocation9 + $0xe8] ss:$16 sps:$4 sm:$0xff]   ;;  %v7306_v13 = vld [vmem:[#allocation8 + $0x4] ss:$16 sps:$4 sm:$0xff]  }
 0x153   :  { %10422 = vst [vmem:[#allocation27_spill] sm:$0xff] %v7160_v17  ;;  %10423 = vst [vmem:[#allocation28_spill] sm:$0xff] %v7163_v18  ;;  %v7296_v18 = vld [vmem:[#allocation9 + $0xec] ss:$16 sps:$4 sm:$0xff]   ;;  %v7300_v17 = vld [vmem:[#allocation9 + $0xe0] ss:$16 sps:$4 sm:$0xff]  }
 0x154   :  { %10441 = vst [vmem:[#allocation45_spill] sm:$0xff] %v7296_v18  ;;  %10442 = vst [vmem:[#allocation46_spill] sm:$0xff] %v7300_v17  ;;  %v7318_v5 = vld [vmem:[#allocation8 + $0x24] ss:$16 sps:$4 sm:$0xff]  }
 0x155   :  { %v266_v19 = vpop.f32.mrb[8].mxu0  ;;  %v339_v20 = vpop.f32.mrb[8].mxu1  ;;  %10443 = vst [vmem:[#allocation47_spill] sm:$0xff] %v7302_v15  ;;  %10444 = vst [vmem:[#allocation48_spill] sm:$0xff] %v7306_v13 }
 0x156   :  { %v7165_v21 = vadd.f32 %v266_v19, %v142_v54  ;;  %v268_v22 = vpop.f32.mrb[9].mxu0  ;;  %v7168_v25 = vadd.f32 %v339_v20, %v7124_v50  ;;  %v341_v32 = vpop.f32.mrb[9].mxu1  ;;  %10445 = vst [vmem:[#allocation49_spill] sm:$0xff] %v7308_v11  ;;  %10446 = vst [vmem:[#allocation50_spill] sm:$0xff] %v7312_v9 }
 0x157   :  { %v7170_v43 = vadd.f32 %v268_v22, %v146_v57  ;;  %v270_v44 = vpop.f32.mrb[10].mxu0  ;;  %v7173_v48 = vadd.f32 %v341_v32, %v7131_v53  ;;  %v343_v58 = vpop.f32.mrb[10].mxu1  ;;  %10447 = vst [vmem:[#allocation51_spill] sm:$0xff] %v7314_v7  ;;  %10448 = vst [vmem:[#allocation52_spill] sm:$0xff] %v7318_v5 }
 0x158   :  { %10424 = vst [vmem:[#allocation29_spill] sm:$0xff] %v7165_v21  ;;  %10425 = vst [vmem:[#allocation30_spill] sm:$0xff] %v7168_v25  ;;  %v7175_v59 = vadd.f32 %v270_v44, %v142_v54  ;;  %v272_v61 = vpop.f32.mrb[11].mxu0  ;;  %v7178_v63 = vadd.f32 %v343_v58, %v7124_v50  ;;  %v345_v3 = vpop.f32.mrb[11].mxu1  ;;  %v7290_v25 = vld [vmem:[#allocation9 + $0xc8] ss:$16 sps:$4 sm:$0xff]  }
 0x159   :  { %10426 = vst [vmem:[#allocation31_spill] sm:$0xff] %v7170_v43  ;;  %10427 = vst [vmem:[#allocation32_spill] sm:$0xff] %v7173_v48  ;;  %v7180_v4 = vadd.f32 %v272_v61, %v146_v57  ;;  %v7183_v6 = vadd.f32 %v345_v3, %v7131_v53  ;;  %v7284_v48 = vld [vmem:[#allocation9 + $0xcc] ss:$16 sps:$4 sm:$0xff]   ;;  %v7288_v43 = vld [vmem:[#allocation9 + $0xc0] ss:$16 sps:$4 sm:$0xff]  }
 0x15a   :  { %10428 = vst [vmem:[#allocation33_spill] sm:$0xff] %v7175_v59  ;;  %10429 = vst [vmem:[#allocation34_spill] sm:$0xff] %v7178_v63  ;;  %v7282_v59 = vld [vmem:[#allocation9 + $0xc4] ss:$16 sps:$4 sm:$0xff]  }
 0x15b   :  { %10430 = vst [vmem:[#allocation35_spill] sm:$0xff] %v7180_v4  ;;  %10431 = vst [vmem:[#allocation36_spill] sm:$0xff] %v7183_v6  ;;  %v7294_v21 = vld [vmem:[#allocation9 + $0xe4] ss:$16 sps:$4 sm:$0xff]  }
 0x15d   :  { %v276_v8 = vpop.f32.mrb[12].mxu0  ;;  %v349_v10 = vpop.f32.mrb[12].mxu1 }
 0x15e   :  { %v7185_v12 = vadd.f32 %v276_v8, %v142_v54  ;;  %v278_v14 = vpop.f32.mrb[13].mxu0  ;;  %v7188_v16 = vadd.f32 %v349_v10, %v7124_v50  ;;  %v351_v19 = vpop.f32.mrb[13].mxu1 }
 0x15f   :  { %v7190_v20 = vadd.f32 %v278_v14, %v146_v57  ;;  %v280_v22 = vpop.f32.mrb[14].mxu0  ;;  %v7193_v32 = vadd.f32 %v351_v19, %v7131_v53  ;;  %v353_v44 = vpop.f32.mrb[14].mxu1  ;;  %v247_v14 = vadd.f32 %v7126_v51, %v142_v54  ;;  %v320_v19 = vadd.f32 %v7128_v52, %v7124_v50 }
 0x160   :  { %10432 = vst [vmem:[#allocation37_spill] sm:$0xff] %v7185_v12  ;;  %10433 = vst [vmem:[#allocation38_spill] sm:$0xff] %v7188_v16  ;;  %v7195_v58 = vadd.f32 %v280_v22, %v142_v54  ;;  %v282_v61 = vpop.f32.mrb[15].mxu0  ;;  %v7198_v3 = vadd.f32 %v353_v44, %v7124_v50  ;;  %v355_v8 = vpop.f32.mrb[15].mxu1  ;;  %v322_v22 = vadd.f32 %v321_v56, %v7131_v53 }
 0x161   :  { %10434 = vst [vmem:[#allocation39_spill] sm:$0xff] %v7190_v20  ;;  %10435 = vst [vmem:[#allocation40_spill] sm:$0xff] %v7193_v32  ;;  %v7200_v0 = vadd.f32 %v282_v61, %v146_v57  ;;  %v7203_v10 = vadd.f32 %v355_v8, %v7131_v53  ;;  %v249_v20 = vadd.f32 %v248_v55, %v146_v57 }
 0x162   :  { %10436 = vst [vmem:[#allocation41_spill] sm:$0xff] %v7195_v58  ;;  %10437 = vst [vmem:[#allocation42_spill] sm:$0xff] %v7198_v3 }
 0x163   :  { %10438 = vst [vmem:[#allocation43_spill] sm:$0xff] %v7200_v0  ;;  %10439 = vst [vmem:[#allocation44_spill] sm:$0xff] %v7203_v10 }
 0x165   :  { %v664_v32 = vpop.f32.mrb[16].mxu0 }
 0x166   :  { %v712_v58 = vadd.f32 %v664_v32, %v247_v14  ;;  %v705_v16 = vpop.f32.mrb[16].mxu1  ;;  %v666_v12 = vpop.f32.mrb[17].mxu0 }
 0x167   :  { %v714_v44 = vadd.f32 %v705_v16, %v320_v19  ;;  %v713_v3 = vadd.f32 %v666_v12, %v249_v20  ;;  %v707_v6 = vpop.f32.mrb[17].mxu1  ;;  %v668_v61 = vpop.f32.mrb[18].mxu0  ;;  %v7218_v19 = vld [vmem:[#allocation9 + $0x24] ss:$16 sps:$4 sm:$0xff]  }
 0x168   :  { %v716_v0 = vmul.f32 0.5, %v712_v58  ;;  %v715_v4 = vadd.f32 %v707_v6, %v322_v22  ;;  %v669_v8 = vpop.f32.mrb[19].mxu0  ;;  %v709_v10 = vpop.f32.mrb[18].mxu1  ;;  %v7220_v22 = vld [vmem:[#allocation9 + $0x2c] ss:$16 sps:$4 sm:$0xff]  }
 0x169   :  { %v717_v63 = vmul.f32 0.5, %v713_v3  ;;  %v710_v51 = vpop.f32.mrb[19].mxu1  ;;  %v718_v50 = vmul.f32 0.5, %v714_v44  ;;  %v7212_v3 = vld [vmem:[#allocation9] ss:$16 sps:$4 sm:$0xff]  }
 0x16a   :  { %5872 = vtanh.f32 %v716_v0  ;;  %v7214_v10 = vld [vmem:[#allocation9 + $0x8] ss:$16 sps:$4 sm:$0xff]   ;;  %v7226_v44 = vld [vmem:[#allocation9 + $0x20] ss:$16 sps:$4 sm:$0xff]   ;;  %v7232_v8 = vld [vmem:[#allocation9 + $0x44] ss:$16 sps:$4 sm:$0xff]  }
 0x16b   :  { %5874 = vtanh.f32 %v717_v63  ;;  %v7228_v61 = vld [vmem:[#allocation9 + $0x28] ss:$16 sps:$4 sm:$0xff]   ;;  %v7234_v51 = vld [vmem:[#allocation9 + $0x4c] ss:$16 sps:$4 sm:$0xff]  }
 0x16c   :  { %5876 = vtanh.f32 %v715_v4 }
 0x16d   :  { %5878 = vtanh.f32 %v718_v50  ;;  %v10440_v50 = vmov 0  }
 0x174   :  { %v5873_v52 = vpop.eup %5872 }
 0x175   :  { %v722_v54 = vmul.f32 0.5, %v5873_v52  ;;  %v5875_v53 = vpop.eup %5874  ;;  %v7240_v52 = vld [vmem:[#allocation9 + $0x40] ss:$16 sps:$4 sm:$0xff]  }
 0x176   :  { %v723_v56 = vmul.f32 0.5, %v5875_v53  ;;  %v5877_v57 = vpop.eup %5876  ;;  %v7246_v53 = vld [vmem:[#allocation9 + $0x64] ss:$16 sps:$4 sm:$0xff]  }
 0x177   :  { %v725_v55 = vadd.f32 0.5, %v722_v54  ;;  %v5879_v6 = vpop.eup %5878  ;;  %v7242_v54 = vld [vmem:[#allocation9 + $0x48] ss:$16 sps:$4 sm:$0xff]  }
 0x178   :  { %v726_v12 = vadd.f32 0.5, %v723_v56  ;;  %v724_v58 = vmul.f32 0.5, %v5879_v6  ;;  %v7252_v56 = vld [vmem:[#allocation9 + $0x60] ss:$16 sps:$4 sm:$0xff]   ;;  %v7266_v6 = vld [vmem:[#allocation9 + $0x88] ss:$16 sps:$4 sm:$0xff]  }
 0x179   :  { %v730_v16 = vmul.f32 %v5877_v57, %v725_v55  ;;  %v7248_v55 = vld [vmem:[#allocation9 + $0x6c] ss:$16 sps:$4 sm:$0xff]   ;;  %v7254_v57 = vld [vmem:[#allocation9 + $0x68] ss:$16 sps:$4 sm:$0xff]  }
 0x17a   :  { %v729_v20 = vmul.f32 0.0, %v726_v12  ;;  %v727_v0 = vadd.f32 0.5, %v724_v58  ;;  %v7258_v12 = vld [vmem:[#allocation9 + $0x84] ss:$16 sps:$4 sm:$0xff]  }
 0x17b   :  { %v7270_v58 = vld [vmem:[#allocation9 + $0xa4] ss:$16 sps:$4 sm:$0xff]  }
 0x17c   :  { %v7209_v32 = vadd.f32 %v730_v16, %v729_v20  ;;  %v7260_v16 = vld [vmem:[#allocation9 + $0x8c] ss:$16 sps:$4 sm:$0xff]   ;;  %v7264_v20 = vld [vmem:[#allocation9 + $0x80] ss:$16 sps:$4 sm:$0xff]  }
 0x17e   :  { %5880 = vtanh.f32 %v7209_v32 }
 0x188   :  { %v5881_v63 = vpop.eup %5880 }
 0x189   :  { %v733_v4 = vmul.f32 %v5881_v63, %v727_v0  ;;  %v7272_v0 = vld [vmem:[#allocation9 + $0xac] ss:$16 sps:$4 sm:$0xff]   ;;  %v7276_v63 = vld [vmem:[#allocation9 + $0xa0] ss:$16 sps:$4 sm:$0xff]  }
 0x18b   :  { %v7216_v14 = vpack.c.bf16 %v733_v4, %v733_v4  ;;  %v7278_v4 = vld [vmem:[#allocation9 + $0xa8] ss:$16 sps:$4 sm:$0xff]  }
 0x18d   :  { %772 = vmatmul.mubr.bf16.vlgmr.msra.gmra.mrb[20].mxu0 %v7216_v14  ;;  %813 = vmatmul.mubr.bf16.vlgmr.msra.gmra.mrb[20].mxu1 %v7216_v14 }
 0x18e   :  { %1069 = vmatpush1.bf16.msra.mxu0 %v7212_v3  ;;  %1110 = vmatpush1.bf16.msra.mxu1 %v7214_v10 }
 0x18f   :  { %1070 = vmatprep.subr.bf16.mxu0 %v7218_v19  ;;  %1111 = vmatprep.subr.bf16.mxu1 %v7220_v22 }
 0x190   :  { %1100 = vmatprep.mubr.bf16.mxu0 %v10440_v50  ;;  %1141 = vmatprep.mubr.bf16.mxu1 %v10440_v50 }
 0x192   :  { %1071 = vmatpush1.bf16.msra.mxu0 %v7226_v44  ;;  %1112 = vmatpush1.bf16.msra.mxu1 %v7228_v61 }
 0x193   :  { %1072 = vmatprep.subr.bf16.mxu0 %v7232_v8  ;;  %1113 = vmatprep.subr.bf16.mxu1 %v7234_v51 }
 0x196   :  { %1073 = vmatpush1.bf16.msra.mxu0 %v7240_v52  ;;  %1114 = vmatpush1.bf16.msra.mxu1 %v7242_v54 }
 0x197   :  { %1074 = vmatprep.subr.bf16.mxu0 %v7246_v53  ;;  %1115 = vmatprep.subr.bf16.mxu1 %v7248_v55 }
 0x19a   :  { %1075 = vmatpush1.bf16.msra.mxu0 %v7252_v56  ;;  %1116 = vmatpush1.bf16.msra.mxu1 %v7254_v57 }
 0x19b   :  { %1076 = vmatprep.subr.bf16.mxu0 %v7258_v12  ;;  %1117 = vmatprep.subr.bf16.mxu1 %v7260_v16 }
 0x19e   :  { %1077 = vmatpush1.bf16.msra.mxu0 %v7264_v20  ;;  %1118 = vmatpush1.bf16.msra.mxu1 %v7266_v6 }
 0x19f   :  { %1078 = vmatprep.subr.bf16.mxu0 %v7270_v58  ;;  %1119 = vmatprep.subr.bf16.mxu1 %v7272_v0 }
 0x1a2   :  { %1079 = vmatpush1.bf16.msra.mxu0 %v7276_v63  ;;  %1120 = vmatpush1.bf16.msra.mxu1 %v7278_v4 }
 0x1a3   :  { %1080 = vmatprep.subr.bf16.mxu0 %v7282_v59  ;;  %1121 = vmatprep.subr.bf16.mxu1 %v7284_v48 }
 0x1a6   :  { %1081 = vmatpush1.bf16.msra.mxu0 %v7288_v43  ;;  %1122 = vmatpush1.bf16.msra.mxu1 %v7290_v25 }
 0x1a7   :  { %1082 = vmatprep.subr.bf16.mxu0 %v7294_v21  ;;  %1123 = vmatprep.subr.bf16.mxu1 %v7296_v18  ;;  %v7352_v18 = vld [vmem:[#allocation8 + $0x60] ss:$16 sps:$4 sm:$0xff]  }
 0x1a8   :  { %10458 = vst [vmem:[#allocation62_spill] sm:$0xff] %v7352_v18 }
 0x1aa   :  { %1083 = vmatpush1.bf16.msra.mxu0 %v7300_v17  ;;  %1124 = vmatpush1.bf16.msra.mxu1 %v7302_v15  ;;  %v7326_v15 = vld [vmem:[#allocation8 + $0x20] ss:$16 sps:$4 sm:$0xff]   ;;  %v7328_v17 = vld [vmem:[#allocation8 + $0x28] ss:$16 sps:$4 sm:$0xff]  }
 0x1ab   :  { %1310 = vmatprep.subr.bf16.mxu0 %v7306_v13  ;;  %1351 = vmatprep.subr.bf16.mxu1 %v7308_v11  ;;  %10450 = vst [vmem:[#allocation54_spill] sm:$0xff] %v7326_v15  ;;  %10451 = vst [vmem:[#allocation55_spill] sm:$0xff] %v7328_v17  ;;  %v7332_v11 = vld [vmem:[#allocation8 + $0x44] ss:$16 sps:$4 sm:$0xff]   ;;  %v7334_v13 = vld [vmem:[#allocation8 + $0x4c] ss:$16 sps:$4 sm:$0xff]  }
 0x1ac   :  { %10452 = vst [vmem:[#allocation56_spill] sm:$0xff] %v7332_v11  ;;  %10453 = vst [vmem:[#allocation57_spill] sm:$0xff] %v7334_v13 }
 0x1ad   :  { %1101 = vmatmul.mubr.bf16.vlgmr.msra.gmra.mrb[24].mxu0 %v10440_v50  ;;  %1142 = vmatmul.mubr.bf16.vlgmr.msra.gmra.mrb[24].mxu1 %v10440_v50 }
 0x1ae   :  { %1311 = vmatpush1.bf16.msra.mxu0 %v7312_v9  ;;  %1352 = vmatpush1.bf16.msra.mxu1 %v7314_v7  ;;  %v7340_v7 = vld [vmem:[#allocation8 + $0x40] ss:$16 sps:$4 sm:$0xff]   ;;  %v7342_v9 = vld [vmem:[#allocation8 + $0x48] ss:$16 sps:$4 sm:$0xff]  }
 0x1af   :  { %1312 = vmatprep.subr.bf16.mxu0 %v7318_v5  ;;  %1353 = vmatprep.subr.bf16.mxu1 %v7320_v45  ;;  %10454 = vst [vmem:[#allocation58_spill] sm:$0xff] %v7340_v7  ;;  %10455 = vst [vmem:[#allocation59_spill] sm:$0xff] %v7342_v9  ;;  %v7346_v45 = vld [vmem:[#allocation8 + $0x64] ss:$16 sps:$4 sm:$0xff]   ;;  %v7348_v5 = vld [vmem:[#allocation8 + $0x6c] ss:$16 sps:$4 sm:$0xff]  }
 0x1b0   :  { %1342 = vmatprep.mubr.bf16.mxu0 %v10440_v50  ;;  %1383 = vmatprep.mubr.bf16.mxu1 %v10440_v50  ;;  %10456 = vst [vmem:[#allocation60_spill] sm:$0xff] %v7346_v45  ;;  %10457 = vst [vmem:[#allocation61_spill] sm:$0xff] %v7348_v5 }
 0x1b2   :  { %1313 = vmatpush1.bf16.msra.mxu0 %v7326_v15  ;;  %1354 = vmatpush1.bf16.msra.mxu1 %v7328_v17  ;;  %v7354_v15 = vld [vmem:[#allocation8 + $0x68] ss:$16 sps:$4 sm:$0xff]   ;;  %v7358_v17 = vld [vmem:[#allocation8 + $0x84] ss:$16 sps:$4 sm:$0xff]  }
 0x1b3   :  { %1314 = vmatprep.subr.bf16.mxu0 %v7332_v11  ;;  %1355 = vmatprep.subr.bf16.mxu1 %v7334_v13  ;;  %10459 = vst [vmem:[#allocation63_spill] sm:$0xff] %v7354_v15  ;;  %10460 = vst [vmem:[#allocation64_spill] sm:$0xff] %v7358_v17  ;;  %v7360_v11 = vld [vmem:[#allocation8 + $0x8c] ss:$16 sps:$4 sm:$0xff]   ;;  %v7364_v13 = vld [vmem:[#allocation8 + $0x80] ss:$16 sps:$4 sm:$0xff]  }
 0x1b4   :  { %10461 = vst [vmem:[#allocation65_spill] sm:$0xff] %v7360_v11  ;;  %10462 = vst [vmem:[#allocation66_spill] sm:$0xff] %v7364_v13 }
 0x1b6   :  { %1315 = vmatpush1.bf16.msra.mxu0 %v7340_v7  ;;  %1356 = vmatpush1.bf16.msra.mxu1 %v7342_v9  ;;  %v7366_v7 = vld [vmem:[#allocation8 + $0x88] ss:$16 sps:$4 sm:$0xff]   ;;  %v7370_v9 = vld [vmem:[#allocation8 + $0xa4] ss:$16 sps:$4 sm:$0xff]  }
 0x1b7   :  { %1316 = vmatprep.subr.bf16.mxu0 %v7346_v45  ;;  %1357 = vmatprep.subr.bf16.mxu1 %v7348_v5  ;;  %10463 = vst [vmem:[#allocation67_spill] sm:$0xff] %v7366_v7  ;;  %10464 = vst [vmem:[#allocation68_spill] sm:$0xff] %v7370_v9  ;;  %v7372_v45 = vld [vmem:[#allocation8 + $0xac] ss:$16 sps:$4 sm:$0xff]   ;;  %v7376_v5 = vld [vmem:[#allocation8 + $0xa0] ss:$16 sps:$4 sm:$0xff]  }
 0x1b8   :  { %10465 = vst [vmem:[#allocation69_spill] sm:$0xff] %v7372_v45  ;;  %10466 = vst [vmem:[#allocation70_spill] sm:$0xff] %v7376_v5 }
 0x1ba   :  { %1317 = vmatpush1.bf16.msra.mxu0 %v7352_v18  ;;  %1358 = vmatpush1.bf16.msra.mxu1 %v7354_v15  ;;  %v7378_v18 = vld [vmem:[#allocation8 + $0xa8] ss:$16 sps:$4 sm:$0xff]   ;;  %v7382_v15 = vld [vmem:[#allocation8 + $0xc4] ss:$16 sps:$4 sm:$0xff]  }
 0x1bb   :  { %1318 = vmatprep.subr.bf16.mxu0 %v7358_v17  ;;  %1359 = vmatprep.subr.bf16.mxu1 %v7360_v11  ;;  %10467 = vst [vmem:[#allocation71_spill] sm:$0xff] %v7382_v15  ;;  %v7384_v17 = vld [vmem:[#allocation8 + $0xcc] ss:$16 sps:$4 sm:$0xff]   ;;  %v7388_v11 = vld [vmem:[#allocation8 + $0xc0] ss:$16 sps:$4 sm:$0xff]  }
 0x1bc   :  { %10468 = vst [vmem:[#allocation72_spill] sm:$0xff] %v7384_v17 }
 0x1be   :  { %1319 = vmatpush1.bf16.msra.mxu0 %v7364_v13  ;;  %1360 = vmatpush1.bf16.msra.mxu1 %v7366_v7  ;;  %v7390_v13 = vld [vmem:[#allocation8 + $0xc8] ss:$16 sps:$4 sm:$0xff]   ;;  %v7394_v7 = vld [vmem:[#allocation8 + $0xe4] ss:$16 sps:$4 sm:$0xff]  }
 0x1bf   :  { %1320 = vmatprep.subr.bf16.mxu0 %v7370_v9  ;;  %1361 = vmatprep.subr.bf16.mxu1 %v7372_v45  ;;  %10469 = vst [vmem:[#allocation73_spill] sm:$0xff] %v7390_v13  ;;  %v7396_v9 = vld [vmem:[#allocation8 + $0xec] ss:$16 sps:$4 sm:$0xff]   ;;  %v7400_v45 = vld [vmem:[#allocation8 + $0xe0] ss:$16 sps:$4 sm:$0xff]  }
 0x1c0   :  { %10470 = vst [vmem:[#allocation74_spill] sm:$0xff] %v7396_v9 }
 0x1c2   :  { %1321 = vmatpush1.bf16.msra.mxu0 %v7376_v5  ;;  %1362 = vmatpush1.bf16.msra.mxu1 %v7378_v18  ;;  %v7402_v5 = vld [vmem:[#allocation8 + $0xe8] ss:$16 sps:$4 sm:$0xff]  }
 0x1c3   :  { %1322 = vmatprep.subr.bf16.mxu0 %v7382_v15  ;;  %1363 = vmatprep.subr.bf16.mxu1 %v7384_v17  ;;  %10471 = vst [vmem:[#allocation75_spill] sm:$0xff] %v7402_v5  ;;  %v7408_v17 = vld [vmem:[#allocation6 + $0x4] ss:$16 sps:$4 sm:$0xff]   ;;  %v7411_v15 = vld [vmem:[#allocation6 + $0xc] ss:$16 sps:$4 sm:$0xff]  }
 0x1c4   :  { %10472 = vst [vmem:[#allocation76_spill] sm:$0xff] %v7408_v17  ;;  %10473 = vst [vmem:[#allocation77_spill] sm:$0xff] %v7411_v15 }
 0x1c6   :  { %1323 = vmatpush1.bf16.msra.mxu0 %v7388_v11  ;;  %1364 = vmatpush1.bf16.msra.mxu1 %v7390_v13  ;;  %v7416_v13 = vld [vmem:[#allocation6] ss:$16 sps:$4 sm:$0xff]  }
 0x1c7   :  { %1324 = vmatprep.subr.bf16.mxu0 %v7394_v7  ;;  %1365 = vmatprep.subr.bf16.mxu1 %v7396_v9  ;;  %10474 = vst [vmem:[#allocation78_spill] sm:$0xff] %v7416_v13  ;;  %v7419_v9 = vld [vmem:[#allocation6 + $0x8] ss:$16 sps:$4 sm:$0xff]  }
 0x1c8   :  { %10475 = vst [vmem:[#allocation79_spill] sm:$0xff] %v7419_v9 }
 0x1ca   :  { %1325 = vmatpush1.bf16.msra.mxu0 %v7400_v45  ;;  %1366 = vmatpush1.bf16.msra.mxu1 %v7402_v5  ;;  %v7422_v5 = vld [vmem:[#allocation6 + $0x24] ss:$16 sps:$4 sm:$0xff]  }
 0x1cb   :  { %1419 = vmatprep.subr.bf16.mxu0 %v7408_v17  ;;  %1460 = vmatprep.subr.bf16.mxu1 %v7411_v15  ;;  %10476 = vst [vmem:[#allocation80_spill] sm:$0xff] %v7422_v5  ;;  %v7425_v17 = vld [vmem:[#allocation6 + $0x2c] ss:$16 sps:$4 sm:$0xff]   ;;  %v7445_v15 = vld [vmem:[#allocation6 + $0x48] ss:$16 sps:$4 sm:$0xff]  }
 0x1cc   :  { %10477 = vst [vmem:[#allocation81_spill] sm:$0xff] %v7425_v17 }
 0x1cd   :  { %1343 = vmatmul.mubr.bf16.vlgmr.msra.gmra.mrb[28].mxu0 %v7216_v14  ;;  %1384 = vmatmul.mubr.bf16.vlgmr.msra.gmra.mrb[28].mxu1 %v7216_v14  ;;  %v7430_v14 = vld [vmem:[#allocation6 + $0x20] ss:$16 sps:$4 sm:$0xff]  }
 0x1ce   :  { %1420 = vmatpush1.bf16.msra.mxu0 %v7416_v13  ;;  %1461 = vmatpush1.bf16.msra.mxu1 %v7419_v9  ;;  %10478 = vst [vmem:[#allocation82_spill] sm:$0xff] %v7430_v14  ;;  %v7433_v13 = vld [vmem:[#allocation6 + $0x28] ss:$16 sps:$4 sm:$0xff]   ;;  %v7436_v9 = vld [vmem:[#allocation6 + $0x44] ss:$16 sps:$4 sm:$0xff]  }
 0x1cf   :  { %1421 = vmatprep.subr.bf16.mxu0 %v7422_v5  ;;  %1462 = vmatprep.subr.bf16.mxu1 %v7425_v17  ;;  %10479 = vst [vmem:[#allocation83_spill] sm:$0xff] %v7433_v13  ;;  %10480 = vst [vmem:[#allocation84_spill] sm:$0xff] %v7436_v9  ;;  %v7439_v5 = vld [vmem:[#allocation6 + $0x4c] ss:$16 sps:$4 sm:$0xff]   ;;  %v7442_v17 = vld [vmem:[#allocation6 + $0x40] ss:$16 sps:$4 sm:$0xff]  }
 0x1d0   :  { %1451 = vmatprep.mubr.bf16.mxu0 %v10440_v50  ;;  %1492 = vmatprep.mubr.bf16.mxu1 %v10440_v50  ;;  %10481 = vst [vmem:[#allocation85_spill] sm:$0xff] %v7439_v5 }
 0x1d2   :  { %1422 = vmatpush1.bf16.msra.mxu0 %v7430_v14  ;;  %1463 = vmatpush1.bf16.msra.mxu1 %v7433_v13  ;;  %v7448_v14 = vld [vmem:[#allocation6 + $0x64] ss:$16 sps:$4 sm:$0xff]   ;;  %v7451_v13 = vld [vmem:[#allocation6 + $0x6c] ss:$16 sps:$4 sm:$0xff]  }
 0x1d3   :  { %1423 = vmatprep.subr.bf16.mxu0 %v7436_v9  ;;  %1464 = vmatprep.subr.bf16.mxu1 %v7439_v5  ;;  %v7454_v9 = vld [vmem:[#allocation6 + $0x60] ss:$16 sps:$4 sm:$0xff]   ;;  %v7457_v5 = vld [vmem:[#allocation6 + $0x68] ss:$16 sps:$4 sm:$0xff]  }
 0x1d6   :  { %1424 = vmatpush1.bf16.msra.mxu0 %v7442_v17  ;;  %1465 = vmatpush1.bf16.msra.mxu1 %v7445_v15 }
 0x1d7   :  { %1425 = vmatprep.subr.bf16.mxu0 %v7448_v14  ;;  %1466 = vmatprep.subr.bf16.mxu1 %v7451_v13 }
 0x1da   :  { %1426 = vmatpush1.bf16.msra.mxu0 %v7454_v9  ;;  %1467 = vmatpush1.bf16.msra.mxu1 %v7457_v5 }
 0x1db   :  { %1427 = vmatprep.subr.bf16.mxu0 %v7004_v23  ;;  %1468 = vmatprep.subr.bf16.mxu1 %v7008_v24 }
 0x1de   :  { %1428 = vmatpush1.bf16.msra.mxu0 %v7014_v26  ;;  %1469 = vmatpush1.bf16.msra.mxu1 %v7018_v27 }
 0x1df   :  { %1429 = vmatprep.subr.bf16.mxu0 %v7020_v28  ;;  %1470 = vmatprep.subr.bf16.mxu1 %v7023_v29 }
 0x1e2   :  { %1430 = vmatpush1.bf16.msra.mxu0 %v7028_v30  ;;  %1471 = vmatpush1.bf16.msra.mxu1 %v7030_v31 }
 0x1e3   :  { %1431 = vmatprep.subr.bf16.mxu0 %v7038_v33  ;;  %1472 = vmatprep.subr.bf16.mxu1 %v7042_v34 }
 0x1e6   :  { %1432 = vmatpush1.bf16.msra.mxu0 %v7044_v35  ;;  %1473 = vmatpush1.bf16.msra.mxu1 %v7046_v36 }
 0x1e7   :  { %1433 = vmatprep.subr.bf16.mxu0 %v7048_v37  ;;  %1474 = vmatprep.subr.bf16.mxu1 %v7051_v38 }
 0x1ea   :  { %1434 = vmatpush1.bf16.msra.mxu0 %v7056_v39  ;;  %1475 = vmatpush1.bf16.msra.mxu1 %v7060_v40 }
 0x1eb   :  { %1524 = vmatprep.subr.bf16.mxu0 %v7106_v41  ;;  %1565 = vmatprep.subr.bf16.mxu1 %v7108_v42 }
 0x260   :  { %v773_v23 = vpop.f32.mrb[20].mxu0  ;;  %v814_v24 = vpop.f32.mrb[20].mxu1 }
 0x261   :  { %v821_v26 = vadd.f32 %v773_v23, %v7135_v60  ;;  %v823_v27 = vadd.f32 %v814_v24, %v7138_v62  ;;  %v775_v28 = vpop.f32.mrb[21].mxu0  ;;  %v816_v29 = vpop.f32.mrb[21].mxu1 }
 0x262   :  { %v822_v30 = vadd.f32 %v775_v28, %v7140_v1  ;;  %v824_v31 = vadd.f32 %v816_v29, %v7143_v2  ;;  %v777_v33 = vpop.f32.mrb[22].mxu0  ;;  %v818_v34 = vpop.f32.mrb[22].mxu1 }
 0x263   :  { %v825_v35 = vmul.f32 0.5, %v821_v26  ;;  %v778_v36 = vpop.f32.mrb[23].mxu0  ;;  %v819_v37 = vpop.f32.mrb[23].mxu1  ;;  %v827_v39 = vmul.f32 0.5, %v823_v27 }
 0x264   :  { %v826_v38 = vmul.f32 0.5, %v822_v30 }
 0x265   :  { %5882 = vtanh.f32 %v825_v35 }
 0x266   :  { %5884 = vtanh.f32 %v826_v38 }
 0x267   :  { %5886 = vtanh.f32 %v824_v31 }
 0x268   :  { %5888 = vtanh.f32 %v827_v39 }
 0x26f   :  { %v5883_v40 = vpop.eup %5882 }
 0x270   :  { %v831_v41 = vmul.f32 0.5, %v5883_v40  ;;  %v5885_v42 = vpop.eup %5884 }
 0x271   :  { %v832_v62 = vmul.f32 0.5, %v5885_v42  ;;  %v5887_v23 = vpop.eup %5886 }
 0x272   :  { %v834_v60 = vadd.f32 0.5, %v831_v41  ;;  %v5889_v26 = vpop.eup %5888 }
 0x273   :  { %v835_v1 = vadd.f32 0.5, %v832_v62  ;;  %v833_v29 = vmul.f32 0.5, %v5889_v26 }
 0x274   :  { %v839_v24 = vmul.f32 %v5887_v23, %v834_v60 }
 0x275   :  { %v838_v2 = vmul.f32 %v835_v1, %v7209_v32  ;;  %v836_v36 = vadd.f32 0.5, %v833_v29  ;;  %v390_v32 = vld [vmem:[%s10052_s6] sm:$0xf] }
 0x277   :  { %v7483_v28 = vadd.f32 %v839_v24, %v838_v2 }
 0x279   :  { %5890 = vtanh.f32 %v7483_v28 }
 0x280   :  { %v1102_v30 = vpop.f32.mrb[24].mxu0  ;;  %v1143_v31 = vpop.f32.mrb[24].mxu1 }
 0x281   :  { %v1104_v27 = vpop.f32.mrb[25].mxu0  ;;  %v1145_v33 = vpop.f32.mrb[25].mxu1 }
 0x282   :  { %v1106_v34 = vpop.f32.mrb[26].mxu0  ;;  %v1147_v35 = vpop.f32.mrb[26].mxu1 }
 0x283   :  { %v1107_v37 = vpop.f32.mrb[27].mxu0  ;;  %v1148_v38 = vpop.f32.mrb[27].mxu1 }
 0x284   :  { %v5891_v39 = vpop.eup %5890 }
 0x285   :  { %v842_v40 = vmul.f32 %v5891_v39, %v836_v36  ;;  %v10488_v39 = vld [vmem:[#allocation50_spill] sm:$0xff] }
 0x287   :  { %v7486_v41 = vpack.c.bf16 %v842_v40, %v842_v40  ;;  %v10489_v40 = vld [vmem:[#allocation51_spill] sm:$0xff] }
 0x289   :  { %1452 = vmatmul.mubr.bf16.vlgmr.msra.gmra.mrb[32].mxu0 %v7486_v41  ;;  %1493 = vmatmul.mubr.bf16.vlgmr.msra.gmra.mrb[32].mxu1 %v7486_v41 }
 0x28a   :  { %1525 = vmatpush1.bf16.msra.mxu0 %v7212_v3  ;;  %1566 = vmatpush1.bf16.msra.mxu1 %v7214_v10  ;;  %v7518_v3 = vrot.slane %v390_v32, %v7116_v47 }
 0x28b   :  { %1526 = vmatprep.subr.bf16.mxu0 %v7218_v19  ;;  %1567 = vmatprep.subr.bf16.mxu1 %v7220_v22  ;;  %v7523_v22 = vrot.slane %v390_v32, %v7121_v49 }
 0x28c   :  { %1556 = vmatprep.mubr.bf16.mxu0 %v10440_v50  ;;  %1597 = vmatprep.mubr.bf16.mxu1 %v10440_v50 }
 0x28e   :  { %1527 = vmatpush1.bf16.msra.mxu0 %v7226_v44  ;;  %1568 = vmatpush1.bf16.msra.mxu1 %v7228_v61 }
 0x28f   :  { %1528 = vmatprep.subr.bf16.mxu0 %v7232_v8  ;;  %1569 = vmatprep.subr.bf16.mxu1 %v7234_v51 }
 0x292   :  { %1529 = vmatpush1.bf16.msra.mxu0 %v7240_v52  ;;  %1570 = vmatpush1.bf16.msra.mxu1 %v7242_v54 }
 0x293   :  { %1530 = vmatprep.subr.bf16.mxu0 %v7246_v53  ;;  %1571 = vmatprep.subr.bf16.mxu1 %v7248_v55 }
 0x296   :  { %1531 = vmatpush1.bf16.msra.mxu0 %v7252_v56  ;;  %1572 = vmatpush1.bf16.msra.mxu1 %v7254_v57 }
 0x297   :  { %1532 = vmatprep.subr.bf16.mxu0 %v7258_v12  ;;  %1573 = vmatprep.subr.bf16.mxu1 %v7260_v16  ;;  %v10482_v12 = vld [vmem:[#allocation45_spill] sm:$0xff] }
 0x29a   :  { %1533 = vmatpush1.bf16.msra.mxu0 %v7264_v20  ;;  %1574 = vmatpush1.bf16.msra.mxu1 %v7266_v6 }
 0x29b   :  { %1534 = vmatprep.subr.bf16.mxu0 %v7270_v58  ;;  %1575 = vmatprep.subr.bf16.mxu1 %v7272_v0  ;;  %v10483_v58 = vld [vmem:[#allocation46_spill] sm:$0xff]  ;;  %v10485_v0 = vld [vmem:[#allocation48_spill] sm:$0xff] }
 0x29e   :  { %1535 = vmatpush1.bf16.msra.mxu0 %v7276_v63  ;;  %1576 = vmatpush1.bf16.msra.mxu1 %v7278_v4  ;;  %v10486_v63 = vld [vmem:[#allocation49_spill] sm:$0xff]  ;;  %v10487_v4 = vld [vmem:[#allocation20_spill] sm:$0xff] }
 0x29f   :  { %1536 = vmatprep.subr.bf16.mxu0 %v7282_v59  ;;  %1577 = vmatprep.subr.bf16.mxu1 %v7284_v48  ;;  %v7529_v48 = vrot.slane %v390_v32, %v7114_v46  ;;  %v7540_v42 = vrot.slane %v390_v32, %v10487_v4  ;;  %v10490_v32 = vld [vmem:[#allocation52_spill] sm:$0xff] }
 0x2a0   :  { %v1344_v10 = vpop.f32.mrb[28].mxu0  ;;  %v1385_v19 = vpop.f32.mrb[28].mxu1 }
 0x2a1   :  { %v1345_v44 = vadd.f32 %v1344_v10, %v1102_v30  ;;  %v1386_v61 = vadd.f32 %v1385_v19, %v1143_v31  ;;  %v1346_v8 = vpop.f32.mrb[29].mxu0  ;;  %v1387_v51 = vpop.f32.mrb[29].mxu1  ;;  %v10491_v10 = vld [vmem:[#allocation53_spill] sm:$0xff]  ;;  %v10492_v19 = vld [vmem:[#allocation54_spill] sm:$0xff] }
 0x2a2   :  { %v1347_v52 = vadd.f32 %v1346_v8, %v1104_v27  ;;  %v1388_v54 = vadd.f32 %v1387_v51, %v1145_v33  ;;  %v1348_v53 = vpop.f32.mrb[30].mxu0  ;;  %v1389_v55 = vpop.f32.mrb[30].mxu1  ;;  %1537 = vmatpush1.bf16.msra.mxu0 %v7288_v43  ;;  %1578 = vmatpush1.bf16.msra.mxu1 %v7290_v25  ;;  %v10484_v43 = vld [vmem:[#allocation47_spill] sm:$0xff]  ;;  %v10495_v8 = vld [vmem:[#allocation57_spill] sm:$0xff]  ;;  %v10496_v51 = vld [vmem:[#allocation58_spill] sm:$0xff] }
 0x2a3   :  { %v1392_v59 = vadd.f32 %v1345_v44, %v7518_v3  ;;  %v1349_v56 = vpop.f32.mrb[31].mxu0  ;;  %v1390_v57 = vpop.f32.mrb[31].mxu1  ;;  %1538 = vmatprep.subr.bf16.mxu0 %v7294_v21  ;;  %1579 = vmatprep.subr.bf16.mxu1 %v10482_v12  ;;  %v1394_v21 = vadd.f32 %v1386_v61, %v7540_v42  ;;  %v10493_v44 = vld [vmem:[#allocation55_spill] sm:$0xff]  ;;  %v10494_v61 = vld [vmem:[#allocation56_spill] sm:$0xff]  ;;  %v10499_v53 = vld [vmem:[#allocation61_spill] sm:$0xff] }
 0x2a4   :  { %v1393_v16 = vadd.f32 %v1347_v52, %v7523_v22  ;;  %v1395_v25 = vadd.f32 %v1388_v54, %v7529_v48  ;;  %v10497_v52 = vld [vmem:[#allocation59_spill] sm:$0xff]  ;;  %v10498_v54 = vld [vmem:[#allocation60_spill] sm:$0xff]  ;;  %v10500_v55 = vld [vmem:[#allocation62_spill] sm:$0xff] }
 0x2a5   :  { %v1396_v20 = vmul.f32 0.5, %v1392_v59  ;;  %v1398_v60 = vmul.f32 0.5, %v1394_v21  ;;  %v10501_v59 = vld [vmem:[#allocation63_spill] sm:$0xff]  ;;  %v10502_v56 = vld [vmem:[#allocation64_spill] sm:$0xff]  ;;  %v10503_v57 = vld [vmem:[#allocation65_spill] sm:$0xff] }
 0x2a6   :  { %v1397_v6 = vmul.f32 0.5, %v1393_v16  ;;  %1539 = vmatpush1.bf16.msra.mxu0 %v10483_v58  ;;  %1580 = vmatpush1.bf16.msra.mxu1 %v10484_v43  ;;  %v10504_v12 = vld [vmem:[#allocation66_spill] sm:$0xff]  ;;  %v10505_v16 = vld [vmem:[#allocation67_spill] sm:$0xff] }
 0x2a7   :  { %5892 = vtanh.f32 %v1396_v20  ;;  %1606 = vmatprep.subr.bf16.mxu0 %v10485_v0  ;;  %1647 = vmatprep.subr.bf16.mxu1 %v10486_v63  ;;  %v10506_v20 = vld [vmem:[#allocation68_spill] sm:$0xff]  ;;  %v10508_v58 = vld [vmem:[#allocation70_spill] sm:$0xff]  ;;  %v10509_v43 = vld [vmem:[#allocation71_spill] sm:$0xff] }
 0x2a8   :  { %5894 = vtanh.f32 %v1397_v6  ;;  %v10507_v6 = vld [vmem:[#allocation69_spill] sm:$0xff]  ;;  %v10512_v63 = vld [vmem:[#allocation74_spill] sm:$0xff] }
 0x2a9   :  { %5896 = vtanh.f32 %v1395_v25  ;;  %v10510_v25 = vld [vmem:[#allocation72_spill] sm:$0xff]  ;;  %v10511_v0 = vld [vmem:[#allocation73_spill] sm:$0xff] }
 0x2aa   :  { %5898 = vtanh.f32 %v1398_v60  ;;  %v7580_v21 = vld [vmem:[#allocation12 + $0x4] ss:$16 sps:$4 sm:$0xff]   ;;  %v7582_v60 = vld [vmem:[#allocation12 + $0xc] ss:$16 sps:$4 sm:$0xff]  }
 0x2b1   :  { %v5893_v62 = vpop.eup %5892 }
 0x2b2   :  { %v1402_v23 = vmul.f32 0.5, %v5893_v62  ;;  %v5895_v1 = vpop.eup %5894  ;;  %v10513_v62 = vld [vmem:[#allocation75_spill] sm:$0xff] }
 0x2b3   :  { %v1403_v2 = vmul.f32 0.5, %v5895_v1  ;;  %v5897_v26 = vpop.eup %5896  ;;  %v7602_v1 = vld [vmem:[#allocation12 + $0x28] ss:$16 sps:$4 sm:$0xff]  }
 0x2b4   :  { %v1405_v24 = vadd.f32 0.5, %v1402_v23  ;;  %v5899_v33 = vpop.eup %5898  ;;  %v7588_v23 = vld [vmem:[#allocation12 + $0x8] ss:$16 sps:$4 sm:$0xff]  }
 0x2b5   :  { %v1406_v29 = vadd.f32 0.5, %v1403_v2  ;;  %v1404_v34 = vmul.f32 0.5, %v5899_v33  ;;  %v7608_v2 = vld [vmem:[#allocation12 + $0x4c] ss:$16 sps:$4 sm:$0xff]   ;;  %v7628_v33 = vld [vmem:[#allocation12 + $0x68] ss:$16 sps:$4 sm:$0xff]  }
 0x2b6   :  { %v1410_v30 = vmul.f32 %v5897_v26, %v1405_v24  ;;  %v7606_v24 = vld [vmem:[#allocation12 + $0x44] ss:$16 sps:$4 sm:$0xff]   ;;  %v7616_v26 = vld [vmem:[#allocation12 + $0x48] ss:$16 sps:$4 sm:$0xff]  }
 0x2b7   :  { %v1409_v31 = vmul.f32 0.0, %v1406_v29  ;;  %v1407_v35 = vadd.f32 0.5, %v1404_v34  ;;  %v7620_v29 = vld [vmem:[#allocation12 + $0x64] ss:$16 sps:$4 sm:$0xff]  }
 0x2b8   :  { %v7632_v34 = vld [vmem:[#allocation12 + $0x84] ss:$16 sps:$4 sm:$0xff]  }
 0x2b9   :  { %v7543_v27 = vadd.f32 %v1410_v30, %v1409_v31  ;;  %v7622_v30 = vld [vmem:[#allocation12 + $0x6c] ss:$16 sps:$4 sm:$0xff]   ;;  %v7626_v31 = vld [vmem:[#allocation12 + $0x60] ss:$16 sps:$4 sm:$0xff]  }
 0x2bb   :  { %5900 = vtanh.f32 %v7543_v27 }
 0x2c5   :  { %v5901_v36 = vpop.eup %5900 }
 0x2c6   :  { %v1413_v37 = vmul.f32 %v5901_v36, %v1407_v35  ;;  %v7634_v35 = vld [vmem:[#allocation12 + $0x8c] ss:$16 sps:$4 sm:$0xff]   ;;  %v7638_v36 = vld [vmem:[#allocation12 + $0x80] ss:$16 sps:$4 sm:$0xff]  }
 0x2c8   :  { %v7546_v38 = vpack.c.bf16 %v1413_v37, %v1413_v37  ;;  %v7640_v37 = vld [vmem:[#allocation12 + $0x88] ss:$16 sps:$4 sm:$0xff]  }
 0x2ca   :  { %1557 = vmatmul.mubr.bf16.vlgmr.msra.gmra.mrb[36].mxu0 %v7546_v38  ;;  %1598 = vmatmul.mubr.bf16.vlgmr.msra.gmra.mrb[36].mxu1 %v7546_v38 }
 0x2cb   :  { %1607 = vmatpush1.bf16.msra.mxu0 %v10488_v39  ;;  %1648 = vmatpush1.bf16.msra.mxu1 %v10489_v40  ;;  %v7644_v39 = vld [vmem:[#allocation12 + $0xa4] ss:$16 sps:$4 sm:$0xff]   ;;  %v7646_v40 = vld [vmem:[#allocation12 + $0xac] ss:$16 sps:$4 sm:$0xff]  }
 0x2cc   :  { %1608 = vmatprep.subr.bf16.mxu0 %v10490_v32  ;;  %1649 = vmatprep.subr.bf16.mxu1 %v10491_v10  ;;  %v7650_v32 = vld [vmem:[#allocation12 + $0xa0] ss:$16 sps:$4 sm:$0xff]   ;;  %v7652_v10 = vld [vmem:[#allocation12 + $0xa8] ss:$16 sps:$4 sm:$0xff]  }
 0x2cd   :  { %1638 = vmatprep.mubr.bf16.mxu0 %v10440_v50  ;;  %1679 = vmatprep.mubr.bf16.mxu1 %v10440_v50 }
 0x2cf   :  { %1609 = vmatpush1.bf16.msra.mxu0 %v10492_v19  ;;  %1650 = vmatpush1.bf16.msra.mxu1 %v10493_v44  ;;  %v7656_v19 = vld [vmem:[#allocation12 + $0xc4] ss:$16 sps:$4 sm:$0xff]   ;;  %v7658_v44 = vld [vmem:[#allocation12 + $0xcc] ss:$16 sps:$4 sm:$0xff]  }
 0x2d0   :  { %1610 = vmatprep.subr.bf16.mxu0 %v10494_v61  ;;  %1651 = vmatprep.subr.bf16.mxu1 %v10495_v8  ;;  %v7662_v61 = vld [vmem:[#allocation12 + $0xc0] ss:$16 sps:$4 sm:$0xff]   ;;  %v7664_v8 = vld [vmem:[#allocation12 + $0xc8] ss:$16 sps:$4 sm:$0xff]  }
 0x2d3   :  { %1611 = vmatpush1.bf16.msra.mxu0 %v10496_v51  ;;  %1652 = vmatpush1.bf16.msra.mxu1 %v10497_v52  ;;  %v7668_v51 = vld [vmem:[#allocation12 + $0xe4] ss:$16 sps:$4 sm:$0xff]   ;;  %v7670_v52 = vld [vmem:[#allocation12 + $0xec] ss:$16 sps:$4 sm:$0xff]  }
 0x2d4   :  { %1612 = vmatprep.subr.bf16.mxu0 %v10498_v54  ;;  %1653 = vmatprep.subr.bf16.mxu1 %v10499_v53  ;;  %v7674_v54 = vld [vmem:[#allocation12 + $0xe0] ss:$16 sps:$4 sm:$0xff]   ;;  %v7676_v53 = vld [vmem:[#allocation12 + $0xe8] ss:$16 sps:$4 sm:$0xff]  }
 0x2d7   :  { %1613 = vmatpush1.bf16.msra.mxu0 %v10500_v55  ;;  %1654 = vmatpush1.bf16.msra.mxu1 %v10501_v59  ;;  %v7680_v55 = vld [vmem:[#allocation11 + $0x4] ss:$16 sps:$4 sm:$0xff]   ;;  %v7682_v59 = vld [vmem:[#allocation11 + $0xc] ss:$16 sps:$4 sm:$0xff]  }
 0x2d8   :  { %1614 = vmatprep.subr.bf16.mxu0 %v10502_v56  ;;  %1655 = vmatprep.subr.bf16.mxu1 %v10503_v57  ;;  %10514 = vst [vmem:[#allocation45_spill] sm:$0xff] %v7680_v55  ;;  %10515 = vst [vmem:[#allocation46_spill] sm:$0xff] %v7682_v59  ;;  %v7686_v56 = vld [vmem:[#allocation11] ss:$16 sps:$4 sm:$0xff]   ;;  %v7688_v57 = vld [vmem:[#allocation11 + $0x8] ss:$16 sps:$4 sm:$0xff]  }
 0x2d9   :  { %10516 = vst [vmem:[#allocation47_spill] sm:$0xff] %v7686_v56  ;;  %10517 = vst [vmem:[#allocation48_spill] sm:$0xff] %v7688_v57 }
 0x2db   :  { %1615 = vmatpush1.bf16.msra.mxu0 %v10504_v12  ;;  %1656 = vmatpush1.bf16.msra.mxu1 %v10505_v16  ;;  %v7692_v12 = vld [vmem:[#allocation11 + $0x24] ss:$16 sps:$4 sm:$0xff]   ;;  %v7694_v16 = vld [vmem:[#allocation11 + $0x2c] ss:$16 sps:$4 sm:$0xff]  }
 0x2dc   :  { %1616 = vmatprep.subr.bf16.mxu0 %v10506_v20  ;;  %1657 = vmatprep.subr.bf16.mxu1 %v10507_v6  ;;  %10518 = vst [vmem:[#allocation49_spill] sm:$0xff] %v7692_v12  ;;  %10519 = vst [vmem:[#allocation20_spill] sm:$0xff] %v7694_v16  ;;  %v7700_v20 = vld [vmem:[#allocation11 + $0x20] ss:$16 sps:$4 sm:$0xff]   ;;  %v7702_v6 = vld [vmem:[#allocation11 + $0x28] ss:$16 sps:$4 sm:$0xff]  }
 0x2dd   :  { %10520 = vst [vmem:[#allocation50_spill] sm:$0xff] %v7700_v20  ;;  %10521 = vst [vmem:[#allocation51_spill] sm:$0xff] %v7702_v6 }
 0x2df   :  { %1617 = vmatpush1.bf16.msra.mxu0 %v10508_v58  ;;  %1658 = vmatpush1.bf16.msra.mxu1 %v7378_v18  ;;  %v7586_v18 = vld [vmem:[#allocation12] ss:$16 sps:$4 sm:$0xff]   ;;  %v7706_v58 = vld [vmem:[#allocation11 + $0x44] ss:$16 sps:$4 sm:$0xff]  }
 0x2e0   :  { %1618 = vmatprep.subr.bf16.mxu0 %v10509_v43  ;;  %1659 = vmatprep.subr.bf16.mxu1 %v10510_v25  ;;  %10522 = vst [vmem:[#allocation52_spill] sm:$0xff] %v7706_v58  ;;  %v7708_v43 = vld [vmem:[#allocation11 + $0x4c] ss:$16 sps:$4 sm:$0xff]   ;;  %v7714_v25 = vld [vmem:[#allocation11 + $0x40] ss:$16 sps:$4 sm:$0xff]  }
 0x2e1   :  { %10523 = vst [vmem:[#allocation53_spill] sm:$0xff] %v7708_v43  ;;  %10524 = vst [vmem:[#allocation54_spill] sm:$0xff] %v7714_v25 }
 0x2e3   :  { %1619 = vmatpush1.bf16.msra.mxu0 %v7388_v11  ;;  %1660 = vmatpush1.bf16.msra.mxu1 %v10511_v0  ;;  %v7592_v11 = vld [vmem:[#allocation12 + $0x24] ss:$16 sps:$4 sm:$0xff]   ;;  %v7716_v0 = vld [vmem:[#allocation11 + $0x48] ss:$16 sps:$4 sm:$0xff]  }
 0x2e4   :  { %1620 = vmatprep.subr.bf16.mxu0 %v7394_v7  ;;  %1661 = vmatprep.subr.bf16.mxu1 %v10512_v63  ;;  %v7594_v7 = vld [vmem:[#allocation12 + $0x2c] ss:$16 sps:$4 sm:$0xff]   ;;  %10525 = vst [vmem:[#allocation55_spill] sm:$0xff] %v7716_v0  ;;  %v7720_v63 = vld [vmem:[#allocation11 + $0x64] ss:$16 sps:$4 sm:$0xff]  }
 0x2e5   :  { %10526 = vst [vmem:[#allocation56_spill] sm:$0xff] %v7720_v63 }
 0x2e7   :  { %1621 = vmatpush1.bf16.msra.mxu0 %v7400_v45  ;;  %1662 = vmatpush1.bf16.msra.mxu1 %v10513_v62  ;;  %v7600_v45 = vld [vmem:[#allocation12 + $0x20] ss:$16 sps:$4 sm:$0xff]   ;;  %v7722_v62 = vld [vmem:[#allocation11 + $0x6c] ss:$16 sps:$4 sm:$0xff]  }
 0x2e8   :  { %1935 = vmatprep.subr.bf16.mxu0 %v7580_v21  ;;  %1976 = vmatprep.subr.bf16.mxu1 %v7582_v60  ;;  %10527 = vst [vmem:[#allocation57_spill] sm:$0xff] %v7722_v62 }
 0x2ea   :  { %1639 = vmatmul.mubr.bf16.vlgmr.msra.gmra.mrb[40].mxu0 %v7486_v41  ;;  %1680 = vmatmul.mubr.bf16.vlgmr.msra.gmra.mrb[40].mxu1 %v7486_v41  ;;  %v7614_v41 = vld [vmem:[#allocation12 + $0x40] ss:$16 sps:$4 sm:$0xff]  }
 0x2eb   :  { %1936 = vmatpush1.bf16.msra.mxu0 %v7586_v18  ;;  %1977 = vmatpush1.bf16.msra.mxu1 %v7588_v23 }
 0x2ec   :  { %1937 = vmatprep.subr.bf16.mxu0 %v7592_v11  ;;  %1978 = vmatprep.subr.bf16.mxu1 %v7594_v7 }
 0x2ed   :  { %1967 = vmatprep.mubr.bf16.mxu0 %v10440_v50  ;;  %2008 = vmatprep.mubr.bf16.mxu1 %v10440_v50 }
 0x2ef   :  { %1938 = vmatpush1.bf16.msra.mxu0 %v7600_v45  ;;  %1979 = vmatpush1.bf16.msra.mxu1 %v7602_v1 }
 0x2f0   :  { %1939 = vmatprep.subr.bf16.mxu0 %v7606_v24  ;;  %1980 = vmatprep.subr.bf16.mxu1 %v7608_v2 }
 0x2f3   :  { %1940 = vmatpush1.bf16.msra.mxu0 %v7614_v41  ;;  %1981 = vmatpush1.bf16.msra.mxu1 %v7616_v26 }
 0x2f4   :  { %1941 = vmatprep.subr.bf16.mxu0 %v7620_v29  ;;  %1982 = vmatprep.subr.bf16.mxu1 %v7622_v30 }
 0x2f7   :  { %1942 = vmatpush1.bf16.msra.mxu0 %v7626_v31  ;;  %1983 = vmatpush1.bf16.msra.mxu1 %v7628_v33 }
 0x2f8   :  { %1943 = vmatprep.subr.bf16.mxu0 %v7632_v34  ;;  %1984 = vmatprep.subr.bf16.mxu1 %v7634_v35 }
 0x2fb   :  { %1944 = vmatpush1.bf16.msra.mxu0 %v7638_v36  ;;  %1985 = vmatpush1.bf16.msra.mxu1 %v7640_v37 }
 0x2fc   :  { %1945 = vmatprep.subr.bf16.mxu0 %v7644_v39  ;;  %1986 = vmatprep.subr.bf16.mxu1 %v7646_v40 }
 0x2ff   :  { %1946 = vmatpush1.bf16.msra.mxu0 %v7650_v32  ;;  %1987 = vmatpush1.bf16.msra.mxu1 %v7652_v10 }
 0x300   :  { %1947 = vmatprep.subr.bf16.mxu0 %v7656_v19  ;;  %1988 = vmatprep.subr.bf16.mxu1 %v7658_v44 }
 0x303   :  { %1948 = vmatpush1.bf16.msra.mxu0 %v7662_v61  ;;  %1989 = vmatpush1.bf16.msra.mxu1 %v7664_v8 }
 0x304   :  { %1949 = vmatprep.subr.bf16.mxu0 %v7668_v51  ;;  %1990 = vmatprep.subr.bf16.mxu1 %v7670_v52 }
 0x307   :  { %1950 = vmatpush1.bf16.msra.mxu0 %v7674_v54  ;;  %1991 = vmatpush1.bf16.msra.mxu1 %v7676_v53 }
 0x308   :  { %2177 = vmatprep.subr.bf16.mxu0 %v7680_v55  ;;  %2218 = vmatprep.subr.bf16.mxu1 %v7682_v59 }
 0x30a   :  { %1968 = vmatmul.mubr.bf16.vlgmr.msra.gmra.mrb[44].mxu0 %v10440_v50  ;;  %2009 = vmatmul.mubr.bf16.vlgmr.msra.gmra.mrb[44].mxu1 %v10440_v50 }
 0x30b   :  { %2178 = vmatpush1.bf16.msra.mxu0 %v7686_v56  ;;  %2219 = vmatpush1.bf16.msra.mxu1 %v7688_v57 }
 0x30c   :  { %2179 = vmatprep.subr.bf16.mxu0 %v7692_v12  ;;  %2220 = vmatprep.subr.bf16.mxu1 %v7694_v16  ;;  %v7726_v16 = vld [vmem:[#allocation11 + $0x60] ss:$16 sps:$4 sm:$0xff]  }
 0x30d   :  { %2209 = vmatprep.mubr.bf16.mxu0 %v10440_v50  ;;  %2250 = vmatprep.mubr.bf16.mxu1 %v10440_v50  ;;  %10528 = vst [vmem:[#allocation58_spill] sm:$0xff] %v7726_v16 }
 0x30f   :  { %2180 = vmatpush1.bf16.msra.mxu0 %v7700_v20  ;;  %2221 = vmatpush1.bf16.msra.mxu1 %v7702_v6  ;;  %v7728_v20 = vld [vmem:[#allocation11 + $0x68] ss:$16 sps:$4 sm:$0xff]   ;;  %v7732_v6 = vld [vmem:[#allocation11 + $0x84] ss:$16 sps:$4 sm:$0xff]  }
 0x310   :  { %2181 = vmatprep.subr.bf16.mxu0 %v7706_v58  ;;  %2222 = vmatprep.subr.bf16.mxu1 %v7708_v43  ;;  %10529 = vst [vmem:[#allocation59_spill] sm:$0xff] %v7728_v20  ;;  %10530 = vst [vmem:[#allocation60_spill] sm:$0xff] %v7732_v6  ;;  %v7734_v58 = vld [vmem:[#allocation11 + $0x8c] ss:$16 sps:$4 sm:$0xff]   ;;  %v7738_v43 = vld [vmem:[#allocation11 + $0x80] ss:$16 sps:$4 sm:$0xff]  }
 0x311   :  { %10531 = vst [vmem:[#allocation61_spill] sm:$0xff] %v7734_v58  ;;  %10532 = vst [vmem:[#allocation62_spill] sm:$0xff] %v7738_v43 }
 0x313   :  { %2182 = vmatpush1.bf16.msra.mxu0 %v7714_v25  ;;  %2223 = vmatpush1.bf16.msra.mxu1 %v7716_v0  ;;  %v7740_v25 = vld [vmem:[#allocation11 + $0x88] ss:$16 sps:$4 sm:$0xff]   ;;  %v7744_v0 = vld [vmem:[#allocation11 + $0xa4] ss:$16 sps:$4 sm:$0xff]  }
 0x314   :  { %2183 = vmatprep.subr.bf16.mxu0 %v7720_v63  ;;  %2224 = vmatprep.subr.bf16.mxu1 %v7722_v62  ;;  %10533 = vst [vmem:[#allocation63_spill] sm:$0xff] %v7740_v25  ;;  %10534 = vst [vmem:[#allocation64_spill] sm:$0xff] %v7744_v0  ;;  %v7746_v63 = vld [vmem:[#allocation11 + $0xac] ss:$16 sps:$4 sm:$0xff]   ;;  %v7750_v62 = vld [vmem:[#allocation11 + $0xa0] ss:$16 sps:$4 sm:$0xff]  }
 0x315   :  { %10535 = vst [vmem:[#allocation65_spill] sm:$0xff] %v7746_v63  ;;  %10536 = vst [vmem:[#allocation66_spill] sm:$0xff] %v7750_v62 }
 0x317   :  { %2184 = vmatpush1.bf16.msra.mxu0 %v7726_v16  ;;  %2225 = vmatpush1.bf16.msra.mxu1 %v7728_v20  ;;  %v7752_v16 = vld [vmem:[#allocation11 + $0xa8] ss:$16 sps:$4 sm:$0xff]   ;;  %v7756_v20 = vld [vmem:[#allocation11 + $0xc4] ss:$16 sps:$4 sm:$0xff]  }
 0x318   :  { %2185 = vmatprep.subr.bf16.mxu0 %v7732_v6  ;;  %2226 = vmatprep.subr.bf16.mxu1 %v7734_v58  ;;  %10537 = vst [vmem:[#allocation67_spill] sm:$0xff] %v7752_v16  ;;  %10538 = vst [vmem:[#allocation68_spill] sm:$0xff] %v7756_v20  ;;  %v7758_v6 = vld [vmem:[#allocation11 + $0xcc] ss:$16 sps:$4 sm:$0xff]   ;;  %v7762_v58 = vld [vmem:[#allocation11 + $0xc0] ss:$16 sps:$4 sm:$0xff]  }
 0x319   :  { %10539 = vst [vmem:[#allocation69_spill] sm:$0xff] %v7758_v6  ;;  %10540 = vst [vmem:[#allocation70_spill] sm:$0xff] %v7762_v58 }
 0x31b   :  { %2186 = vmatpush1.bf16.msra.mxu0 %v7738_v43  ;;  %2227 = vmatpush1.bf16.msra.mxu1 %v7740_v25  ;;  %v7764_v43 = vld [vmem:[#allocation11 + $0xc8] ss:$16 sps:$4 sm:$0xff]   ;;  %v7768_v25 = vld [vmem:[#allocation11 + $0xe4] ss:$16 sps:$4 sm:$0xff]  }
 0x31c   :  { %2187 = vmatprep.subr.bf16.mxu0 %v7744_v0  ;;  %2228 = vmatprep.subr.bf16.mxu1 %v7746_v63  ;;  %10541 = vst [vmem:[#allocation71_spill] sm:$0xff] %v7764_v43  ;;  %10542 = vst [vmem:[#allocation72_spill] sm:$0xff] %v7768_v25  ;;  %v7770_v0 = vld [vmem:[#allocation11 + $0xec] ss:$16 sps:$4 sm:$0xff]   ;;  %v7774_v63 = vld [vmem:[#allocation11 + $0xe0] ss:$16 sps:$4 sm:$0xff]  }
 0x31d   :  { %10543 = vst [vmem:[#allocation73_spill] sm:$0xff] %v7770_v0  ;;  %10544 = vst [vmem:[#allocation74_spill] sm:$0xff] %v7774_v63 }
 0x31f   :  { %2188 = vmatpush1.bf16.msra.mxu0 %v7750_v62  ;;  %2229 = vmatpush1.bf16.msra.mxu1 %v7752_v16  ;;  %v7776_v62 = vld [vmem:[#allocation11 + $0xe8] ss:$16 sps:$4 sm:$0xff]  }
 0x320   :  { %2189 = vmatprep.subr.bf16.mxu0 %v7756_v20  ;;  %2230 = vmatprep.subr.bf16.mxu1 %v7758_v6  ;;  %10545 = vst [vmem:[#allocation75_spill] sm:$0xff] %v7776_v62  ;;  %v10546_v6 = vld [vmem:[#allocation76_spill] sm:$0xff]  ;;  %v10547_v20 = vld [vmem:[#allocation77_spill] sm:$0xff] }
 0x321   :  { %v10550_v16 = vld [vmem:[#allocation80_spill] sm:$0xff] }
 0x323   :  { %2190 = vmatpush1.bf16.msra.mxu0 %v7762_v58  ;;  %2231 = vmatpush1.bf16.msra.mxu1 %v7764_v43  ;;  %v10548_v43 = vld [vmem:[#allocation78_spill] sm:$0xff]  ;;  %v10549_v58 = vld [vmem:[#allocation79_spill] sm:$0xff] }
 0x324   :  { %2191 = vmatprep.subr.bf16.mxu0 %v7768_v25  ;;  %2232 = vmatprep.subr.bf16.mxu1 %v7770_v0  ;;  %v10551_v25 = vld [vmem:[#allocation81_spill] sm:$0xff] }
 0x327   :  { %2192 = vmatpush1.bf16.msra.mxu0 %v7774_v63  ;;  %2233 = vmatpush1.bf16.msra.mxu1 %v7776_v62  ;;  %v10552_v62 = vld [vmem:[#allocation82_spill] sm:$0xff]  ;;  %v10555_v63 = vld [vmem:[#allocation85_spill] sm:$0xff] }
 0x328   :  { %2286 = vmatprep.subr.bf16.mxu0 %v10546_v6  ;;  %2327 = vmatprep.subr.bf16.mxu1 %v10547_v20  ;;  %v10553_v6 = vld [vmem:[#allocation83_spill] sm:$0xff]  ;;  %v10554_v20 = vld [vmem:[#allocation84_spill] sm:$0xff] }
 0x32a   :  { %2210 = vmatmul.mubr.bf16.vlgmr.msra.gmra.mrb[48].mxu0 %v7546_v38  ;;  %2251 = vmatmul.mubr.bf16.vlgmr.msra.gmra.mrb[48].mxu1 %v7546_v38  ;;  %v7802_v38 = vld [vmem:[#allocation6 + $0x84] ss:$16 sps:$4 sm:$0xff]  }
 0x32b   :  { %2287 = vmatpush1.bf16.msra.mxu0 %v10548_v43  ;;  %2328 = vmatpush1.bf16.msra.mxu1 %v10549_v58  ;;  %10556 = vst [vmem:[#allocation76_spill] sm:$0xff] %v7802_v38  ;;  %v7808_v58 = vld [vmem:[#allocation6 + $0x80] ss:$16 sps:$4 sm:$0xff]   ;;  %v7829_v43 = vld [vmem:[#allocation6 + $0xcc] ss:$16 sps:$4 sm:$0xff]  }
 0x32c   :  { %2288 = vmatprep.subr.bf16.mxu0 %v10550_v16  ;;  %2329 = vmatprep.subr.bf16.mxu1 %v10551_v25  ;;  %v7805_v16 = vld [vmem:[#allocation6 + $0x8c] ss:$16 sps:$4 sm:$0xff]   ;;  %10558 = vst [vmem:[#allocation78_spill] sm:$0xff] %v7808_v58  ;;  %10565 = vst [vmem:[#allocation85_spill] sm:$0xff] %v7829_v43  ;;  %v7832_v25 = vld [vmem:[#allocation6 + $0xc0] ss:$16 sps:$4 sm:$0xff]  }
 0x32d   :  { %2318 = vmatprep.mubr.bf16.mxu0 %v10440_v50  ;;  %2359 = vmatprep.mubr.bf16.mxu1 %v10440_v50  ;;  %10557 = vst [vmem:[#allocation77_spill] sm:$0xff] %v7805_v16  ;;  %10566 = vst [vmem:[#allocation86_spill] sm:$0xff] %v7832_v25 }
 0x32f   :  { %2289 = vmatpush1.bf16.msra.mxu0 %v10552_v62  ;;  %2330 = vmatpush1.bf16.msra.mxu1 %v10553_v6  ;;  %v7838_v62 = vld [vmem:[#allocation6 + $0xe4] ss:$16 sps:$4 sm:$0xff]   ;;  %v7841_v6 = vld [vmem:[#allocation6 + $0xec] ss:$16 sps:$4 sm:$0xff]  }
 0x330   :  { %2290 = vmatprep.subr.bf16.mxu0 %v10554_v20  ;;  %2331 = vmatprep.subr.bf16.mxu1 %v10555_v63  ;;  %v7835_v63 = vld [vmem:[#allocation6 + $0xc8] ss:$16 sps:$4 sm:$0xff]   ;;  %10568 = vst [vmem:[#allocation88_spill] sm:$0xff] %v7838_v62  ;;  %10569 = vst [vmem:[#allocation89_spill] sm:$0xff] %v7841_v6  ;;  %v7844_v20 = vld [vmem:[#allocation6 + $0xe0] ss:$16 sps:$4 sm:$0xff]  }
 0x331   :  { %10567 = vst [vmem:[#allocation87_spill] sm:$0xff] %v7835_v63  ;;  %10570 = vst [vmem:[#allocation90_spill] sm:$0xff] %v7844_v20 }
 0x333   :  { %2291 = vmatpush1.bf16.msra.mxu0 %v7442_v17  ;;  %2332 = vmatpush1.bf16.msra.mxu1 %v7445_v15  ;;  %v7811_v15 = vld [vmem:[#allocation6 + $0x88] ss:$16 sps:$4 sm:$0xff]  }
 0x334   :  { %2292 = vmatprep.subr.bf16.mxu0 %v7448_v14  ;;  %2333 = vmatprep.subr.bf16.mxu1 %v7451_v13  ;;  %10559 = vst [vmem:[#allocation79_spill] sm:$0xff] %v7811_v15  ;;  %v7814_v13 = vld [vmem:[#allocation6 + $0xa4] ss:$16 sps:$4 sm:$0xff]   ;;  %v7823_v17 = vld [vmem:[#allocation6 + $0xa8] ss:$16 sps:$4 sm:$0xff]  }
 0x335   :  { %10560 = vst [vmem:[#allocation80_spill] sm:$0xff] %v7814_v13  ;;  %10563 = vst [vmem:[#allocation83_spill] sm:$0xff] %v7823_v17  ;;  %v7826_v14 = vld [vmem:[#allocation6 + $0xc4] ss:$16 sps:$4 sm:$0xff]  }
 0x336   :  { %10564 = vst [vmem:[#allocation84_spill] sm:$0xff] %v7826_v14 }
 0x337   :  { %2293 = vmatpush1.bf16.msra.mxu0 %v7454_v9  ;;  %2334 = vmatpush1.bf16.msra.mxu1 %v7457_v5  ;;  %v7817_v5 = vld [vmem:[#allocation6 + $0xac] ss:$16 sps:$4 sm:$0xff]   ;;  %v7820_v9 = vld [vmem:[#allocation6 + $0xa0] ss:$16 sps:$4 sm:$0xff]  }
 0x338   :  { %2294 = vmatprep.subr.bf16.mxu0 %v7802_v38  ;;  %2335 = vmatprep.subr.bf16.mxu1 %v7805_v16  ;;  %10561 = vst [vmem:[#allocation81_spill] sm:$0xff] %v7817_v5  ;;  %10562 = vst [vmem:[#allocation82_spill] sm:$0xff] %v7820_v9  ;;  %v10577_v16 = vld [vmem:[#allocation24_spill] sm:$0xff] }
 0x33b   :  { %2295 = vmatpush1.bf16.msra.mxu0 %v7808_v58  ;;  %2336 = vmatpush1.bf16.msra.mxu1 %v7811_v15  ;;  %v10576_v15 = vld [vmem:[#allocation23_spill] sm:$0xff] }
 0x33c   :  { %2296 = vmatprep.subr.bf16.mxu0 %v7814_v13  ;;  %2337 = vmatprep.subr.bf16.mxu1 %v7817_v5 }
 0x33f   :  { %2297 = vmatpush1.bf16.msra.mxu0 %v7820_v9  ;;  %2338 = vmatpush1.bf16.msra.mxu1 %v7823_v17  ;;  %v10574_v17 = vld [vmem:[#allocation21_spill] sm:$0xff]  ;;  %v10575_v9 = vld [vmem:[#allocation22_spill] sm:$0xff] }
 0x340   :  { %2298 = vmatprep.subr.bf16.mxu0 %v7826_v14  ;;  %2339 = vmatprep.subr.bf16.mxu1 %v7829_v43  ;;  %v7847_v43 = vld [vmem:[#allocation6 + $0xe8] ss:$16 sps:$4 sm:$0xff]  }
 0x341   :  { %10571 = vst [vmem:[#allocation91_spill] sm:$0xff] %v7847_v43 }
 0x343   :  { %2299 = vmatpush1.bf16.msra.mxu0 %v7832_v25  ;;  %2340 = vmatpush1.bf16.msra.mxu1 %v7835_v63  ;;  %v7850_v25 = vld [vmem:[#allocation9 + $0x4] ss:$16 sps:$4 sm:$0xff]   ;;  %v7853_v63 = vld [vmem:[#allocation9 + $0xc] ss:$16 sps:$4 sm:$0xff]  }
 0x344   :  { %2300 = vmatprep.subr.bf16.mxu0 %v7838_v62  ;;  %2341 = vmatprep.subr.bf16.mxu1 %v7841_v6  ;;  %10572 = vst [vmem:[#allocation92_spill] sm:$0xff] %v7850_v25  ;;  %10573 = vst [vmem:[#allocation93_spill] sm:$0xff] %v7853_v63 }
 0x347   :  { %2301 = vmatpush1.bf16.msra.mxu0 %v7844_v20  ;;  %2342 = vmatpush1.bf16.msra.mxu1 %v7847_v43 }
 0x348   :  { %2391 = vmatprep.subr.bf16.mxu0 %v7850_v25  ;;  %2432 = vmatprep.subr.bf16.mxu1 %v7853_v63 }
 0x35c   :  { %v1453_v62 = vpop.f32.mrb[32].mxu0  ;;  %v1494_v14 = vpop.f32.mrb[32].mxu1 }
 0x35d   :  { %v1501_v6 = vadd.f32 %v1453_v62, %v10574_v17  ;;  %v1503_v5 = vadd.f32 %v1494_v14, %v10575_v9  ;;  %v1455_v13 = vpop.f32.mrb[33].mxu0  ;;  %v1496_v20 = vpop.f32.mrb[33].mxu1 }
 0x35e   :  { %v1502_v58 = vadd.f32 %v1455_v13, %v10576_v15  ;;  %v1504_v43 = vadd.f32 %v1496_v20, %v10577_v16  ;;  %v1457_v38 = vpop.f32.mrb[34].mxu0  ;;  %v1498_v0 = vpop.f32.mrb[34].mxu1  ;;  %v7891_v20 = vld [vmem:[#allocation9 + $0x4c] ss:$16 sps:$4 sm:$0xff]  }
 0x35f   :  { %v1505_v12 = vmul.f32 0.5, %v1501_v6  ;;  %v1458_v25 = vpop.f32.mrb[35].mxu0  ;;  %v1499_v57 = vpop.f32.mrb[35].mxu1  ;;  %v1507_v63 = vmul.f32 0.5, %v1503_v5  ;;  %v7888_v6 = vld [vmem:[#allocation9 + $0x44] ss:$16 sps:$4 sm:$0xff]  }
 0x360   :  { %v1506_v56 = vmul.f32 0.5, %v1502_v58  ;;  %v7882_v25 = vld [vmem:[#allocation9 + $0x20] ss:$16 sps:$4 sm:$0xff]   ;;  %10585 = vst [vmem:[#allocation97_spill] sm:$0xff] %v7888_v6  ;;  %10586 = vst [vmem:[#allocation98_spill] sm:$0xff] %v7891_v20 }
 0x361   :  { %5902 = vtanh.f32 %v1505_v12  ;;  %10583 = vst [vmem:[#allocation95_spill] sm:$0xff] %v7882_v25 }
 0x362   :  { %5904 = vtanh.f32 %v1506_v56 }
 0x363   :  { %5906 = vtanh.f32 %v1504_v43  ;;  %v7877_v43 = vld [vmem:[#allocation9 + $0x2c] ss:$16 sps:$4 sm:$0xff]  }
 0x364   :  { %5908 = vtanh.f32 %v1507_v63  ;;  %10582 = vst [vmem:[#allocation94_spill] sm:$0xff] %v7877_v43  ;;  %v7885_v63 = vld [vmem:[#allocation9 + $0x28] ss:$16 sps:$4 sm:$0xff]  }
 0x365   :  { %10584 = vst [vmem:[#allocation96_spill] sm:$0xff] %v7885_v63 }
 0x36b   :  { %v5903_v59 = vpop.eup %5902 }
 0x36c   :  { %v1511_v17 = vmul.f32 0.5, %v5903_v59  ;;  %v5905_v62 = vpop.eup %5904  ;;  %v7868_v59 = vld [vmem:[#allocation9] ss:$16 sps:$4 sm:$0xff]  }
 0x36d   :  { %v1512_v14 = vmul.f32 0.5, %v5905_v62  ;;  %v5907_v55 = vpop.eup %5906  ;;  %10579 = vst [vmem:[#allocation22_spill] sm:$0xff] %v7868_v59  ;;  %v7897_v62 = vld [vmem:[#allocation9 + $0x48] ss:$16 sps:$4 sm:$0xff]  }
 0x36e   :  { %v1514_v9 = vadd.f32 0.5, %v1511_v17  ;;  %v5909_v57 = vpop.eup %5908  ;;  %v7894_v17 = vld [vmem:[#allocation9 + $0x40] ss:$16 sps:$4 sm:$0xff]   ;;  %10588 = vst [vmem:[#allocation100_spill] sm:$0xff] %v7897_v62 }
 0x36f   :  { %v1515_v15 = vadd.f32 0.5, %v1512_v14  ;;  %v1513_v12 = vmul.f32 0.5, %v5909_v57  ;;  %10587 = vst [vmem:[#allocation99_spill] sm:$0xff] %v7894_v17  ;;  %v7903_v14 = vld [vmem:[#allocation9 + $0x6c] ss:$16 sps:$4 sm:$0xff]  }
 0x370   :  { %v1519_v13 = vmul.f32 %v5907_v55, %v1514_v9  ;;  %v7874_v55 = vld [vmem:[#allocation9 + $0x24] ss:$16 sps:$4 sm:$0xff]   ;;  %10590 = vst [vmem:[#allocation102_spill] sm:$0xff] %v7903_v14  ;;  %v7915_v57 = vld [vmem:[#allocation9 + $0x8c] ss:$16 sps:$4 sm:$0xff]  }
 0x371   :  { %v1518_v38 = vmul.f32 %v1515_v15, %v7483_v28  ;;  %v1516_v56 = vadd.f32 0.5, %v1513_v12  ;;  %v7871_v28 = vld [vmem:[#allocation9 + $0x8] ss:$16 sps:$4 sm:$0xff]   ;;  %10581 = vst [vmem:[#allocation24_spill] sm:$0xff] %v7874_v55  ;;  %v7900_v9 = vld [vmem:[#allocation9 + $0x64] ss:$16 sps:$4 sm:$0xff]  }
 0x372   :  { %10580 = vst [vmem:[#allocation23_spill] sm:$0xff] %v7871_v28  ;;  %10589 = vst [vmem:[#allocation101_spill] sm:$0xff] %v7900_v9  ;;  %v7906_v15 = vld [vmem:[#allocation9 + $0x60] ss:$16 sps:$4 sm:$0xff]  }
 0x373   :  { %v7861_v0 = vadd.f32 %v1519_v13, %v1518_v38  ;;  %10591 = vst [vmem:[#allocation103_spill] sm:$0xff] %v7906_v15  ;;  %v7909_v13 = vld [vmem:[#allocation9 + $0x68] ss:$16 sps:$4 sm:$0xff]   ;;  %v7912_v38 = vld [vmem:[#allocation9 + $0x84] ss:$16 sps:$4 sm:$0xff]   ;;  %10594 = vst [vmem:[#allocation106_spill] sm:$0xff] %v7915_v57 }
 0x374   :  { %10592 = vst [vmem:[#allocation104_spill] sm:$0xff] %v7909_v13  ;;  %10593 = vst [vmem:[#allocation105_spill] sm:$0xff] %v7912_v38  ;;  %v7918_v12 = vld [vmem:[#allocation9 + $0x80] ss:$16 sps:$4 sm:$0xff]  }
 0x375   :  { %10578 = vst [vmem:[#allocation21_spill] sm:$0xff] %v7861_v0  ;;  %5910 = vtanh.f32 %v7861_v0  ;;  %10595 = vst [vmem:[#allocation107_spill] sm:$0xff] %v7918_v12 }
 0x37f   :  { %v5911_v16 = vpop.eup %5910 }
 0x380   :  { %v1522_v58 = vmul.f32 %v5911_v16, %v1516_v56  ;;  %v7921_v56 = vld [vmem:[#allocation9 + $0x88] ss:$16 sps:$4 sm:$0xff]   ;;  %v7924_v16 = vld [vmem:[#allocation9 + $0xa4] ss:$16 sps:$4 sm:$0xff]  }
 0x381   :  { %10596 = vst [vmem:[#allocation108_spill] sm:$0xff] %v7921_v56  ;;  %10597 = vst [vmem:[#allocation109_spill] sm:$0xff] %v7924_v16 }
 0x382   :  { %v7864_v5 = vpack.c.bf16 %v1522_v58, %v1522_v58  ;;  %v7927_v58 = vld [vmem:[#allocation9 + $0xac] ss:$16 sps:$4 sm:$0xff]  }
 0x383   :  { %10598 = vst [vmem:[#allocation110_spill] sm:$0xff] %v7927_v58 }
 0x384   :  { %2319 = vmatmul.mubr.bf16.vlgmr.msra.gmra.mrb[52].mxu0 %v7864_v5  ;;  %2360 = vmatmul.mubr.bf16.vlgmr.msra.gmra.mrb[52].mxu1 %v7864_v5 }
 0x385   :  { %2392 = vmatpush1.bf16.msra.mxu0 %v7868_v59  ;;  %2433 = vmatpush1.bf16.msra.mxu1 %v7871_v28 }
 0x386   :  { %2393 = vmatprep.subr.bf16.mxu0 %v7874_v55  ;;  %2434 = vmatprep.subr.bf16.mxu1 %v7877_v43 }
 0x387   :  { %2423 = vmatprep.mubr.bf16.mxu0 %v10440_v50  ;;  %2464 = vmatprep.mubr.bf16.mxu1 %v10440_v50 }
 0x389   :  { %2394 = vmatpush1.bf16.msra.mxu0 %v7882_v25  ;;  %2435 = vmatpush1.bf16.msra.mxu1 %v7885_v63 }
 0x38a   :  { %2395 = vmatprep.subr.bf16.mxu0 %v7888_v6  ;;  %2436 = vmatprep.subr.bf16.mxu1 %v7891_v20  ;;  %v7954_v20 = vld [vmem:[#allocation9 + $0xe0] ss:$16 sps:$4 sm:$0xff]  }
 0x38b   :  { %10607 = vst [vmem:[#allocation119_spill] sm:$0xff] %v7954_v20 }
 0x38d   :  { %2396 = vmatpush1.bf16.msra.mxu0 %v7894_v17  ;;  %2437 = vmatpush1.bf16.msra.mxu1 %v7897_v62 }
 0x38e   :  { %2397 = vmatprep.subr.bf16.mxu0 %v7900_v9  ;;  %2438 = vmatprep.subr.bf16.mxu1 %v7903_v14  ;;  %v7948_v14 = vld [vmem:[#allocation9 + $0xe4] ss:$16 sps:$4 sm:$0xff]  }
 0x38f   :  { %10605 = vst [vmem:[#allocation117_spill] sm:$0xff] %v7948_v14 }
 0x391   :  { %2398 = vmatpush1.bf16.msra.mxu0 %v7906_v15  ;;  %2439 = vmatpush1.bf16.msra.mxu1 %v7909_v13  ;;  %v7942_v15 = vld [vmem:[#allocation9 + $0xc0] ss:$16 sps:$4 sm:$0xff]  }
 0x392   :  { %2399 = vmatprep.subr.bf16.mxu0 %v7912_v38  ;;  %2440 = vmatprep.subr.bf16.mxu1 %v7915_v57  ;;  %v7930_v38 = vld [vmem:[#allocation9 + $0xa0] ss:$16 sps:$4 sm:$0xff]   ;;  %v7933_v57 = vld [vmem:[#allocation9 + $0xa8] ss:$16 sps:$4 sm:$0xff]   ;;  %10603 = vst [vmem:[#allocation115_spill] sm:$0xff] %v7942_v15 }
 0x393   :  { %10599 = vst [vmem:[#allocation111_spill] sm:$0xff] %v7930_v38  ;;  %10600 = vst [vmem:[#allocation112_spill] sm:$0xff] %v7933_v57 }
 0x395   :  { %2400 = vmatpush1.bf16.msra.mxu0 %v7918_v12  ;;  %2441 = vmatpush1.bf16.msra.mxu1 %v7921_v56  ;;  %v7936_v12 = vld [vmem:[#allocation9 + $0xc4] ss:$16 sps:$4 sm:$0xff]   ;;  %v7939_v56 = vld [vmem:[#allocation9 + $0xcc] ss:$16 sps:$4 sm:$0xff]  }
 0x396   :  { %2401 = vmatprep.subr.bf16.mxu0 %v7924_v16  ;;  %2442 = vmatprep.subr.bf16.mxu1 %v7927_v58  ;;  %10601 = vst [vmem:[#allocation113_spill] sm:$0xff] %v7936_v12  ;;  %10602 = vst [vmem:[#allocation114_spill] sm:$0xff] %v7939_v56  ;;  %v7945_v58 = vld [vmem:[#allocation9 + $0xc8] ss:$16 sps:$4 sm:$0xff]  }
 0x397   :  { %10604 = vst [vmem:[#allocation116_spill] sm:$0xff] %v7945_v58 }
 0x399   :  { %2402 = vmatpush1.bf16.msra.mxu0 %v7930_v38  ;;  %2443 = vmatpush1.bf16.msra.mxu1 %v7933_v57 }
 0x39a   :  { %2403 = vmatprep.subr.bf16.mxu0 %v7936_v12  ;;  %2444 = vmatprep.subr.bf16.mxu1 %v7939_v56  ;;  %v7951_v12 = vld [vmem:[#allocation9 + $0xec] ss:$16 sps:$4 sm:$0xff]  }
 0x39b   :  { %10606 = vst [vmem:[#allocation118_spill] sm:$0xff] %v7951_v12 }
 0x39d   :  { %v1558_v16 = vpop.f32.mrb[36].mxu0  ;;  %v1599_v13 = vpop.f32.mrb[36].mxu1  ;;  %2404 = vmatpush1.bf16.msra.mxu0 %v7942_v15  ;;  %2445 = vmatpush1.bf16.msra.mxu1 %v7945_v58  ;;  %v7957_v15 = vld [vmem:[#allocation9 + $0xe8] ss:$16 sps:$4 sm:$0xff]   ;;  %v7960_v58 = vld [vmem:[#allocation8 + $0x4] ss:$16 sps:$4 sm:$0xff]  }
 0x39e   :  { %v1560_v38 = vpop.f32.mrb[37].mxu0  ;;  %v1601_v57 = vpop.f32.mrb[37].mxu1  ;;  %2405 = vmatprep.subr.bf16.mxu0 %v7948_v14  ;;  %2446 = vmatprep.subr.bf16.mxu1 %v7951_v12  ;;  %10608 = vst [vmem:[#allocation120_spill] sm:$0xff] %v7957_v15  ;;  %10609 = vst [vmem:[#allocation121_spill] sm:$0xff] %v7960_v58  ;;  %v7963_v14 = vld [vmem:[#allocation8 + $0xc] ss:$16 sps:$4 sm:$0xff]  }
 0x39f   :  { %v1562_v56 = vpop.f32.mrb[38].mxu0  ;;  %v1603_v9 = vpop.f32.mrb[38].mxu1  ;;  %10610 = vst [vmem:[#allocation122_spill] sm:$0xff] %v7963_v14 }
 0x3a0   :  { %v1563_v62 = vpop.f32.mrb[39].mxu0  ;;  %v1604_v17 = vpop.f32.mrb[39].mxu1 }
 0x3a1   :  { %2406 = vmatpush1.bf16.msra.mxu0 %v7954_v20  ;;  %2447 = vmatpush1.bf16.msra.mxu1 %v7957_v15 }
 0x3a2   :  { %2473 = vmatprep.subr.bf16.mxu0 %v7960_v58  ;;  %2514 = vmatprep.subr.bf16.mxu1 %v7963_v14 }
 0x3bd   :  { %v1640_v56 = vpop.f32.mrb[40].mxu0  ;;  %v1681_v9 = vpop.f32.mrb[40].mxu1 }
 0x3be   :  { %v1641_v62 = vadd.f32 %v1640_v56, %v1558_v16  ;;  %v1682_v17 = vadd.f32 %v1681_v9, %v1599_v13  ;;  %v1642_v12 = vpop.f32.mrb[41].mxu0  ;;  %v1683_v6 = vpop.f32.mrb[41].mxu1 }
 0x3bf   :  { %v1643_v63 = vadd.f32 %v1642_v12, %v1560_v38  ;;  %v1684_v20 = vadd.f32 %v1683_v6, %v1601_v57  ;;  %v1644_v25 = vpop.f32.mrb[42].mxu0  ;;  %v1685_v43 = vpop.f32.mrb[42].mxu1 }
 0x3c0   :  { %v1688_v15 = vadd.f32 %v1641_v62, %v7518_v3  ;;  %v1645_v55 = vpop.f32.mrb[43].mxu0  ;;  %v1686_v28 = vpop.f32.mrb[43].mxu1  ;;  %v1690_v13 = vadd.f32 %v1682_v17, %v7540_v42 }
 0x3c1   :  { %v1689_v58 = vadd.f32 %v1643_v63, %v7523_v22  ;;  %v1691_v14 = vadd.f32 %v1684_v20, %v7529_v48 }
 0x3c2   :  { %v1692_v59 = vmul.f32 0.5, %v1688_v15  ;;  %v1694_v16 = vmul.f32 0.5, %v1690_v13 }
 0x3c3   :  { %v1693_v0 = vmul.f32 0.5, %v1689_v58 }
 0x3c4   :  { %5912 = vtanh.f32 %v1692_v59 }
 0x3c5   :  { %5914 = vtanh.f32 %v1693_v0 }
 0x3c6   :  { %5916 = vtanh.f32 %v1691_v14 }
 0x3c7   :  { %5918 = vtanh.f32 %v1694_v16 }
 0x3ce   :  { %v5913_v38 = vpop.eup %5912 }
 0x3cf   :  { %v1698_v6 = vmul.f32 0.5, %v5913_v38  ;;  %v5915_v25 = vpop.eup %5914 }
 0x3d0   :  { %v1699_v57 = vmul.f32 0.5, %v5915_v25  ;;  %v5917_v55 = vpop.eup %5916  ;;  %v7986_v25 = vld [vmem:[#allocation8] ss:$16 sps:$4 sm:$0xff]  }
 0x3d1   :  { %v1701_v43 = vadd.f32 0.5, %v1698_v6  ;;  %v5919_v0 = vpop.eup %5918 }
 0x3d2   :  { %v1702_v28 = vadd.f32 0.5, %v1699_v57  ;;  %v1700_v14 = vmul.f32 0.5, %v5919_v0  ;;  %v7992_v57 = vld [vmem:[#allocation8 + $0x24] ss:$16 sps:$4 sm:$0xff]   ;;  %v8009_v0 = vld [vmem:[#allocation8 + $0x4c] ss:$16 sps:$4 sm:$0xff]  }
 0x3d3   :  { %v1706_v12 = vmul.f32 %v5917_v55, %v1701_v43  ;;  %v7989_v43 = vld [vmem:[#allocation8 + $0x8] ss:$16 sps:$4 sm:$0xff]   ;;  %10611 = vst [vmem:[#allocation123_spill] sm:$0xff] %v7992_v57  ;;  %v7995_v55 = vld [vmem:[#allocation8 + $0x2c] ss:$16 sps:$4 sm:$0xff]   ;;  %10616 = vst [vmem:[#allocation128_spill] sm:$0xff] %v8009_v0 }
 0x3d4   :  { %v1705_v63 = vmul.f32 %v1702_v28, %v7543_v27  ;;  %v1703_v16 = vadd.f32 0.5, %v1700_v14  ;;  %10612 = vst [vmem:[#allocation124_spill] sm:$0xff] %v7995_v55  ;;  %v8000_v28 = vld [vmem:[#allocation8 + $0x20] ss:$16 sps:$4 sm:$0xff]  }
 0x3d5   :  { %10613 = vst [vmem:[#allocation125_spill] sm:$0xff] %v8000_v28  ;;  %v8012_v14 = vld [vmem:[#allocation8 + $0x40] ss:$16 sps:$4 sm:$0xff]  }
 0x3d6   :  { %v7971_v15 = vadd.f32 %v1706_v12, %v1705_v63  ;;  %v8003_v12 = vld [vmem:[#allocation8 + $0x28] ss:$16 sps:$4 sm:$0xff]   ;;  %v8006_v63 = vld [vmem:[#allocation8 + $0x44] ss:$16 sps:$4 sm:$0xff]   ;;  %10617 = vst [vmem:[#allocation129_spill] sm:$0xff] %v8012_v14 }
 0x3d7   :  { %10614 = vst [vmem:[#allocation126_spill] sm:$0xff] %v8003_v12  ;;  %10615 = vst [vmem:[#allocation127_spill] sm:$0xff] %v8006_v63 }
 0x3d8   :  { %5920 = vtanh.f32 %v7971_v15 }
 0x3dd   :  { %v7974_v59 = vpop.f32.mrb[44].mxu0  ;;  %v7976_v20 = vpop.f32.mrb[44].mxu1 }
 0x3de   :  { %v7978_v58 = vpop.f32.mrb[45].mxu0  ;;  %v7980_v56 = vpop.f32.mrb[45].mxu1 }
 0x3df   :  { %v1973_v9 = vpop.f32.mrb[46].mxu0  ;;  %v2014_v62 = vpop.f32.mrb[46].mxu1 }
 0x3e0   :  { %v1974_v17 = vpop.f32.mrb[47].mxu0  ;;  %v2015_v13 = vpop.f32.mrb[47].mxu1  ;;  %v8015_v9 = vld [vmem:[#allocation8 + $0x48] ss:$16 sps:$4 sm:$0xff]   ;;  %v8018_v62 = vld [vmem:[#allocation8 + $0x64] ss:$16 sps:$4 sm:$0xff]  }
 0x3e1   :  { %10618 = vst [vmem:[#allocation130_spill] sm:$0xff] %v8015_v9  ;;  %10619 = vst [vmem:[#allocation131_spill] sm:$0xff] %v8018_v62  ;;  %v8021_v17 = vld [vmem:[#allocation8 + $0x6c] ss:$16 sps:$4 sm:$0xff]   ;;  %v8024_v13 = vld [vmem:[#allocation8 + $0x60] ss:$16 sps:$4 sm:$0xff]  }
 0x3e2   :  { %v5921_v27 = vpop.eup %5920  ;;  %10620 = vst [vmem:[#allocation132_spill] sm:$0xff] %v8021_v17  ;;  %10621 = vst [vmem:[#allocation133_spill] sm:$0xff] %v8024_v13 }
 0x3e3   :  { %v1709_v38 = vmul.f32 %v5921_v27, %v1703_v16  ;;  %v8027_v16 = vld [vmem:[#allocation8 + $0x68] ss:$16 sps:$4 sm:$0xff]   ;;  %v8030_v27 = vld [vmem:[#allocation8 + $0x84] ss:$16 sps:$4 sm:$0xff]  }
 0x3e4   :  { %10622 = vst [vmem:[#allocation134_spill] sm:$0xff] %v8027_v16  ;;  %10623 = vst [vmem:[#allocation135_spill] sm:$0xff] %v8030_v27 }
 0x3e5   :  { %v7982_v6 = vpack.c.bf16 %v1709_v38, %v1709_v38  ;;  %v8033_v38 = vld [vmem:[#allocation8 + $0x8c] ss:$16 sps:$4 sm:$0xff]  }
 0x3e6   :  { %10624 = vst [vmem:[#allocation136_spill] sm:$0xff] %v8033_v38 }
 0x3e7   :  { %2424 = vmatmul.mubr.bf16.vlgmr.msra.gmra.mrb[56].mxu0 %v7982_v6  ;;  %2465 = vmatmul.mubr.bf16.vlgmr.msra.gmra.mrb[56].mxu1 %v7982_v6 }
 0x3e8   :  { %2474 = vmatpush1.bf16.msra.mxu0 %v7986_v25  ;;  %2515 = vmatpush1.bf16.msra.mxu1 %v7989_v43 }
 0x3e9   :  { %2475 = vmatprep.subr.bf16.mxu0 %v7992_v57  ;;  %2516 = vmatprep.subr.bf16.mxu1 %v7995_v55 }
 0x3ea   :  { %2505 = vmatprep.mubr.bf16.mxu0 %v10440_v50  ;;  %2546 = vmatprep.mubr.bf16.mxu1 %v10440_v50 }
 0x3ec   :  { %2476 = vmatpush1.bf16.msra.mxu0 %v8000_v28  ;;  %2517 = vmatpush1.bf16.msra.mxu1 %v8003_v12  ;;  %v8065_v12 = vld [vmem:[#allocation8 + $0xc4] ss:$16 sps:$4 sm:$0xff]  }
 0x3ed   :  { %2477 = vmatprep.subr.bf16.mxu0 %v8006_v63  ;;  %2518 = vmatprep.subr.bf16.mxu1 %v8009_v0  ;;  %10631 = vst [vmem:[#allocation143_spill] sm:$0xff] %v8065_v12 }
 0x3f0   :  { %2478 = vmatpush1.bf16.msra.mxu0 %v8012_v14  ;;  %2519 = vmatpush1.bf16.msra.mxu1 %v8015_v9 }
 0x3f1   :  { %2479 = vmatprep.subr.bf16.mxu0 %v8018_v62  ;;  %2520 = vmatprep.subr.bf16.mxu1 %v8021_v17  ;;  %v8036_v62 = vld [vmem:[#allocation8 + $0x80] ss:$16 sps:$4 sm:$0xff]   ;;  %v8039_v17 = vld [vmem:[#allocation8 + $0x88] ss:$16 sps:$4 sm:$0xff]  }
 0x3f2   :  { %10625 = vst [vmem:[#allocation137_spill] sm:$0xff] %v8036_v62  ;;  %10626 = vst [vmem:[#allocation138_spill] sm:$0xff] %v8039_v17 }
 0x3f4   :  { %2480 = vmatpush1.bf16.msra.mxu0 %v8024_v13  ;;  %2521 = vmatpush1.bf16.msra.mxu1 %v8027_v16  ;;  %v412_v16 = vld [vmem:[%s10055_s9] sm:$0xf]  ;;  %v8045_v13 = vld [vmem:[#allocation8 + $0xa4] ss:$16 sps:$4 sm:$0xff]  }
 0x3f5   :  { %2481 = vmatprep.subr.bf16.mxu0 %v8030_v27  ;;  %2522 = vmatprep.subr.bf16.mxu1 %v8033_v38  ;;  %10627 = vst [vmem:[#allocation139_spill] sm:$0xff] %v8045_v13  ;;  %v8048_v27 = vld [vmem:[#allocation8 + $0xac] ss:$16 sps:$4 sm:$0xff]   ;;  %v8052_v38 = vrot.slane %v412_v16, %v7116_v47  ;;  %v8061_v0 = vrot.slane %v412_v16, %v7121_v49 }
 0x3f6   :  { %10628 = vst [vmem:[#allocation140_spill] sm:$0xff] %v8048_v27 }
 0x3f8   :  { %2482 = vmatpush1.bf16.msra.mxu0 %v8036_v62  ;;  %2523 = vmatpush1.bf16.msra.mxu1 %v8039_v17  ;;  %v8054_v62 = vld [vmem:[#allocation8 + $0xa0] ss:$16 sps:$4 sm:$0xff]   ;;  %v8057_v17 = vld [vmem:[#allocation8 + $0xa8] ss:$16 sps:$4 sm:$0xff]  }
 0x3f9   :  { %2483 = vmatprep.subr.bf16.mxu0 %v8045_v13  ;;  %2524 = vmatprep.subr.bf16.mxu1 %v8048_v27  ;;  %10629 = vst [vmem:[#allocation141_spill] sm:$0xff] %v8054_v62  ;;  %10630 = vst [vmem:[#allocation142_spill] sm:$0xff] %v8057_v17 }
 0x3fc   :  { %2484 = vmatpush1.bf16.msra.mxu0 %v8054_v62  ;;  %2525 = vmatpush1.bf16.msra.mxu1 %v8057_v17  ;;  %v8068_v62 = vld [vmem:[#allocation8 + $0xcc] ss:$16 sps:$4 sm:$0xff]  }
 0x3fd   :  { %v2211_v9 = vpop.f32.mrb[48].mxu0  ;;  %v2252_v14 = vpop.f32.mrb[48].mxu1  ;;  %2485 = vmatprep.subr.bf16.mxu0 %v8065_v12  ;;  %10632 = vst [vmem:[#allocation144_spill] sm:$0xff] %v8068_v62  ;;  %2526 = vmatprep.subr.bf16.mxu1 %v8068_v62  ;;  %v8078_v12 = vld [vmem:[#allocation8 + $0xc0] ss:$16 sps:$4 sm:$0xff]  }
 0x3fe   :  { %v2212_v13 = vadd.f32 %v2211_v9, %v7974_v59  ;;  %v2253_v27 = vadd.f32 %v2252_v14, %v7976_v20  ;;  %v2213_v63 = vpop.f32.mrb[49].mxu0  ;;  %v2254_v47 = vpop.f32.mrb[49].mxu1  ;;  %v8075_v20 = vrot.slane %v412_v16, %v7114_v46  ;;  %v8081_v62 = vld [vmem:[#allocation8 + $0xc8] ss:$16 sps:$4 sm:$0xff]  }
 0x3ff   :  { %v2214_v17 = vadd.f32 %v2213_v63, %v7978_v58  ;;  %v2255_v28 = vadd.f32 %v2254_v47, %v7980_v56  ;;  %v2215_v49 = vpop.f32.mrb[50].mxu0  ;;  %v2256_v55 = vpop.f32.mrb[50].mxu1  ;;  %v8084_v56 = vld [vmem:[#allocation8 + $0xe4] ss:$16 sps:$4 sm:$0xff]   ;;  %v8097_v47 = vld [vmem:[#allocation8 + $0xe8] ss:$16 sps:$4 sm:$0xff]  }
 0x400   :  { %v2259_v59 = vadd.f32 %v2212_v13, %v8052_v38  ;;  %v2216_v14 = vpop.f32.mrb[51].mxu0  ;;  %v2257_v9 = vpop.f32.mrb[51].mxu1  ;;  %2486 = vmatpush1.bf16.msra.mxu0 %v8078_v12  ;;  %2527 = vmatpush1.bf16.msra.mxu1 %v8081_v62  ;;  %v8087_v55 = vld [vmem:[#allocation8 + $0xec] ss:$16 sps:$4 sm:$0xff]   ;;  %v8094_v13 = vld [vmem:[#allocation8 + $0xe0] ss:$16 sps:$4 sm:$0xff]  }
 0x401   :  { %v2260_v57 = vadd.f32 %v2214_v17, %v8061_v0  ;;  %2487 = vmatprep.subr.bf16.mxu0 %v8084_v56  ;;  %2528 = vmatprep.subr.bf16.mxu1 %v8087_v55  ;;  %v2262_v63 = vadd.f32 %v2255_v28, %v8075_v20  ;;  %v8092_v17 = vrot.slane %v412_v16, %v10487_v4  ;;  %v10650_v28 = vld [vmem:[#allocation61_spill] sm:$0xff]  ;;  %v10651_v16 = vld [vmem:[#allocation62_spill] sm:$0xff]  ;;  %v10653_v49 = vld [vmem:[#allocation64_spill] sm:$0xff] }
 0x402   :  { %v2263_v58 = vmul.f32 0.5, %v2259_v59  ;;  %v10654_v59 = vld [vmem:[#allocation65_spill] sm:$0xff]  ;;  %v10655_v14 = vld [vmem:[#allocation66_spill] sm:$0xff]  ;;  %v10656_v9 = vld [vmem:[#allocation67_spill] sm:$0xff] }
 0x403   :  { %v2264_v46 = vmul.f32 0.5, %v2260_v57  ;;  %v2261_v4 = vadd.f32 %v2253_v27, %v8092_v17  ;;  %v10652_v27 = vld [vmem:[#allocation63_spill] sm:$0xff] }
 0x404   :  { %5922 = vtanh.f32 %v2263_v58  ;;  %2488 = vmatpush1.bf16.msra.mxu0 %v8094_v13  ;;  %2529 = vmatpush1.bf16.msra.mxu1 %v8097_v47  ;;  %v10657_v58 = vld [vmem:[#allocation68_spill] sm:$0xff] }
 0x405   :  { %5924 = vtanh.f32 %v2264_v46  ;;  %2578 = vmatprep.subr.bf16.mxu0 %v7580_v21  ;;  %2619 = vmatprep.subr.bf16.mxu1 %v7582_v60  ;;  %v2265_v21 = vmul.f32 0.5, %v2261_v4  ;;  %v10658_v46 = vld [vmem:[#allocation69_spill] sm:$0xff]  ;;  %v10660_v4 = vld [vmem:[#allocation71_spill] sm:$0xff] }
 0x406   :  { %5926 = vtanh.f32 %v2262_v63  ;;  %v10659_v63 = vld [vmem:[#allocation70_spill] sm:$0xff] }
 0x407   :  { %2506 = vmatmul.mubr.bf16.vlgmr.msra.gmra.mrb[60].mxu0 %v7864_v5  ;;  %2547 = vmatmul.mubr.bf16.vlgmr.msra.gmra.mrb[60].mxu1 %v7864_v5  ;;  %5928 = vtanh.f32 %v2265_v21  ;;  %v10661_v21 = vld [vmem:[#allocation72_spill] sm:$0xff] }
 0x408   :  { %2579 = vmatpush1.bf16.msra.mxu0 %v7586_v18  ;;  %2620 = vmatpush1.bf16.msra.mxu1 %v7588_v23 }
 0x409   :  { %2580 = vmatprep.subr.bf16.mxu0 %v7592_v11  ;;  %2621 = vmatprep.subr.bf16.mxu1 %v7594_v7 }
 0x40a   :  { %2610 = vmatprep.mubr.bf16.mxu0 %v10440_v50  ;;  %2651 = vmatprep.mubr.bf16.mxu1 %v10440_v50 }
 0x40c   :  { %2581 = vmatpush1.bf16.msra.mxu0 %v7600_v45  ;;  %2622 = vmatpush1.bf16.msra.mxu1 %v7602_v1 }
 0x40d   :  { %2582 = vmatprep.subr.bf16.mxu0 %v7606_v24  ;;  %2623 = vmatprep.subr.bf16.mxu1 %v7608_v2 }
 0x40e   :  { %v5923_v60 = vpop.eup %5922 }
 0x40f   :  { %v2269_v18 = vmul.f32 0.5, %v5923_v60  ;;  %v5925_v23 = vpop.eup %5924  ;;  %v10662_v60 = vld [vmem:[#allocation73_spill] sm:$0xff] }
 0x410   :  { %v2270_v11 = vmul.f32 0.5, %v5925_v23  ;;  %2583 = vmatpush1.bf16.msra.mxu0 %v7614_v41  ;;  %2624 = vmatpush1.bf16.msra.mxu1 %v7616_v26  ;;  %v5927_v7 = vpop.eup %5926  ;;  %v10664_v23 = vld [vmem:[#allocation75_spill] sm:$0xff] }
 0x411   :  { %v2272_v5 = vadd.f32 0.5, %v2269_v18  ;;  %2584 = vmatprep.subr.bf16.mxu0 %v7620_v29  ;;  %2625 = vmatprep.subr.bf16.mxu1 %v7622_v30  ;;  %v5929_v2 = vpop.eup %5928  ;;  %v10663_v18 = vld [vmem:[#allocation74_spill] sm:$0xff] }
 0x412   :  { %v2273_v45 = vadd.f32 0.5, %v2270_v11  ;;  %v2271_v41 = vmul.f32 0.5, %v5929_v2  ;;  %v8177_v11 = vld [vmem:[#allocation6 + $0xc] ss:$16 sps:$4 sm:$0xff]   ;;  %v8199_v2 = vld [vmem:[#allocation6 + $0x28] ss:$16 sps:$4 sm:$0xff]  }
 0x413   :  { %v2277_v1 = vmul.f32 %v5927_v7, %v2272_v5  ;;  %v8174_v5 = vld [vmem:[#allocation6 + $0x4] ss:$16 sps:$4 sm:$0xff]   ;;  %v8182_v7 = vld [vmem:[#allocation6] ss:$16 sps:$4 sm:$0xff]  }
 0x414   :  { %v2276_v57 = vmul.f32 0.0, %v2273_v45  ;;  %2585 = vmatpush1.bf16.msra.mxu0 %v7626_v31  ;;  %2626 = vmatpush1.bf16.msra.mxu1 %v7628_v33  ;;  %v2274_v26 = vadd.f32 0.5, %v2271_v41  ;;  %v10633_v31 = vld [vmem:[#allocation45_spill] sm:$0xff]  ;;  %v10634_v33 = vld [vmem:[#allocation46_spill] sm:$0xff] }
 0x415   :  { %2586 = vmatprep.subr.bf16.mxu0 %v7632_v34  ;;  %2627 = vmatprep.subr.bf16.mxu1 %v7634_v35  ;;  %v10635_v35 = vld [vmem:[#allocation47_spill] sm:$0xff]  ;;  %v8185_v45 = vld [vmem:[#allocation6 + $0x8] ss:$16 sps:$4 sm:$0xff]  }
 0x416   :  { %v8123_v24 = vadd.f32 %v2277_v1, %v2276_v57  ;;  %v8188_v1 = vld [vmem:[#allocation6 + $0x24] ss:$16 sps:$4 sm:$0xff]   ;;  %v8191_v57 = vld [vmem:[#allocation6 + $0x2c] ss:$16 sps:$4 sm:$0xff]  }
 0x417   :  { %v8202_v41 = vld [vmem:[#allocation6 + $0x44] ss:$16 sps:$4 sm:$0xff]  }
 0x418   :  { %5930 = vtanh.f32 %v8123_v24  ;;  %2587 = vmatpush1.bf16.msra.mxu0 %v7638_v36  ;;  %2628 = vmatpush1.bf16.msra.mxu1 %v7640_v37  ;;  %v10636_v36 = vld [vmem:[#allocation48_spill] sm:$0xff]  ;;  %v10637_v37 = vld [vmem:[#allocation49_spill] sm:$0xff] }
 0x419   :  { %2588 = vmatprep.subr.bf16.mxu0 %v7644_v39  ;;  %2629 = vmatprep.subr.bf16.mxu1 %v7646_v40  ;;  %v10638_v39 = vld [vmem:[#allocation20_spill] sm:$0xff]  ;;  %v10639_v40 = vld [vmem:[#allocation50_spill] sm:$0xff] }
 0x41c   :  { %2589 = vmatpush1.bf16.msra.mxu0 %v7650_v32  ;;  %2630 = vmatpush1.bf16.msra.mxu1 %v7652_v10  ;;  %v10640_v32 = vld [vmem:[#allocation51_spill] sm:$0xff]  ;;  %v10641_v10 = vld [vmem:[#allocation52_spill] sm:$0xff] }
 0x41d   :  { %2590 = vmatprep.subr.bf16.mxu0 %v7656_v19  ;;  %2631 = vmatprep.subr.bf16.mxu1 %v7658_v44  ;;  %v10642_v19 = vld [vmem:[#allocation53_spill] sm:$0xff]  ;;  %v10643_v44 = vld [vmem:[#allocation54_spill] sm:$0xff] }
 0x420   :  { %2591 = vmatpush1.bf16.msra.mxu0 %v7662_v61  ;;  %2632 = vmatpush1.bf16.msra.mxu1 %v7664_v8  ;;  %v10644_v61 = vld [vmem:[#allocation55_spill] sm:$0xff]  ;;  %v10645_v8 = vld [vmem:[#allocation56_spill] sm:$0xff] }
 0x421   :  { %2592 = vmatprep.subr.bf16.mxu0 %v7668_v51  ;;  %2633 = vmatprep.subr.bf16.mxu1 %v7670_v52  ;;  %v10646_v51 = vld [vmem:[#allocation57_spill] sm:$0xff]  ;;  %v10647_v52 = vld [vmem:[#allocation58_spill] sm:$0xff] }
 0x422   :  { %v5931_v29 = vpop.eup %5930 }
 0x423   :  { %v2280_v30 = vmul.f32 %v5931_v29, %v2274_v26  ;;  %v8205_v26 = vld [vmem:[#allocation6 + $0x4c] ss:$16 sps:$4 sm:$0xff]   ;;  %v8208_v29 = vld [vmem:[#allocation6 + $0x40] ss:$16 sps:$4 sm:$0xff]  }
 0x424   :  { %2593 = vmatpush1.bf16.msra.mxu0 %v7674_v54  ;;  %2634 = vmatpush1.bf16.msra.mxu1 %v7676_v53  ;;  %v10648_v54 = vld [vmem:[#allocation59_spill] sm:$0xff]  ;;  %v10649_v53 = vld [vmem:[#allocation60_spill] sm:$0xff] }
 0x425   :  { %2660 = vmatprep.subr.bf16.mxu0 %v10633_v31  ;;  %2701 = vmatprep.subr.bf16.mxu1 %v10634_v33  ;;  %v2281_v34 = vpack.c.bf16 %v2280_v30, %v2280_v30  ;;  %v8211_v30 = vld [vmem:[#allocation6 + $0x48] ss:$16 sps:$4 sm:$0xff]   ;;  %v8214_v31 = vld [vmem:[#allocation6 + $0x64] ss:$16 sps:$4 sm:$0xff]   ;;  %v8217_v33 = vld [vmem:[#allocation6 + $0x6c] ss:$16 sps:$4 sm:$0xff]  }
 0x427   :  { %2611 = vmatmul.mubr.bf16.vlgmr.msra.gmra.mrb[64].mxu0 %v2281_v34  ;;  %2652 = vmatmul.mubr.bf16.vlgmr.msra.gmra.mrb[64].mxu1 %v2281_v34  ;;  %v8220_v34 = vld [vmem:[#allocation6 + $0x60] ss:$16 sps:$4 sm:$0xff]  }
 0x428   :  { %2661 = vmatpush1.bf16.msra.mxu0 %v10635_v35  ;;  %2702 = vmatpush1.bf16.msra.mxu1 %v10636_v36  ;;  %v8223_v35 = vld [vmem:[#allocation6 + $0x68] ss:$16 sps:$4 sm:$0xff]  }
 0x429   :  { %2662 = vmatprep.subr.bf16.mxu0 %v10637_v37  ;;  %2703 = vmatprep.subr.bf16.mxu1 %v10638_v39  ;;  %v10665_v36 = vld [vmem:[#allocation76_spill] sm:$0xff]  ;;  %v10666_v37 = vld [vmem:[#allocation77_spill] sm:$0xff] }
 0x42a   :  { %2692 = vmatprep.mubr.bf16.mxu0 %v10440_v50  ;;  %2733 = vmatprep.mubr.bf16.mxu1 %v10440_v50 }
 0x42c   :  { %2663 = vmatpush1.bf16.msra.mxu0 %v10639_v40  ;;  %2704 = vmatpush1.bf16.msra.mxu1 %v10640_v32  ;;  %v10667_v32 = vld [vmem:[#allocation25_spill] sm:$0xff] }
 0x42d   :  { %2664 = vmatprep.subr.bf16.mxu0 %v10641_v10  ;;  %2705 = vmatprep.subr.bf16.mxu1 %v10642_v19  ;;  %v10668_v19 = vld [vmem:[#allocation26_spill] sm:$0xff] }
 0x430   :  { %2665 = vmatpush1.bf16.msra.mxu0 %v10643_v44  ;;  %2706 = vmatpush1.bf16.msra.mxu1 %v10644_v61 }
 0x431   :  { %2666 = vmatprep.subr.bf16.mxu0 %v10645_v8  ;;  %2707 = vmatprep.subr.bf16.mxu1 %v10646_v51  ;;  %v10669_v51 = vld [vmem:[#allocation27_spill] sm:$0xff] }
 0x434   :  { %2667 = vmatpush1.bf16.msra.mxu0 %v10647_v52  ;;  %2708 = vmatpush1.bf16.msra.mxu1 %v10648_v54  ;;  %v10670_v54 = vld [vmem:[#allocation28_spill] sm:$0xff] }
 0x435   :  { %2668 = vmatprep.subr.bf16.mxu0 %v10649_v53  ;;  %2709 = vmatprep.subr.bf16.mxu1 %v10650_v28 }
 0x438   :  { %2669 = vmatpush1.bf16.msra.mxu0 %v10651_v16  ;;  %2710 = vmatpush1.bf16.msra.mxu1 %v10652_v27  ;;  %v10671_v27 = vld [vmem:[#allocation78_spill] sm:$0xff] }
 0x439   :  { %2670 = vmatprep.subr.bf16.mxu0 %v10653_v49  ;;  %2711 = vmatprep.subr.bf16.mxu1 %v10654_v59  ;;  %v10672_v49 = vld [vmem:[#allocation79_spill] sm:$0xff] }
 0x43c   :  { %2671 = vmatpush1.bf16.msra.mxu0 %v10655_v14  ;;  %2712 = vmatpush1.bf16.msra.mxu1 %v10656_v9 }
 0x43d   :  { %2672 = vmatprep.subr.bf16.mxu0 %v10657_v58  ;;  %2713 = vmatprep.subr.bf16.mxu1 %v10658_v46  ;;  %v10673_v58 = vld [vmem:[#allocation80_spill] sm:$0xff]  ;;  %v10674_v46 = vld [vmem:[#allocation81_spill] sm:$0xff] }
 0x440   :  { %2673 = vmatpush1.bf16.msra.mxu0 %v10659_v63  ;;  %2714 = vmatpush1.bf16.msra.mxu1 %v10660_v4  ;;  %v10675_v4 = vld [vmem:[#allocation82_spill] sm:$0xff] }
 0x441   :  { %2674 = vmatprep.subr.bf16.mxu0 %v10661_v21  ;;  %2715 = vmatprep.subr.bf16.mxu1 %v10662_v60  ;;  %v10676_v21 = vld [vmem:[#allocation83_spill] sm:$0xff]  ;;  %v10677_v60 = vld [vmem:[#allocation84_spill] sm:$0xff] }
 0x444   :  { %2675 = vmatpush1.bf16.msra.mxu0 %v10663_v18  ;;  %2716 = vmatpush1.bf16.msra.mxu1 %v10664_v23  ;;  %v10678_v18 = vld [vmem:[#allocation85_spill] sm:$0xff]  ;;  %v10679_v23 = vld [vmem:[#allocation86_spill] sm:$0xff] }
 0x445   :  { %2769 = vmatprep.subr.bf16.mxu0 %v8174_v5  ;;  %2810 = vmatprep.subr.bf16.mxu1 %v8177_v11 }
 0x447   :  { %2693 = vmatmul.mubr.bf16.vlgmr.msra.gmra.mrb[68].mxu0 %v7982_v6  ;;  %2734 = vmatmul.mubr.bf16.vlgmr.msra.gmra.mrb[68].mxu1 %v7982_v6  ;;  %v8196_v6 = vld [vmem:[#allocation6 + $0x20] ss:$16 sps:$4 sm:$0xff]  }
 0x448   :  { %2770 = vmatpush1.bf16.msra.mxu0 %v8182_v7  ;;  %2811 = vmatpush1.bf16.msra.mxu1 %v8185_v45 }
 0x449   :  { %2771 = vmatprep.subr.bf16.mxu0 %v8188_v1  ;;  %2812 = vmatprep.subr.bf16.mxu1 %v8191_v57 }
 0x44a   :  { %2801 = vmatprep.mubr.bf16.mxu0 %v10440_v50  ;;  %2842 = vmatprep.mubr.bf16.mxu1 %v10440_v50 }
 0x44c   :  { %2772 = vmatpush1.bf16.msra.mxu0 %v8196_v6  ;;  %2813 = vmatpush1.bf16.msra.mxu1 %v8199_v2 }
 0x44d   :  { %2773 = vmatprep.subr.bf16.mxu0 %v8202_v41  ;;  %2814 = vmatprep.subr.bf16.mxu1 %v8205_v26 }
 0x450   :  { %2774 = vmatpush1.bf16.msra.mxu0 %v8208_v29  ;;  %2815 = vmatpush1.bf16.msra.mxu1 %v8211_v30 }
 0x451   :  { %2775 = vmatprep.subr.bf16.mxu0 %v8214_v31  ;;  %2816 = vmatprep.subr.bf16.mxu1 %v8217_v33 }
 0x454   :  { %2776 = vmatpush1.bf16.msra.mxu0 %v8220_v34  ;;  %2817 = vmatpush1.bf16.msra.mxu1 %v8223_v35 }
 0x455   :  { %2777 = vmatprep.subr.bf16.mxu0 %v10665_v36  ;;  %2818 = vmatprep.subr.bf16.mxu1 %v10666_v37  ;;  %v10680_v36 = vld [vmem:[#allocation87_spill] sm:$0xff]  ;;  %v10681_v37 = vld [vmem:[#allocation88_spill] sm:$0xff] }
 0x457   :  { %v2320_v39 = vpop.f32.mrb[52].mxu0  ;;  %v2361_v40 = vpop.f32.mrb[52].mxu1 }
 0x458   :  { %v2368_v10 = vadd.f32 %v2320_v39, %v10667_v32  ;;  %v2370_v44 = vadd.f32 %v2361_v40, %v10668_v19  ;;  %v2322_v61 = vpop.f32.mrb[53].mxu0  ;;  %v2363_v8 = vpop.f32.mrb[53].mxu1  ;;  %2778 = vmatpush1.bf16.msra.mxu0 %v10671_v27  ;;  %2819 = vmatpush1.bf16.msra.mxu1 %v10672_v49  ;;  %v10682_v39 = vld [vmem:[#allocation89_spill] sm:$0xff]  ;;  %v10683_v32 = vld [vmem:[#allocation90_spill] sm:$0xff] }
 0x459   :  { %v2369_v52 = vadd.f32 %v2322_v61, %v10669_v51  ;;  %v2371_v53 = vadd.f32 %v2363_v8, %v10670_v54  ;;  %v2324_v28 = vpop.f32.mrb[54].mxu0  ;;  %v2365_v16 = vpop.f32.mrb[54].mxu1  ;;  %2779 = vmatprep.subr.bf16.mxu0 %v10673_v58  ;;  %2820 = vmatprep.subr.bf16.mxu1 %v10674_v46  ;;  %v10685_v61 = vld [vmem:[#allocation92_spill] sm:$0xff]  ;;  %v10686_v8 = vld [vmem:[#allocation93_spill] sm:$0xff] }
 0x45a   :  { %v2372_v59 = vmul.f32 0.5, %v2368_v10  ;;  %v2325_v14 = vpop.f32.mrb[55].mxu0  ;;  %v2366_v9 = vpop.f32.mrb[55].mxu1  ;;  %v2374_v40 = vmul.f32 0.5, %v2370_v44  ;;  %v10684_v10 = vld [vmem:[#allocation91_spill] sm:$0xff]  ;;  %v10687_v49 = vld [vmem:[#allocation21_spill] sm:$0xff] }
 0x45b   :  { %v2373_v63 = vmul.f32 0.5, %v2369_v52 }
 0x45c   :  { %5932 = vtanh.f32 %v2372_v59  ;;  %2780 = vmatpush1.bf16.msra.mxu0 %v10675_v4  ;;  %2821 = vmatpush1.bf16.msra.mxu1 %v10676_v21  ;;  %v10688_v21 = vld [vmem:[#allocation22_spill] sm:$0xff] }
 0x45d   :  { %5934 = vtanh.f32 %v2373_v63  ;;  %2781 = vmatprep.subr.bf16.mxu0 %v10677_v60  ;;  %2822 = vmatprep.subr.bf16.mxu1 %v10678_v18  ;;  %v10689_v60 = vld [vmem:[#allocation23_spill] sm:$0xff]  ;;  %v10690_v18 = vld [vmem:[#allocation24_spill] sm:$0xff] }
 0x45e   :  { %5936 = vtanh.f32 %v2371_v53 }
 0x45f   :  { %5938 = vtanh.f32 %v2374_v40  ;;  %v10695_v40 = vld [vmem:[#allocation98_spill] sm:$0xff] }
 0x460   :  { %2782 = vmatpush1.bf16.msra.mxu0 %v10679_v23  ;;  %2823 = vmatpush1.bf16.msra.mxu1 %v10680_v36  ;;  %v10691_v23 = vld [vmem:[#allocation94_spill] sm:$0xff]  ;;  %v10692_v36 = vld [vmem:[#allocation95_spill] sm:$0xff] }
 0x461   :  { %2783 = vmatprep.subr.bf16.mxu0 %v10681_v37  ;;  %2824 = vmatprep.subr.bf16.mxu1 %v10682_v39  ;;  %v10693_v37 = vld [vmem:[#allocation96_spill] sm:$0xff]  ;;  %v10694_v39 = vld [vmem:[#allocation97_spill] sm:$0xff] }
 0x464   :  { %2784 = vmatpush1.bf16.msra.mxu0 %v10683_v32  ;;  %2825 = vmatpush1.bf16.msra.mxu1 %v10684_v10  ;;  %v10696_v32 = vld [vmem:[#allocation99_spill] sm:$0xff]  ;;  %v10697_v10 = vld [vmem:[#allocation100_spill] sm:$0xff] }
 0x465   :  { %2874 = vmatprep.subr.bf16.mxu0 %v10685_v61  ;;  %2915 = vmatprep.subr.bf16.mxu1 %v10686_v8  ;;  %v10699_v61 = vld [vmem:[#allocation102_spill] sm:$0xff]  ;;  %v10700_v8 = vld [vmem:[#allocation103_spill] sm:$0xff] }
 0x466   :  { %v5933_v19 = vpop.eup %5932 }
 0x467   :  { %v2378_v51 = vmul.f32 0.5, %v5933_v19  ;;  %v5935_v52 = vpop.eup %5934  ;;  %v10698_v19 = vld [vmem:[#allocation101_spill] sm:$0xff] }
 0x468   :  { %v2379_v53 = vmul.f32 0.5, %v5935_v52  ;;  %v5937_v28 = vpop.eup %5936  ;;  %v10702_v52 = vld [vmem:[#allocation105_spill] sm:$0xff] }
 0x469   :  { %v2381_v54 = vadd.f32 0.5, %v2378_v51  ;;  %v5939_v14 = vpop.eup %5938  ;;  %v10701_v51 = vld [vmem:[#allocation104_spill] sm:$0xff] }
 0x46a   :  { %v2382_v16 = vadd.f32 0.5, %v2379_v53  ;;  %v2380_v9 = vmul.f32 0.5, %v5939_v14  ;;  %v10704_v53 = vld [vmem:[#allocation107_spill] sm:$0xff]  ;;  %v10710_v14 = vld [vmem:[#allocation113_spill] sm:$0xff] }
 0x46b   :  { %v2386_v27 = vmul.f32 %v5937_v28, %v2381_v54  ;;  %v10703_v54 = vld [vmem:[#allocation106_spill] sm:$0xff]  ;;  %v10705_v28 = vld [vmem:[#allocation108_spill] sm:$0xff] }
 0x46c   :  { %v2385_v59 = vmul.f32 %v2382_v16, %v10687_v49  ;;  %v2383_v58 = vadd.f32 0.5, %v2380_v9  ;;  %v10706_v16 = vld [vmem:[#allocation109_spill] sm:$0xff]  ;;  %v10708_v49 = vld [vmem:[#allocation111_spill] sm:$0xff]  ;;  %v10711_v9 = vld [vmem:[#allocation114_spill] sm:$0xff] }
 0x46e   :  { %v8249_v44 = vadd.f32 %v2386_v27, %v2385_v59  ;;  %v10707_v27 = vld [vmem:[#allocation110_spill] sm:$0xff]  ;;  %v10709_v59 = vld [vmem:[#allocation112_spill] sm:$0xff] }
 0x470   :  { %5940 = vtanh.f32 %v8249_v44 }
 0x47a   :  { %v5941_v46 = vpop.eup %5940 }
 0x47b   :  { %v2389_v63 = vmul.f32 %v5941_v46, %v2383_v58  ;;  %v10712_v58 = vld [vmem:[#allocation115_spill] sm:$0xff]  ;;  %v10713_v46 = vld [vmem:[#allocation116_spill] sm:$0xff] }
 0x47d   :  { %v8252_v4 = vpack.c.bf16 %v2389_v63, %v2389_v63  ;;  %v10714_v63 = vld [vmem:[#allocation117_spill] sm:$0xff] }
 0x47f   :  { %2802 = vmatmul.mubr.bf16.vlgmr.msra.gmra.mrb[72].mxu0 %v8252_v4  ;;  %2843 = vmatmul.mubr.bf16.vlgmr.msra.gmra.mrb[72].mxu1 %v8252_v4 }
 0x480   :  { %2875 = vmatpush1.bf16.msra.mxu0 %v10688_v21  ;;  %2916 = vmatpush1.bf16.msra.mxu1 %v10689_v60  ;;  %v10715_v21 = vld [vmem:[#allocation118_spill] sm:$0xff]  ;;  %v10716_v60 = vld [vmem:[#allocation119_spill] sm:$0xff] }
 0x481   :  { %2876 = vmatprep.subr.bf16.mxu0 %v10690_v18  ;;  %2917 = vmatprep.subr.bf16.mxu1 %v10691_v23  ;;  %v10717_v18 = vld [vmem:[#allocation120_spill] sm:$0xff]  ;;  %v10718_v23 = vld [vmem:[#allocation121_spill] sm:$0xff] }
 0x482   :  { %2906 = vmatprep.mubr.bf16.mxu0 %v10440_v50  ;;  %2947 = vmatprep.mubr.bf16.mxu1 %v10440_v50 }
 0x484   :  { %2877 = vmatpush1.bf16.msra.mxu0 %v10692_v36  ;;  %2918 = vmatpush1.bf16.msra.mxu1 %v10693_v37  ;;  %v10719_v36 = vld [vmem:[#allocation122_spill] sm:$0xff] }
 0x485   :  { %2878 = vmatprep.subr.bf16.mxu0 %v10694_v39  ;;  %2919 = vmatprep.subr.bf16.mxu1 %v10695_v40 }
 0x488   :  { %2879 = vmatpush1.bf16.msra.mxu0 %v10696_v32  ;;  %2920 = vmatpush1.bf16.msra.mxu1 %v10697_v10 }
 0x489   :  { %2880 = vmatprep.subr.bf16.mxu0 %v10698_v19  ;;  %2921 = vmatprep.subr.bf16.mxu1 %v10699_v61 }
 0x48c   :  { %2881 = vmatpush1.bf16.msra.mxu0 %v10700_v8  ;;  %2922 = vmatpush1.bf16.msra.mxu1 %v10701_v51 }
 0x48d   :  { %2882 = vmatprep.subr.bf16.mxu0 %v10702_v52  ;;  %2923 = vmatprep.subr.bf16.mxu1 %v10703_v54 }
 0x490   :  { %2883 = vmatpush1.bf16.msra.mxu0 %v10704_v53  ;;  %2924 = vmatpush1.bf16.msra.mxu1 %v10705_v28 }
 0x491   :  { %2884 = vmatprep.subr.bf16.mxu0 %v10706_v16  ;;  %2925 = vmatprep.subr.bf16.mxu1 %v10707_v27 }
 0x494   :  { %2885 = vmatpush1.bf16.msra.mxu0 %v10708_v49  ;;  %2926 = vmatpush1.bf16.msra.mxu1 %v10709_v59 }
 0x495   :  { %2886 = vmatprep.subr.bf16.mxu0 %v10710_v14  ;;  %2927 = vmatprep.subr.bf16.mxu1 %v10711_v9 }
 0x498   :  { %2887 = vmatpush1.bf16.msra.mxu0 %v10712_v58  ;;  %2928 = vmatpush1.bf16.msra.mxu1 %v10713_v46 }
 0x499   :  { %2888 = vmatprep.subr.bf16.mxu0 %v10714_v63  ;;  %2929 = vmatprep.subr.bf16.mxu1 %v10715_v21 }
 0x49c   :  { %2889 = vmatpush1.bf16.msra.mxu0 %v10716_v60  ;;  %2930 = vmatpush1.bf16.msra.mxu1 %v10717_v18 }
 0x49d   :  { %2956 = vmatprep.subr.bf16.mxu0 %v10718_v23  ;;  %2997 = vmatprep.subr.bf16.mxu1 %v10719_v36 }
 0x4ba   :  { %v2425_v37 = vpop.f32.mrb[56].mxu0  ;;  %v2466_v39 = vpop.f32.mrb[56].mxu1 }
 0x4bb   :  { %v2427_v40 = vpop.f32.mrb[57].mxu0  ;;  %v2468_v32 = vpop.f32.mrb[57].mxu1 }
 0x4bc   :  { %v2429_v10 = vpop.f32.mrb[58].mxu0  ;;  %v2470_v19 = vpop.f32.mrb[58].mxu1 }
 0x4bd   :  { %v2430_v61 = vpop.f32.mrb[59].mxu0  ;;  %v2471_v8 = vpop.f32.mrb[59].mxu1 }
 0x4da   :  { %v2507_v51 = vpop.f32.mrb[60].mxu0  ;;  %v2548_v52 = vpop.f32.mrb[60].mxu1 }
 0x4db   :  { %v2508_v54 = vadd.f32 %v2507_v51, %v2425_v37  ;;  %v2549_v53 = vadd.f32 %v2548_v52, %v2466_v39  ;;  %v2509_v28 = vpop.f32.mrb[61].mxu0  ;;  %v2550_v16 = vpop.f32.mrb[61].mxu1 }
 0x4dc   :  { %v2510_v27 = vadd.f32 %v2509_v28, %v2427_v40  ;;  %v2551_v49 = vadd.f32 %v2550_v16, %v2468_v32  ;;  %v2511_v59 = vpop.f32.mrb[62].mxu0  ;;  %v2552_v14 = vpop.f32.mrb[62].mxu1 }
 0x4dd   :  { %v2555_v9 = vadd.f32 %v2508_v54, %v7518_v3  ;;  %v2512_v58 = vpop.f32.mrb[63].mxu0  ;;  %v2553_v46 = vpop.f32.mrb[63].mxu1  ;;  %v2557_v23 = vadd.f32 %v2549_v53, %v7540_v42 }
 0x4de   :  { %v2556_v63 = vadd.f32 %v2510_v27, %v7523_v22  ;;  %v2558_v18 = vadd.f32 %v2551_v49, %v7529_v48 }
 0x4df   :  { %v2559_v21 = vmul.f32 0.5, %v2555_v9  ;;  %v2561_v36 = vmul.f32 0.5, %v2557_v23  ;;  %v10722_v23 = vld [vmem:[#allocation125_spill] sm:$0xff] }
 0x4e0   :  { %v2560_v60 = vmul.f32 0.5, %v2556_v63 }
 0x4e1   :  { %5942 = vtanh.f32 %v2559_v21 }
 0x4e2   :  { %5944 = vtanh.f32 %v2560_v60 }
 0x4e3   :  { %5946 = vtanh.f32 %v2558_v18  ;;  %v10721_v18 = vld [vmem:[#allocation124_spill] sm:$0xff] }
 0x4e4   :  { %5948 = vtanh.f32 %v2561_v36  ;;  %v10723_v36 = vld [vmem:[#allocation126_spill] sm:$0xff] }
 0x4eb   :  { %v5943_v37 = vpop.eup %5942 }
 0x4ec   :  { %v2565_v39 = vmul.f32 0.5, %v5943_v37  ;;  %v5945_v40 = vpop.eup %5944  ;;  %v10724_v37 = vld [vmem:[#allocation127_spill] sm:$0xff] }
 0x4ed   :  { %v2566_v10 = vmul.f32 0.5, %v5945_v40  ;;  %v5947_v19 = vpop.eup %5946  ;;  %v10726_v40 = vld [vmem:[#allocation129_spill] sm:$0xff] }
 0x4ee   :  { %v2568_v32 = vadd.f32 0.5, %v2565_v39  ;;  %v5949_v54 = vpop.eup %5948  ;;  %v10725_v39 = vld [vmem:[#allocation128_spill] sm:$0xff] }
 0x4ef   :  { %v2569_v61 = vadd.f32 0.5, %v2566_v10  ;;  %v2567_v53 = vmul.f32 0.5, %v5949_v54  ;;  %v10730_v10 = vld [vmem:[#allocation133_spill] sm:$0xff]  ;;  %v10735_v54 = vld [vmem:[#allocation138_spill] sm:$0xff] }
 0x4f0   :  { %v2573_v8 = vmul.f32 %v5947_v19, %v2568_v32  ;;  %v10729_v32 = vld [vmem:[#allocation132_spill] sm:$0xff]  ;;  %v10731_v19 = vld [vmem:[#allocation134_spill] sm:$0xff] }
 0x4f1   :  { %v2572_v51 = vmul.f32 %v2569_v61, %v7971_v15  ;;  %v2570_v46 = vadd.f32 0.5, %v2567_v53  ;;  %v10720_v15 = vld [vmem:[#allocation123_spill] sm:$0xff] }
 0x4f2   :  { %v10732_v61 = vld [vmem:[#allocation135_spill] sm:$0xff] }
 0x4f3   :  { %v8295_v52 = vadd.f32 %v2573_v8, %v2572_v51  ;;  %v10733_v8 = vld [vmem:[#allocation136_spill] sm:$0xff]  ;;  %v10734_v51 = vld [vmem:[#allocation137_spill] sm:$0xff]  ;;  %v10736_v53 = vld [vmem:[#allocation139_spill] sm:$0xff] }
 0x4f5   :  { %5950 = vtanh.f32 %v8295_v52 }
 0x4fa   :  { %v2612_v28 = vpop.f32.mrb[64].mxu0  ;;  %v2653_v16 = vpop.f32.mrb[64].mxu1 }
 0x4fb   :  { %v2614_v27 = vpop.f32.mrb[65].mxu0  ;;  %v2655_v49 = vpop.f32.mrb[65].mxu1 }
 0x4fc   :  { %v2616_v59 = vpop.f32.mrb[66].mxu0  ;;  %v2657_v14 = vpop.f32.mrb[66].mxu1 }
 0x4fd   :  { %v2617_v9 = vpop.f32.mrb[67].mxu0  ;;  %v2658_v58 = vpop.f32.mrb[67].mxu1  ;;  %v10737_v59 = vld [vmem:[#allocation140_spill] sm:$0xff]  ;;  %v10738_v14 = vld [vmem:[#allocation141_spill] sm:$0xff] }
 0x4fe   :  { %v10739_v9 = vld [vmem:[#allocation142_spill] sm:$0xff] }
 0x4ff   :  { %v5951_v63 = vpop.eup %5950 }
 0x500   :  { %v2576_v21 = vmul.f32 %v5951_v63, %v2570_v46 }
 0x502   :  { %v8298_v60 = vpack.c.bf16 %v2576_v21, %v2576_v21 }
 0x504   :  { %2907 = vmatmul.mubr.bf16.vlgmr.msra.gmra.mrb[76].mxu0 %v8298_v60  ;;  %2948 = vmatmul.mubr.bf16.vlgmr.msra.gmra.mrb[76].mxu1 %v8298_v60 }
 0x505   :  { %2957 = vmatpush1.bf16.msra.mxu0 %v7986_v25  ;;  %2998 = vmatpush1.bf16.msra.mxu1 %v7989_v43  ;;  %v10727_v25 = vld [vmem:[#allocation130_spill] sm:$0xff]  ;;  %v10728_v43 = vld [vmem:[#allocation131_spill] sm:$0xff] }
 0x506   :  { %2958 = vmatprep.subr.bf16.mxu0 %v10720_v15  ;;  %2999 = vmatprep.subr.bf16.mxu1 %v10721_v18 }
 0x507   :  { %2988 = vmatprep.mubr.bf16.mxu0 %v10440_v50  ;;  %3029 = vmatprep.mubr.bf16.mxu1 %v10440_v50 }
 0x509   :  { %2959 = vmatpush1.bf16.msra.mxu0 %v10722_v23  ;;  %3000 = vmatpush1.bf16.msra.mxu1 %v10723_v36  ;;  %v10740_v23 = vld [vmem:[#allocation143_spill] sm:$0xff]  ;;  %v10741_v36 = vld [vmem:[#allocation144_spill] sm:$0xff] }
 0x50a   :  { %2960 = vmatprep.subr.bf16.mxu0 %v10724_v37  ;;  %3001 = vmatprep.subr.bf16.mxu1 %v10725_v39 }
 0x50d   :  { %2961 = vmatpush1.bf16.msra.mxu0 %v10726_v40  ;;  %3002 = vmatpush1.bf16.msra.mxu1 %v10727_v25 }
 0x50e   :  { %2962 = vmatprep.subr.bf16.mxu0 %v10728_v43  ;;  %3003 = vmatprep.subr.bf16.mxu1 %v10729_v32 }
 0x511   :  { %2963 = vmatpush1.bf16.msra.mxu0 %v10730_v10  ;;  %3004 = vmatpush1.bf16.msra.mxu1 %v10731_v19 }
 0x512   :  { %2964 = vmatprep.subr.bf16.mxu0 %v10732_v61  ;;  %3005 = vmatprep.subr.bf16.mxu1 %v10733_v8  ;;  %v8360_v61 = vld [vmem:[#allocation12 + $0x20] ss:$16 sps:$4 sm:$0xff]   ;;  %v8363_v8 = vld [vmem:[#allocation12 + $0x28] ss:$16 sps:$4 sm:$0xff]  }
 0x515   :  { %2965 = vmatpush1.bf16.msra.mxu0 %v10734_v51  ;;  %3006 = vmatpush1.bf16.msra.mxu1 %v10735_v54  ;;  %v8366_v54 = vld [vmem:[#allocation12 + $0x44] ss:$16 sps:$4 sm:$0xff]  }
 0x516   :  { %2966 = vmatprep.subr.bf16.mxu0 %v10736_v53  ;;  %3007 = vmatprep.subr.bf16.mxu1 %v10737_v59  ;;  %v8369_v53 = vld [vmem:[#allocation12 + $0x4c] ss:$16 sps:$4 sm:$0xff]  }
 0x519   :  { %2967 = vmatpush1.bf16.msra.mxu0 %v10738_v14  ;;  %3008 = vmatpush1.bf16.msra.mxu1 %v10739_v9 }
 0x51a   :  { %v2694_v58 = vpop.f32.mrb[68].mxu0  ;;  %v2735_v46 = vpop.f32.mrb[68].mxu1  ;;  %2968 = vmatprep.subr.bf16.mxu0 %v10740_v23  ;;  %3009 = vmatprep.subr.bf16.mxu1 %v10741_v36 }
 0x51b   :  { %v2695_v63 = vadd.f32 %v2694_v58, %v2612_v28  ;;  %v2736_v21 = vadd.f32 %v2735_v46, %v2653_v16  ;;  %v2696_v15 = vpop.f32.mrb[69].mxu0  ;;  %v2737_v18 = vpop.f32.mrb[69].mxu1  ;;  %v8372_v46 = vld [vmem:[#allocation12 + $0x40] ss:$16 sps:$4 sm:$0xff]  }
 0x51c   :  { %v2697_v37 = vadd.f32 %v2696_v15, %v2614_v27  ;;  %v2738_v39 = vadd.f32 %v2737_v18, %v2655_v49  ;;  %v2698_v40 = vpop.f32.mrb[70].mxu0  ;;  %v2739_v25 = vpop.f32.mrb[70].mxu1  ;;  %v8337_v49 = vld [vmem:[#allocation12 + $0x4] ss:$16 sps:$4 sm:$0xff]   ;;  %v8381_v18 = vld [vmem:[#allocation12 + $0x6c] ss:$16 sps:$4 sm:$0xff]  }
 0x51d   :  { %v2742_v43 = vadd.f32 %v2695_v63, %v8052_v38  ;;  %v2699_v32 = vpop.f32.mrb[71].mxu0  ;;  %v2740_v10 = vpop.f32.mrb[71].mxu1  ;;  %2969 = vmatpush1.bf16.msra.mxu0 %v8078_v12  ;;  %3010 = vmatpush1.bf16.msra.mxu1 %v8081_v62  ;;  %v8340_v12 = vld [vmem:[#allocation12 + $0xc] ss:$16 sps:$4 sm:$0xff]   ;;  %v2744_v62 = vadd.f32 %v2736_v21, %v8092_v17  ;;  %v8375_v63 = vld [vmem:[#allocation12 + $0x48] ss:$16 sps:$4 sm:$0xff]  }
 0x51e   :  { %v2743_v19 = vadd.f32 %v2697_v37, %v8061_v0  ;;  %2970 = vmatprep.subr.bf16.mxu0 %v8084_v56  ;;  %3011 = vmatprep.subr.bf16.mxu1 %v8087_v55  ;;  %v2745_v27 = vadd.f32 %v2738_v39, %v8075_v20  ;;  %v8346_v56 = vld [vmem:[#allocation12] ss:$16 sps:$4 sm:$0xff]   ;;  %v8349_v55 = vld [vmem:[#allocation12 + $0x8] ss:$16 sps:$4 sm:$0xff]   ;;  %v8378_v15 = vld [vmem:[#allocation12 + $0x64] ss:$16 sps:$4 sm:$0xff]  }
 0x51f   :  { %v2746_v28 = vmul.f32 0.5, %v2742_v43  ;;  %v8385_v39 = vld [vmem:[#allocation12 + $0x60] ss:$16 sps:$4 sm:$0xff]   ;;  %v8388_v40 = vld [vmem:[#allocation12 + $0x68] ss:$16 sps:$4 sm:$0xff]  }
 0x520   :  { %v2747_v16 = vmul.f32 0.5, %v2743_v19  ;;  %v8391_v25 = vld [vmem:[#allocation12 + $0x84] ss:$16 sps:$4 sm:$0xff]   ;;  %v8394_v43 = vld [vmem:[#allocation12 + $0x8c] ss:$16 sps:$4 sm:$0xff]  }
 0x521   :  { %5952 = vtanh.f32 %v2746_v28  ;;  %2971 = vmatpush1.bf16.msra.mxu0 %v8094_v13  ;;  %3012 = vmatpush1.bf16.msra.mxu1 %v8097_v47  ;;  %v8352_v13 = vld [vmem:[#allocation12 + $0x24] ss:$16 sps:$4 sm:$0xff]   ;;  %v8355_v47 = vld [vmem:[#allocation12 + $0x2c] ss:$16 sps:$4 sm:$0xff]   ;;  %10742 = vst [vmem:[#allocation45_spill] sm:$0xff] %v8391_v25  ;;  %10743 = vst [vmem:[#allocation46_spill] sm:$0xff] %v8394_v43 }
 0x522   :  { %5954 = vtanh.f32 %v2747_v16  ;;  %3061 = vmatprep.subr.bf16.mxu0 %v8337_v49  ;;  %3102 = vmatprep.subr.bf16.mxu1 %v8340_v12  ;;  %v8403_v10 = vld [vmem:[#allocation12 + $0x88] ss:$16 sps:$4 sm:$0xff]   ;;  %v8406_v19 = vld [vmem:[#allocation12 + $0xa4] ss:$16 sps:$4 sm:$0xff]   ;;  %v8409_v28 = vld [vmem:[#allocation12 + $0xac] ss:$16 sps:$4 sm:$0xff]  }
 0x523   :  { %5956 = vtanh.f32 %v2745_v27  ;;  %10745 = vst [vmem:[#allocation48_spill] sm:$0xff] %v8403_v10  ;;  %10746 = vst [vmem:[#allocation49_spill] sm:$0xff] %v8406_v19  ;;  %v8412_v27 = vld [vmem:[#allocation12 + $0xa0] ss:$16 sps:$4 sm:$0xff]  }
 0x524   :  { %2989 = vmatmul.mubr.bf16.vlgmr.msra.gmra.mrb[80].mxu0 %v8252_v4  ;;  %3030 = vmatmul.mubr.bf16.vlgmr.msra.gmra.mrb[80].mxu1 %v8252_v4  ;;  %v2748_v4 = vmul.f32 0.5, %v2744_v62  ;;  %10747 = vst [vmem:[#allocation20_spill] sm:$0xff] %v8409_v28  ;;  %10748 = vst [vmem:[#allocation50_spill] sm:$0xff] %v8412_v27  ;;  %v8415_v62 = vld [vmem:[#allocation12 + $0xa8] ss:$16 sps:$4 sm:$0xff]  }
 0x525   :  { %3062 = vmatpush1.bf16.msra.mxu0 %v8346_v56  ;;  %3103 = vmatpush1.bf16.msra.mxu1 %v8349_v55  ;;  %10749 = vst [vmem:[#allocation51_spill] sm:$0xff] %v8415_v62 }
 0x526   :  { %3063 = vmatprep.subr.bf16.mxu0 %v8352_v13  ;;  %3104 = vmatprep.subr.bf16.mxu1 %v8355_v47  ;;  %5958 = vtanh.f32 %v2748_v4 }
 0x527   :  { %3093 = vmatprep.mubr.bf16.mxu0 %v10440_v50  ;;  %3134 = vmatprep.mubr.bf16.mxu1 %v10440_v50 }
 0x529   :  { %3064 = vmatpush1.bf16.msra.mxu0 %v8360_v61  ;;  %3105 = vmatpush1.bf16.msra.mxu1 %v8363_v8 }
 0x52a   :  { %3065 = vmatprep.subr.bf16.mxu0 %v8366_v54  ;;  %3106 = vmatprep.subr.bf16.mxu1 %v8369_v53 }
 0x52b   :  { %v5953_v51 = vpop.eup %5952 }
 0x52c   :  { %v2752_v59 = vmul.f32 0.5, %v5953_v51  ;;  %v5955_v14 = vpop.eup %5954  ;;  %v8418_v51 = vld [vmem:[#allocation12 + $0xc4] ss:$16 sps:$4 sm:$0xff]  }
 0x52d   :  { %v2753_v58 = vmul.f32 0.5, %v5955_v14  ;;  %3066 = vmatpush1.bf16.msra.mxu0 %v8372_v46  ;;  %3107 = vmatpush1.bf16.msra.mxu1 %v8375_v63  ;;  %v5957_v21 = vpop.eup %5956  ;;  %10750 = vst [vmem:[#allocation52_spill] sm:$0xff] %v8418_v51  ;;  %v8424_v14 = vld [vmem:[#allocation12 + $0xc0] ss:$16 sps:$4 sm:$0xff]  }
 0x52e   :  { %v2755_v9 = vadd.f32 0.5, %v2752_v59  ;;  %3067 = vmatprep.subr.bf16.mxu0 %v8378_v15  ;;  %3108 = vmatprep.subr.bf16.mxu1 %v8381_v18  ;;  %v8421_v59 = vld [vmem:[#allocation12 + $0xcc] ss:$16 sps:$4 sm:$0xff]   ;;  %10752 = vst [vmem:[#allocation54_spill] sm:$0xff] %v8424_v14 }
 0x52f   :  { %v2756_v23 = vadd.f32 0.5, %v2753_v58  ;;  %10751 = vst [vmem:[#allocation53_spill] sm:$0xff] %v8421_v59 }
 0x530   :  { %v2760_v36 = vmul.f32 %v5957_v21, %v2755_v9  ;;  %v5959_v16 = vpop.eup %5958  ;;  %v8427_v9 = vld [vmem:[#allocation12 + $0xc8] ss:$16 sps:$4 sm:$0xff]   ;;  %v8430_v21 = vld [vmem:[#allocation12 + $0xe4] ss:$16 sps:$4 sm:$0xff]  }
 0x531   :  { %v2759_v37 = vmul.f32 %v2756_v23, %v8123_v24  ;;  %3068 = vmatpush1.bf16.msra.mxu0 %v8385_v39  ;;  %3109 = vmatpush1.bf16.msra.mxu1 %v8388_v40  ;;  %v8400_v24 = vld [vmem:[#allocation12 + $0x80] ss:$16 sps:$4 sm:$0xff]   ;;  %v2754_v4 = vmul.f32 0.5, %v5959_v16  ;;  %10753 = vst [vmem:[#allocation55_spill] sm:$0xff] %v8427_v9  ;;  %10754 = vst [vmem:[#allocation56_spill] sm:$0xff] %v8430_v21 }
 0x532   :  { %3069 = vmatprep.subr.bf16.mxu0 %v8391_v25  ;;  %3110 = vmatprep.subr.bf16.mxu1 %v8394_v43  ;;  %10744 = vst [vmem:[#allocation47_spill] sm:$0xff] %v8400_v24  ;;  %v8433_v23 = vld [vmem:[#allocation12 + $0xec] ss:$16 sps:$4 sm:$0xff]   ;;  %v8436_v16 = vld [vmem:[#allocation12 + $0xe0] ss:$16 sps:$4 sm:$0xff]  }
 0x533   :  { %v8397_v32 = vadd.f32 %v2760_v36, %v2759_v37  ;;  %v2757_v58 = vadd.f32 0.5, %v2754_v4  ;;  %10755 = vst [vmem:[#allocation57_spill] sm:$0xff] %v8433_v23  ;;  %10756 = vst [vmem:[#allocation58_spill] sm:$0xff] %v8436_v16  ;;  %v8445_v4 = vld [vmem:[#allocation11 + $0xc] ss:$16 sps:$4 sm:$0xff]  }
 0x534   :  { %10759 = vst [vmem:[#allocation61_spill] sm:$0xff] %v8445_v4 }
 0x535   :  { %5960 = vtanh.f32 %v8397_v32  ;;  %3070 = vmatpush1.bf16.msra.mxu0 %v8400_v24  ;;  %3111 = vmatpush1.bf16.msra.mxu1 %v8403_v10 }
 0x536   :  { %3071 = vmatprep.subr.bf16.mxu0 %v8406_v19  ;;  %3112 = vmatprep.subr.bf16.mxu1 %v8409_v28  ;;  %v10779_v28 = vld [vmem:[#allocation32_spill] sm:$0xff] }
 0x539   :  { %3072 = vmatpush1.bf16.msra.mxu0 %v8412_v27  ;;  %3113 = vmatpush1.bf16.msra.mxu1 %v8415_v62  ;;  %v10778_v62 = vld [vmem:[#allocation31_spill] sm:$0xff] }
 0x53a   :  { %3073 = vmatprep.subr.bf16.mxu0 %v8418_v51  ;;  %3114 = vmatprep.subr.bf16.mxu1 %v8421_v59 }
 0x53d   :  { %3074 = vmatpush1.bf16.msra.mxu0 %v8424_v14  ;;  %3115 = vmatpush1.bf16.msra.mxu1 %v8427_v9  ;;  %v8439_v14 = vld [vmem:[#allocation12 + $0xe8] ss:$16 sps:$4 sm:$0xff]   ;;  %v8442_v9 = vld [vmem:[#allocation11 + $0x4] ss:$16 sps:$4 sm:$0xff]  }
 0x53e   :  { %3075 = vmatprep.subr.bf16.mxu0 %v8430_v21  ;;  %3116 = vmatprep.subr.bf16.mxu1 %v8433_v23  ;;  %10757 = vst [vmem:[#allocation59_spill] sm:$0xff] %v8439_v14  ;;  %10758 = vst [vmem:[#allocation60_spill] sm:$0xff] %v8442_v9  ;;  %v10777_v23 = vld [vmem:[#allocation30_spill] sm:$0xff] }
 0x53f   :  { %v5961_v36 = vpop.eup %5960 }
 0x540   :  { %v2763_v37 = vmul.f32 %v5961_v36, %v2757_v58  ;;  %v8448_v58 = vld [vmem:[#allocation11] ss:$16 sps:$4 sm:$0xff]   ;;  %v8451_v36 = vld [vmem:[#allocation11 + $0x8] ss:$16 sps:$4 sm:$0xff]  }
 0x541   :  { %3076 = vmatpush1.bf16.msra.mxu0 %v8436_v16  ;;  %3117 = vmatpush1.bf16.msra.mxu1 %v8439_v14  ;;  %10760 = vst [vmem:[#allocation62_spill] sm:$0xff] %v8448_v58  ;;  %10761 = vst [vmem:[#allocation63_spill] sm:$0xff] %v8451_v36  ;;  %v8454_v14 = vld [vmem:[#allocation11 + $0x24] ss:$16 sps:$4 sm:$0xff]  }
 0x542   :  { %3143 = vmatprep.subr.bf16.mxu0 %v8442_v9  ;;  %3184 = vmatprep.subr.bf16.mxu1 %v8445_v4  ;;  %v2764_v21 = vpack.c.bf16 %v2763_v37, %v2763_v37  ;;  %10762 = vst [vmem:[#allocation64_spill] sm:$0xff] %v8454_v14  ;;  %v8457_v9 = vld [vmem:[#allocation11 + $0x2c] ss:$16 sps:$4 sm:$0xff]   ;;  %v8465_v37 = vld [vmem:[#allocation11 + $0x28] ss:$16 sps:$4 sm:$0xff]  }
 0x543   :  { %10763 = vst [vmem:[#allocation65_spill] sm:$0xff] %v8457_v9  ;;  %10765 = vst [vmem:[#allocation67_spill] sm:$0xff] %v8465_v37  ;;  %v8492_v16 = vld [vmem:[#allocation11 + $0x84] ss:$16 sps:$4 sm:$0xff]  }
 0x544   :  { %3094 = vmatmul.mubr.bf16.vlgmr.msra.gmra.mrb[84].mxu0 %v2764_v21  ;;  %3135 = vmatmul.mubr.bf16.vlgmr.msra.gmra.mrb[84].mxu1 %v2764_v21  ;;  %v8462_v21 = vld [vmem:[#allocation11 + $0x20] ss:$16 sps:$4 sm:$0xff]   ;;  %10774 = vst [vmem:[#allocation76_spill] sm:$0xff] %v8492_v16 }
 0x545   :  { %3144 = vmatpush1.bf16.msra.mxu0 %v8448_v58  ;;  %3185 = vmatpush1.bf16.msra.mxu1 %v8451_v36  ;;  %10764 = vst [vmem:[#allocation66_spill] sm:$0xff] %v8462_v21  ;;  %v8468_v36 = vld [vmem:[#allocation11 + $0x44] ss:$16 sps:$4 sm:$0xff]   ;;  %v8477_v58 = vld [vmem:[#allocation11 + $0x48] ss:$16 sps:$4 sm:$0xff]  }
 0x546   :  { %3145 = vmatprep.subr.bf16.mxu0 %v8454_v14  ;;  %3186 = vmatprep.subr.bf16.mxu1 %v8457_v9  ;;  %10766 = vst [vmem:[#allocation68_spill] sm:$0xff] %v8468_v36  ;;  %v8471_v14 = vld [vmem:[#allocation11 + $0x4c] ss:$16 sps:$4 sm:$0xff]   ;;  %v8474_v9 = vld [vmem:[#allocation11 + $0x40] ss:$16 sps:$4 sm:$0xff]   ;;  %10769 = vst [vmem:[#allocation71_spill] sm:$0xff] %v8477_v58 }
 0x547   :  { %3175 = vmatprep.mubr.bf16.mxu0 %v10440_v50  ;;  %3216 = vmatprep.mubr.bf16.mxu1 %v10440_v50  ;;  %10767 = vst [vmem:[#allocation69_spill] sm:$0xff] %v8471_v14  ;;  %10768 = vst [vmem:[#allocation70_spill] sm:$0xff] %v8474_v9 }
 0x549   :  { %3146 = vmatpush1.bf16.msra.mxu0 %v8462_v21  ;;  %3187 = vmatpush1.bf16.msra.mxu1 %v8465_v37  ;;  %v8480_v21 = vld [vmem:[#allocation11 + $0x64] ss:$16 sps:$4 sm:$0xff]   ;;  %v8483_v37 = vld [vmem:[#allocation11 + $0x6c] ss:$16 sps:$4 sm:$0xff]  }
 0x54a   :  { %3147 = vmatprep.subr.bf16.mxu0 %v8468_v36  ;;  %3188 = vmatprep.subr.bf16.mxu1 %v8471_v14  ;;  %10770 = vst [vmem:[#allocation72_spill] sm:$0xff] %v8480_v21  ;;  %10771 = vst [vmem:[#allocation73_spill] sm:$0xff] %v8483_v37  ;;  %v8486_v36 = vld [vmem:[#allocation11 + $0x60] ss:$16 sps:$4 sm:$0xff]   ;;  %v8489_v14 = vld [vmem:[#allocation11 + $0x68] ss:$16 sps:$4 sm:$0xff]  }
 0x54b   :  { %10772 = vst [vmem:[#allocation74_spill] sm:$0xff] %v8486_v36  ;;  %10773 = vst [vmem:[#allocation75_spill] sm:$0xff] %v8489_v14 }
 0x54d   :  { %3148 = vmatpush1.bf16.msra.mxu0 %v8474_v9  ;;  %3189 = vmatpush1.bf16.msra.mxu1 %v8477_v58  ;;  %v8495_v58 = vld [vmem:[#allocation11 + $0x8c] ss:$16 sps:$4 sm:$0xff]  }
 0x54e   :  { %3149 = vmatprep.subr.bf16.mxu0 %v8480_v21  ;;  %3190 = vmatprep.subr.bf16.mxu1 %v8483_v37  ;;  %10775 = vst [vmem:[#allocation77_spill] sm:$0xff] %v8495_v58  ;;  %v10776_v21 = vld [vmem:[#allocation29_spill] sm:$0xff] }
 0x551   :  { %3150 = vmatpush1.bf16.msra.mxu0 %v8486_v36  ;;  %3191 = vmatpush1.bf16.msra.mxu1 %v8489_v14 }
 0x552   :  { %v2803_v9 = vpop.f32.mrb[72].mxu0  ;;  %v2844_v4 = vpop.f32.mrb[72].mxu1  ;;  %3151 = vmatprep.subr.bf16.mxu0 %v8492_v16  ;;  %3192 = vmatprep.subr.bf16.mxu1 %v8495_v58  ;;  %v8502_v16 = vld [vmem:[#allocation11 + $0x80] ss:$16 sps:$4 sm:$0xff]   ;;  %v8505_v58 = vld [vmem:[#allocation11 + $0x88] ss:$16 sps:$4 sm:$0xff]  }
 0x553   :  { %v2851_v37 = vadd.f32 %v2803_v9, %v10776_v21  ;;  %v2853_v59 = vadd.f32 %v2844_v4, %v10777_v23  ;;  %v2805_v51 = vpop.f32.mrb[73].mxu0  ;;  %v2846_v36 = vpop.f32.mrb[73].mxu1  ;;  %v8508_v23 = vld [vmem:[#allocation11 + $0xa4] ss:$16 sps:$4 sm:$0xff]   ;;  %v8541_v21 = vld [vmem:[#allocation11 + $0xe8] ss:$16 sps:$4 sm:$0xff]  }
 0x554   :  { %v2852_v27 = vadd.f32 %v2805_v51, %v10778_v62  ;;  %v2854_v14 = vadd.f32 %v2846_v36, %v10779_v28  ;;  %v2807_v19 = vpop.f32.mrb[74].mxu0  ;;  %v2848_v10 = vpop.f32.mrb[74].mxu1  ;;  %v8511_v28 = vld [vmem:[#allocation11 + $0xac] ss:$16 sps:$4 sm:$0xff]   ;;  %v8532_v62 = vld [vmem:[#allocation11 + $0xe4] ss:$16 sps:$4 sm:$0xff]  }
 0x555   :  { %v2855_v24 = vmul.f32 0.5, %v2851_v37  ;;  %v2808_v43 = vpop.f32.mrb[75].mxu0  ;;  %v2849_v25 = vpop.f32.mrb[75].mxu1  ;;  %3152 = vmatpush1.bf16.msra.mxu0 %v8502_v16  ;;  %3193 = vmatpush1.bf16.msra.mxu1 %v8505_v58  ;;  %v8520_v10 = vld [vmem:[#allocation11 + $0xc4] ss:$16 sps:$4 sm:$0xff]   ;;  %10781 = vst [vmem:[#allocation26_spill] sm:$0xff] %v8532_v62 }
 0x556   :  { %v2856_v9 = vmul.f32 0.5, %v2852_v27  ;;  %3153 = vmatprep.subr.bf16.mxu0 %v8508_v23  ;;  %3194 = vmatprep.subr.bf16.mxu1 %v8511_v28  ;;  %v8514_v25 = vld [vmem:[#allocation11 + $0xa0] ss:$16 sps:$4 sm:$0xff]   ;;  %v8517_v43 = vld [vmem:[#allocation11 + $0xa8] ss:$16 sps:$4 sm:$0xff]  }
 0x557   :  { %5962 = vtanh.f32 %v2855_v24  ;;  %v8523_v24 = vld [vmem:[#allocation11 + $0xcc] ss:$16 sps:$4 sm:$0xff]   ;;  %v8526_v19 = vld [vmem:[#allocation11 + $0xc0] ss:$16 sps:$4 sm:$0xff]   ;;  %v8529_v27 = vld [vmem:[#allocation11 + $0xc8] ss:$16 sps:$4 sm:$0xff]  }
 0x558   :  { %5964 = vtanh.f32 %v2856_v9  ;;  %10780 = vst [vmem:[#allocation25_spill] sm:$0xff] %v8529_v27  ;;  %v8535_v51 = vld [vmem:[#allocation11 + $0xec] ss:$16 sps:$4 sm:$0xff]   ;;  %v8538_v36 = vld [vmem:[#allocation11 + $0xe0] ss:$16 sps:$4 sm:$0xff]  }
 0x559   :  { %3154 = vmatpush1.bf16.msra.mxu0 %v8514_v25  ;;  %3195 = vmatpush1.bf16.msra.mxu1 %v8517_v43  ;;  %5966 = vtanh.f32 %v2854_v14  ;;  %10782 = vst [vmem:[#allocation27_spill] sm:$0xff] %v8535_v51 }
 0x55a   :  { %3155 = vmatprep.subr.bf16.mxu0 %v8520_v10  ;;  %3196 = vmatprep.subr.bf16.mxu1 %v8523_v24 }
 0x55d   :  { %3156 = vmatpush1.bf16.msra.mxu0 %v8526_v19  ;;  %3197 = vmatpush1.bf16.msra.mxu1 %v8529_v27 }
 0x55e   :  { %3157 = vmatprep.subr.bf16.mxu0 %v8532_v62  ;;  %3198 = vmatprep.subr.bf16.mxu1 %v8535_v51 }
 0x561   :  { %v5963_v14 = vpop.eup %5962  ;;  %3158 = vmatpush1.bf16.msra.mxu0 %v8538_v36  ;;  %3199 = vmatpush1.bf16.msra.mxu1 %v8541_v21 }
 0x562   :  { %v2861_v4 = vmul.f32 0.5, %v5963_v14  ;;  %v5965_v37 = vpop.eup %5964  ;;  %3252 = vmatprep.subr.bf16.mxu0 %v8174_v5  ;;  %3293 = vmatprep.subr.bf16.mxu1 %v8177_v11  ;;  %v2857_v5 = vmul.f32 0.5, %v2853_v59  ;;  %v8604_v59 = vld [vmem:[#allocation6 + $0xe4] ss:$16 sps:$4 sm:$0xff]  }
 0x563   :  { %v2862_v62 = vmul.f32 0.5, %v5965_v37  ;;  %v5967_v27 = vpop.eup %5966  ;;  %10793 = vst [vmem:[#allocation87_spill] sm:$0xff] %v8604_v59  ;;  %v8613_v37 = vld [vmem:[#allocation6 + $0xe8] ss:$16 sps:$4 sm:$0xff]  }
 0x564   :  { %v2864_v9 = vadd.f32 0.5, %v2861_v4  ;;  %3176 = vmatmul.mubr.bf16.vlgmr.msra.gmra.mrb[88].mxu0 %v8298_v60  ;;  %3217 = vmatmul.mubr.bf16.vlgmr.msra.gmra.mrb[88].mxu1 %v8298_v60  ;;  %5968 = vtanh.f32 %v2857_v5  ;;  %v8601_v60 = vld [vmem:[#allocation6 + $0xc8] ss:$16 sps:$4 sm:$0xff]   ;;  %10796 = vst [vmem:[#allocation90_spill] sm:$0xff] %v8613_v37  ;;  %v8621_v5 = vld [vmem:[#allocation9 + $0xc] ss:$16 sps:$4 sm:$0xff]  }
 0x565   :  { %v2865_v14 = vadd.f32 0.5, %v2862_v62  ;;  %3253 = vmatpush1.bf16.msra.mxu0 %v8182_v7  ;;  %3294 = vmatpush1.bf16.msra.mxu1 %v8185_v45  ;;  %v8568_v7 = vld [vmem:[#allocation6 + $0x84] ss:$16 sps:$4 sm:$0xff]   ;;  %v8571_v45 = vld [vmem:[#allocation6 + $0x8c] ss:$16 sps:$4 sm:$0xff]   ;;  %10792 = vst [vmem:[#allocation86_spill] sm:$0xff] %v8601_v60 }
 0x566   :  { %v2869_v51 = vmul.f32 %v5967_v27, %v2864_v9  ;;  %3254 = vmatprep.subr.bf16.mxu0 %v8188_v1  ;;  %3295 = vmatprep.subr.bf16.mxu1 %v8191_v57  ;;  %v8574_v57 = vld [vmem:[#allocation6 + $0x80] ss:$16 sps:$4 sm:$0xff]   ;;  %v8607_v27 = vld [vmem:[#allocation6 + $0xec] ss:$16 sps:$4 sm:$0xff]   ;;  %10798 = vst [vmem:[#allocation92_spill] sm:$0xff] %v8621_v5 }
 0x567   :  { %v2868_v11 = vmul.f32 %v2865_v14, %v8249_v44  ;;  %3284 = vmatprep.mubr.bf16.mxu0 %v10440_v50  ;;  %3325 = vmatprep.mubr.bf16.mxu1 %v10440_v50  ;;  %10783 = vst [vmem:[#allocation28_spill] sm:$0xff] %v8574_v57  ;;  %v8598_v44 = vld [vmem:[#allocation6 + $0xc0] ss:$16 sps:$4 sm:$0xff]   ;;  %10794 = vst [vmem:[#allocation88_spill] sm:$0xff] %v8607_v27  ;;  %v8618_v14 = vld [vmem:[#allocation9 + $0x4] ss:$16 sps:$4 sm:$0xff]  }
 0x568   :  { %10791 = vst [vmem:[#allocation85_spill] sm:$0xff] %v8598_v44  ;;  %10797 = vst [vmem:[#allocation91_spill] sm:$0xff] %v8618_v14 }
 0x569   :  { %v8555_v4 = vadd.f32 %v2869_v51, %v2868_v11  ;;  %3255 = vmatpush1.bf16.msra.mxu0 %v8196_v6  ;;  %3296 = vmatpush1.bf16.msra.mxu1 %v8199_v2  ;;  %v8577_v6 = vld [vmem:[#allocation6 + $0x88] ss:$16 sps:$4 sm:$0xff]   ;;  %v8580_v2 = vld [vmem:[#allocation6 + $0xa4] ss:$16 sps:$4 sm:$0xff]   ;;  %v8610_v51 = vld [vmem:[#allocation6 + $0xe0] ss:$16 sps:$4 sm:$0xff]  }
 0x56a   :  { %3256 = vmatprep.subr.bf16.mxu0 %v8202_v41  ;;  %3297 = vmatprep.subr.bf16.mxu1 %v8205_v26  ;;  %10784 = vst [vmem:[#allocation78_spill] sm:$0xff] %v8577_v6  ;;  %10785 = vst [vmem:[#allocation79_spill] sm:$0xff] %v8580_v2  ;;  %v8583_v41 = vld [vmem:[#allocation6 + $0xac] ss:$16 sps:$4 sm:$0xff]   ;;  %v8626_v11 = vld [vmem:[#allocation9] ss:$16 sps:$4 sm:$0xff]  }
 0x56b   :  { %5970 = vtanh.f32 %v8555_v4  ;;  %10786 = vst [vmem:[#allocation80_spill] sm:$0xff] %v8583_v41  ;;  %10795 = vst [vmem:[#allocation89_spill] sm:$0xff] %v8610_v51 }
 0x56c   :  { %10799 = vst [vmem:[#allocation93_spill] sm:$0xff] %v8626_v11 }
 0x56d   :  { %3257 = vmatpush1.bf16.msra.mxu0 %v8208_v29  ;;  %3298 = vmatpush1.bf16.msra.mxu1 %v8211_v30  ;;  %v8586_v29 = vld [vmem:[#allocation6 + $0xa0] ss:$16 sps:$4 sm:$0xff]   ;;  %v8589_v30 = vld [vmem:[#allocation6 + $0xa8] ss:$16 sps:$4 sm:$0xff]  }
 0x56e   :  { %3258 = vmatprep.subr.bf16.mxu0 %v8214_v31  ;;  %3299 = vmatprep.subr.bf16.mxu1 %v8217_v33  ;;  %v5969_v1 = vpop.eup %5968  ;;  %10787 = vst [vmem:[#allocation81_spill] sm:$0xff] %v8586_v29  ;;  %10788 = vst [vmem:[#allocation82_spill] sm:$0xff] %v8589_v30  ;;  %v8592_v31 = vld [vmem:[#allocation6 + $0xc4] ss:$16 sps:$4 sm:$0xff]   ;;  %v8595_v33 = vld [vmem:[#allocation6 + $0xcc] ss:$16 sps:$4 sm:$0xff]  }
 0x56f   :  { %v2863_v26 = vmul.f32 0.5, %v5969_v1  ;;  %10789 = vst [vmem:[#allocation83_spill] sm:$0xff] %v8592_v31  ;;  %10790 = vst [vmem:[#allocation84_spill] sm:$0xff] %v8595_v33  ;;  %v8629_v1 = vld [vmem:[#allocation9 + $0x8] ss:$16 sps:$4 sm:$0xff]  }
 0x570   :  { %10800 = vst [vmem:[#allocation21_spill] sm:$0xff] %v8629_v1 }
 0x571   :  { %3259 = vmatpush1.bf16.msra.mxu0 %v8220_v34  ;;  %3300 = vmatpush1.bf16.msra.mxu1 %v8223_v35  ;;  %v2866_v35 = vadd.f32 0.5, %v2863_v26  ;;  %v8632_v26 = vld [vmem:[#allocation9 + $0x24] ss:$16 sps:$4 sm:$0xff]  }
 0x572   :  { %3260 = vmatprep.subr.bf16.mxu0 %v8568_v7  ;;  %3301 = vmatprep.subr.bf16.mxu1 %v8571_v45  ;;  %10801 = vst [vmem:[#allocation22_spill] sm:$0xff] %v8632_v26 }
 0x575   :  { %3261 = vmatpush1.bf16.msra.mxu0 %v8574_v57  ;;  %3302 = vmatpush1.bf16.msra.mxu1 %v8577_v6  ;;  %v5971_v34 = vpop.eup %5970 }
 0x576   :  { %3262 = vmatprep.subr.bf16.mxu0 %v8580_v2  ;;  %3303 = vmatprep.subr.bf16.mxu1 %v8583_v41  ;;  %v2872_v62 = vmul.f32 %v5971_v34, %v2866_v35  ;;  %v8635_v34 = vld [vmem:[#allocation9 + $0x2c] ss:$16 sps:$4 sm:$0xff]   ;;  %v8640_v35 = vld [vmem:[#allocation9 + $0x20] ss:$16 sps:$4 sm:$0xff]  }
 0x577   :  { %10802 = vst [vmem:[#allocation23_spill] sm:$0xff] %v8635_v34  ;;  %10803 = vst [vmem:[#allocation24_spill] sm:$0xff] %v8640_v35 }
 0x578   :  { %v8616_v9 = vpack.c.bf16 %v2872_v62, %v2872_v62  ;;  %v8643_v62 = vld [vmem:[#allocation9 + $0x28] ss:$16 sps:$4 sm:$0xff]  }
 0x579   :  { %3263 = vmatpush1.bf16.msra.mxu0 %v8586_v29  ;;  %3304 = vmatpush1.bf16.msra.mxu1 %v8589_v30  ;;  %10804 = vst [vmem:[#allocation94_spill] sm:$0xff] %v8643_v62 }
 0x57a   :  { %3264 = vmatprep.subr.bf16.mxu0 %v8592_v31  ;;  %3305 = vmatprep.subr.bf16.mxu1 %v8595_v33 }
 0x57d   :  { %3265 = vmatpush1.bf16.msra.mxu0 %v8598_v44  ;;  %3306 = vmatpush1.bf16.msra.mxu1 %v8601_v60 }
 0x57e   :  { %3266 = vmatprep.subr.bf16.mxu0 %v8604_v59  ;;  %3307 = vmatprep.subr.bf16.mxu1 %v8607_v27 }
 0x581   :  { %3267 = vmatpush1.bf16.msra.mxu0 %v8610_v51  ;;  %3308 = vmatpush1.bf16.msra.mxu1 %v8613_v37 }
 0x582   :  { %3357 = vmatprep.subr.bf16.mxu0 %v8618_v14  ;;  %3398 = vmatprep.subr.bf16.mxu1 %v8621_v5 }
 0x584   :  { %3285 = vmatmul.mubr.bf16.vlgmr.msra.gmra.mrb[92].mxu0 %v8616_v9  ;;  %3326 = vmatmul.mubr.bf16.vlgmr.msra.gmra.mrb[92].mxu1 %v8616_v9 }
 0x585   :  { %3358 = vmatpush1.bf16.msra.mxu0 %v8626_v11  ;;  %3399 = vmatpush1.bf16.msra.mxu1 %v8629_v1  ;;  %v8646_v1 = vld [vmem:[#allocation9 + $0x44] ss:$16 sps:$4 sm:$0xff]   ;;  %v8655_v11 = vld [vmem:[#allocation9 + $0x48] ss:$16 sps:$4 sm:$0xff]  }
 0x586   :  { %3359 = vmatprep.subr.bf16.mxu0 %v8632_v26  ;;  %3400 = vmatprep.subr.bf16.mxu1 %v8635_v34  ;;  %10805 = vst [vmem:[#allocation95_spill] sm:$0xff] %v8646_v1  ;;  %v8649_v26 = vld [vmem:[#allocation9 + $0x4c] ss:$16 sps:$4 sm:$0xff]   ;;  %v8652_v34 = vld [vmem:[#allocation9 + $0x40] ss:$16 sps:$4 sm:$0xff]   ;;  %10808 = vst [vmem:[#allocation98_spill] sm:$0xff] %v8655_v11 }
 0x587   :  { %3389 = vmatprep.mubr.bf16.mxu0 %v10440_v50  ;;  %3430 = vmatprep.mubr.bf16.mxu1 %v10440_v50  ;;  %10806 = vst [vmem:[#allocation96_spill] sm:$0xff] %v8649_v26  ;;  %10807 = vst [vmem:[#allocation97_spill] sm:$0xff] %v8652_v34 }
 0x589   :  { %3360 = vmatpush1.bf16.msra.mxu0 %v8640_v35  ;;  %3401 = vmatpush1.bf16.msra.mxu1 %v8643_v62  ;;  %v8658_v35 = vld [vmem:[#allocation9 + $0x64] ss:$16 sps:$4 sm:$0xff]   ;;  %v8661_v62 = vld [vmem:[#allocation9 + $0x6c] ss:$16 sps:$4 sm:$0xff]  }
 0x58a   :  { %3361 = vmatprep.subr.bf16.mxu0 %v8646_v1  ;;  %3402 = vmatprep.subr.bf16.mxu1 %v8649_v26  ;;  %10809 = vst [vmem:[#allocation99_spill] sm:$0xff] %v8658_v35  ;;  %10810 = vst [vmem:[#allocation100_spill] sm:$0xff] %v8661_v62  ;;  %v8664_v1 = vld [vmem:[#allocation9 + $0x60] ss:$16 sps:$4 sm:$0xff]   ;;  %v8667_v26 = vld [vmem:[#allocation9 + $0x68] ss:$16 sps:$4 sm:$0xff]  }
 0x58b   :  { %10811 = vst [vmem:[#allocation101_spill] sm:$0xff] %v8664_v1  ;;  %10812 = vst [vmem:[#allocation102_spill] sm:$0xff] %v8667_v26 }
 0x58d   :  { %3362 = vmatpush1.bf16.msra.mxu0 %v8652_v34  ;;  %3403 = vmatpush1.bf16.msra.mxu1 %v8655_v11  ;;  %v8670_v34 = vld [vmem:[#allocation9 + $0x84] ss:$16 sps:$4 sm:$0xff]   ;;  %v8673_v11 = vld [vmem:[#allocation9 + $0x8c] ss:$16 sps:$4 sm:$0xff]  }
 0x58e   :  { %3363 = vmatprep.subr.bf16.mxu0 %v8658_v35  ;;  %3404 = vmatprep.subr.bf16.mxu1 %v8661_v62  ;;  %10813 = vst [vmem:[#allocation103_spill] sm:$0xff] %v8670_v34  ;;  %10814 = vst [vmem:[#allocation104_spill] sm:$0xff] %v8673_v11  ;;  %v8676_v35 = vld [vmem:[#allocation9 + $0x80] ss:$16 sps:$4 sm:$0xff]   ;;  %v8679_v62 = vld [vmem:[#allocation9 + $0x88] ss:$16 sps:$4 sm:$0xff]  }
 0x58f   :  { %10815 = vst [vmem:[#allocation105_spill] sm:$0xff] %v8676_v35  ;;  %10816 = vst [vmem:[#allocation106_spill] sm:$0xff] %v8679_v62 }
 0x591   :  { %3364 = vmatpush1.bf16.msra.mxu0 %v8664_v1  ;;  %3405 = vmatpush1.bf16.msra.mxu1 %v8667_v26  ;;  %v8682_v1 = vld [vmem:[#allocation9 + $0xa4] ss:$16 sps:$4 sm:$0xff]   ;;  %v8685_v26 = vld [vmem:[#allocation9 + $0xac] ss:$16 sps:$4 sm:$0xff]  }
 0x592   :  { %3365 = vmatprep.subr.bf16.mxu0 %v8670_v34  ;;  %3406 = vmatprep.subr.bf16.mxu1 %v8673_v11  ;;  %10817 = vst [vmem:[#allocation107_spill] sm:$0xff] %v8682_v1  ;;  %10818 = vst [vmem:[#allocation108_spill] sm:$0xff] %v8685_v26  ;;  %v8688_v34 = vld [vmem:[#allocation9 + $0xa0] ss:$16 sps:$4 sm:$0xff]   ;;  %v8691_v11 = vld [vmem:[#allocation9 + $0xa8] ss:$16 sps:$4 sm:$0xff]  }
 0x593   :  { %10819 = vst [vmem:[#allocation109_spill] sm:$0xff] %v8688_v34  ;;  %10820 = vst [vmem:[#allocation110_spill] sm:$0xff] %v8691_v11 }
 0x595   :  { %3366 = vmatpush1.bf16.msra.mxu0 %v8676_v35  ;;  %3407 = vmatpush1.bf16.msra.mxu1 %v8679_v62  ;;  %v8694_v35 = vld [vmem:[#allocation9 + $0xc4] ss:$16 sps:$4 sm:$0xff]   ;;  %v8697_v62 = vld [vmem:[#allocation9 + $0xcc] ss:$16 sps:$4 sm:$0xff]  }
 0x596   :  { %3367 = vmatprep.subr.bf16.mxu0 %v8682_v1  ;;  %3408 = vmatprep.subr.bf16.mxu1 %v8685_v26  ;;  %10821 = vst [vmem:[#allocation111_spill] sm:$0xff] %v8694_v35  ;;  %10822 = vst [vmem:[#allocation112_spill] sm:$0xff] %v8697_v62  ;;  %v8700_v1 = vld [vmem:[#allocation9 + $0xc0] ss:$16 sps:$4 sm:$0xff]   ;;  %v8703_v26 = vld [vmem:[#allocation9 + $0xc8] ss:$16 sps:$4 sm:$0xff]  }
 0x597   :  { %10823 = vst [vmem:[#allocation113_spill] sm:$0xff] %v8700_v1  ;;  %10824 = vst [vmem:[#allocation114_spill] sm:$0xff] %v8703_v26 }
 0x599   :  { %3368 = vmatpush1.bf16.msra.mxu0 %v8688_v34  ;;  %3409 = vmatpush1.bf16.msra.mxu1 %v8691_v11  ;;  %v8706_v34 = vld [vmem:[#allocation9 + $0xe4] ss:$16 sps:$4 sm:$0xff]   ;;  %v8709_v11 = vld [vmem:[#allocation9 + $0xec] ss:$16 sps:$4 sm:$0xff]  }
 0x59a   :  { %3369 = vmatprep.subr.bf16.mxu0 %v8694_v35  ;;  %3410 = vmatprep.subr.bf16.mxu1 %v8697_v62  ;;  %10825 = vst [vmem:[#allocation115_spill] sm:$0xff] %v8706_v34  ;;  %10826 = vst [vmem:[#allocation116_spill] sm:$0xff] %v8709_v11  ;;  %v8712_v35 = vld [vmem:[#allocation9 + $0xe0] ss:$16 sps:$4 sm:$0xff]   ;;  %v8715_v62 = vld [vmem:[#allocation9 + $0xe8] ss:$16 sps:$4 sm:$0xff]  }
 0x59b   :  { %10827 = vst [vmem:[#allocation117_spill] sm:$0xff] %v8712_v35  ;;  %10828 = vst [vmem:[#allocation118_spill] sm:$0xff] %v8715_v62 }
 0x59d   :  { %3370 = vmatpush1.bf16.msra.mxu0 %v8700_v1  ;;  %3411 = vmatpush1.bf16.msra.mxu1 %v8703_v26  ;;  %v8718_v1 = vld [vmem:[#allocation8 + $0x4] ss:$16 sps:$4 sm:$0xff]   ;;  %v8721_v26 = vld [vmem:[#allocation8 + $0xc] ss:$16 sps:$4 sm:$0xff]  }
 0x59e   :  { %3371 = vmatprep.subr.bf16.mxu0 %v8706_v34  ;;  %3412 = vmatprep.subr.bf16.mxu1 %v8709_v11  ;;  %10829 = vst [vmem:[#allocation119_spill] sm:$0xff] %v8718_v1  ;;  %10830 = vst [vmem:[#allocation120_spill] sm:$0xff] %v8721_v26 }
 0x5a1   :  { %3372 = vmatpush1.bf16.msra.mxu0 %v8712_v35  ;;  %3413 = vmatpush1.bf16.msra.mxu1 %v8715_v62 }
 0x5a2   :  { %3439 = vmatprep.subr.bf16.mxu0 %v8718_v1  ;;  %3480 = vmatprep.subr.bf16.mxu1 %v8721_v26 }
 0x5d7   :  { %v2908_v34 = vpop.f32.mrb[76].mxu0  ;;  %v2949_v5 = vpop.f32.mrb[76].mxu1 }
 0x5d8   :  { %v2910_v14 = vpop.f32.mrb[77].mxu0  ;;  %v2951_v11 = vpop.f32.mrb[77].mxu1 }
 0x5d9   :  { %v2912_v37 = vpop.f32.mrb[78].mxu0  ;;  %v2953_v51 = vpop.f32.mrb[78].mxu1 }
 0x5da   :  { %v2913_v27 = vpop.f32.mrb[79].mxu0  ;;  %v2954_v35 = vpop.f32.mrb[79].mxu1 }
 0x5f7   :  { %v2990_v59 = vpop.f32.mrb[80].mxu0  ;;  %v3031_v60 = vpop.f32.mrb[80].mxu1 }
 0x5f8   :  { %v2991_v44 = vadd.f32 %v2990_v59, %v2908_v34  ;;  %v3032_v62 = vadd.f32 %v3031_v60, %v2949_v5  ;;  %v2992_v33 = vpop.f32.mrb[81].mxu0  ;;  %v3033_v31 = vpop.f32.mrb[81].mxu1 }
 0x5f9   :  { %v2993_v30 = vadd.f32 %v2992_v33, %v2910_v14  ;;  %v3034_v1 = vadd.f32 %v3033_v31, %v2951_v11  ;;  %v2994_v29 = vpop.f32.mrb[82].mxu0  ;;  %v3035_v41 = vpop.f32.mrb[82].mxu1 }
 0x5fa   :  { %v3038_v26 = vadd.f32 %v2991_v44, %v7518_v3  ;;  %v2995_v2 = vpop.f32.mrb[83].mxu0  ;;  %v3036_v6 = vpop.f32.mrb[83].mxu1  ;;  %v3040_v60 = vadd.f32 %v3032_v62, %v7540_v42 }
 0x5fb   :  { %v3039_v57 = vadd.f32 %v2993_v30, %v7523_v22  ;;  %v3041_v27 = vadd.f32 %v3034_v1, %v7529_v48 }
 0x5fc   :  { %v3042_v37 = vmul.f32 0.5, %v3038_v26  ;;  %v3044_v59 = vmul.f32 0.5, %v3040_v60 }
 0x5fd   :  { %v3043_v51 = vmul.f32 0.5, %v3039_v57 }
 0x5fe   :  { %5972 = vtanh.f32 %v3042_v37 }
 0x5ff   :  { %5974 = vtanh.f32 %v3043_v51 }
 0x600   :  { %5976 = vtanh.f32 %v3041_v27 }
 0x601   :  { %5978 = vtanh.f32 %v3044_v59 }
 0x608   :  { %v5973_v33 = vpop.eup %5972 }
 0x609   :  { %v3048_v31 = vmul.f32 0.5, %v5973_v33  ;;  %v5975_v29 = vpop.eup %5974 }
 0x60a   :  { %v3049_v44 = vmul.f32 0.5, %v5975_v29  ;;  %v5977_v2 = vpop.eup %5976  ;;  %v8747_v29 = vld [vmem:[#allocation8 + $0x8] ss:$16 sps:$4 sm:$0xff]  }
 0x60b   :  { %v3051_v41 = vadd.f32 0.5, %v3048_v31  ;;  %v5979_v5 = vpop.eup %5978  ;;  %v8744_v31 = vld [vmem:[#allocation8] ss:$16 sps:$4 sm:$0xff]  }
 0x60c   :  { %v3052_v6 = vadd.f32 0.5, %v3049_v44  ;;  %v3050_v26 = vmul.f32 0.5, %v5979_v5  ;;  %v8753_v44 = vld [vmem:[#allocation8 + $0x2c] ss:$16 sps:$4 sm:$0xff]   ;;  %v8770_v5 = vld [vmem:[#allocation8 + $0x40] ss:$16 sps:$4 sm:$0xff]  }
 0x60d   :  { %v3056_v14 = vmul.f32 %v5977_v2, %v3051_v41  ;;  %v8750_v41 = vld [vmem:[#allocation8 + $0x24] ss:$16 sps:$4 sm:$0xff]   ;;  %v8758_v2 = vld [vmem:[#allocation8 + $0x20] ss:$16 sps:$4 sm:$0xff]   ;;  %10835 = vst [vmem:[#allocation125_spill] sm:$0xff] %v8770_v5 }
 0x60e   :  { %v3055_v30 = vmul.f32 %v3052_v6, %v8295_v52  ;;  %v3053_v60 = vadd.f32 0.5, %v3050_v26  ;;  %10831 = vst [vmem:[#allocation121_spill] sm:$0xff] %v8758_v2  ;;  %v8761_v6 = vld [vmem:[#allocation8 + $0x28] ss:$16 sps:$4 sm:$0xff]  }
 0x60f   :  { %10832 = vst [vmem:[#allocation122_spill] sm:$0xff] %v8761_v6  ;;  %v8773_v26 = vld [vmem:[#allocation8 + $0x48] ss:$16 sps:$4 sm:$0xff]  }
 0x610   :  { %v8729_v57 = vadd.f32 %v3056_v14, %v3055_v30  ;;  %v8764_v14 = vld [vmem:[#allocation8 + $0x44] ss:$16 sps:$4 sm:$0xff]   ;;  %v8767_v30 = vld [vmem:[#allocation8 + $0x4c] ss:$16 sps:$4 sm:$0xff]   ;;  %10836 = vst [vmem:[#allocation126_spill] sm:$0xff] %v8773_v26 }
 0x611   :  { %10833 = vst [vmem:[#allocation123_spill] sm:$0xff] %v8764_v14  ;;  %10834 = vst [vmem:[#allocation124_spill] sm:$0xff] %v8767_v30 }
 0x612   :  { %5980 = vtanh.f32 %v8729_v57 }
 0x617   :  { %v8732_v11 = vpop.f32.mrb[84].mxu0  ;;  %v8734_v1 = vpop.f32.mrb[84].mxu1 }
 0x618   :  { %v8736_v34 = vpop.f32.mrb[85].mxu0  ;;  %v8738_v35 = vpop.f32.mrb[85].mxu1 }
 0x619   :  { %v3099_v62 = vpop.f32.mrb[86].mxu0  ;;  %v3140_v37 = vpop.f32.mrb[86].mxu1 }
 0x61a   :  { %v3100_v51 = vpop.f32.mrb[87].mxu0  ;;  %v3141_v27 = vpop.f32.mrb[87].mxu1  ;;  %v8776_v62 = vld [vmem:[#allocation8 + $0x64] ss:$16 sps:$4 sm:$0xff]   ;;  %v8779_v37 = vld [vmem:[#allocation8 + $0x6c] ss:$16 sps:$4 sm:$0xff]  }
 0x61b   :  { %10837 = vst [vmem:[#allocation127_spill] sm:$0xff] %v8776_v62  ;;  %10838 = vst [vmem:[#allocation128_spill] sm:$0xff] %v8779_v37  ;;  %v8782_v51 = vld [vmem:[#allocation8 + $0x60] ss:$16 sps:$4 sm:$0xff]   ;;  %v8785_v27 = vld [vmem:[#allocation8 + $0x68] ss:$16 sps:$4 sm:$0xff]  }
 0x61c   :  { %v5981_v52 = vpop.eup %5980  ;;  %10839 = vst [vmem:[#allocation129_spill] sm:$0xff] %v8782_v51  ;;  %10840 = vst [vmem:[#allocation130_spill] sm:$0xff] %v8785_v27 }
 0x61d   :  { %v3059_v59 = vmul.f32 %v5981_v52, %v3053_v60  ;;  %v8788_v60 = vld [vmem:[#allocation8 + $0x84] ss:$16 sps:$4 sm:$0xff]   ;;  %v8791_v52 = vld [vmem:[#allocation8 + $0x8c] ss:$16 sps:$4 sm:$0xff]  }
 0x61e   :  { %10841 = vst [vmem:[#allocation131_spill] sm:$0xff] %v8788_v60  ;;  %10842 = vst [vmem:[#allocation132_spill] sm:$0xff] %v8791_v52 }
 0x61f   :  { %v8740_v33 = vpack.c.bf16 %v3059_v59, %v3059_v59  ;;  %v8794_v59 = vld [vmem:[#allocation8 + $0x80] ss:$16 sps:$4 sm:$0xff]  }
 0x620   :  { %10843 = vst [vmem:[#allocation133_spill] sm:$0xff] %v8794_v59 }
 0x621   :  { %3390 = vmatmul.mubr.bf16.vlgmr.msra.gmra.mrb[96].mxu0 %v8740_v33  ;;  %3431 = vmatmul.mubr.bf16.vlgmr.msra.gmra.mrb[96].mxu1 %v8740_v33 }
 0x622   :  { %3440 = vmatpush1.bf16.msra.mxu0 %v8744_v31  ;;  %3481 = vmatpush1.bf16.msra.mxu1 %v8747_v29 }
 0x623   :  { %3441 = vmatprep.subr.bf16.mxu0 %v8750_v41  ;;  %3482 = vmatprep.subr.bf16.mxu1 %v8753_v44 }
 0x624   :  { %3471 = vmatprep.mubr.bf16.mxu0 %v10440_v50  ;;  %3512 = vmatprep.mubr.bf16.mxu1 %v10440_v50 }
 0x626   :  { %3442 = vmatpush1.bf16.msra.mxu0 %v8758_v2  ;;  %3483 = vmatpush1.bf16.msra.mxu1 %v8761_v6  ;;  %v8824_v2 = vld [vmem:[#allocation8 + $0xc0] ss:$16 sps:$4 sm:$0xff]  }
 0x627   :  { %3443 = vmatprep.subr.bf16.mxu0 %v8764_v14  ;;  %3484 = vmatprep.subr.bf16.mxu1 %v8767_v30  ;;  %v8814_v30 = vld [vmem:[#allocation8 + $0xc4] ss:$16 sps:$4 sm:$0xff]  }
 0x628   :  { %10849 = vst [vmem:[#allocation139_spill] sm:$0xff] %v8814_v30 }
 0x62a   :  { %3444 = vmatpush1.bf16.msra.mxu0 %v8770_v5  ;;  %3485 = vmatpush1.bf16.msra.mxu1 %v8773_v26 }
 0x62b   :  { %3445 = vmatprep.subr.bf16.mxu0 %v8776_v62  ;;  %3486 = vmatprep.subr.bf16.mxu1 %v8779_v37  ;;  %v8797_v37 = vld [vmem:[#allocation8 + $0x88] ss:$16 sps:$4 sm:$0xff]  }
 0x62c   :  { %10844 = vst [vmem:[#allocation134_spill] sm:$0xff] %v8797_v37 }
 0x62e   :  { %3446 = vmatpush1.bf16.msra.mxu0 %v8782_v51  ;;  %3487 = vmatpush1.bf16.msra.mxu1 %v8785_v27  ;;  %v8800_v51 = vld [vmem:[#allocation8 + $0xa4] ss:$16 sps:$4 sm:$0xff]   ;;  %v8803_v27 = vld [vmem:[#allocation8 + $0xac] ss:$16 sps:$4 sm:$0xff]  }
 0x62f   :  { %3447 = vmatprep.subr.bf16.mxu0 %v8788_v60  ;;  %3488 = vmatprep.subr.bf16.mxu1 %v8791_v52  ;;  %10845 = vst [vmem:[#allocation135_spill] sm:$0xff] %v8800_v51  ;;  %10846 = vst [vmem:[#allocation136_spill] sm:$0xff] %v8803_v27  ;;  %v8806_v60 = vld [vmem:[#allocation8 + $0xa0] ss:$16 sps:$4 sm:$0xff]   ;;  %v8809_v52 = vld [vmem:[#allocation8 + $0xa8] ss:$16 sps:$4 sm:$0xff]  }
 0x630   :  { %10847 = vst [vmem:[#allocation137_spill] sm:$0xff] %v8806_v60  ;;  %10848 = vst [vmem:[#allocation138_spill] sm:$0xff] %v8809_v52 }
 0x632   :  { %3448 = vmatpush1.bf16.msra.mxu0 %v8794_v59  ;;  %3489 = vmatpush1.bf16.msra.mxu1 %v8797_v37 }
 0x633   :  { %3449 = vmatprep.subr.bf16.mxu0 %v8800_v51  ;;  %3490 = vmatprep.subr.bf16.mxu1 %v8803_v27  ;;  %v8817_v27 = vld [vmem:[#allocation8 + $0xcc] ss:$16 sps:$4 sm:$0xff]  }
 0x634   :  { %10850 = vst [vmem:[#allocation140_spill] sm:$0xff] %v8817_v27 }
 0x636   :  { %3450 = vmatpush1.bf16.msra.mxu0 %v8806_v60  ;;  %3491 = vmatpush1.bf16.msra.mxu1 %v8809_v52 }
 0x637   :  { %v3177_v59 = vpop.f32.mrb[88].mxu0  ;;  %v3218_v62 = vpop.f32.mrb[88].mxu1  ;;  %3451 = vmatprep.subr.bf16.mxu0 %v8814_v30  ;;  %3492 = vmatprep.subr.bf16.mxu1 %v8817_v27  ;;  %v8827_v30 = vld [vmem:[#allocation8 + $0xc8] ss:$16 sps:$4 sm:$0xff]  }
 0x638   :  { %v3178_v37 = vadd.f32 %v3177_v59, %v8732_v11  ;;  %v3219_v26 = vadd.f32 %v3218_v62, %v8734_v1  ;;  %v3179_v5 = vpop.f32.mrb[89].mxu0  ;;  %v3220_v51 = vpop.f32.mrb[89].mxu1 }
 0x639   :  { %v3180_v60 = vadd.f32 %v3179_v5, %v8736_v34  ;;  %v3221_v52 = vadd.f32 %v3220_v51, %v8738_v35  ;;  %v3181_v14 = vpop.f32.mrb[90].mxu0  ;;  %v3222_v6 = vpop.f32.mrb[90].mxu1  ;;  %v8830_v34 = vld [vmem:[#allocation8 + $0xe4] ss:$16 sps:$4 sm:$0xff]   ;;  %v8833_v35 = vld [vmem:[#allocation8 + $0xec] ss:$16 sps:$4 sm:$0xff]  }
 0x63a   :  { %v3225_v11 = vadd.f32 %v3178_v37, %v8052_v38  ;;  %v3182_v59 = vpop.f32.mrb[91].mxu0  ;;  %v3223_v1 = vpop.f32.mrb[91].mxu1  ;;  %3452 = vmatpush1.bf16.msra.mxu0 %v8824_v2  ;;  %3493 = vmatpush1.bf16.msra.mxu1 %v8827_v30  ;;  %v8837_v5 = vld [vmem:[#allocation8 + $0xe0] ss:$16 sps:$4 sm:$0xff]   ;;  %v8840_v37 = vld [vmem:[#allocation8 + $0xe8] ss:$16 sps:$4 sm:$0xff]   ;;  %v3227_v51 = vadd.f32 %v3219_v26, %v8092_v17 }
 0x63b   :  { %v3226_v62 = vadd.f32 %v3180_v60, %v8061_v0  ;;  %3453 = vmatprep.subr.bf16.mxu0 %v8830_v34  ;;  %3494 = vmatprep.subr.bf16.mxu1 %v8833_v35  ;;  %v3228_v14 = vadd.f32 %v3221_v52, %v8075_v20  ;;  %v10852_v26 = vld [vmem:[#allocation46_spill] sm:$0xff]  ;;  %v10859_v59 = vld [vmem:[#allocation33_spill] sm:$0xff] }
 0x63c   :  { %v3229_v27 = vmul.f32 0.5, %v3225_v11 }
 0x63d   :  { %v3230_v6 = vmul.f32 0.5, %v3226_v62  ;;  %v10860_v62 = vld [vmem:[#allocation34_spill] sm:$0xff] }
 0x63e   :  { %5982 = vtanh.f32 %v3229_v27  ;;  %3454 = vmatpush1.bf16.msra.mxu0 %v8837_v5  ;;  %3495 = vmatpush1.bf16.msra.mxu1 %v8840_v37  ;;  %v10856_v27 = vld [vmem:[#allocation20_spill] sm:$0xff] }
 0x63f   :  { %5984 = vtanh.f32 %v3230_v6  ;;  %3544 = vmatprep.subr.bf16.mxu0 %v8337_v49  ;;  %3585 = vmatprep.subr.bf16.mxu1 %v8340_v12  ;;  %v3231_v49 = vmul.f32 0.5, %v3227_v51 }
 0x640   :  { %5986 = vtanh.f32 %v3228_v14 }
 0x641   :  { %3472 = vmatmul.mubr.bf16.vlgmr.msra.gmra.mrb[100].mxu0 %v8616_v9  ;;  %3513 = vmatmul.mubr.bf16.vlgmr.msra.gmra.mrb[100].mxu1 %v8616_v9  ;;  %5988 = vtanh.f32 %v3231_v49  ;;  %v10861_v49 = vld [vmem:[#allocation52_spill] sm:$0xff] }
 0x642   :  { %3545 = vmatpush1.bf16.msra.mxu0 %v8346_v56  ;;  %3586 = vmatpush1.bf16.msra.mxu1 %v8349_v55 }
 0x643   :  { %3546 = vmatprep.subr.bf16.mxu0 %v8352_v13  ;;  %3587 = vmatprep.subr.bf16.mxu1 %v8355_v47 }
 0x644   :  { %3576 = vmatprep.mubr.bf16.mxu0 %v10440_v50  ;;  %3617 = vmatprep.mubr.bf16.mxu1 %v10440_v50 }
 0x646   :  { %3547 = vmatpush1.bf16.msra.mxu0 %v8360_v61  ;;  %3588 = vmatpush1.bf16.msra.mxu1 %v8363_v8 }
 0x647   :  { %3548 = vmatprep.subr.bf16.mxu0 %v8366_v54  ;;  %3589 = vmatprep.subr.bf16.mxu1 %v8369_v53  ;;  %v10851_v53 = vld [vmem:[#allocation45_spill] sm:$0xff] }
 0x648   :  { %v5983_v12 = vpop.eup %5982 }
 0x649   :  { %v3235_v56 = vmul.f32 0.5, %v5983_v12  ;;  %v5985_v55 = vpop.eup %5984  ;;  %v10862_v12 = vld [vmem:[#allocation53_spill] sm:$0xff] }
 0x64a   :  { %v3236_v13 = vmul.f32 0.5, %v5985_v55  ;;  %3549 = vmatpush1.bf16.msra.mxu0 %v8372_v46  ;;  %3590 = vmatpush1.bf16.msra.mxu1 %v8375_v63  ;;  %v5987_v47 = vpop.eup %5986  ;;  %v10853_v63 = vld [vmem:[#allocation47_spill] sm:$0xff] }
 0x64b   :  { %v3238_v9 = vadd.f32 0.5, %v3235_v56  ;;  %3550 = vmatprep.subr.bf16.mxu0 %v8378_v15  ;;  %3591 = vmatprep.subr.bf16.mxu1 %v8381_v18  ;;  %v10854_v15 = vld [vmem:[#allocation48_spill] sm:$0xff]  ;;  %v10855_v18 = vld [vmem:[#allocation49_spill] sm:$0xff]  ;;  %v10863_v56 = vld [vmem:[#allocation35_spill] sm:$0xff] }
 0x64c   :  { %v3239_v61 = vadd.f32 0.5, %v3236_v13 }
 0x64d   :  { %v3243_v8 = vmul.f32 %v5987_v47, %v3238_v9  ;;  %v10864_v9 = vld [vmem:[#allocation36_spill] sm:$0xff] }
 0x64e   :  { %v3242_v54 = vmul.f32 %v3239_v61, %v8397_v32  ;;  %3551 = vmatpush1.bf16.msra.mxu0 %v8385_v39  ;;  %3592 = vmatpush1.bf16.msra.mxu1 %v8388_v40  ;;  %v5989_v32 = vpop.eup %5988  ;;  %v10857_v39 = vld [vmem:[#allocation50_spill] sm:$0xff]  ;;  %v10858_v40 = vld [vmem:[#allocation51_spill] sm:$0xff] }
 0x64f   :  { %3552 = vmatprep.subr.bf16.mxu0 %v10851_v53  ;;  %3593 = vmatprep.subr.bf16.mxu1 %v10852_v26  ;;  %v3237_v11 = vmul.f32 0.5, %v5989_v32  ;;  %v10868_v32 = vld [vmem:[#allocation57_spill] sm:$0xff] }
 0x650   :  { %v8867_v46 = vadd.f32 %v3243_v8, %v3242_v54 }
 0x652   :  { %5990 = vtanh.f32 %v8867_v46  ;;  %3553 = vmatpush1.bf16.msra.mxu0 %v10853_v63  ;;  %3594 = vmatpush1.bf16.msra.mxu1 %v10854_v15  ;;  %v10865_v63 = vld [vmem:[#allocation54_spill] sm:$0xff]  ;;  %v10866_v15 = vld [vmem:[#allocation55_spill] sm:$0xff] }
 0x653   :  { %3554 = vmatprep.subr.bf16.mxu0 %v10855_v18  ;;  %3595 = vmatprep.subr.bf16.mxu1 %v10856_v27  ;;  %v3240_v18 = vadd.f32 0.5, %v3237_v11  ;;  %v10867_v27 = vld [vmem:[#allocation56_spill] sm:$0xff]  ;;  %v10873_v11 = vld [vmem:[#allocation62_spill] sm:$0xff] }
 0x656   :  { %3555 = vmatpush1.bf16.msra.mxu0 %v10857_v39  ;;  %3596 = vmatpush1.bf16.msra.mxu1 %v10858_v40 }
 0x657   :  { %v3286_v60 = vpop.f32.mrb[92].mxu0  ;;  %v3327_v52 = vpop.f32.mrb[92].mxu1  ;;  %3556 = vmatprep.subr.bf16.mxu0 %v10861_v49  ;;  %3597 = vmatprep.subr.bf16.mxu1 %v10862_v12  ;;  %v10876_v49 = vld [vmem:[#allocation65_spill] sm:$0xff] }
 0x658   :  { %v3334_v1 = vadd.f32 %v3286_v60, %v10859_v59  ;;  %v8878_v6 = vadd.f32 %v3327_v52, %v10860_v62  ;;  %v3288_v14 = vpop.f32.mrb[93].mxu0  ;;  %v3329_v51 = vpop.f32.mrb[93].mxu1  ;;  %v10869_v60 = vld [vmem:[#allocation58_spill] sm:$0xff]  ;;  %v10870_v52 = vld [vmem:[#allocation59_spill] sm:$0xff]  ;;  %v10871_v59 = vld [vmem:[#allocation60_spill] sm:$0xff] }
 0x659   :  { %v3335_v55 = vadd.f32 %v3288_v14, %v10863_v56  ;;  %v3337_v13 = vadd.f32 %v3329_v51, %v10864_v9  ;;  %v3290_v47 = vpop.f32.mrb[94].mxu0  ;;  %v3331_v61 = vpop.f32.mrb[94].mxu1  ;;  %v10874_v14 = vld [vmem:[#allocation63_spill] sm:$0xff]  ;;  %v10875_v51 = vld [vmem:[#allocation64_spill] sm:$0xff] }
 0x65a   :  { %v3338_v8 = vmul.f32 0.5, %v3334_v1  ;;  %v3291_v54 = vpop.f32.mrb[95].mxu0  ;;  %v3332_v53 = vpop.f32.mrb[95].mxu1  ;;  %3557 = vmatpush1.bf16.msra.mxu0 %v10865_v63  ;;  %3598 = vmatpush1.bf16.msra.mxu1 %v10866_v15  ;;  %v10872_v1 = vld [vmem:[#allocation61_spill] sm:$0xff]  ;;  %v10878_v9 = vld [vmem:[#allocation67_spill] sm:$0xff]  ;;  %v10879_v47 = vld [vmem:[#allocation68_spill] sm:$0xff] }
 0x65b   :  { %v3339_v26 = vmul.f32 0.5, %v3335_v55  ;;  %3558 = vmatprep.subr.bf16.mxu0 %v10867_v27  ;;  %3599 = vmatprep.subr.bf16.mxu1 %v10868_v32  ;;  %v10877_v55 = vld [vmem:[#allocation66_spill] sm:$0xff]  ;;  %v10880_v61 = vld [vmem:[#allocation69_spill] sm:$0xff]  ;;  %v10883_v27 = vld [vmem:[#allocation72_spill] sm:$0xff] }
 0x65c   :  { %5992 = vtanh.f32 %v3338_v8  ;;  %v5991_v39 = vpop.eup %5990  ;;  %v10881_v15 = vld [vmem:[#allocation70_spill] sm:$0xff]  ;;  %v10884_v32 = vld [vmem:[#allocation73_spill] sm:$0xff] }
 0x65d   :  { %5994 = vtanh.f32 %v3339_v26  ;;  %v3246_v40 = vmul.f32 %v5991_v39, %v3240_v18  ;;  %v10882_v18 = vld [vmem:[#allocation71_spill] sm:$0xff] }
 0x65e   :  { %3559 = vmatpush1.bf16.msra.mxu0 %v10869_v60  ;;  %3600 = vmatpush1.bf16.msra.mxu1 %v10870_v52  ;;  %5996 = vtanh.f32 %v3337_v13  ;;  %v10885_v60 = vld [vmem:[#allocation74_spill] sm:$0xff]  ;;  %v10886_v52 = vld [vmem:[#allocation75_spill] sm:$0xff] }
 0x65f   :  { %3626 = vmatprep.subr.bf16.mxu0 %v10871_v59  ;;  %3667 = vmatprep.subr.bf16.mxu1 %v10872_v1  ;;  %v3247_v62 = vpack.c.bf16 %v3246_v40, %v3246_v40  ;;  %v10887_v59 = vld [vmem:[#allocation76_spill] sm:$0xff]  ;;  %v10888_v1 = vld [vmem:[#allocation77_spill] sm:$0xff] }
 0x661   :  { %3577 = vmatmul.mubr.bf16.vlgmr.msra.gmra.mrb[104].mxu0 %v3247_v62  ;;  %3618 = vmatmul.mubr.bf16.vlgmr.msra.gmra.mrb[104].mxu1 %v3247_v62  ;;  %v10890_v62 = vld [vmem:[#allocation26_spill] sm:$0xff] }
 0x662   :  { %3627 = vmatpush1.bf16.msra.mxu0 %v10873_v11  ;;  %3668 = vmatpush1.bf16.msra.mxu1 %v10874_v14  ;;  %v8965_v11 = vld [vmem:[#allocation6 + $0x48] ss:$16 sps:$4 sm:$0xff]   ;;  %v8968_v14 = vld [vmem:[#allocation6 + $0x64] ss:$16 sps:$4 sm:$0xff]  }
 0x663   :  { %3628 = vmatprep.subr.bf16.mxu0 %v10875_v51  ;;  %3669 = vmatprep.subr.bf16.mxu1 %v10876_v49  ;;  %v8971_v51 = vld [vmem:[#allocation6 + $0x6c] ss:$16 sps:$4 sm:$0xff]   ;;  %v8975_v49 = vld [vmem:[#allocation6 + $0x60] ss:$16 sps:$4 sm:$0xff]  }
 0x664   :  { %3658 = vmatprep.mubr.bf16.mxu0 %v10440_v50  ;;  %3699 = vmatprep.mubr.bf16.mxu1 %v10440_v50 }
 0x666   :  { %v5993_v12 = vpop.eup %5992  ;;  %3629 = vmatpush1.bf16.msra.mxu0 %v10877_v55  ;;  %3670 = vmatpush1.bf16.msra.mxu1 %v10878_v9  ;;  %v10892_v55 = vld [vmem:[#allocation28_spill] sm:$0xff]  ;;  %v10893_v9 = vld [vmem:[#allocation78_spill] sm:$0xff] }
 0x667   :  { %v3344_v56 = vmul.f32 0.5, %v5993_v12  ;;  %v5995_v13 = vpop.eup %5994  ;;  %3630 = vmatprep.subr.bf16.mxu0 %v10879_v47  ;;  %3671 = vmatprep.subr.bf16.mxu1 %v10880_v61  ;;  %v8978_v12 = vld [vmem:[#allocation6 + $0x68] ss:$16 sps:$4 sm:$0xff]  }
 0x668   :  { %v3345_v54 = vmul.f32 0.5, %v5995_v13  ;;  %v5997_v53 = vpop.eup %5996  ;;  %v10894_v13 = vld [vmem:[#allocation79_spill] sm:$0xff]  ;;  %v10895_v47 = vld [vmem:[#allocation80_spill] sm:$0xff] }
 0x669   :  { %v3347_v8 = vadd.f32 0.5, %v3344_v56 }
 0x66a   :  { %v3348_v26 = vadd.f32 0.5, %v3345_v54  ;;  %3631 = vmatpush1.bf16.msra.mxu0 %v10881_v15  ;;  %3672 = vmatpush1.bf16.msra.mxu1 %v10882_v18  ;;  %v10897_v54 = vld [vmem:[#allocation82_spill] sm:$0xff]  ;;  %v10902_v18 = vld [vmem:[#allocation87_spill] sm:$0xff] }
 0x66b   :  { %v3352_v63 = vmul.f32 %v5997_v53, %v3347_v8  ;;  %3632 = vmatprep.subr.bf16.mxu0 %v10883_v27  ;;  %3673 = vmatprep.subr.bf16.mxu1 %v10884_v32  ;;  %v10896_v8 = vld [vmem:[#allocation81_spill] sm:$0xff]  ;;  %v10898_v53 = vld [vmem:[#allocation83_spill] sm:$0xff]  ;;  %v10901_v15 = vld [vmem:[#allocation86_spill] sm:$0xff] }
 0x66c   :  { %v3351_v39 = vmul.f32 %v3348_v26, %v8555_v4  ;;  %v10889_v4 = vld [vmem:[#allocation25_spill] sm:$0xff]  ;;  %v10899_v26 = vld [vmem:[#allocation84_spill] sm:$0xff] }
 0x66d   :  { %v10903_v27 = vld [vmem:[#allocation88_spill] sm:$0xff] }
 0x66e   :  { %v8907_v40 = vadd.f32 %v3352_v63, %v3351_v39  ;;  %3633 = vmatpush1.bf16.msra.mxu0 %v10885_v60  ;;  %3674 = vmatpush1.bf16.msra.mxu1 %v10886_v52  ;;  %v10900_v63 = vld [vmem:[#allocation85_spill] sm:$0xff]  ;;  %v10905_v60 = vld [vmem:[#allocation90_spill] sm:$0xff] }
 0x66f   :  { %3634 = vmatprep.subr.bf16.mxu0 %v10887_v59  ;;  %3675 = vmatprep.subr.bf16.mxu1 %v10888_v1  ;;  %v10904_v39 = vld [vmem:[#allocation89_spill] sm:$0xff]  ;;  %v10906_v59 = vld [vmem:[#allocation91_spill] sm:$0xff]  ;;  %v10907_v1 = vld [vmem:[#allocation92_spill] sm:$0xff] }
 0x672   :  { %3635 = vmatpush1.bf16.msra.mxu0 %v8502_v16  ;;  %3676 = vmatpush1.bf16.msra.mxu1 %v8505_v58  ;;  %v10891_v16 = vld [vmem:[#allocation27_spill] sm:$0xff] }
 0x673   :  { %3636 = vmatprep.subr.bf16.mxu0 %v8508_v23  ;;  %3677 = vmatprep.subr.bf16.mxu1 %v8511_v28  ;;  %v8927_v58 = vld [vmem:[#allocation6 + $0x4] ss:$16 sps:$4 sm:$0xff]   ;;  %v8930_v23 = vld [vmem:[#allocation6 + $0xc] ss:$16 sps:$4 sm:$0xff]   ;;  %v8935_v28 = vld [vmem:[#allocation6] ss:$16 sps:$4 sm:$0xff]  }
 0x676   :  { %3637 = vmatpush1.bf16.msra.mxu0 %v8514_v25  ;;  %3678 = vmatpush1.bf16.msra.mxu1 %v8517_v43  ;;  %v8938_v25 = vld [vmem:[#allocation6 + $0x8] ss:$16 sps:$4 sm:$0xff]   ;;  %v8941_v43 = vld [vmem:[#allocation6 + $0x24] ss:$16 sps:$4 sm:$0xff]  }
 0x677   :  { %3638 = vmatprep.subr.bf16.mxu0 %v8520_v10  ;;  %3679 = vmatprep.subr.bf16.mxu1 %v8523_v24  ;;  %v8944_v10 = vld [vmem:[#allocation6 + $0x2c] ss:$16 sps:$4 sm:$0xff]   ;;  %v3340_v24 = vmul.f32 0.5, %v8878_v6  ;;  %v8962_v6 = vld [vmem:[#allocation6 + $0x40] ss:$16 sps:$4 sm:$0xff]  }
 0x679   :  { %5998 = vtanh.f32 %v3340_v24  ;;  %v10911_v24 = vld [vmem:[#allocation23_spill] sm:$0xff] }
 0x67a   :  { %3639 = vmatpush1.bf16.msra.mxu0 %v8526_v19  ;;  %3680 = vmatpush1.bf16.msra.mxu1 %v10889_v4  ;;  %v8950_v19 = vld [vmem:[#allocation6 + $0x20] ss:$16 sps:$4 sm:$0xff]   ;;  %6000 = vtanh.f32 %v8907_v40 }
 0x67b   :  { %3640 = vmatprep.subr.bf16.mxu0 %v10890_v62  ;;  %3681 = vmatprep.subr.bf16.mxu1 %v10891_v16  ;;  %v10908_v4 = vld [vmem:[#allocation93_spill] sm:$0xff]  ;;  %v10910_v16 = vld [vmem:[#allocation22_spill] sm:$0xff] }
 0x67c   :  { %v10909_v62 = vld [vmem:[#allocation21_spill] sm:$0xff] }
 0x67e   :  { %3641 = vmatpush1.bf16.msra.mxu0 %v8538_v36  ;;  %3682 = vmatpush1.bf16.msra.mxu1 %v8541_v21  ;;  %v8953_v36 = vld [vmem:[#allocation6 + $0x28] ss:$16 sps:$4 sm:$0xff]   ;;  %v8956_v21 = vld [vmem:[#allocation6 + $0x44] ss:$16 sps:$4 sm:$0xff]  }
 0x67f   :  { %3735 = vmatprep.subr.bf16.mxu0 %v8927_v58  ;;  %3776 = vmatprep.subr.bf16.mxu1 %v8930_v23 }
 0x681   :  { %3659 = vmatmul.mubr.bf16.vlgmr.msra.gmra.mrb[108].mxu0 %v8740_v33  ;;  %3700 = vmatmul.mubr.bf16.vlgmr.msra.gmra.mrb[108].mxu1 %v8740_v33  ;;  %v8959_v33 = vld [vmem:[#allocation6 + $0x4c] ss:$16 sps:$4 sm:$0xff]  }
 0x682   :  { %3736 = vmatpush1.bf16.msra.mxu0 %v8935_v28  ;;  %3777 = vmatpush1.bf16.msra.mxu1 %v8938_v25 }
 0x683   :  { %3737 = vmatprep.subr.bf16.mxu0 %v8941_v43  ;;  %3778 = vmatprep.subr.bf16.mxu1 %v8944_v10  ;;  %v5999_v56 = vpop.eup %5998 }
 0x684   :  { %3767 = vmatprep.mubr.bf16.mxu0 %v10440_v50  ;;  %3808 = vmatprep.mubr.bf16.mxu1 %v10440_v50  ;;  %v3346_v61 = vmul.f32 0.5, %v5999_v56  ;;  %v10912_v56 = vld [vmem:[#allocation24_spill] sm:$0xff] }
 0x686   :  { %3738 = vmatpush1.bf16.msra.mxu0 %v8950_v19  ;;  %3779 = vmatpush1.bf16.msra.mxu1 %v8953_v36 }
 0x687   :  { %3739 = vmatprep.subr.bf16.mxu0 %v8956_v21  ;;  %3780 = vmatprep.subr.bf16.mxu1 %v8959_v33 }
 0x68a   :  { %3740 = vmatpush1.bf16.msra.mxu0 %v8962_v6  ;;  %3781 = vmatpush1.bf16.msra.mxu1 %v8965_v11 }
 0x68b   :  { %3741 = vmatprep.subr.bf16.mxu0 %v8968_v14  ;;  %3782 = vmatprep.subr.bf16.mxu1 %v8971_v51 }
 0x68e   :  { %3742 = vmatpush1.bf16.msra.mxu0 %v8975_v49  ;;  %3783 = vmatpush1.bf16.msra.mxu1 %v8978_v12 }
 0x68f   :  { %3743 = vmatprep.subr.bf16.mxu0 %v8568_v7  ;;  %3784 = vmatprep.subr.bf16.mxu1 %v8571_v45  ;;  %v6001_v7 = vpop.eup %6000  ;;  %v3349_v45 = vadd.f32 0.5, %v3346_v61  ;;  %v10917_v61 = vld [vmem:[#allocation98_spill] sm:$0xff] }
 0x691   :  { %v3355_v32 = vmul.f32 %v6001_v7, %v3349_v45  ;;  %v10922_v7 = vld [vmem:[#allocation103_spill] sm:$0xff]  ;;  %v10923_v45 = vld [vmem:[#allocation104_spill] sm:$0xff] }
 0x692   :  { %3744 = vmatpush1.bf16.msra.mxu0 %v10892_v55  ;;  %3785 = vmatpush1.bf16.msra.mxu1 %v10893_v9  ;;  %v10913_v55 = vld [vmem:[#allocation94_spill] sm:$0xff]  ;;  %v10914_v9 = vld [vmem:[#allocation95_spill] sm:$0xff] }
 0x693   :  { %3745 = vmatprep.subr.bf16.mxu0 %v10894_v13  ;;  %3786 = vmatprep.subr.bf16.mxu1 %v10895_v47  ;;  %v8997_v52 = vpack.c.bf16 %v3355_v32, %v3355_v32  ;;  %v10915_v13 = vld [vmem:[#allocation96_spill] sm:$0xff]  ;;  %v10916_v47 = vld [vmem:[#allocation97_spill] sm:$0xff] }
 0x694   :  { %v10928_v32 = vld [vmem:[#allocation109_spill] sm:$0xff] }
 0x696   :  { %3746 = vmatpush1.bf16.msra.mxu0 %v10896_v8  ;;  %3787 = vmatpush1.bf16.msra.mxu1 %v10897_v54  ;;  %v10918_v8 = vld [vmem:[#allocation99_spill] sm:$0xff]  ;;  %v10919_v54 = vld [vmem:[#allocation100_spill] sm:$0xff] }
 0x697   :  { %3747 = vmatprep.subr.bf16.mxu0 %v10898_v53  ;;  %3788 = vmatprep.subr.bf16.mxu1 %v10899_v26  ;;  %v10920_v53 = vld [vmem:[#allocation101_spill] sm:$0xff]  ;;  %v10921_v26 = vld [vmem:[#allocation102_spill] sm:$0xff] }
 0x69a   :  { %3748 = vmatpush1.bf16.msra.mxu0 %v10900_v63  ;;  %3789 = vmatpush1.bf16.msra.mxu1 %v10901_v15  ;;  %v10924_v63 = vld [vmem:[#allocation105_spill] sm:$0xff]  ;;  %v10925_v15 = vld [vmem:[#allocation106_spill] sm:$0xff] }
 0x69b   :  { %3749 = vmatprep.subr.bf16.mxu0 %v10902_v18  ;;  %3790 = vmatprep.subr.bf16.mxu1 %v10903_v27  ;;  %v10926_v18 = vld [vmem:[#allocation107_spill] sm:$0xff]  ;;  %v10927_v27 = vld [vmem:[#allocation108_spill] sm:$0xff] }
 0x69e   :  { %3750 = vmatpush1.bf16.msra.mxu0 %v10904_v39  ;;  %3791 = vmatpush1.bf16.msra.mxu1 %v10905_v60  ;;  %v10929_v39 = vld [vmem:[#allocation110_spill] sm:$0xff]  ;;  %v10930_v60 = vld [vmem:[#allocation111_spill] sm:$0xff] }
 0x69f   :  { %3840 = vmatprep.subr.bf16.mxu0 %v10906_v59  ;;  %3881 = vmatprep.subr.bf16.mxu1 %v10907_v1  ;;  %v10931_v59 = vld [vmem:[#allocation112_spill] sm:$0xff]  ;;  %v10932_v1 = vld [vmem:[#allocation113_spill] sm:$0xff] }
 0x6a1   :  { %3768 = vmatmul.mubr.bf16.vlgmr.msra.gmra.mrb[112].mxu0 %v8997_v52  ;;  %3809 = vmatmul.mubr.bf16.vlgmr.msra.gmra.mrb[112].mxu1 %v8997_v52 }
 0x6a2   :  { %3841 = vmatpush1.bf16.msra.mxu0 %v10908_v4  ;;  %3882 = vmatpush1.bf16.msra.mxu1 %v10909_v62  ;;  %v10933_v4 = vld [vmem:[#allocation114_spill] sm:$0xff]  ;;  %v10934_v62 = vld [vmem:[#allocation115_spill] sm:$0xff] }
 0x6a3   :  { %3842 = vmatprep.subr.bf16.mxu0 %v10910_v16  ;;  %3883 = vmatprep.subr.bf16.mxu1 %v10911_v24  ;;  %v10935_v16 = vld [vmem:[#allocation116_spill] sm:$0xff]  ;;  %v10936_v24 = vld [vmem:[#allocation117_spill] sm:$0xff] }
 0x6a4   :  { %3872 = vmatprep.mubr.bf16.mxu0 %v10440_v50  ;;  %3913 = vmatprep.mubr.bf16.mxu1 %v10440_v50 }
 0x6a6   :  { %3843 = vmatpush1.bf16.msra.mxu0 %v10912_v56  ;;  %3884 = vmatpush1.bf16.msra.mxu1 %v10913_v55  ;;  %v10937_v56 = vld [vmem:[#allocation118_spill] sm:$0xff]  ;;  %v10938_v55 = vld [vmem:[#allocation119_spill] sm:$0xff] }
 0x6a7   :  { %3844 = vmatprep.subr.bf16.mxu0 %v10914_v9  ;;  %3885 = vmatprep.subr.bf16.mxu1 %v10915_v13  ;;  %v10939_v9 = vld [vmem:[#allocation120_spill] sm:$0xff] }
 0x6aa   :  { %3845 = vmatpush1.bf16.msra.mxu0 %v10916_v47  ;;  %3886 = vmatpush1.bf16.msra.mxu1 %v10917_v61 }
 0x6ab   :  { %3846 = vmatprep.subr.bf16.mxu0 %v10918_v8  ;;  %3887 = vmatprep.subr.bf16.mxu1 %v10919_v54 }
 0x6ae   :  { %3847 = vmatpush1.bf16.msra.mxu0 %v10920_v53  ;;  %3888 = vmatpush1.bf16.msra.mxu1 %v10921_v26 }
 0x6af   :  { %3848 = vmatprep.subr.bf16.mxu0 %v10922_v7  ;;  %3889 = vmatprep.subr.bf16.mxu1 %v10923_v45 }
 0x6b2   :  { %3849 = vmatpush1.bf16.msra.mxu0 %v10924_v63  ;;  %3890 = vmatpush1.bf16.msra.mxu1 %v10925_v15 }
 0x6b3   :  { %3850 = vmatprep.subr.bf16.mxu0 %v10926_v18  ;;  %3891 = vmatprep.subr.bf16.mxu1 %v10927_v27 }
 0x6b6   :  { %3851 = vmatpush1.bf16.msra.mxu0 %v10928_v32  ;;  %3892 = vmatpush1.bf16.msra.mxu1 %v10929_v39 }
 0x6b7   :  { %3852 = vmatprep.subr.bf16.mxu0 %v10930_v60  ;;  %3893 = vmatprep.subr.bf16.mxu1 %v10931_v59 }
 0x6ba   :  { %3853 = vmatpush1.bf16.msra.mxu0 %v10932_v1  ;;  %3894 = vmatpush1.bf16.msra.mxu1 %v10933_v4 }
 0x6bb   :  { %3854 = vmatprep.subr.bf16.mxu0 %v10934_v62  ;;  %3895 = vmatprep.subr.bf16.mxu1 %v10935_v16 }
 0x6be   :  { %3855 = vmatpush1.bf16.msra.mxu0 %v10936_v24  ;;  %3896 = vmatpush1.bf16.msra.mxu1 %v10937_v56 }
 0x6bf   :  { %3922 = vmatprep.subr.bf16.mxu0 %v10938_v55  ;;  %3963 = vmatprep.subr.bf16.mxu1 %v10939_v9 }
 0x6f4   :  { %v3391_v13 = vpop.f32.mrb[96].mxu0  ;;  %v3432_v47 = vpop.f32.mrb[96].mxu1 }
 0x6f5   :  { %v3393_v61 = vpop.f32.mrb[97].mxu0  ;;  %v3434_v8 = vpop.f32.mrb[97].mxu1 }
 0x6f6   :  { %v3395_v54 = vpop.f32.mrb[98].mxu0  ;;  %v3436_v53 = vpop.f32.mrb[98].mxu1 }
 0x6f7   :  { %v3396_v26 = vpop.f32.mrb[99].mxu0  ;;  %v3437_v7 = vpop.f32.mrb[99].mxu1 }
 0x714   :  { %v3473_v45 = vpop.f32.mrb[100].mxu0  ;;  %v3514_v63 = vpop.f32.mrb[100].mxu1 }
 0x715   :  { %v3474_v15 = vadd.f32 %v3473_v45, %v3391_v13  ;;  %v3515_v18 = vadd.f32 %v3514_v63, %v3432_v47  ;;  %v3475_v27 = vpop.f32.mrb[101].mxu0  ;;  %v3516_v32 = vpop.f32.mrb[101].mxu1 }
 0x716   :  { %v3476_v39 = vadd.f32 %v3475_v27, %v3393_v61  ;;  %v3517_v60 = vadd.f32 %v3516_v32, %v3434_v8  ;;  %v3477_v59 = vpop.f32.mrb[102].mxu0  ;;  %v3518_v1 = vpop.f32.mrb[102].mxu1 }
 0x717   :  { %v3521_v4 = vadd.f32 %v3474_v15, %v7518_v3  ;;  %v3478_v62 = vpop.f32.mrb[103].mxu0  ;;  %v3519_v16 = vpop.f32.mrb[103].mxu1  ;;  %v3523_v13 = vadd.f32 %v3515_v18, %v7540_v42 }
 0x718   :  { %v3522_v24 = vadd.f32 %v3476_v39, %v7523_v22  ;;  %v3524_v9 = vadd.f32 %v3517_v60, %v7529_v48 }
 0x719   :  { %v3525_v56 = vmul.f32 0.5, %v3521_v4  ;;  %v3527_v47 = vmul.f32 0.5, %v3523_v13 }
 0x71a   :  { %v3526_v55 = vmul.f32 0.5, %v3522_v24 }
 0x71b   :  { %6002 = vtanh.f32 %v3525_v56 }
 0x71c   :  { %6004 = vtanh.f32 %v3526_v55 }
 0x71d   :  { %6006 = vtanh.f32 %v3524_v9 }
 0x71e   :  { %6008 = vtanh.f32 %v3527_v47  ;;  %v10941_v47 = vld [vmem:[#allocation122_spill] sm:$0xff] }
 0x725   :  { %v6003_v61 = vpop.eup %6002 }
 0x726   :  { %v3531_v8 = vmul.f32 0.5, %v6003_v61  ;;  %v6005_v54 = vpop.eup %6004  ;;  %v10942_v61 = vld [vmem:[#allocation123_spill] sm:$0xff] }
 0x727   :  { %v3532_v26 = vmul.f32 0.5, %v6005_v54  ;;  %v6007_v7 = vpop.eup %6006  ;;  %v10944_v54 = vld [vmem:[#allocation125_spill] sm:$0xff] }
 0x728   :  { %v3534_v53 = vadd.f32 0.5, %v3531_v8  ;;  %v6009_v32 = vpop.eup %6008  ;;  %v10943_v8 = vld [vmem:[#allocation124_spill] sm:$0xff] }
 0x729   :  { %v3535_v45 = vadd.f32 0.5, %v3532_v26  ;;  %v3533_v18 = vmul.f32 0.5, %v6009_v32  ;;  %v10950_v26 = vld [vmem:[#allocation131_spill] sm:$0xff]  ;;  %v10955_v32 = vld [vmem:[#allocation136_spill] sm:$0xff] }
 0x72a   :  { %v3539_v63 = vmul.f32 %v6007_v7, %v3534_v53  ;;  %v10949_v53 = vld [vmem:[#allocation130_spill] sm:$0xff]  ;;  %v10951_v7 = vld [vmem:[#allocation132_spill] sm:$0xff] }
 0x72b   :  { %v3538_v15 = vmul.f32 %v3535_v45, %v8729_v57  ;;  %v3536_v56 = vadd.f32 0.5, %v3533_v18  ;;  %v10940_v57 = vld [vmem:[#allocation121_spill] sm:$0xff] }
 0x72c   :  { %v10952_v45 = vld [vmem:[#allocation133_spill] sm:$0xff] }
 0x72d   :  { %v9042_v27 = vadd.f32 %v3539_v63, %v3538_v15  ;;  %v10953_v63 = vld [vmem:[#allocation134_spill] sm:$0xff]  ;;  %v10954_v15 = vld [vmem:[#allocation135_spill] sm:$0xff]  ;;  %v10956_v18 = vld [vmem:[#allocation137_spill] sm:$0xff] }
 0x72f   :  { %6010 = vtanh.f32 %v9042_v27 }
 0x734   :  { %v3578_v39 = vpop.f32.mrb[104].mxu0  ;;  %v3619_v60 = vpop.f32.mrb[104].mxu1 }
 0x735   :  { %v3580_v59 = vpop.f32.mrb[105].mxu0  ;;  %v3621_v1 = vpop.f32.mrb[105].mxu1 }
 0x736   :  { %v3582_v4 = vpop.f32.mrb[106].mxu0  ;;  %v3623_v62 = vpop.f32.mrb[106].mxu1 }
 0x737   :  { %v3583_v16 = vpop.f32.mrb[107].mxu0  ;;  %v3624_v24 = vpop.f32.mrb[107].mxu1  ;;  %v10957_v4 = vld [vmem:[#allocation138_spill] sm:$0xff] }
 0x739   :  { %v6011_v55 = vpop.eup %6010 }
 0x73a   :  { %v3542_v9 = vmul.f32 %v6011_v55, %v3536_v56 }
 0x73c   :  { %v9045_v13 = vpack.c.bf16 %v3542_v9, %v3542_v9 }
 0x73e   :  { %3873 = vmatmul.mubr.bf16.vlgmr.msra.gmra.mrb[116].mxu0 %v9045_v13  ;;  %3914 = vmatmul.mubr.bf16.vlgmr.msra.gmra.mrb[116].mxu1 %v9045_v13 }
 0x73f   :  { %3923 = vmatpush1.bf16.msra.mxu0 %v8744_v31  ;;  %3964 = vmatpush1.bf16.msra.mxu1 %v8747_v29  ;;  %v10945_v31 = vld [vmem:[#allocation126_spill] sm:$0xff]  ;;  %v10946_v29 = vld [vmem:[#allocation127_spill] sm:$0xff] }
 0x740   :  { %3924 = vmatprep.subr.bf16.mxu0 %v8750_v41  ;;  %3965 = vmatprep.subr.bf16.mxu1 %v8753_v44  ;;  %v10947_v41 = vld [vmem:[#allocation128_spill] sm:$0xff]  ;;  %v10948_v44 = vld [vmem:[#allocation129_spill] sm:$0xff] }
 0x741   :  { %3954 = vmatprep.mubr.bf16.mxu0 %v10440_v50  ;;  %3995 = vmatprep.mubr.bf16.mxu1 %v10440_v50 }
 0x743   :  { %3925 = vmatpush1.bf16.msra.mxu0 %v10940_v57  ;;  %3966 = vmatpush1.bf16.msra.mxu1 %v10941_v47  ;;  %v10958_v57 = vld [vmem:[#allocation139_spill] sm:$0xff]  ;;  %v10959_v47 = vld [vmem:[#allocation140_spill] sm:$0xff] }
 0x744   :  { %3926 = vmatprep.subr.bf16.mxu0 %v10942_v61  ;;  %3967 = vmatprep.subr.bf16.mxu1 %v10943_v8 }
 0x747   :  { %3927 = vmatpush1.bf16.msra.mxu0 %v10944_v54  ;;  %3968 = vmatpush1.bf16.msra.mxu1 %v10945_v31 }
 0x748   :  { %3928 = vmatprep.subr.bf16.mxu0 %v10946_v29  ;;  %3969 = vmatprep.subr.bf16.mxu1 %v10947_v41 }
 0x74b   :  { %3929 = vmatpush1.bf16.msra.mxu0 %v10948_v44  ;;  %3970 = vmatpush1.bf16.msra.mxu1 %v10949_v53 }
 0x74c   :  { %3930 = vmatprep.subr.bf16.mxu0 %v10950_v26  ;;  %3971 = vmatprep.subr.bf16.mxu1 %v10951_v7  ;;  %v9107_v26 = vld [vmem:[#allocation12 + $0x20] ss:$16 sps:$4 sm:$0xff]   ;;  %v9110_v7 = vld [vmem:[#allocation12 + $0x28] ss:$16 sps:$4 sm:$0xff]  }
 0x74f   :  { %3931 = vmatpush1.bf16.msra.mxu0 %v10952_v45  ;;  %3972 = vmatpush1.bf16.msra.mxu1 %v10953_v63  ;;  %v9113_v63 = vld [vmem:[#allocation12 + $0x44] ss:$16 sps:$4 sm:$0xff]  }
 0x750   :  { %3932 = vmatprep.subr.bf16.mxu0 %v10954_v15  ;;  %3973 = vmatprep.subr.bf16.mxu1 %v10955_v32  ;;  %v9116_v15 = vld [vmem:[#allocation12 + $0x4c] ss:$16 sps:$4 sm:$0xff]  }
 0x753   :  { %3933 = vmatpush1.bf16.msra.mxu0 %v10956_v18  ;;  %3974 = vmatpush1.bf16.msra.mxu1 %v10957_v4 }
 0x754   :  { %v3660_v62 = vpop.f32.mrb[108].mxu0  ;;  %v3701_v16 = vpop.f32.mrb[108].mxu1  ;;  %3934 = vmatprep.subr.bf16.mxu0 %v10958_v57  ;;  %3975 = vmatprep.subr.bf16.mxu1 %v10959_v47 }
 0x755   :  { %v3661_v24 = vadd.f32 %v3660_v62, %v3578_v39  ;;  %v3702_v56 = vadd.f32 %v3701_v16, %v3619_v60  ;;  %v3662_v55 = vpop.f32.mrb[109].mxu0  ;;  %v3703_v9 = vpop.f32.mrb[109].mxu1  ;;  %v9119_v16 = vld [vmem:[#allocation12 + $0x40] ss:$16 sps:$4 sm:$0xff]  }
 0x756   :  { %v3663_v61 = vadd.f32 %v3662_v55, %v3580_v59  ;;  %v3704_v8 = vadd.f32 %v3703_v9, %v3621_v1  ;;  %v3664_v54 = vpop.f32.mrb[110].mxu0  ;;  %v3705_v31 = vpop.f32.mrb[110].mxu1  ;;  %v9084_v1 = vld [vmem:[#allocation12 + $0x4] ss:$16 sps:$4 sm:$0xff]   ;;  %v9128_v9 = vld [vmem:[#allocation12 + $0x6c] ss:$16 sps:$4 sm:$0xff]  }
 0x757   :  { %v3708_v29 = vadd.f32 %v3661_v24, %v8052_v38  ;;  %v3665_v41 = vpop.f32.mrb[111].mxu0  ;;  %v3706_v44 = vpop.f32.mrb[111].mxu1  ;;  %3935 = vmatpush1.bf16.msra.mxu0 %v8824_v2  ;;  %3976 = vmatpush1.bf16.msra.mxu1 %v8827_v30  ;;  %v9087_v2 = vld [vmem:[#allocation12 + $0xc] ss:$16 sps:$4 sm:$0xff]   ;;  %v3710_v30 = vadd.f32 %v3702_v56, %v8092_v17  ;;  %v9122_v24 = vld [vmem:[#allocation12 + $0x48] ss:$16 sps:$4 sm:$0xff]  }
 0x758   :  { %v3709_v53 = vadd.f32 %v3663_v61, %v8061_v0  ;;  %3936 = vmatprep.subr.bf16.mxu0 %v8830_v34  ;;  %3977 = vmatprep.subr.bf16.mxu1 %v8833_v35  ;;  %v3711_v59 = vadd.f32 %v3704_v8, %v8075_v20  ;;  %v9093_v34 = vld [vmem:[#allocation12] ss:$16 sps:$4 sm:$0xff]   ;;  %v9096_v35 = vld [vmem:[#allocation12 + $0x8] ss:$16 sps:$4 sm:$0xff]   ;;  %v9125_v55 = vld [vmem:[#allocation12 + $0x64] ss:$16 sps:$4 sm:$0xff]  }
 0x759   :  { %v3712_v39 = vmul.f32 0.5, %v3708_v29  ;;  %v9132_v8 = vld [vmem:[#allocation12 + $0x60] ss:$16 sps:$4 sm:$0xff]   ;;  %v9135_v54 = vld [vmem:[#allocation12 + $0x68] ss:$16 sps:$4 sm:$0xff]  }
 0x75a   :  { %v3713_v60 = vmul.f32 0.5, %v3709_v53  ;;  %v9138_v31 = vld [vmem:[#allocation12 + $0x84] ss:$16 sps:$4 sm:$0xff]   ;;  %v9141_v29 = vld [vmem:[#allocation12 + $0x8c] ss:$16 sps:$4 sm:$0xff]  }
 0x75b   :  { %6012 = vtanh.f32 %v3712_v39  ;;  %3937 = vmatpush1.bf16.msra.mxu0 %v8837_v5  ;;  %3978 = vmatpush1.bf16.msra.mxu1 %v8840_v37  ;;  %v9099_v5 = vld [vmem:[#allocation12 + $0x24] ss:$16 sps:$4 sm:$0xff]   ;;  %v9102_v37 = vld [vmem:[#allocation12 + $0x2c] ss:$16 sps:$4 sm:$0xff]   ;;  %10960 = vst [vmem:[#allocation141_spill] sm:$0xff] %v9138_v31  ;;  %10961 = vst [vmem:[#allocation142_spill] sm:$0xff] %v9141_v29 }
 0x75c   :  { %6014 = vtanh.f32 %v3713_v60  ;;  %4027 = vmatprep.subr.bf16.mxu0 %v9084_v1  ;;  %4068 = vmatprep.subr.bf16.mxu1 %v9087_v2  ;;  %v9150_v44 = vld [vmem:[#allocation12 + $0x88] ss:$16 sps:$4 sm:$0xff]   ;;  %v9153_v53 = vld [vmem:[#allocation12 + $0xa4] ss:$16 sps:$4 sm:$0xff]   ;;  %v9156_v39 = vld [vmem:[#allocation12 + $0xac] ss:$16 sps:$4 sm:$0xff]  }
 0x75d   :  { %6016 = vtanh.f32 %v3711_v59  ;;  %10963 = vst [vmem:[#allocation144_spill] sm:$0xff] %v9150_v44  ;;  %10964 = vst [vmem:[#allocation29_spill] sm:$0xff] %v9153_v53  ;;  %v9159_v59 = vld [vmem:[#allocation12 + $0xa0] ss:$16 sps:$4 sm:$0xff]  }
 0x75e   :  { %3955 = vmatmul.mubr.bf16.vlgmr.msra.gmra.mrb[120].mxu0 %v8997_v52  ;;  %3996 = vmatmul.mubr.bf16.vlgmr.msra.gmra.mrb[120].mxu1 %v8997_v52  ;;  %v3714_v52 = vmul.f32 0.5, %v3710_v30  ;;  %10965 = vst [vmem:[#allocation30_spill] sm:$0xff] %v9156_v39  ;;  %10966 = vst [vmem:[#allocation31_spill] sm:$0xff] %v9159_v59  ;;  %v9162_v30 = vld [vmem:[#allocation12 + $0xa8] ss:$16 sps:$4 sm:$0xff]  }
 0x75f   :  { %4028 = vmatpush1.bf16.msra.mxu0 %v9093_v34  ;;  %4069 = vmatpush1.bf16.msra.mxu1 %v9096_v35  ;;  %10967 = vst [vmem:[#allocation32_spill] sm:$0xff] %v9162_v30 }
 0x760   :  { %4029 = vmatprep.subr.bf16.mxu0 %v9099_v5  ;;  %4070 = vmatprep.subr.bf16.mxu1 %v9102_v37  ;;  %6018 = vtanh.f32 %v3714_v52 }
 0x761   :  { %4059 = vmatprep.mubr.bf16.mxu0 %v10440_v50  ;;  %4100 = vmatprep.mubr.bf16.mxu1 %v10440_v50 }
 0x763   :  { %4030 = vmatpush1.bf16.msra.mxu0 %v9107_v26  ;;  %4071 = vmatpush1.bf16.msra.mxu1 %v9110_v7 }
 0x764   :  { %4031 = vmatprep.subr.bf16.mxu0 %v9113_v63  ;;  %4072 = vmatprep.subr.bf16.mxu1 %v9116_v15 }
 0x765   :  { %v6013_v45 = vpop.eup %6012 }
 0x766   :  { %v3718_v32 = vmul.f32 0.5, %v6013_v45  ;;  %v6015_v18 = vpop.eup %6014 }
 0x767   :  { %v3719_v62 = vmul.f32 0.5, %v6015_v18  ;;  %4032 = vmatpush1.bf16.msra.mxu0 %v9119_v16  ;;  %4073 = vmatpush1.bf16.msra.mxu1 %v9122_v24  ;;  %v6017_v56 = vpop.eup %6016  ;;  %v10968_v18 = vld [vmem:[#allocation37_spill] sm:$0xff] }
 0x768   :  { %v3721_v4 = vadd.f32 0.5, %v3718_v32  ;;  %4033 = vmatprep.subr.bf16.mxu0 %v9125_v55  ;;  %4074 = vmatprep.subr.bf16.mxu1 %v9128_v9 }
 0x769   :  { %v3722_v57 = vadd.f32 0.5, %v3719_v62  ;;  %v10969_v62 = vld [vmem:[#allocation38_spill] sm:$0xff] }
 0x76a   :  { %v3726_v47 = vmul.f32 %v6017_v56, %v3721_v4  ;;  %v6019_v60 = vpop.eup %6018 }
 0x76b   :  { %v3725_v61 = vmul.f32 %v3722_v57, %v8867_v46  ;;  %4034 = vmatpush1.bf16.msra.mxu0 %v9132_v8  ;;  %4075 = vmatpush1.bf16.msra.mxu1 %v9135_v54  ;;  %v9147_v46 = vld [vmem:[#allocation12 + $0x80] ss:$16 sps:$4 sm:$0xff]   ;;  %v3720_v32 = vmul.f32 0.5, %v6019_v60 }
 0x76c   :  { %4035 = vmatprep.subr.bf16.mxu0 %v9138_v31  ;;  %4076 = vmatprep.subr.bf16.mxu1 %v9141_v29  ;;  %10962 = vst [vmem:[#allocation143_spill] sm:$0xff] %v9147_v46  ;;  %v9177_v29 = vld [vmem:[#allocation12 + $0xc0] ss:$16 sps:$4 sm:$0xff]   ;;  %v9180_v31 = vld [vmem:[#allocation12 + $0xc8] ss:$16 sps:$4 sm:$0xff]  }
 0x76d   :  { %v9144_v41 = vadd.f32 %v3726_v47, %v3725_v61  ;;  %v9169_v61 = vld [vmem:[#allocation12 + $0xc4] ss:$16 sps:$4 sm:$0xff]  }
 0x76e   :  { %10970 = vst [vmem:[#allocation45_spill] sm:$0xff] %v9169_v61 }
 0x76f   :  { %6020 = vtanh.f32 %v9144_v41  ;;  %4036 = vmatpush1.bf16.msra.mxu0 %v9147_v46  ;;  %4077 = vmatpush1.bf16.msra.mxu1 %v9150_v44 }
 0x770   :  { %4037 = vmatprep.subr.bf16.mxu0 %v9153_v53  ;;  %4078 = vmatprep.subr.bf16.mxu1 %v9156_v39  ;;  %v9172_v39 = vld [vmem:[#allocation12 + $0xcc] ss:$16 sps:$4 sm:$0xff]  }
 0x771   :  { %10971 = vst [vmem:[#allocation46_spill] sm:$0xff] %v9172_v39  ;;  %v10973_v53 = vld [vmem:[#allocation40_spill] sm:$0xff] }
 0x773   :  { %4038 = vmatpush1.bf16.msra.mxu0 %v9159_v59  ;;  %4079 = vmatpush1.bf16.msra.mxu1 %v9162_v30  ;;  %v10972_v59 = vld [vmem:[#allocation39_spill] sm:$0xff] }
 0x774   :  { %v3769_v52 = vpop.f32.mrb[112].mxu0  ;;  %v3810_v45 = vpop.f32.mrb[112].mxu1  ;;  %4039 = vmatprep.subr.bf16.mxu0 %v9169_v61  ;;  %4080 = vmatprep.subr.bf16.mxu1 %v9172_v39  ;;  %v3723_v61 = vadd.f32 0.5, %v3720_v32  ;;  %v9183_v39 = vld [vmem:[#allocation12 + $0xe4] ss:$16 sps:$4 sm:$0xff]  }
 0x775   :  { %v3817_v4 = vadd.f32 %v3769_v52, %v10968_v18  ;;  %v9167_v56 = vadd.f32 %v3810_v45, %v10969_v62  ;;  %v3771_v57 = vpop.f32.mrb[113].mxu0  ;;  %v3812_v47 = vpop.f32.mrb[113].mxu1  ;;  %v9195_v32 = vld [vmem:[#allocation11 + $0x4] ss:$16 sps:$4 sm:$0xff]  }
 0x776   :  { %v3818_v30 = vadd.f32 %v3771_v57, %v10972_v59  ;;  %v3820_v44 = vadd.f32 %v3812_v47, %v10973_v53  ;;  %v3773_v60 = vpop.f32.mrb[114].mxu0  ;;  %v3814_v46 = vpop.f32.mrb[114].mxu1  ;;  %v9186_v53 = vld [vmem:[#allocation12 + $0xec] ss:$16 sps:$4 sm:$0xff]   ;;  %10974 = vst [vmem:[#allocation47_spill] sm:$0xff] %v9195_v32 }
 0x777   :  { %v3821_v52 = vmul.f32 0.5, %v3817_v4  ;;  %v3774_v18 = vpop.f32.mrb[115].mxu0  ;;  %v3815_v45 = vpop.f32.mrb[115].mxu1  ;;  %4040 = vmatpush1.bf16.msra.mxu0 %v9177_v29  ;;  %4081 = vmatpush1.bf16.msra.mxu1 %v9180_v31  ;;  %v9192_v4 = vld [vmem:[#allocation12 + $0xe8] ss:$16 sps:$4 sm:$0xff]  }
 0x778   :  { %v3822_v62 = vmul.f32 0.5, %v3818_v30  ;;  %4041 = vmatprep.subr.bf16.mxu0 %v9183_v39  ;;  %4082 = vmatprep.subr.bf16.mxu1 %v9186_v53  ;;  %v9189_v30 = vld [vmem:[#allocation12 + $0xe0] ss:$16 sps:$4 sm:$0xff]   ;;  %v9198_v57 = vld [vmem:[#allocation11 + $0xc] ss:$16 sps:$4 sm:$0xff]  }
 0x779   :  { %6022 = vtanh.f32 %v3821_v52  ;;  %v6021_v46 = vpop.eup %6020  ;;  %10975 = vst [vmem:[#allocation48_spill] sm:$0xff] %v9198_v57  ;;  %v9204_v60 = vld [vmem:[#allocation11 + $0x8] ss:$16 sps:$4 sm:$0xff]   ;;  %v9210_v52 = vld [vmem:[#allocation11 + $0x2c] ss:$16 sps:$4 sm:$0xff]  }
 0x77a   :  { %6024 = vtanh.f32 %v3822_v62  ;;  %v3729_v59 = vmul.f32 %v6021_v46, %v3723_v61  ;;  %v9201_v61 = vld [vmem:[#allocation11] ss:$16 sps:$4 sm:$0xff]   ;;  %10977 = vst [vmem:[#allocation20_spill] sm:$0xff] %v9204_v60  ;;  %10979 = vst [vmem:[#allocation51_spill] sm:$0xff] %v9210_v52  ;;  %v9218_v46 = vld [vmem:[#allocation11 + $0x28] ss:$16 sps:$4 sm:$0xff]  }
 0x77b   :  { %4042 = vmatpush1.bf16.msra.mxu0 %v9189_v30  ;;  %4083 = vmatpush1.bf16.msra.mxu1 %v9192_v4  ;;  %6026 = vtanh.f32 %v3820_v44  ;;  %10976 = vst [vmem:[#allocation49_spill] sm:$0xff] %v9201_v61  ;;  %v9207_v44 = vld [vmem:[#allocation11 + $0x24] ss:$16 sps:$4 sm:$0xff]   ;;  %v9215_v62 = vld [vmem:[#allocation11 + $0x20] ss:$16 sps:$4 sm:$0xff]   ;;  %10981 = vst [vmem:[#allocation34_spill] sm:$0xff] %v9218_v46 }
 0x77c   :  { %4109 = vmatprep.subr.bf16.mxu0 %v9195_v32  ;;  %4150 = vmatprep.subr.bf16.mxu1 %v9198_v57  ;;  %v3730_v47 = vpack.c.bf16 %v3729_v59, %v3729_v59  ;;  %10978 = vst [vmem:[#allocation50_spill] sm:$0xff] %v9207_v44  ;;  %10980 = vst [vmem:[#allocation33_spill] sm:$0xff] %v9215_v62  ;;  %v9227_v32 = vld [vmem:[#allocation11 + $0x40] ss:$16 sps:$4 sm:$0xff]  }
 0x77e   :  { %4060 = vmatmul.mubr.bf16.vlgmr.msra.gmra.mrb[124].mxu0 %v3730_v47  ;;  %4101 = vmatmul.mubr.bf16.vlgmr.msra.gmra.mrb[124].mxu1 %v3730_v47  ;;  %v9221_v47 = vld [vmem:[#allocation11 + $0x44] ss:$16 sps:$4 sm:$0xff]  }
 0x77f   :  { %4110 = vmatpush1.bf16.msra.mxu0 %v9201_v61  ;;  %4151 = vmatpush1.bf16.msra.mxu1 %v9204_v60  ;;  %10982 = vst [vmem:[#allocation52_spill] sm:$0xff] %v9221_v47 }
 0x780   :  { %4111 = vmatprep.subr.bf16.mxu0 %v9207_v44  ;;  %4152 = vmatprep.subr.bf16.mxu1 %v9210_v52  ;;  %v9224_v52 = vld [vmem:[#allocation11 + $0x4c] ss:$16 sps:$4 sm:$0xff]  }
 0x781   :  { %4141 = vmatprep.mubr.bf16.mxu0 %v10440_v50  ;;  %4182 = vmatprep.mubr.bf16.mxu1 %v10440_v50 }
 0x783   :  { %v6023_v18 = vpop.eup %6022  ;;  %4112 = vmatpush1.bf16.msra.mxu0 %v9215_v62  ;;  %4153 = vmatpush1.bf16.msra.mxu1 %v9218_v46  ;;  %v9230_v62 = vld [vmem:[#allocation11 + $0x48] ss:$16 sps:$4 sm:$0xff]   ;;  %v9233_v46 = vld [vmem:[#allocation11 + $0x64] ss:$16 sps:$4 sm:$0xff]  }
 0x784   :  { %v3827_v45 = vmul.f32 0.5, %v6023_v18  ;;  %v6025_v59 = vpop.eup %6024  ;;  %4113 = vmatprep.subr.bf16.mxu0 %v9221_v47  ;;  %4154 = vmatprep.subr.bf16.mxu1 %v9224_v52  ;;  %10983 = vst [vmem:[#allocation53_spill] sm:$0xff] %v9233_v46  ;;  %v9236_v47 = vld [vmem:[#allocation11 + $0x6c] ss:$16 sps:$4 sm:$0xff]  }
 0x785   :  { %v3828_v60 = vmul.f32 0.5, %v6025_v59  ;;  %v6027_v18 = vpop.eup %6026  ;;  %10984 = vst [vmem:[#allocation35_spill] sm:$0xff] %v9236_v47  ;;  %v9245_v59 = vld [vmem:[#allocation11 + $0x68] ss:$16 sps:$4 sm:$0xff]  }
 0x786   :  { %v3830_v44 = vadd.f32 0.5, %v3827_v45 }
 0x787   :  { %v3831_v61 = vadd.f32 0.5, %v3828_v60  ;;  %4114 = vmatpush1.bf16.msra.mxu0 %v9227_v32  ;;  %4155 = vmatpush1.bf16.msra.mxu1 %v9230_v62 }
 0x788   :  { %v3835_v57 = vmul.f32 %v6027_v18, %v3830_v44  ;;  %4115 = vmatprep.subr.bf16.mxu0 %v9233_v46  ;;  %4156 = vmatprep.subr.bf16.mxu1 %v9236_v47  ;;  %v9242_v44 = vld [vmem:[#allocation11 + $0x60] ss:$16 sps:$4 sm:$0xff]   ;;  %v9248_v18 = vld [vmem:[#allocation11 + $0x84] ss:$16 sps:$4 sm:$0xff]   ;;  %v9251_v46 = vld [vmem:[#allocation11 + $0x8c] ss:$16 sps:$4 sm:$0xff]  }
 0x789   :  { %v3834_v45 = vmul.f32 %v3831_v61, %v8907_v40  ;;  %10985 = vst [vmem:[#allocation36_spill] sm:$0xff] %v9251_v46  ;;  %v9254_v47 = vld [vmem:[#allocation11 + $0x80] ss:$16 sps:$4 sm:$0xff]   ;;  %v9257_v40 = vld [vmem:[#allocation11 + $0x88] ss:$16 sps:$4 sm:$0xff]  }
 0x78a   :  { %10986 = vst [vmem:[#allocation54_spill] sm:$0xff] %v9254_v47  ;;  %10987 = vst [vmem:[#allocation55_spill] sm:$0xff] %v9257_v40  ;;  %v9263_v61 = vld [vmem:[#allocation11 + $0xac] ss:$16 sps:$4 sm:$0xff]  }
 0x78b   :  { %v9240_v60 = vadd.f32 %v3835_v57, %v3834_v45  ;;  %4116 = vmatpush1.bf16.msra.mxu0 %v9242_v44  ;;  %4157 = vmatpush1.bf16.msra.mxu1 %v9245_v59  ;;  %v9260_v57 = vld [vmem:[#allocation11 + $0xa4] ss:$16 sps:$4 sm:$0xff]   ;;  %10989 = vst [vmem:[#allocation57_spill] sm:$0xff] %v9263_v61  ;;  %v9266_v45 = vld [vmem:[#allocation11 + $0xa0] ss:$16 sps:$4 sm:$0xff]  }
 0x78c   :  { %4117 = vmatprep.subr.bf16.mxu0 %v9248_v18  ;;  %4158 = vmatprep.subr.bf16.mxu1 %v9251_v46  ;;  %10988 = vst [vmem:[#allocation56_spill] sm:$0xff] %v9260_v57  ;;  %10990 = vst [vmem:[#allocation58_spill] sm:$0xff] %v9266_v45  ;;  %v9269_v46 = vld [vmem:[#allocation11 + $0xa8] ss:$16 sps:$4 sm:$0xff]  }
 0x78d   :  { %10991 = vst [vmem:[#allocation59_spill] sm:$0xff] %v9269_v46 }
 0x78f   :  { %4118 = vmatpush1.bf16.msra.mxu0 %v9254_v47  ;;  %4159 = vmatpush1.bf16.msra.mxu1 %v9257_v40  ;;  %v9272_v47 = vld [vmem:[#allocation11 + $0xc4] ss:$16 sps:$4 sm:$0xff]   ;;  %v9275_v40 = vld [vmem:[#allocation11 + $0xcc] ss:$16 sps:$4 sm:$0xff]  }
 0x790   :  { %4119 = vmatprep.subr.bf16.mxu0 %v9260_v57  ;;  %4160 = vmatprep.subr.bf16.mxu1 %v9263_v61  ;;  %10992 = vst [vmem:[#allocation60_spill] sm:$0xff] %v9272_v47  ;;  %10993 = vst [vmem:[#allocation61_spill] sm:$0xff] %v9275_v40  ;;  %v9278_v57 = vld [vmem:[#allocation11 + $0xc0] ss:$16 sps:$4 sm:$0xff]   ;;  %v9281_v61 = vld [vmem:[#allocation11 + $0xc8] ss:$16 sps:$4 sm:$0xff]  }
 0x791   :  { %10994 = vst [vmem:[#allocation62_spill] sm:$0xff] %v9281_v61 }
 0x793   :  { %4120 = vmatpush1.bf16.msra.mxu0 %v9266_v45  ;;  %4161 = vmatpush1.bf16.msra.mxu1 %v9269_v46  ;;  %v9284_v45 = vld [vmem:[#allocation11 + $0xe4] ss:$16 sps:$4 sm:$0xff]   ;;  %v9287_v46 = vld [vmem:[#allocation11 + $0xec] ss:$16 sps:$4 sm:$0xff]  }
 0x794   :  { %4121 = vmatprep.subr.bf16.mxu0 %v9272_v47  ;;  %4162 = vmatprep.subr.bf16.mxu1 %v9275_v40  ;;  %10995 = vst [vmem:[#allocation63_spill] sm:$0xff] %v9284_v45  ;;  %10996 = vst [vmem:[#allocation64_spill] sm:$0xff] %v9287_v46  ;;  %v9290_v47 = vld [vmem:[#allocation11 + $0xe0] ss:$16 sps:$4 sm:$0xff]   ;;  %v9293_v40 = vld [vmem:[#allocation11 + $0xe8] ss:$16 sps:$4 sm:$0xff]  }
 0x795   :  { %10997 = vst [vmem:[#allocation65_spill] sm:$0xff] %v9290_v47  ;;  %10998 = vst [vmem:[#allocation66_spill] sm:$0xff] %v9293_v40 }
 0x797   :  { %4122 = vmatpush1.bf16.msra.mxu0 %v9278_v57  ;;  %4163 = vmatpush1.bf16.msra.mxu1 %v9281_v61 }
 0x798   :  { %4123 = vmatprep.subr.bf16.mxu0 %v9284_v45  ;;  %4164 = vmatprep.subr.bf16.mxu1 %v9287_v46 }
 0x79b   :  { %4124 = vmatpush1.bf16.msra.mxu0 %v9290_v47  ;;  %4165 = vmatpush1.bf16.msra.mxu1 %v9293_v40  ;;  %v3823_v47 = vmul.f32 0.5, %v9167_v56  ;;  %v6461_v56 = vld [vmem:[#allocation6 + $0xec] ss:$16 sps:$4 sm:$0xff]  }
 0x79c   :  { %4218 = vmatprep.subr.bf16.mxu0 %v8927_v58  ;;  %4259 = vmatprep.subr.bf16.mxu1 %v8930_v23  ;;  %v6448_v58 = vld [vmem:[#allocation6 + $0x84] ss:$16 sps:$4 sm:$0xff]   ;;  %v6449_v23 = vld [vmem:[#allocation6 + $0x8c] ss:$16 sps:$4 sm:$0xff]  }
 0x79d   :  { %6028 = vtanh.f32 %v3823_v47 }
 0x79e   :  { %4142 = vmatmul.mubr.bf16.vlgmr.msra.gmra.mrb[128].mxu0 %v9045_v13  ;;  %4183 = vmatmul.mubr.bf16.vlgmr.msra.gmra.mrb[128].mxu1 %v9045_v13  ;;  %6030 = vtanh.f32 %v9240_v60  ;;  %v6460_v13 = vld [vmem:[#allocation6 + $0xe4] ss:$16 sps:$4 sm:$0xff]  }
 0x79f   :  { %4219 = vmatpush1.bf16.msra.mxu0 %v8935_v28  ;;  %4260 = vmatpush1.bf16.msra.mxu1 %v8938_v25  ;;  %v6450_v25 = vld [vmem:[#allocation6 + $0x80] ss:$16 sps:$4 sm:$0xff]  }
 0x7a0   :  { %4220 = vmatprep.subr.bf16.mxu0 %v8941_v43  ;;  %4261 = vmatprep.subr.bf16.mxu1 %v8944_v10  ;;  %v6451_v43 = vld [vmem:[#allocation6 + $0x88] ss:$16 sps:$4 sm:$0xff]   ;;  %v6452_v10 = vld [vmem:[#allocation6 + $0xa4] ss:$16 sps:$4 sm:$0xff]  }
 0x7a1   :  { %4250 = vmatprep.mubr.bf16.mxu0 %v10440_v50  ;;  %4291 = vmatprep.mubr.bf16.mxu1 %v10440_v50 }
 0x7a3   :  { %4221 = vmatpush1.bf16.msra.mxu0 %v8950_v19  ;;  %4262 = vmatpush1.bf16.msra.mxu1 %v8953_v36  ;;  %v6453_v19 = vld [vmem:[#allocation6 + $0xac] ss:$16 sps:$4 sm:$0xff]  }
 0x7a4   :  { %4222 = vmatprep.subr.bf16.mxu0 %v8956_v21  ;;  %4263 = vmatprep.subr.bf16.mxu1 %v8959_v33  ;;  %v6454_v21 = vld [vmem:[#allocation6 + $0xa0] ss:$16 sps:$4 sm:$0xff]   ;;  %v6455_v33 = vld [vmem:[#allocation6 + $0xa8] ss:$16 sps:$4 sm:$0xff]  }
 0x7a7   :  { %4223 = vmatpush1.bf16.msra.mxu0 %v8962_v6  ;;  %4264 = vmatpush1.bf16.msra.mxu1 %v8965_v11  ;;  %v6029_v28 = vpop.eup %6028  ;;  %v6456_v6 = vld [vmem:[#allocation6 + $0xc4] ss:$16 sps:$4 sm:$0xff]   ;;  %v6457_v11 = vld [vmem:[#allocation6 + $0xcc] ss:$16 sps:$4 sm:$0xff]  }
 0x7a8   :  { %4224 = vmatprep.subr.bf16.mxu0 %v8968_v14  ;;  %4265 = vmatprep.subr.bf16.mxu1 %v8971_v51  ;;  %v3829_v36 = vmul.f32 0.5, %v6029_v28  ;;  %v6031_v14 = vpop.eup %6030 }
 0x7aa   :  { %v3832_v51 = vadd.f32 0.5, %v3829_v36  ;;  %v9334_v36 = vld [vmem:[#allocation9 + $0x24] ss:$16 sps:$4 sm:$0xff]  }
 0x7ab   :  { %4225 = vmatpush1.bf16.msra.mxu0 %v8975_v49  ;;  %4266 = vmatpush1.bf16.msra.mxu1 %v8978_v12  ;;  %v6458_v49 = vld [vmem:[#allocation6 + $0xc0] ss:$16 sps:$4 sm:$0xff]   ;;  %v6459_v12 = vld [vmem:[#allocation6 + $0xc8] ss:$16 sps:$4 sm:$0xff]   ;;  %11003 = vst [vmem:[#allocation71_spill] sm:$0xff] %v9334_v36 }
 0x7ac   :  { %4226 = vmatprep.subr.bf16.mxu0 %v6448_v58  ;;  %4267 = vmatprep.subr.bf16.mxu1 %v6449_v23  ;;  %v3838_v47 = vmul.f32 %v6031_v14, %v3832_v51  ;;  %v6462_v58 = vld [vmem:[#allocation6 + $0xe0] ss:$16 sps:$4 sm:$0xff]   ;;  %v6463_v23 = vld [vmem:[#allocation6 + $0xe8] ss:$16 sps:$4 sm:$0xff]   ;;  %v9351_v14 = vld [vmem:[#allocation9 + $0x4c] ss:$16 sps:$4 sm:$0xff]  }
 0x7ad   :  { %11008 = vst [vmem:[#allocation76_spill] sm:$0xff] %v9351_v14  ;;  %v9354_v51 = vld [vmem:[#allocation9 + $0x40] ss:$16 sps:$4 sm:$0xff]  }
 0x7ae   :  { %v9318_v28 = vpack.c.bf16 %v3838_v47, %v3838_v47  ;;  %11009 = vst [vmem:[#allocation77_spill] sm:$0xff] %v9354_v51  ;;  %v9369_v47 = vld [vmem:[#allocation9 + $0x68] ss:$16 sps:$4 sm:$0xff]  }
 0x7af   :  { %4227 = vmatpush1.bf16.msra.mxu0 %v6450_v25  ;;  %4268 = vmatpush1.bf16.msra.mxu1 %v6451_v43  ;;  %v9320_v25 = vld [vmem:[#allocation9 + $0x4] ss:$16 sps:$4 sm:$0xff]   ;;  %v9323_v43 = vld [vmem:[#allocation9 + $0xc] ss:$16 sps:$4 sm:$0xff]   ;;  %11014 = vst [vmem:[#allocation78_spill] sm:$0xff] %v9369_v47 }
 0x7b0   :  { %4228 = vmatprep.subr.bf16.mxu0 %v6452_v10  ;;  %4269 = vmatprep.subr.bf16.mxu1 %v6453_v19  ;;  %10999 = vst [vmem:[#allocation67_spill] sm:$0xff] %v9320_v25  ;;  %11000 = vst [vmem:[#allocation68_spill] sm:$0xff] %v9323_v43  ;;  %v9328_v10 = vld [vmem:[#allocation9] ss:$16 sps:$4 sm:$0xff]   ;;  %v9331_v19 = vld [vmem:[#allocation9 + $0x8] ss:$16 sps:$4 sm:$0xff]  }
 0x7b1   :  { %11001 = vst [vmem:[#allocation69_spill] sm:$0xff] %v9328_v10  ;;  %11002 = vst [vmem:[#allocation70_spill] sm:$0xff] %v9331_v19 }
 0x7b3   :  { %4229 = vmatpush1.bf16.msra.mxu0 %v6454_v21  ;;  %4270 = vmatpush1.bf16.msra.mxu1 %v6455_v33  ;;  %v9337_v21 = vld [vmem:[#allocation9 + $0x2c] ss:$16 sps:$4 sm:$0xff]   ;;  %v9342_v33 = vld [vmem:[#allocation9 + $0x20] ss:$16 sps:$4 sm:$0xff]  }
 0x7b4   :  { %4230 = vmatprep.subr.bf16.mxu0 %v6456_v6  ;;  %4271 = vmatprep.subr.bf16.mxu1 %v6457_v11  ;;  %11004 = vst [vmem:[#allocation72_spill] sm:$0xff] %v9337_v21  ;;  %11005 = vst [vmem:[#allocation73_spill] sm:$0xff] %v9342_v33  ;;  %v9345_v6 = vld [vmem:[#allocation9 + $0x28] ss:$16 sps:$4 sm:$0xff]   ;;  %v9348_v11 = vld [vmem:[#allocation9 + $0x44] ss:$16 sps:$4 sm:$0xff]  }
 0x7b5   :  { %11006 = vst [vmem:[#allocation74_spill] sm:$0xff] %v9345_v6  ;;  %11007 = vst [vmem:[#allocation75_spill] sm:$0xff] %v9348_v11 }
 0x7b7   :  { %4231 = vmatpush1.bf16.msra.mxu0 %v6458_v49  ;;  %4272 = vmatpush1.bf16.msra.mxu1 %v6459_v12  ;;  %v9357_v49 = vld [vmem:[#allocation9 + $0x48] ss:$16 sps:$4 sm:$0xff]   ;;  %v9360_v12 = vld [vmem:[#allocation9 + $0x64] ss:$16 sps:$4 sm:$0xff]  }
 0x7b8   :  { %4232 = vmatprep.subr.bf16.mxu0 %v6460_v13  ;;  %4273 = vmatprep.subr.bf16.mxu1 %v6461_v56  ;;  %11010 = vst [vmem:[#allocation25_spill] sm:$0xff] %v9357_v49  ;;  %11011 = vst [vmem:[#allocation26_spill] sm:$0xff] %v9360_v12  ;;  %v9363_v13 = vld [vmem:[#allocation9 + $0x6c] ss:$16 sps:$4 sm:$0xff]   ;;  %v9366_v56 = vld [vmem:[#allocation9 + $0x60] ss:$16 sps:$4 sm:$0xff]  }
 0x7b9   :  { %11012 = vst [vmem:[#allocation27_spill] sm:$0xff] %v9363_v13  ;;  %11013 = vst [vmem:[#allocation28_spill] sm:$0xff] %v9366_v56 }
 0x7bb   :  { %4233 = vmatpush1.bf16.msra.mxu0 %v6462_v58  ;;  %4274 = vmatpush1.bf16.msra.mxu1 %v6463_v23  ;;  %v9372_v58 = vld [vmem:[#allocation9 + $0x84] ss:$16 sps:$4 sm:$0xff]   ;;  %v9375_v23 = vld [vmem:[#allocation9 + $0x8c] ss:$16 sps:$4 sm:$0xff]  }
 0x7bc   :  { %4323 = vmatprep.subr.bf16.mxu0 %v9320_v25  ;;  %4364 = vmatprep.subr.bf16.mxu1 %v9323_v43  ;;  %11015 = vst [vmem:[#allocation79_spill] sm:$0xff] %v9372_v58  ;;  %11016 = vst [vmem:[#allocation80_spill] sm:$0xff] %v9375_v23 }
 0x7be   :  { %4251 = vmatmul.mubr.bf16.vlgmr.msra.gmra.mrb[132].mxu0 %v9318_v28  ;;  %4292 = vmatmul.mubr.bf16.vlgmr.msra.gmra.mrb[132].mxu1 %v9318_v28 }
 0x7bf   :  { %4324 = vmatpush1.bf16.msra.mxu0 %v9328_v10  ;;  %4365 = vmatpush1.bf16.msra.mxu1 %v9331_v19 }
 0x7c0   :  { %4325 = vmatprep.subr.bf16.mxu0 %v9334_v36  ;;  %4366 = vmatprep.subr.bf16.mxu1 %v9337_v21 }
 0x7c1   :  { %4355 = vmatprep.mubr.bf16.mxu0 %v10440_v50  ;;  %4396 = vmatprep.mubr.bf16.mxu1 %v10440_v50 }
 0x7c3   :  { %4326 = vmatpush1.bf16.msra.mxu0 %v9342_v33  ;;  %4367 = vmatpush1.bf16.msra.mxu1 %v9345_v6 }
 0x7c4   :  { %4327 = vmatprep.subr.bf16.mxu0 %v9348_v11  ;;  %4368 = vmatprep.subr.bf16.mxu1 %v9351_v14 }
 0x7c7   :  { %4328 = vmatpush1.bf16.msra.mxu0 %v9354_v51  ;;  %4369 = vmatpush1.bf16.msra.mxu1 %v9357_v49 }
 0x7c8   :  { %4329 = vmatprep.subr.bf16.mxu0 %v9360_v12  ;;  %4370 = vmatprep.subr.bf16.mxu1 %v9363_v13  ;;  %v9378_v12 = vld [vmem:[#allocation9 + $0x80] ss:$16 sps:$4 sm:$0xff]   ;;  %v9381_v13 = vld [vmem:[#allocation9 + $0x88] ss:$16 sps:$4 sm:$0xff]  }
 0x7c9   :  { %11017 = vst [vmem:[#allocation81_spill] sm:$0xff] %v9378_v12  ;;  %11018 = vst [vmem:[#allocation82_spill] sm:$0xff] %v9381_v13 }
 0x7cb   :  { %4330 = vmatpush1.bf16.msra.mxu0 %v9366_v56  ;;  %4371 = vmatpush1.bf16.msra.mxu1 %v9369_v47  ;;  %v9384_v56 = vld [vmem:[#allocation9 + $0xa4] ss:$16 sps:$4 sm:$0xff]   ;;  %v9387_v47 = vld [vmem:[#allocation9 + $0xac] ss:$16 sps:$4 sm:$0xff]  }
 0x7cc   :  { %4331 = vmatprep.subr.bf16.mxu0 %v9372_v58  ;;  %4372 = vmatprep.subr.bf16.mxu1 %v9375_v23  ;;  %11019 = vst [vmem:[#allocation83_spill] sm:$0xff] %v9384_v56  ;;  %11020 = vst [vmem:[#allocation84_spill] sm:$0xff] %v9387_v47  ;;  %v9390_v58 = vld [vmem:[#allocation9 + $0xa0] ss:$16 sps:$4 sm:$0xff]   ;;  %v9393_v23 = vld [vmem:[#allocation9 + $0xa8] ss:$16 sps:$4 sm:$0xff]  }
 0x7cd   :  { %11021 = vst [vmem:[#allocation85_spill] sm:$0xff] %v9390_v58  ;;  %11022 = vst [vmem:[#allocation86_spill] sm:$0xff] %v9393_v23 }
 0x7cf   :  { %4332 = vmatpush1.bf16.msra.mxu0 %v9378_v12  ;;  %4373 = vmatpush1.bf16.msra.mxu1 %v9381_v13  ;;  %v9396_v12 = vld [vmem:[#allocation9 + $0xc4] ss:$16 sps:$4 sm:$0xff]   ;;  %v9399_v13 = vld [vmem:[#allocation9 + $0xcc] ss:$16 sps:$4 sm:$0xff]  }
 0x7d0   :  { %4333 = vmatprep.subr.bf16.mxu0 %v9384_v56  ;;  %4374 = vmatprep.subr.bf16.mxu1 %v9387_v47  ;;  %11023 = vst [vmem:[#allocation87_spill] sm:$0xff] %v9396_v12  ;;  %11024 = vst [vmem:[#allocation88_spill] sm:$0xff] %v9399_v13  ;;  %v9402_v56 = vld [vmem:[#allocation9 + $0xc0] ss:$16 sps:$4 sm:$0xff]   ;;  %v9405_v47 = vld [vmem:[#allocation9 + $0xc8] ss:$16 sps:$4 sm:$0xff]  }
 0x7d1   :  { %11025 = vst [vmem:[#allocation89_spill] sm:$0xff] %v9402_v56  ;;  %11026 = vst [vmem:[#allocation90_spill] sm:$0xff] %v9405_v47 }
 0x7d3   :  { %4334 = vmatpush1.bf16.msra.mxu0 %v9390_v58  ;;  %4375 = vmatpush1.bf16.msra.mxu1 %v9393_v23  ;;  %v9408_v58 = vld [vmem:[#allocation9 + $0xe4] ss:$16 sps:$4 sm:$0xff]   ;;  %v9411_v23 = vld [vmem:[#allocation9 + $0xec] ss:$16 sps:$4 sm:$0xff]  }
 0x7d4   :  { %4335 = vmatprep.subr.bf16.mxu0 %v9396_v12  ;;  %4376 = vmatprep.subr.bf16.mxu1 %v9399_v13  ;;  %11027 = vst [vmem:[#allocation91_spill] sm:$0xff] %v9408_v58  ;;  %11028 = vst [vmem:[#allocation92_spill] sm:$0xff] %v9411_v23  ;;  %v9414_v12 = vld [vmem:[#allocation9 + $0xe0] ss:$16 sps:$4 sm:$0xff]   ;;  %v9417_v13 = vld [vmem:[#allocation9 + $0xe8] ss:$16 sps:$4 sm:$0xff]  }
 0x7d5   :  { %11029 = vst [vmem:[#allocation93_spill] sm:$0xff] %v9414_v12  ;;  %11030 = vst [vmem:[#allocation21_spill] sm:$0xff] %v9417_v13 }
 0x7d7   :  { %4336 = vmatpush1.bf16.msra.mxu0 %v9402_v56  ;;  %4377 = vmatpush1.bf16.msra.mxu1 %v9405_v47  ;;  %v9420_v56 = vld [vmem:[#allocation8 + $0x4] ss:$16 sps:$4 sm:$0xff]   ;;  %v9423_v47 = vld [vmem:[#allocation8 + $0xc] ss:$16 sps:$4 sm:$0xff]  }
 0x7d8   :  { %4337 = vmatprep.subr.bf16.mxu0 %v9408_v58  ;;  %4378 = vmatprep.subr.bf16.mxu1 %v9411_v23  ;;  %11031 = vst [vmem:[#allocation22_spill] sm:$0xff] %v9420_v56  ;;  %11032 = vst [vmem:[#allocation23_spill] sm:$0xff] %v9423_v47 }
 0x7db   :  { %4338 = vmatpush1.bf16.msra.mxu0 %v9414_v12  ;;  %4379 = vmatpush1.bf16.msra.mxu1 %v9417_v13 }
 0x7dc   :  { %4405 = vmatprep.subr.bf16.mxu0 %v9420_v56  ;;  %4446 = vmatprep.subr.bf16.mxu1 %v9423_v47 }
 0x811   :  { %v3874_v58 = vpop.f32.mrb[116].mxu0  ;;  %v3915_v49 = vpop.f32.mrb[116].mxu1 }
 0x812   :  { %v3876_v51 = vpop.f32.mrb[117].mxu0  ;;  %v3917_v23 = vpop.f32.mrb[117].mxu1 }
 0x813   :  { %v3878_v14 = vpop.f32.mrb[118].mxu0  ;;  %v3919_v11 = vpop.f32.mrb[118].mxu1 }
 0x814   :  { %v3879_v6 = vpop.f32.mrb[119].mxu0  ;;  %v3920_v12 = vpop.f32.mrb[119].mxu1 }
 0x831   :  { %v3956_v33 = vpop.f32.mrb[120].mxu0  ;;  %v3997_v21 = vpop.f32.mrb[120].mxu1 }
 0x832   :  { %v3957_v36 = vadd.f32 %v3956_v33, %v3874_v58  ;;  %v3998_v13 = vadd.f32 %v3997_v21, %v3915_v49  ;;  %v3958_v19 = vpop.f32.mrb[121].mxu0  ;;  %v3999_v10 = vpop.f32.mrb[121].mxu1 }
 0x833   :  { %v3959_v43 = vadd.f32 %v3958_v19, %v3876_v51  ;;  %v4000_v56 = vadd.f32 %v3999_v10, %v3917_v23  ;;  %v3960_v25 = vpop.f32.mrb[122].mxu0  ;;  %v4001_v40 = vpop.f32.mrb[122].mxu1 }
 0x834   :  { %v4004_v47 = vadd.f32 %v3957_v36, %v7518_v3  ;;  %v3961_v46 = vpop.f32.mrb[123].mxu0  ;;  %v4002_v45 = vpop.f32.mrb[123].mxu1  ;;  %v4006_v21 = vadd.f32 %v3998_v13, %v7540_v42 }
 0x835   :  { %v4005_v61 = vadd.f32 %v3959_v43, %v7523_v22  ;;  %v4007_v6 = vadd.f32 %v4000_v56, %v7529_v48 }
 0x836   :  { %v4008_v14 = vmul.f32 0.5, %v4004_v47  ;;  %v4010_v33 = vmul.f32 0.5, %v4006_v21 }
 0x837   :  { %v4009_v11 = vmul.f32 0.5, %v4005_v61 }
 0x838   :  { %6032 = vtanh.f32 %v4008_v14 }
 0x839   :  { %6034 = vtanh.f32 %v4009_v11 }
 0x83a   :  { %6036 = vtanh.f32 %v4007_v6 }
 0x83b   :  { %6038 = vtanh.f32 %v4010_v33 }
 0x842   :  { %v6033_v19 = vpop.eup %6032 }
 0x843   :  { %v4014_v10 = vmul.f32 0.5, %v6033_v19  ;;  %v6035_v25 = vpop.eup %6034 }
 0x844   :  { %v4015_v36 = vmul.f32 0.5, %v6035_v25  ;;  %v6037_v46 = vpop.eup %6036  ;;  %v9449_v25 = vld [vmem:[#allocation8 + $0x8] ss:$16 sps:$4 sm:$0xff]  }
 0x845   :  { %v4017_v40 = vadd.f32 0.5, %v4014_v10  ;;  %v6039_v49 = vpop.eup %6038  ;;  %v9446_v10 = vld [vmem:[#allocation8] ss:$16 sps:$4 sm:$0xff]  }
 0x846   :  { %v4018_v45 = vadd.f32 0.5, %v4015_v36  ;;  %v4016_v56 = vmul.f32 0.5, %v6039_v49  ;;  %v9455_v36 = vld [vmem:[#allocation8 + $0x2c] ss:$16 sps:$4 sm:$0xff]   ;;  %v9472_v49 = vld [vmem:[#allocation8 + $0x40] ss:$16 sps:$4 sm:$0xff]  }
 0x847   :  { %v4022_v51 = vmul.f32 %v6037_v46, %v4017_v40  ;;  %v9452_v40 = vld [vmem:[#allocation8 + $0x24] ss:$16 sps:$4 sm:$0xff]   ;;  %v9460_v46 = vld [vmem:[#allocation8 + $0x20] ss:$16 sps:$4 sm:$0xff]   ;;  %11037 = vst [vmem:[#allocation97_spill] sm:$0xff] %v9472_v49 }
 0x848   :  { %v4021_v43 = vmul.f32 %v4018_v45, %v9042_v27  ;;  %v4019_v21 = vadd.f32 0.5, %v4016_v56  ;;  %11033 = vst [vmem:[#allocation24_spill] sm:$0xff] %v9460_v46  ;;  %v9463_v45 = vld [vmem:[#allocation8 + $0x28] ss:$16 sps:$4 sm:$0xff]  }
 0x849   :  { %11034 = vst [vmem:[#allocation94_spill] sm:$0xff] %v9463_v45  ;;  %v9475_v56 = vld [vmem:[#allocation8 + $0x48] ss:$16 sps:$4 sm:$0xff]  }
 0x84a   :  { %v9431_v61 = vadd.f32 %v4022_v51, %v4021_v43  ;;  %v9466_v51 = vld [vmem:[#allocation8 + $0x44] ss:$16 sps:$4 sm:$0xff]   ;;  %v9469_v43 = vld [vmem:[#allocation8 + $0x4c] ss:$16 sps:$4 sm:$0xff]   ;;  %11038 = vst [vmem:[#allocation98_spill] sm:$0xff] %v9475_v56 }
 0x84b   :  { %11035 = vst [vmem:[#allocation95_spill] sm:$0xff] %v9466_v51  ;;  %11036 = vst [vmem:[#allocation96_spill] sm:$0xff] %v9469_v43 }
 0x84c   :  { %6040 = vtanh.f32 %v9431_v61 }
 0x851   :  { %v9434_v12 = vpop.f32.mrb[124].mxu0  ;;  %v9436_v13 = vpop.f32.mrb[124].mxu1 }
 0x852   :  { %v9438_v47 = vpop.f32.mrb[125].mxu0  ;;  %v9440_v58 = vpop.f32.mrb[125].mxu1 }
 0x853   :  { %v4065_v23 = vpop.f32.mrb[126].mxu0  ;;  %v4106_v14 = vpop.f32.mrb[126].mxu1 }
 0x854   :  { %v4066_v11 = vpop.f32.mrb[127].mxu0  ;;  %v4107_v6 = vpop.f32.mrb[127].mxu1  ;;  %v9478_v23 = vld [vmem:[#allocation8 + $0x64] ss:$16 sps:$4 sm:$0xff]   ;;  %v9481_v14 = vld [vmem:[#allocation8 + $0x6c] ss:$16 sps:$4 sm:$0xff]  }
 0x855   :  { %11039 = vst [vmem:[#allocation99_spill] sm:$0xff] %v9478_v23  ;;  %11040 = vst [vmem:[#allocation100_spill] sm:$0xff] %v9481_v14  ;;  %v9484_v11 = vld [vmem:[#allocation8 + $0x60] ss:$16 sps:$4 sm:$0xff]   ;;  %v9487_v6 = vld [vmem:[#allocation8 + $0x68] ss:$16 sps:$4 sm:$0xff]  }
 0x856   :  { %v6041_v27 = vpop.eup %6040  ;;  %11041 = vst [vmem:[#allocation101_spill] sm:$0xff] %v9484_v11  ;;  %11042 = vst [vmem:[#allocation102_spill] sm:$0xff] %v9487_v6 }
 0x857   :  { %v4025_v33 = vmul.f32 %v6041_v27, %v4019_v21  ;;  %v9490_v21 = vld [vmem:[#allocation8 + $0x84] ss:$16 sps:$4 sm:$0xff]   ;;  %v9493_v27 = vld [vmem:[#allocation8 + $0x8c] ss:$16 sps:$4 sm:$0xff]  }
 0x858   :  { %11043 = vst [vmem:[#allocation103_spill] sm:$0xff] %v9490_v21  ;;  %11044 = vst [vmem:[#allocation104_spill] sm:$0xff] %v9493_v27 }
 0x859   :  { %v9442_v19 = vpack.c.bf16 %v4025_v33, %v4025_v33  ;;  %v9496_v33 = vld [vmem:[#allocation8 + $0x80] ss:$16 sps:$4 sm:$0xff]  }
 0x85a   :  { %11045 = vst [vmem:[#allocation105_spill] sm:$0xff] %v9496_v33 }
 0x85b   :  { %4356 = vmatmul.mubr.bf16.vlgmr.msra.gmra.mrb[136].mxu0 %v9442_v19  ;;  %4397 = vmatmul.mubr.bf16.vlgmr.msra.gmra.mrb[136].mxu1 %v9442_v19 }
 0x85c   :  { %4406 = vmatpush1.bf16.msra.mxu0 %v9446_v10  ;;  %4447 = vmatpush1.bf16.msra.mxu1 %v9449_v25 }
 0x85d   :  { %4407 = vmatprep.subr.bf16.mxu0 %v9452_v40  ;;  %4448 = vmatprep.subr.bf16.mxu1 %v9455_v36 }
 0x85e   :  { %4437 = vmatprep.mubr.bf16.mxu0 %v10440_v50  ;;  %4478 = vmatprep.mubr.bf16.mxu1 %v10440_v50 }
 0x860   :  { %4408 = vmatpush1.bf16.msra.mxu0 %v9460_v46  ;;  %4449 = vmatpush1.bf16.msra.mxu1 %v9463_v45  ;;  %v9526_v46 = vld [vmem:[#allocation8 + $0xc0] ss:$16 sps:$4 sm:$0xff]  }
 0x861   :  { %4409 = vmatprep.subr.bf16.mxu0 %v9466_v51  ;;  %4450 = vmatprep.subr.bf16.mxu1 %v9469_v43  ;;  %v9516_v43 = vld [vmem:[#allocation8 + $0xc4] ss:$16 sps:$4 sm:$0xff]  }
 0x862   :  { %11051 = vst [vmem:[#allocation111_spill] sm:$0xff] %v9516_v43 }
 0x864   :  { %4410 = vmatpush1.bf16.msra.mxu0 %v9472_v49  ;;  %4451 = vmatpush1.bf16.msra.mxu1 %v9475_v56 }
 0x865   :  { %4411 = vmatprep.subr.bf16.mxu0 %v9478_v23  ;;  %4452 = vmatprep.subr.bf16.mxu1 %v9481_v14  ;;  %v9499_v14 = vld [vmem:[#allocation8 + $0x88] ss:$16 sps:$4 sm:$0xff]  }
 0x866   :  { %11046 = vst [vmem:[#allocation106_spill] sm:$0xff] %v9499_v14 }
 0x868   :  { %4412 = vmatpush1.bf16.msra.mxu0 %v9484_v11  ;;  %4453 = vmatpush1.bf16.msra.mxu1 %v9487_v6  ;;  %v9502_v11 = vld [vmem:[#allocation8 + $0xa4] ss:$16 sps:$4 sm:$0xff]   ;;  %v9505_v6 = vld [vmem:[#allocation8 + $0xac] ss:$16 sps:$4 sm:$0xff]  }
 0x869   :  { %4413 = vmatprep.subr.bf16.mxu0 %v9490_v21  ;;  %4454 = vmatprep.subr.bf16.mxu1 %v9493_v27  ;;  %11047 = vst [vmem:[#allocation107_spill] sm:$0xff] %v9502_v11  ;;  %11048 = vst [vmem:[#allocation108_spill] sm:$0xff] %v9505_v6  ;;  %v9508_v21 = vld [vmem:[#allocation8 + $0xa0] ss:$16 sps:$4 sm:$0xff]   ;;  %v9511_v27 = vld [vmem:[#allocation8 + $0xa8] ss:$16 sps:$4 sm:$0xff]  }
 0x86a   :  { %11049 = vst [vmem:[#allocation109_spill] sm:$0xff] %v9508_v21  ;;  %11050 = vst [vmem:[#allocation110_spill] sm:$0xff] %v9511_v27 }
 0x86c   :  { %4414 = vmatpush1.bf16.msra.mxu0 %v9496_v33  ;;  %4455 = vmatpush1.bf16.msra.mxu1 %v9499_v14 }
 0x86d   :  { %4415 = vmatprep.subr.bf16.mxu0 %v9502_v11  ;;  %4456 = vmatprep.subr.bf16.mxu1 %v9505_v6  ;;  %v9519_v6 = vld [vmem:[#allocation8 + $0xcc] ss:$16 sps:$4 sm:$0xff]  }
 0x86e   :  { %11052 = vst [vmem:[#allocation112_spill] sm:$0xff] %v9519_v6 }
 0x870   :  { %4416 = vmatpush1.bf16.msra.mxu0 %v9508_v21  ;;  %4457 = vmatpush1.bf16.msra.mxu1 %v9511_v27 }
 0x871   :  { %v4143_v33 = vpop.f32.mrb[128].mxu0  ;;  %v4184_v23 = vpop.f32.mrb[128].mxu1  ;;  %4417 = vmatprep.subr.bf16.mxu0 %v9516_v43  ;;  %4458 = vmatprep.subr.bf16.mxu1 %v9519_v6  ;;  %v9529_v43 = vld [vmem:[#allocation8 + $0xc8] ss:$16 sps:$4 sm:$0xff]  }
 0x872   :  { %v4144_v14 = vadd.f32 %v4143_v33, %v9434_v12  ;;  %v4185_v56 = vadd.f32 %v4184_v23, %v9436_v13  ;;  %v4145_v49 = vpop.f32.mrb[129].mxu0  ;;  %v4186_v11 = vpop.f32.mrb[129].mxu1 }
 0x873   :  { %v4146_v21 = vadd.f32 %v4145_v49, %v9438_v47  ;;  %v4187_v27 = vadd.f32 %v4186_v11, %v9440_v58  ;;  %v4147_v51 = vpop.f32.mrb[130].mxu0  ;;  %v4188_v45 = vpop.f32.mrb[130].mxu1  ;;  %v9532_v47 = vld [vmem:[#allocation8 + $0xe4] ss:$16 sps:$4 sm:$0xff]   ;;  %v9535_v58 = vld [vmem:[#allocation8 + $0xec] ss:$16 sps:$4 sm:$0xff]  }
 0x874   :  { %v4191_v12 = vadd.f32 %v4144_v14, %v8052_v38  ;;  %v4148_v33 = vpop.f32.mrb[131].mxu0  ;;  %v4189_v13 = vpop.f32.mrb[131].mxu1  ;;  %4418 = vmatpush1.bf16.msra.mxu0 %v9526_v46  ;;  %4459 = vmatpush1.bf16.msra.mxu1 %v9529_v43  ;;  %v9539_v49 = vld [vmem:[#allocation8 + $0xe0] ss:$16 sps:$4 sm:$0xff]   ;;  %v9542_v14 = vld [vmem:[#allocation8 + $0xe8] ss:$16 sps:$4 sm:$0xff]   ;;  %v4193_v11 = vadd.f32 %v4185_v56, %v8092_v17 }
 0x875   :  { %v4192_v23 = vadd.f32 %v4146_v21, %v8061_v0  ;;  %4419 = vmatprep.subr.bf16.mxu0 %v9532_v47  ;;  %4460 = vmatprep.subr.bf16.mxu1 %v9535_v58  ;;  %v4194_v51 = vadd.f32 %v4187_v27, %v8075_v20  ;;  %v11054_v56 = vld [vmem:[#allocation142_spill] sm:$0xff]  ;;  %v11061_v33 = vld [vmem:[#allocation41_spill] sm:$0xff] }
 0x876   :  { %v4195_v6 = vmul.f32 0.5, %v4191_v12 }
 0x877   :  { %v4196_v45 = vmul.f32 0.5, %v4192_v23  ;;  %v11062_v23 = vld [vmem:[#allocation42_spill] sm:$0xff] }
 0x878   :  { %6042 = vtanh.f32 %v4195_v6  ;;  %4420 = vmatpush1.bf16.msra.mxu0 %v9539_v49  ;;  %4461 = vmatpush1.bf16.msra.mxu1 %v9542_v14  ;;  %v11058_v6 = vld [vmem:[#allocation30_spill] sm:$0xff] }
 0x879   :  { %6044 = vtanh.f32 %v4196_v45  ;;  %4510 = vmatprep.subr.bf16.mxu0 %v9084_v1  ;;  %4551 = vmatprep.subr.bf16.mxu1 %v9087_v2  ;;  %v4197_v1 = vmul.f32 0.5, %v4193_v11 }
 0x87a   :  { %6046 = vtanh.f32 %v4194_v51 }
 0x87b   :  { %4438 = vmatmul.mubr.bf16.vlgmr.msra.gmra.mrb[140].mxu0 %v9318_v28  ;;  %4479 = vmatmul.mubr.bf16.vlgmr.msra.gmra.mrb[140].mxu1 %v9318_v28  ;;  %6048 = vtanh.f32 %v4197_v1  ;;  %v11063_v1 = vld [vmem:[#allocation45_spill] sm:$0xff] }
 0x87c   :  { %4511 = vmatpush1.bf16.msra.mxu0 %v9093_v34  ;;  %4552 = vmatpush1.bf16.msra.mxu1 %v9096_v35 }
 0x87d   :  { %4512 = vmatprep.subr.bf16.mxu0 %v9099_v5  ;;  %4553 = vmatprep.subr.bf16.mxu1 %v9102_v37 }
 0x87e   :  { %4542 = vmatprep.mubr.bf16.mxu0 %v10440_v50  ;;  %4583 = vmatprep.mubr.bf16.mxu1 %v10440_v50 }
 0x880   :  { %4513 = vmatpush1.bf16.msra.mxu0 %v9107_v26  ;;  %4554 = vmatpush1.bf16.msra.mxu1 %v9110_v7 }
 0x881   :  { %4514 = vmatprep.subr.bf16.mxu0 %v9113_v63  ;;  %4555 = vmatprep.subr.bf16.mxu1 %v9116_v15  ;;  %v11053_v15 = vld [vmem:[#allocation141_spill] sm:$0xff] }
 0x882   :  { %v6043_v2 = vpop.eup %6042 }
 0x883   :  { %v4201_v34 = vmul.f32 0.5, %v6043_v2  ;;  %v6045_v35 = vpop.eup %6044  ;;  %v11064_v2 = vld [vmem:[#allocation46_spill] sm:$0xff] }
 0x884   :  { %v4202_v5 = vmul.f32 0.5, %v6045_v35  ;;  %4515 = vmatpush1.bf16.msra.mxu0 %v9119_v16  ;;  %4556 = vmatpush1.bf16.msra.mxu1 %v9122_v24  ;;  %v6047_v37 = vpop.eup %6046  ;;  %v11055_v24 = vld [vmem:[#allocation143_spill] sm:$0xff] }
 0x885   :  { %v4204_v28 = vadd.f32 0.5, %v4201_v34  ;;  %4516 = vmatprep.subr.bf16.mxu0 %v9125_v55  ;;  %4557 = vmatprep.subr.bf16.mxu1 %v9128_v9  ;;  %v11056_v55 = vld [vmem:[#allocation144_spill] sm:$0xff]  ;;  %v11057_v9 = vld [vmem:[#allocation29_spill] sm:$0xff]  ;;  %v11065_v34 = vld [vmem:[#allocation43_spill] sm:$0xff] }
 0x886   :  { %v4205_v26 = vadd.f32 0.5, %v4202_v5 }
 0x887   :  { %v4209_v7 = vmul.f32 %v6047_v37, %v4204_v28  ;;  %v11066_v28 = vld [vmem:[#allocation44_spill] sm:$0xff] }
 0x888   :  { %v4208_v63 = vmul.f32 %v4205_v26, %v9144_v41  ;;  %4517 = vmatpush1.bf16.msra.mxu0 %v9132_v8  ;;  %4558 = vmatpush1.bf16.msra.mxu1 %v9135_v54  ;;  %v6049_v41 = vpop.eup %6048  ;;  %v11059_v8 = vld [vmem:[#allocation31_spill] sm:$0xff]  ;;  %v11060_v54 = vld [vmem:[#allocation32_spill] sm:$0xff] }
 0x889   :  { %4518 = vmatprep.subr.bf16.mxu0 %v11053_v15  ;;  %4559 = vmatprep.subr.bf16.mxu1 %v11054_v56  ;;  %v4203_v12 = vmul.f32 0.5, %v6049_v41  ;;  %v11068_v41 = vld [vmem:[#allocation48_spill] sm:$0xff] }
 0x88a   :  { %v9569_v16 = vadd.f32 %v4209_v7, %v4208_v63 }
 0x88c   :  { %6050 = vtanh.f32 %v9569_v16  ;;  %4519 = vmatpush1.bf16.msra.mxu0 %v11055_v24  ;;  %4560 = vmatpush1.bf16.msra.mxu1 %v11056_v55  ;;  %v4206_v24 = vadd.f32 0.5, %v4203_v12 }
 0x88d   :  { %4520 = vmatprep.subr.bf16.mxu0 %v11057_v9  ;;  %4561 = vmatprep.subr.bf16.mxu1 %v11058_v6  ;;  %v11067_v6 = vld [vmem:[#allocation47_spill] sm:$0xff] }
 0x890   :  { %4521 = vmatpush1.bf16.msra.mxu0 %v11059_v8  ;;  %4562 = vmatpush1.bf16.msra.mxu1 %v11060_v54  ;;  %v11072_v8 = vld [vmem:[#allocation51_spill] sm:$0xff] }
 0x891   :  { %v4252_v21 = vpop.f32.mrb[132].mxu0  ;;  %v4293_v27 = vpop.f32.mrb[132].mxu1  ;;  %4522 = vmatprep.subr.bf16.mxu0 %v11063_v1  ;;  %4563 = vmatprep.subr.bf16.mxu1 %v11064_v2  ;;  %v11076_v1 = vld [vmem:[#allocation53_spill] sm:$0xff]  ;;  %v11077_v2 = vld [vmem:[#allocation35_spill] sm:$0xff] }
 0x892   :  { %v4300_v13 = vadd.f32 %v4252_v21, %v11061_v33  ;;  %v4302_v45 = vadd.f32 %v4293_v27, %v11062_v23  ;;  %v4254_v51 = vpop.f32.mrb[133].mxu0  ;;  %v4295_v11 = vpop.f32.mrb[133].mxu1  ;;  %v11073_v21 = vld [vmem:[#allocation33_spill] sm:$0xff]  ;;  %v11074_v27 = vld [vmem:[#allocation34_spill] sm:$0xff]  ;;  %v11075_v33 = vld [vmem:[#allocation52_spill] sm:$0xff] }
 0x893   :  { %v4301_v35 = vadd.f32 %v4254_v51, %v11065_v34  ;;  %v4303_v5 = vadd.f32 %v4295_v11, %v11066_v28  ;;  %v4256_v37 = vpop.f32.mrb[134].mxu0  ;;  %v4297_v26 = vpop.f32.mrb[134].mxu1 }
 0x894   :  { %v4304_v7 = vmul.f32 0.5, %v4300_v13  ;;  %v4257_v63 = vpop.f32.mrb[135].mxu0  ;;  %v4298_v15 = vpop.f32.mrb[135].mxu1  ;;  %4523 = vmatpush1.bf16.msra.mxu0 %v9177_v29  ;;  %4564 = vmatpush1.bf16.msra.mxu1 %v9180_v31  ;;  %v11069_v31 = vld [vmem:[#allocation49_spill] sm:$0xff]  ;;  %v4306_v54 = vmul.f32 0.5, %v4302_v45  ;;  %v11083_v26 = vld [vmem:[#allocation58_spill] sm:$0xff] }
 0x895   :  { %v4305_v56 = vmul.f32 0.5, %v4301_v35  ;;  %4524 = vmatprep.subr.bf16.mxu0 %v9183_v39  ;;  %4565 = vmatprep.subr.bf16.mxu1 %v9186_v53  ;;  %v11070_v39 = vld [vmem:[#allocation20_spill] sm:$0xff]  ;;  %v11071_v53 = vld [vmem:[#allocation50_spill] sm:$0xff]  ;;  %v11082_v37 = vld [vmem:[#allocation57_spill] sm:$0xff] }
 0x896   :  { %6052 = vtanh.f32 %v4304_v7  ;;  %v6051_v55 = vpop.eup %6050  ;;  %v11087_v15 = vld [vmem:[#allocation62_spill] sm:$0xff] }
 0x897   :  { %6054 = vtanh.f32 %v4305_v56  ;;  %v4212_v9 = vmul.f32 %v6051_v55, %v4206_v24  ;;  %v11088_v56 = vld [vmem:[#allocation63_spill] sm:$0xff]  ;;  %v11089_v24 = vld [vmem:[#allocation64_spill] sm:$0xff] }
 0x898   :  { %4525 = vmatpush1.bf16.msra.mxu0 %v9189_v30  ;;  %4566 = vmatpush1.bf16.msra.mxu1 %v9192_v4  ;;  %6056 = vtanh.f32 %v4303_v5  ;;  %v11081_v5 = vld [vmem:[#allocation56_spill] sm:$0xff] }
 0x899   :  { %4592 = vmatprep.subr.bf16.mxu0 %v11067_v6  ;;  %4633 = vmatprep.subr.bf16.mxu1 %v11068_v41  ;;  %v4213_v29 = vpack.c.bf16 %v4212_v9, %v4212_v9  ;;  %6058 = vtanh.f32 %v4306_v54  ;;  %v11090_v9 = vld [vmem:[#allocation65_spill] sm:$0xff]  ;;  %v11091_v6 = vld [vmem:[#allocation66_spill] sm:$0xff]  ;;  %v11092_v41 = vld [vmem:[#allocation67_spill] sm:$0xff] }
 0x89a   :  { %v11099_v54 = vld [vmem:[#allocation74_spill] sm:$0xff] }
 0x89b   :  { %4543 = vmatmul.mubr.bf16.vlgmr.msra.gmra.mrb[144].mxu0 %v4213_v29  ;;  %4584 = vmatmul.mubr.bf16.vlgmr.msra.gmra.mrb[144].mxu1 %v4213_v29  ;;  %v11093_v29 = vld [vmem:[#allocation68_spill] sm:$0xff] }
 0x89c   :  { %4593 = vmatpush1.bf16.msra.mxu0 %v11069_v31  ;;  %4634 = vmatpush1.bf16.msra.mxu1 %v11070_v39  ;;  %v11095_v31 = vld [vmem:[#allocation70_spill] sm:$0xff]  ;;  %v11096_v39 = vld [vmem:[#allocation71_spill] sm:$0xff] }
 0x89d   :  { %4594 = vmatprep.subr.bf16.mxu0 %v11071_v53  ;;  %4635 = vmatprep.subr.bf16.mxu1 %v11072_v8  ;;  %v11097_v53 = vld [vmem:[#allocation72_spill] sm:$0xff]  ;;  %v11098_v8 = vld [vmem:[#allocation73_spill] sm:$0xff] }
 0x89e   :  { %4624 = vmatprep.mubr.bf16.mxu0 %v10440_v50  ;;  %4665 = vmatprep.mubr.bf16.mxu1 %v10440_v50 }
 0x8a0   :  { %v6053_v30 = vpop.eup %6052  ;;  %4595 = vmatpush1.bf16.msra.mxu0 %v11073_v21  ;;  %4636 = vmatpush1.bf16.msra.mxu1 %v11074_v27  ;;  %v11103_v21 = vld [vmem:[#allocation25_spill] sm:$0xff]  ;;  %v11104_v27 = vld [vmem:[#allocation26_spill] sm:$0xff] }
 0x8a1   :  { %v4310_v4 = vmul.f32 0.5, %v6053_v30  ;;  %v6055_v12 = vpop.eup %6054  ;;  %4596 = vmatprep.subr.bf16.mxu0 %v11075_v33  ;;  %4637 = vmatprep.subr.bf16.mxu1 %v9224_v52  ;;  %v11078_v52 = vld [vmem:[#allocation36_spill] sm:$0xff]  ;;  %v11100_v30 = vld [vmem:[#allocation75_spill] sm:$0xff] }
 0x8a2   :  { %v4311_v23 = vmul.f32 0.5, %v6055_v12  ;;  %v6057_v51 = vpop.eup %6056  ;;  %v11105_v12 = vld [vmem:[#allocation27_spill] sm:$0xff]  ;;  %v11106_v33 = vld [vmem:[#allocation28_spill] sm:$0xff] }
 0x8a3   :  { %v4313_v13 = vadd.f32 0.5, %v4310_v4  ;;  %v6059_v28 = vpop.eup %6058  ;;  %v11101_v4 = vld [vmem:[#allocation76_spill] sm:$0xff] }
 0x8a4   :  { %v4314_v45 = vadd.f32 0.5, %v4311_v23  ;;  %4597 = vmatpush1.bf16.msra.mxu0 %v9227_v32  ;;  %4638 = vmatpush1.bf16.msra.mxu1 %v9230_v62  ;;  %v11079_v32 = vld [vmem:[#allocation54_spill] sm:$0xff]  ;;  %v11080_v62 = vld [vmem:[#allocation55_spill] sm:$0xff] }
 0x8a5   :  { %v4318_v11 = vmul.f32 %v6057_v51, %v4313_v13  ;;  %4598 = vmatprep.subr.bf16.mxu0 %v11076_v1  ;;  %4639 = vmatprep.subr.bf16.mxu1 %v11077_v2  ;;  %v11107_v13 = vld [vmem:[#allocation78_spill] sm:$0xff]  ;;  %v11108_v23 = vld [vmem:[#allocation79_spill] sm:$0xff]  ;;  %v11109_v51 = vld [vmem:[#allocation80_spill] sm:$0xff] }
 0x8a6   :  { %v4317_v34 = vmul.f32 %v4314_v45, %v9240_v60  ;;  %v4312_v60 = vmul.f32 0.5, %v6059_v28  ;;  %v11110_v45 = vld [vmem:[#allocation81_spill] sm:$0xff]  ;;  %v11112_v1 = vld [vmem:[#allocation83_spill] sm:$0xff]  ;;  %v11113_v2 = vld [vmem:[#allocation84_spill] sm:$0xff] }
 0x8a7   :  { %v11117_v28 = vld [vmem:[#allocation88_spill] sm:$0xff] }
 0x8a8   :  { %v4319_v35 = vadd.f32 %v4318_v11, %v4317_v34  ;;  %4599 = vmatpush1.bf16.msra.mxu0 %v9242_v44  ;;  %4640 = vmatpush1.bf16.msra.mxu1 %v9245_v59  ;;  %v11084_v44 = vld [vmem:[#allocation59_spill] sm:$0xff]  ;;  %v11085_v59 = vld [vmem:[#allocation60_spill] sm:$0xff]  ;;  %v4315_v7 = vadd.f32 0.5, %v4312_v60  ;;  %v11111_v11 = vld [vmem:[#allocation82_spill] sm:$0xff] }
 0x8a9   :  { %4600 = vmatprep.subr.bf16.mxu0 %v9248_v18  ;;  %4641 = vmatprep.subr.bf16.mxu1 %v11078_v52  ;;  %v11086_v18 = vld [vmem:[#allocation61_spill] sm:$0xff]  ;;  %v11116_v52 = vld [vmem:[#allocation87_spill] sm:$0xff] }
 0x8aa   :  { %6060 = vtanh.f32 %v4319_v35  ;;  %v11114_v34 = vld [vmem:[#allocation85_spill] sm:$0xff]  ;;  %v11115_v35 = vld [vmem:[#allocation86_spill] sm:$0xff] }
 0x8ab   :  { %v11122_v60 = vld [vmem:[#allocation93_spill] sm:$0xff] }
 0x8ac   :  { %4601 = vmatpush1.bf16.msra.mxu0 %v11079_v32  ;;  %4642 = vmatpush1.bf16.msra.mxu1 %v11080_v62  ;;  %v11118_v32 = vld [vmem:[#allocation89_spill] sm:$0xff]  ;;  %v11119_v62 = vld [vmem:[#allocation90_spill] sm:$0xff] }
 0x8ad   :  { %4602 = vmatprep.subr.bf16.mxu0 %v11081_v5  ;;  %4643 = vmatprep.subr.bf16.mxu1 %v11082_v37  ;;  %v11120_v5 = vld [vmem:[#allocation91_spill] sm:$0xff]  ;;  %v11121_v37 = vld [vmem:[#allocation92_spill] sm:$0xff] }
 0x8b0   :  { %4603 = vmatpush1.bf16.msra.mxu0 %v11083_v26  ;;  %4644 = vmatpush1.bf16.msra.mxu1 %v11084_v44  ;;  %v11123_v26 = vld [vmem:[#allocation21_spill] sm:$0xff]  ;;  %v11124_v44 = vld [vmem:[#allocation22_spill] sm:$0xff] }
 0x8b1   :  { %4604 = vmatprep.subr.bf16.mxu0 %v11085_v59  ;;  %4645 = vmatprep.subr.bf16.mxu1 %v11086_v18  ;;  %v11125_v59 = vld [vmem:[#allocation23_spill] sm:$0xff] }
 0x8b4   :  { %v6061_v63 = vpop.eup %6060  ;;  %4605 = vmatpush1.bf16.msra.mxu0 %v9278_v57  ;;  %4646 = vmatpush1.bf16.msra.mxu1 %v11087_v15  ;;  %v11094_v57 = vld [vmem:[#allocation69_spill] sm:$0xff] }
 0x8b5   :  { %4606 = vmatprep.subr.bf16.mxu0 %v11088_v56  ;;  %4647 = vmatprep.subr.bf16.mxu1 %v11089_v24  ;;  %v9623_v55 = vmul.f32 %v6061_v63, %v4315_v7 }
 0x8b8   :  { %4607 = vmatpush1.bf16.msra.mxu0 %v11090_v9  ;;  %4648 = vmatpush1.bf16.msra.mxu1 %v11091_v6 }
 0x8b9   :  { %4697 = vmatprep.subr.bf16.mxu0 %v11092_v41  ;;  %4738 = vmatprep.subr.bf16.mxu1 %v11093_v29 }
 0x8bb   :  { %4625 = vmatmul.mubr.bf16.vlgmr.msra.gmra.mrb[148].mxu0 %v9442_v19  ;;  %4666 = vmatmul.mubr.bf16.vlgmr.msra.gmra.mrb[148].mxu1 %v9442_v19  ;;  %v11102_v19 = vld [vmem:[#allocation77_spill] sm:$0xff] }
 0x8bc   :  { %4698 = vmatpush1.bf16.msra.mxu0 %v11094_v57  ;;  %4739 = vmatpush1.bf16.msra.mxu1 %v11095_v31 }
 0x8bd   :  { %4699 = vmatprep.subr.bf16.mxu0 %v11096_v39  ;;  %4740 = vmatprep.subr.bf16.mxu1 %v11097_v53 }
 0x8be   :  { %4729 = vmatprep.mubr.bf16.mxu0 %v10440_v50  ;;  %4770 = vmatprep.mubr.bf16.mxu1 %v10440_v50 }
 0x8c0   :  { %4700 = vmatpush1.bf16.msra.mxu0 %v11098_v8  ;;  %4741 = vmatpush1.bf16.msra.mxu1 %v11099_v54 }
 0x8c1   :  { %4701 = vmatprep.subr.bf16.mxu0 %v11100_v30  ;;  %4742 = vmatprep.subr.bf16.mxu1 %v11101_v4 }
 0x8c4   :  { %4702 = vmatpush1.bf16.msra.mxu0 %v11102_v19  ;;  %4743 = vmatpush1.bf16.msra.mxu1 %v11103_v21 }
 0x8c5   :  { %4703 = vmatprep.subr.bf16.mxu0 %v11104_v27  ;;  %4744 = vmatprep.subr.bf16.mxu1 %v11105_v12 }
 0x8c8   :  { %4704 = vmatpush1.bf16.msra.mxu0 %v11106_v33  ;;  %4745 = vmatpush1.bf16.msra.mxu1 %v11107_v13 }
 0x8c9   :  { %4705 = vmatprep.subr.bf16.mxu0 %v11108_v23  ;;  %4746 = vmatprep.subr.bf16.mxu1 %v11109_v51 }
 0x8cc   :  { %4706 = vmatpush1.bf16.msra.mxu0 %v11110_v45  ;;  %4747 = vmatpush1.bf16.msra.mxu1 %v11111_v11 }
 0x8cd   :  { %4707 = vmatprep.subr.bf16.mxu0 %v11112_v1  ;;  %4748 = vmatprep.subr.bf16.mxu1 %v11113_v2 }
 0x8d0   :  { %4708 = vmatpush1.bf16.msra.mxu0 %v11114_v34  ;;  %4749 = vmatpush1.bf16.msra.mxu1 %v11115_v35 }
 0x8d1   :  { %4709 = vmatprep.subr.bf16.mxu0 %v11116_v52  ;;  %4750 = vmatprep.subr.bf16.mxu1 %v11117_v28 }
 0x8d4   :  { %4710 = vmatpush1.bf16.msra.mxu0 %v11118_v32  ;;  %4751 = vmatpush1.bf16.msra.mxu1 %v11119_v62 }
 0x8d5   :  { %4711 = vmatprep.subr.bf16.mxu0 %v11120_v5  ;;  %4752 = vmatprep.subr.bf16.mxu1 %v11121_v37 }
 0x8d8   :  { %4712 = vmatpush1.bf16.msra.mxu0 %v11122_v60  ;;  %4753 = vmatpush1.bf16.msra.mxu1 %v11123_v26 }
 0x8d9   :  { %4779 = vmatprep.subr.bf16.mxu0 %v11124_v44  ;;  %4820 = vmatprep.subr.bf16.mxu1 %v11125_v59 }
 0x92e   :  { %v4357_v18 = vpop.f32.mrb[136].mxu0  ;;  %v4398_v7 = vpop.f32.mrb[136].mxu1 }
 0x92f   :  { %v4359_v63 = vpop.f32.mrb[137].mxu0  ;;  %v4400_v15 = vpop.f32.mrb[137].mxu1 }
 0x930   :  { %v4361_v56 = vpop.f32.mrb[138].mxu0  ;;  %v4402_v24 = vpop.f32.mrb[138].mxu1 }
 0x931   :  { %v4362_v9 = vpop.f32.mrb[139].mxu0  ;;  %v4403_v6 = vpop.f32.mrb[139].mxu1 }
 0x94e   :  { %v4439_v41 = vpop.f32.mrb[140].mxu0  ;;  %v4480_v29 = vpop.f32.mrb[140].mxu1 }
 0x94f   :  { %v4440_v57 = vadd.f32 %v4439_v41, %v4357_v18  ;;  %v4481_v31 = vadd.f32 %v4480_v29, %v4398_v7  ;;  %v4441_v39 = vpop.f32.mrb[141].mxu0  ;;  %v4482_v53 = vpop.f32.mrb[141].mxu1  ;;  %v11127_v29 = vld [vmem:[#allocation94_spill] sm:$0xff] }
 0x950   :  { %v4442_v8 = vadd.f32 %v4441_v39, %v4359_v63  ;;  %v4483_v54 = vadd.f32 %v4482_v53, %v4400_v15  ;;  %v4443_v30 = vpop.f32.mrb[142].mxu0  ;;  %v4484_v4 = vpop.f32.mrb[142].mxu1  ;;  %v11130_v39 = vld [vmem:[#allocation97_spill] sm:$0xff]  ;;  %v11135_v53 = vld [vmem:[#allocation102_spill] sm:$0xff] }
 0x951   :  { %v4487_v19 = vadd.f32 %v4440_v57, %v7518_v3  ;;  %v4444_v21 = vpop.f32.mrb[143].mxu0  ;;  %v4485_v27 = vpop.f32.mrb[143].mxu1  ;;  %v4489_v51 = vadd.f32 %v4481_v31, %v7540_v42  ;;  %v11128_v57 = vld [vmem:[#allocation95_spill] sm:$0xff]  ;;  %v11129_v31 = vld [vmem:[#allocation96_spill] sm:$0xff]  ;;  %v11138_v30 = vld [vmem:[#allocation105_spill] sm:$0xff] }
 0x952   :  { %v4488_v12 = vadd.f32 %v4442_v8, %v7523_v22  ;;  %v4490_v23 = vadd.f32 %v4483_v54, %v7529_v48  ;;  %v11136_v8 = vld [vmem:[#allocation103_spill] sm:$0xff]  ;;  %v11137_v54 = vld [vmem:[#allocation104_spill] sm:$0xff]  ;;  %v11139_v4 = vld [vmem:[#allocation106_spill] sm:$0xff] }
 0x953   :  { %v4491_v33 = vmul.f32 0.5, %v4487_v19  ;;  %v4493_v45 = vmul.f32 0.5, %v4489_v51  ;;  %v11140_v19 = vld [vmem:[#allocation107_spill] sm:$0xff]  ;;  %v11141_v21 = vld [vmem:[#allocation108_spill] sm:$0xff]  ;;  %v11142_v27 = vld [vmem:[#allocation109_spill] sm:$0xff] }
 0x954   :  { %v4492_v13 = vmul.f32 0.5, %v4488_v12  ;;  %v11143_v12 = vld [vmem:[#allocation110_spill] sm:$0xff] }
 0x955   :  { %6062 = vtanh.f32 %v4491_v33 }
 0x956   :  { %6064 = vtanh.f32 %v4492_v13 }
 0x957   :  { %6066 = vtanh.f32 %v4490_v23 }
 0x958   :  { %6068 = vtanh.f32 %v4493_v45 }
 0x95f   :  { %v6063_v11 = vpop.eup %6062 }
 0x960   :  { %v4497_v1 = vmul.f32 0.5, %v6063_v11  ;;  %v6065_v2 = vpop.eup %6064 }
 0x961   :  { %v4498_v35 = vmul.f32 0.5, %v6065_v2  ;;  %v6067_v52 = vpop.eup %6066  ;;  %v11145_v2 = vld [vmem:[#allocation112_spill] sm:$0xff] }
 0x962   :  { %v4500_v34 = vadd.f32 0.5, %v4497_v1  ;;  %v6069_v37 = vpop.eup %6068  ;;  %v11144_v1 = vld [vmem:[#allocation111_spill] sm:$0xff] }
 0x963   :  { %v4501_v28 = vadd.f32 0.5, %v4498_v35  ;;  %v4499_v44 = vmul.f32 0.5, %v6069_v37 }
 0x964   :  { %v4505_v32 = vmul.f32 %v6067_v52, %v4500_v34 }
 0x965   :  { %v4504_v62 = vmul.f32 %v4501_v28, %v9431_v61  ;;  %v4502_v24 = vadd.f32 0.5, %v4499_v44  ;;  %v11126_v61 = vld [vmem:[#allocation24_spill] sm:$0xff] }
 0x967   :  { %v9670_v5 = vadd.f32 %v4505_v32, %v4504_v62 }
 0x969   :  { %6070 = vtanh.f32 %v9670_v5 }
 0x96e   :  { %v4544_v60 = vpop.f32.mrb[144].mxu0  ;;  %v4585_v26 = vpop.f32.mrb[144].mxu1 }
 0x96f   :  { %v4546_v59 = vpop.f32.mrb[145].mxu0  ;;  %v4587_v18 = vpop.f32.mrb[145].mxu1 }
 0x970   :  { %v4548_v7 = vpop.f32.mrb[146].mxu0  ;;  %v4589_v63 = vpop.f32.mrb[146].mxu1 }
 0x971   :  { %v4549_v15 = vpop.f32.mrb[147].mxu0  ;;  %v4590_v56 = vpop.f32.mrb[147].mxu1  ;;  %v9735_v63 = vld [vmem:[#allocation12 + $0x20] ss:$16 sps:$4 sm:$0xff]  }
 0x972   :  { %v9738_v15 = vld [vmem:[#allocation12 + $0x28] ss:$16 sps:$4 sm:$0xff]  }
 0x973   :  { %v6071_v9 = vpop.eup %6070 }
 0x974   :  { %v4508_v6 = vmul.f32 %v6071_v9, %v4502_v24  ;;  %v9741_v24 = vld [vmem:[#allocation12 + $0x44] ss:$16 sps:$4 sm:$0xff]   ;;  %v9744_v9 = vld [vmem:[#allocation12 + $0x4c] ss:$16 sps:$4 sm:$0xff]  }
 0x976   :  { %v9673_v41 = vpack.c.bf16 %v4508_v6, %v4508_v6 }
 0x978   :  { %4730 = vmatmul.mubr.bf16.vlgmr.msra.gmra.mrb[152].mxu0 %v9673_v41  ;;  %4771 = vmatmul.mubr.bf16.vlgmr.msra.gmra.mrb[152].mxu1 %v9673_v41 }
 0x979   :  { %4780 = vmatpush1.bf16.msra.mxu0 %v9446_v10  ;;  %4821 = vmatpush1.bf16.msra.mxu1 %v9449_v25  ;;  %v11131_v10 = vld [vmem:[#allocation98_spill] sm:$0xff]  ;;  %v11132_v25 = vld [vmem:[#allocation99_spill] sm:$0xff] }
 0x97a   :  { %4781 = vmatprep.subr.bf16.mxu0 %v9452_v40  ;;  %4822 = vmatprep.subr.bf16.mxu1 %v9455_v36  ;;  %v11133_v40 = vld [vmem:[#allocation100_spill] sm:$0xff]  ;;  %v11134_v36 = vld [vmem:[#allocation101_spill] sm:$0xff] }
 0x97b   :  { %4811 = vmatprep.mubr.bf16.mxu0 %v10440_v50  ;;  %4852 = vmatprep.mubr.bf16.mxu1 %v10440_v50 }
 0x97d   :  { %4782 = vmatpush1.bf16.msra.mxu0 %v11126_v61  ;;  %4823 = vmatpush1.bf16.msra.mxu1 %v11127_v29 }
 0x97e   :  { %4783 = vmatprep.subr.bf16.mxu0 %v11128_v57  ;;  %4824 = vmatprep.subr.bf16.mxu1 %v11129_v31  ;;  %v9747_v31 = vld [vmem:[#allocation12 + $0x40] ss:$16 sps:$4 sm:$0xff]  }
 0x981   :  { %4784 = vmatpush1.bf16.msra.mxu0 %v11130_v39  ;;  %4825 = vmatpush1.bf16.msra.mxu1 %v11131_v10  ;;  %v9750_v39 = vld [vmem:[#allocation12 + $0x48] ss:$16 sps:$4 sm:$0xff]  }
 0x982   :  { %4785 = vmatprep.subr.bf16.mxu0 %v11132_v25  ;;  %4826 = vmatprep.subr.bf16.mxu1 %v11133_v40  ;;  %v9753_v25 = vld [vmem:[#allocation12 + $0x64] ss:$16 sps:$4 sm:$0xff]   ;;  %v9756_v40 = vld [vmem:[#allocation12 + $0x6c] ss:$16 sps:$4 sm:$0xff]  }
 0x985   :  { %4786 = vmatpush1.bf16.msra.mxu0 %v11134_v36  ;;  %4827 = vmatpush1.bf16.msra.mxu1 %v11135_v53 }
 0x986   :  { %4787 = vmatprep.subr.bf16.mxu0 %v11136_v8  ;;  %4828 = vmatprep.subr.bf16.mxu1 %v11137_v54  ;;  %v9760_v54 = vld [vmem:[#allocation12 + $0x60] ss:$16 sps:$4 sm:$0xff]  }
 0x989   :  { %4788 = vmatpush1.bf16.msra.mxu0 %v11138_v30  ;;  %4829 = vmatpush1.bf16.msra.mxu1 %v11139_v4  ;;  %v9763_v30 = vld [vmem:[#allocation12 + $0x68] ss:$16 sps:$4 sm:$0xff]   ;;  %v9766_v4 = vld [vmem:[#allocation12 + $0x84] ss:$16 sps:$4 sm:$0xff]  }
 0x98a   :  { %4789 = vmatprep.subr.bf16.mxu0 %v11140_v19  ;;  %4830 = vmatprep.subr.bf16.mxu1 %v11141_v21  ;;  %v9769_v19 = vld [vmem:[#allocation12 + $0x8c] ss:$16 sps:$4 sm:$0xff]  }
 0x98d   :  { %4790 = vmatpush1.bf16.msra.mxu0 %v11142_v27  ;;  %4831 = vmatpush1.bf16.msra.mxu1 %v11143_v12  ;;  %v9778_v27 = vld [vmem:[#allocation12 + $0x88] ss:$16 sps:$4 sm:$0xff]   ;;  %v9781_v12 = vld [vmem:[#allocation12 + $0xa4] ss:$16 sps:$4 sm:$0xff]  }
 0x98e   :  { %v4626_v33 = vpop.f32.mrb[148].mxu0  ;;  %v4667_v13 = vpop.f32.mrb[148].mxu1  ;;  %4791 = vmatprep.subr.bf16.mxu0 %v11144_v1  ;;  %4832 = vmatprep.subr.bf16.mxu1 %v11145_v2  ;;  %v9796_v1 = vld [vmem:[#allocation12 + $0xcc] ss:$16 sps:$4 sm:$0xff]   ;;  %v9799_v2 = vld [vmem:[#allocation12 + $0xc0] ss:$16 sps:$4 sm:$0xff]  }
 0x98f   :  { %v4627_v23 = vadd.f32 %v4626_v33, %v4544_v60  ;;  %v4668_v51 = vadd.f32 %v4667_v13, %v4585_v26  ;;  %v4628_v45 = vpop.f32.mrb[149].mxu0  ;;  %v4669_v11 = vpop.f32.mrb[149].mxu1  ;;  %v9784_v33 = vld [vmem:[#allocation12 + $0xac] ss:$16 sps:$4 sm:$0xff]  }
 0x990   :  { %v4629_v34 = vadd.f32 %v4628_v45, %v4546_v59  ;;  %v4670_v35 = vadd.f32 %v4669_v11, %v4587_v18  ;;  %v4630_v52 = vpop.f32.mrb[150].mxu0  ;;  %v4671_v28 = vpop.f32.mrb[150].mxu1  ;;  %v4322_v18 = vpack.c.bf16 %v9623_v55, %v9623_v55  ;;  %v9730_v55 = vld [vmem:[#allocation12 + $0x2c] ss:$16 sps:$4 sm:$0xff]   ;;  %v9793_v11 = vld [vmem:[#allocation12 + $0xc4] ss:$16 sps:$4 sm:$0xff]  }
 0x991   :  { %v4674_v32 = vadd.f32 %v4627_v23, %v8052_v38  ;;  %v4631_v62 = vpop.f32.mrb[151].mxu0  ;;  %v4672_v37 = vpop.f32.mrb[151].mxu1  ;;  %4792 = vmatpush1.bf16.msra.mxu0 %v9526_v46  ;;  %4833 = vmatpush1.bf16.msra.mxu1 %v9529_v43  ;;  %v9714_v46 = vld [vmem:[#allocation12 + $0x4] ss:$16 sps:$4 sm:$0xff]   ;;  %v9717_v43 = vld [vmem:[#allocation12 + $0xc] ss:$16 sps:$4 sm:$0xff]  }
 0x992   :  { %v4675_v44 = vadd.f32 %v4629_v34, %v8061_v0  ;;  %4793 = vmatprep.subr.bf16.mxu0 %v9532_v47  ;;  %4834 = vmatprep.subr.bf16.mxu1 %v9535_v58  ;;  %v4677_v59 = vadd.f32 %v4670_v35, %v8075_v20  ;;  %v4676_v47 = vadd.f32 %v4668_v51, %v8092_v17  ;;  %v9721_v58 = vld [vmem:[#allocation12] ss:$16 sps:$4 sm:$0xff]   ;;  %v9790_v51 = vld [vmem:[#allocation12 + $0xa8] ss:$16 sps:$4 sm:$0xff]   ;;  %v9805_v52 = vld [vmem:[#allocation12 + $0xe4] ss:$16 sps:$4 sm:$0xff]  }
 0x993   :  { %v4678_v60 = vmul.f32 0.5, %v4674_v32  ;;  %v9787_v23 = vld [vmem:[#allocation12 + $0xa0] ss:$16 sps:$4 sm:$0xff]   ;;  %v9802_v34 = vld [vmem:[#allocation12 + $0xc8] ss:$16 sps:$4 sm:$0xff]  }
 0x994   :  { %v4679_v26 = vmul.f32 0.5, %v4675_v44  ;;  %v4680_v7 = vmul.f32 0.5, %v4676_v47  ;;  %v9808_v28 = vld [vmem:[#allocation12 + $0xec] ss:$16 sps:$4 sm:$0xff]   ;;  %v9811_v37 = vld [vmem:[#allocation12 + $0xe0] ss:$16 sps:$4 sm:$0xff]  }
 0x995   :  { %6072 = vtanh.f32 %v4678_v60  ;;  %4794 = vmatpush1.bf16.msra.mxu0 %v9539_v49  ;;  %4835 = vmatpush1.bf16.msra.mxu1 %v9542_v14  ;;  %v9724_v49 = vld [vmem:[#allocation12 + $0x8] ss:$16 sps:$4 sm:$0xff]   ;;  %v9727_v14 = vld [vmem:[#allocation12 + $0x24] ss:$16 sps:$4 sm:$0xff]  }
 0x996   :  { %6074 = vtanh.f32 %v4679_v26  ;;  %4884 = vmatprep.subr.bf16.mxu0 %v9714_v46  ;;  %4925 = vmatprep.subr.bf16.mxu1 %v9717_v43  ;;  %v9814_v44 = vld [vmem:[#allocation12 + $0xe8] ss:$16 sps:$4 sm:$0xff]   ;;  %v9817_v60 = vld [vmem:[#allocation11 + $0x4] ss:$16 sps:$4 sm:$0xff]   ;;  %v9820_v26 = vld [vmem:[#allocation11 + $0xc] ss:$16 sps:$4 sm:$0xff]  }
 0x997   :  { %6076 = vtanh.f32 %v4677_v59  ;;  %v9826_v47 = vld [vmem:[#allocation11 + $0x8] ss:$16 sps:$4 sm:$0xff]  }
 0x998   :  { %4812 = vmatmul.mubr.bf16.vlgmr.msra.gmra.mrb[156].mxu0 %v4322_v18  ;;  %4853 = vmatmul.mubr.bf16.vlgmr.msra.gmra.mrb[156].mxu1 %v4322_v18  ;;  %6078 = vtanh.f32 %v4680_v7  ;;  %v9823_v18 = vld [vmem:[#allocation11] ss:$16 sps:$4 sm:$0xff]   ;;  %v9829_v7 = vld [vmem:[#allocation11 + $0x24] ss:$16 sps:$4 sm:$0xff]  }
 0x999   :  { %4885 = vmatpush1.bf16.msra.mxu0 %v9721_v58  ;;  %4926 = vmatpush1.bf16.msra.mxu1 %v9724_v49 }
 0x99a   :  { %4886 = vmatprep.subr.bf16.mxu0 %v9727_v14  ;;  %4927 = vmatprep.subr.bf16.mxu1 %v9730_v55 }
 0x99b   :  { %4916 = vmatprep.mubr.bf16.mxu0 %v10440_v50  ;;  %4957 = vmatprep.mubr.bf16.mxu1 %v10440_v50 }
 0x99d   :  { %4887 = vmatpush1.bf16.msra.mxu0 %v9735_v63  ;;  %4928 = vmatpush1.bf16.msra.mxu1 %v9738_v15 }
 0x99e   :  { %4888 = vmatprep.subr.bf16.mxu0 %v9741_v24  ;;  %4929 = vmatprep.subr.bf16.mxu1 %v9744_v9 }
 0x99f   :  { %v6073_v56 = vpop.eup %6072 }
 0x9a0   :  { %v4684_v6 = vmul.f32 0.5, %v6073_v56  ;;  %v6075_v61 = vpop.eup %6074  ;;  %v9832_v56 = vld [vmem:[#allocation11 + $0x2c] ss:$16 sps:$4 sm:$0xff]  }
 0x9a1   :  { %v4685_v57 = vmul.f32 0.5, %v6075_v61  ;;  %4889 = vmatpush1.bf16.msra.mxu0 %v9747_v31  ;;  %4930 = vmatpush1.bf16.msra.mxu1 %v9750_v39  ;;  %v6077_v10 = vpop.eup %6076  ;;  %v9840_v61 = vld [vmem:[#allocation11 + $0x28] ss:$16 sps:$4 sm:$0xff]  }
 0x9a2   :  { %v4687_v29 = vadd.f32 0.5, %v4684_v6  ;;  %4890 = vmatprep.subr.bf16.mxu0 %v9753_v25  ;;  %4931 = vmatprep.subr.bf16.mxu1 %v9756_v40  ;;  %v6079_v13 = vpop.eup %6078  ;;  %v9837_v6 = vld [vmem:[#allocation11 + $0x20] ss:$16 sps:$4 sm:$0xff]  }
 0x9a3   :  { %v4688_v36 = vadd.f32 0.5, %v4685_v57  ;;  %v4686_v45 = vmul.f32 0.5, %v6079_v13  ;;  %v9846_v57 = vld [vmem:[#allocation11 + $0x4c] ss:$16 sps:$4 sm:$0xff]   ;;  %v9861_v13 = vld [vmem:[#allocation11 + $0x60] ss:$16 sps:$4 sm:$0xff]  }
 0x9a4   :  { %v4692_v53 = vmul.f32 %v6077_v10, %v4687_v29  ;;  %v9843_v29 = vld [vmem:[#allocation11 + $0x44] ss:$16 sps:$4 sm:$0xff]   ;;  %v9849_v10 = vld [vmem:[#allocation11 + $0x40] ss:$16 sps:$4 sm:$0xff]   ;;  %11146 = vst [vmem:[#allocation113_spill] sm:$0xff] %v9861_v13 }
 0x9a5   :  { %v4691_v8 = vmul.f32 %v4688_v36, %v9569_v16  ;;  %4891 = vmatpush1.bf16.msra.mxu0 %v9760_v54  ;;  %4932 = vmatpush1.bf16.msra.mxu1 %v9763_v30  ;;  %v9775_v16 = vld [vmem:[#allocation12 + $0x80] ss:$16 sps:$4 sm:$0xff]   ;;  %v4689_v35 = vadd.f32 0.5, %v4686_v45  ;;  %v9852_v36 = vld [vmem:[#allocation11 + $0x48] ss:$16 sps:$4 sm:$0xff]  }
 0x9a6   :  { %4892 = vmatprep.subr.bf16.mxu0 %v9766_v4  ;;  %4933 = vmatprep.subr.bf16.mxu1 %v9769_v19  ;;  %v9864_v45 = vld [vmem:[#allocation11 + $0x68] ss:$16 sps:$4 sm:$0xff]  }
 0x9a7   :  { %v9772_v21 = vadd.f32 %v4692_v53, %v4691_v8  ;;  %v9855_v53 = vld [vmem:[#allocation11 + $0x64] ss:$16 sps:$4 sm:$0xff]   ;;  %v9858_v8 = vld [vmem:[#allocation11 + $0x6c] ss:$16 sps:$4 sm:$0xff]   ;;  %11147 = vst [vmem:[#allocation114_spill] sm:$0xff] %v9864_v45 }
 0x9a9   :  { %6080 = vtanh.f32 %v9772_v21  ;;  %4893 = vmatpush1.bf16.msra.mxu0 %v9775_v16  ;;  %4934 = vmatpush1.bf16.msra.mxu1 %v9778_v27 }
 0x9aa   :  { %4894 = vmatprep.subr.bf16.mxu0 %v9781_v12  ;;  %4935 = vmatprep.subr.bf16.mxu1 %v9784_v33 }
 0x9ad   :  { %4895 = vmatpush1.bf16.msra.mxu0 %v9787_v23  ;;  %4936 = vmatpush1.bf16.msra.mxu1 %v9790_v51 }
 0x9ae   :  { %4896 = vmatprep.subr.bf16.mxu0 %v9793_v11  ;;  %4937 = vmatprep.subr.bf16.mxu1 %v9796_v1 }
 0x9b1   :  { %4897 = vmatpush1.bf16.msra.mxu0 %v9799_v2  ;;  %4938 = vmatpush1.bf16.msra.mxu1 %v9802_v34 }
 0x9b2   :  { %4898 = vmatprep.subr.bf16.mxu0 %v9805_v52  ;;  %4939 = vmatprep.subr.bf16.mxu1 %v9808_v28 }
 0x9b3   :  { %v6081_v32 = vpop.eup %6080 }
 0x9b4   :  { %v4695_v62 = vmul.f32 %v6081_v32, %v4689_v35  ;;  %v9867_v35 = vld [vmem:[#allocation11 + $0x84] ss:$16 sps:$4 sm:$0xff]   ;;  %v9870_v32 = vld [vmem:[#allocation11 + $0x8c] ss:$16 sps:$4 sm:$0xff]  }
 0x9b5   :  { %4899 = vmatpush1.bf16.msra.mxu0 %v9811_v37  ;;  %4940 = vmatpush1.bf16.msra.mxu1 %v9814_v44  ;;  %11148 = vst [vmem:[#allocation115_spill] sm:$0xff] %v9867_v35  ;;  %11149 = vst [vmem:[#allocation116_spill] sm:$0xff] %v9870_v32 }
 0x9b6   :  { %4966 = vmatprep.subr.bf16.mxu0 %v9817_v60  ;;  %5007 = vmatprep.subr.bf16.mxu1 %v9820_v26  ;;  %v4696_v59 = vpack.c.bf16 %v4695_v62, %v4695_v62  ;;  %v9873_v62 = vld [vmem:[#allocation11 + $0x80] ss:$16 sps:$4 sm:$0xff]  }
 0x9b7   :  { %11150 = vst [vmem:[#allocation117_spill] sm:$0xff] %v9873_v62 }
 0x9b8   :  { %4917 = vmatmul.mubr.bf16.vlgmr.msra.gmra.mrb[160].mxu0 %v4696_v59  ;;  %4958 = vmatmul.mubr.bf16.vlgmr.msra.gmra.mrb[160].mxu1 %v4696_v59  ;;  %v9876_v59 = vld [vmem:[#allocation11 + $0x88] ss:$16 sps:$4 sm:$0xff]  }
 0x9b9   :  { %4967 = vmatpush1.bf16.msra.mxu0 %v9823_v18  ;;  %5008 = vmatpush1.bf16.msra.mxu1 %v9826_v47  ;;  %11151 = vst [vmem:[#allocation118_spill] sm:$0xff] %v9876_v59 }
 0x9ba   :  { %4968 = vmatprep.subr.bf16.mxu0 %v9829_v7  ;;  %5009 = vmatprep.subr.bf16.mxu1 %v9832_v56 }
 0x9bb   :  { %4998 = vmatprep.mubr.bf16.mxu0 %v10440_v50  ;;  %5039 = vmatprep.mubr.bf16.mxu1 %v10440_v50 }
 0x9bd   :  { %4969 = vmatpush1.bf16.msra.mxu0 %v9837_v6  ;;  %5010 = vmatpush1.bf16.msra.mxu1 %v9840_v61 }
 0x9be   :  { %4970 = vmatprep.subr.bf16.mxu0 %v9843_v29  ;;  %5011 = vmatprep.subr.bf16.mxu1 %v9846_v57 }
 0x9c1   :  { %4971 = vmatpush1.bf16.msra.mxu0 %v9849_v10  ;;  %5012 = vmatpush1.bf16.msra.mxu1 %v9852_v36 }
 0x9c2   :  { %4972 = vmatprep.subr.bf16.mxu0 %v9855_v53  ;;  %5013 = vmatprep.subr.bf16.mxu1 %v9858_v8 }
 0x9c5   :  { %4973 = vmatpush1.bf16.msra.mxu0 %v9861_v13  ;;  %5014 = vmatpush1.bf16.msra.mxu1 %v9864_v45  ;;  %v9879_v13 = vld [vmem:[#allocation11 + $0xa4] ss:$16 sps:$4 sm:$0xff]   ;;  %v9882_v45 = vld [vmem:[#allocation11 + $0xac] ss:$16 sps:$4 sm:$0xff]  }
 0x9c6   :  { %4974 = vmatprep.subr.bf16.mxu0 %v9867_v35  ;;  %5015 = vmatprep.subr.bf16.mxu1 %v9870_v32  ;;  %11152 = vst [vmem:[#allocation119_spill] sm:$0xff] %v9879_v13  ;;  %11153 = vst [vmem:[#allocation120_spill] sm:$0xff] %v9882_v45  ;;  %v9885_v35 = vld [vmem:[#allocation11 + $0xa0] ss:$16 sps:$4 sm:$0xff]   ;;  %v9888_v32 = vld [vmem:[#allocation11 + $0xa8] ss:$16 sps:$4 sm:$0xff]  }
 0x9c7   :  { %11154 = vst [vmem:[#allocation121_spill] sm:$0xff] %v9885_v35  ;;  %11155 = vst [vmem:[#allocation122_spill] sm:$0xff] %v9888_v32 }
 0x9c9   :  { %4975 = vmatpush1.bf16.msra.mxu0 %v9873_v62  ;;  %5016 = vmatpush1.bf16.msra.mxu1 %v9876_v59  ;;  %v9891_v62 = vld [vmem:[#allocation11 + $0xc4] ss:$16 sps:$4 sm:$0xff]   ;;  %v9894_v59 = vld [vmem:[#allocation11 + $0xcc] ss:$16 sps:$4 sm:$0xff]  }
 0x9ca   :  { %4976 = vmatprep.subr.bf16.mxu0 %v9879_v13  ;;  %5017 = vmatprep.subr.bf16.mxu1 %v9882_v45  ;;  %11156 = vst [vmem:[#allocation123_spill] sm:$0xff] %v9891_v62  ;;  %11157 = vst [vmem:[#allocation124_spill] sm:$0xff] %v9894_v59  ;;  %v9897_v13 = vld [vmem:[#allocation11 + $0xc0] ss:$16 sps:$4 sm:$0xff]   ;;  %v9900_v45 = vld [vmem:[#allocation11 + $0xc8] ss:$16 sps:$4 sm:$0xff]  }
 0x9cd   :  { %4977 = vmatpush1.bf16.msra.mxu0 %v9885_v35  ;;  %5018 = vmatpush1.bf16.msra.mxu1 %v9888_v32  ;;  %v9903_v35 = vld [vmem:[#allocation11 + $0xe4] ss:$16 sps:$4 sm:$0xff]   ;;  %v9906_v32 = vld [vmem:[#allocation11 + $0xec] ss:$16 sps:$4 sm:$0xff]  }
 0x9ce   :  { %4978 = vmatprep.subr.bf16.mxu0 %v9891_v62  ;;  %5019 = vmatprep.subr.bf16.mxu1 %v9894_v59  ;;  %v9909_v62 = vld [vmem:[#allocation11 + $0xe0] ss:$16 sps:$4 sm:$0xff]   ;;  %v9912_v59 = vld [vmem:[#allocation11 + $0xe8] ss:$16 sps:$4 sm:$0xff]  }
 0x9d1   :  { %4979 = vmatpush1.bf16.msra.mxu0 %v9897_v13  ;;  %5020 = vmatpush1.bf16.msra.mxu1 %v9900_v45 }
 0x9d2   :  { %4980 = vmatprep.subr.bf16.mxu0 %v9903_v35  ;;  %5021 = vmatprep.subr.bf16.mxu1 %v9906_v32 }
 0x9d5   :  { %4981 = vmatpush1.bf16.msra.mxu0 %v9909_v62  ;;  %5022 = vmatpush1.bf16.msra.mxu1 %v9912_v59 }
 0x9d6   :  { %5071 = vmatprep.subr.bf16.mxu0 %v9714_v46  ;;  %5112 = vmatprep.subr.bf16.mxu1 %v9717_v43 }
 0x9d8   :  { %4999 = vmatmul.mubr.bf16.vlgmr.msra.gmra.mrb[164].mxu0 %v9673_v41  ;;  %5040 = vmatmul.mubr.bf16.vlgmr.msra.gmra.mrb[164].mxu1 %v9673_v41 }
 0x9d9   :  { %5072 = vmatpush1.bf16.msra.mxu0 %v9721_v58  ;;  %5113 = vmatpush1.bf16.msra.mxu1 %v9724_v49 }
 0x9da   :  { %5073 = vmatprep.subr.bf16.mxu0 %v9727_v14  ;;  %5114 = vmatprep.subr.bf16.mxu1 %v9730_v55 }
 0x9db   :  { %5103 = vmatprep.mubr.bf16.mxu0 %v10440_v50  ;;  %5144 = vmatprep.mubr.bf16.mxu1 %v10440_v50 }
 0x9dd   :  { %5074 = vmatpush1.bf16.msra.mxu0 %v9735_v63  ;;  %5115 = vmatpush1.bf16.msra.mxu1 %v9738_v15 }
 0x9de   :  { %5075 = vmatprep.subr.bf16.mxu0 %v9741_v24  ;;  %5116 = vmatprep.subr.bf16.mxu1 %v9744_v9 }
 0x9e1   :  { %5076 = vmatpush1.bf16.msra.mxu0 %v9747_v31  ;;  %5117 = vmatpush1.bf16.msra.mxu1 %v9750_v39 }
 0x9e2   :  { %5077 = vmatprep.subr.bf16.mxu0 %v9753_v25  ;;  %5118 = vmatprep.subr.bf16.mxu1 %v9756_v40 }
 0x9e5   :  { %5078 = vmatpush1.bf16.msra.mxu0 %v9760_v54  ;;  %5119 = vmatpush1.bf16.msra.mxu1 %v9763_v30 }
 0x9e6   :  { %5079 = vmatprep.subr.bf16.mxu0 %v9766_v4  ;;  %5120 = vmatprep.subr.bf16.mxu1 %v9769_v19 }
 0x9e9   :  { %5080 = vmatpush1.bf16.msra.mxu0 %v9775_v16  ;;  %5121 = vmatpush1.bf16.msra.mxu1 %v9778_v27 }
 0x9ea   :  { %5081 = vmatprep.subr.bf16.mxu0 %v9781_v12  ;;  %5122 = vmatprep.subr.bf16.mxu1 %v9784_v33 }
 0x9ed   :  { %5082 = vmatpush1.bf16.msra.mxu0 %v9787_v23  ;;  %5123 = vmatpush1.bf16.msra.mxu1 %v9790_v51 }
 0x9ee   :  { %5083 = vmatprep.subr.bf16.mxu0 %v9793_v11  ;;  %5124 = vmatprep.subr.bf16.mxu1 %v9796_v1 }
 0x9f1   :  { %5084 = vmatpush1.bf16.msra.mxu0 %v9799_v2  ;;  %5125 = vmatpush1.bf16.msra.mxu1 %v9802_v34 }
 0x9f2   :  { %5085 = vmatprep.subr.bf16.mxu0 %v9805_v52  ;;  %5126 = vmatprep.subr.bf16.mxu1 %v9808_v28 }
 0x9f5   :  { %5086 = vmatpush1.bf16.msra.mxu0 %v9811_v37  ;;  %5127 = vmatpush1.bf16.msra.mxu1 %v9814_v44 }
 0x9f6   :  { %5153 = vmatprep.subr.bf16.mxu0 %v9817_v60  ;;  %5194 = vmatprep.subr.bf16.mxu1 %v9820_v26 }
 0xa4b   :  { %v4731_v41 = vpop.f32.mrb[152].mxu0  ;;  %v4772_v46 = vpop.f32.mrb[152].mxu1 }
 0xa4c   :  { %v4733_v43 = vpop.f32.mrb[153].mxu0  ;;  %v4774_v58 = vpop.f32.mrb[153].mxu1 }
 0xa4d   :  { %v4735_v49 = vpop.f32.mrb[154].mxu0  ;;  %v4776_v14 = vpop.f32.mrb[154].mxu1 }
 0xa4e   :  { %v4736_v55 = vpop.f32.mrb[155].mxu0  ;;  %v4777_v63 = vpop.f32.mrb[155].mxu1 }
 0xa6b   :  { %v4813_v15 = vpop.f32.mrb[156].mxu0  ;;  %v4854_v24 = vpop.f32.mrb[156].mxu1 }
 0xa6c   :  { %v4814_v9 = vadd.f32 %v4813_v15, %v4731_v41  ;;  %v4855_v31 = vadd.f32 %v4854_v24, %v4772_v46  ;;  %v4815_v39 = vpop.f32.mrb[157].mxu0  ;;  %v4856_v25 = vpop.f32.mrb[157].mxu1 }
 0xa6d   :  { %v4816_v40 = vadd.f32 %v4815_v39, %v4733_v43  ;;  %v4857_v54 = vadd.f32 %v4856_v25, %v4774_v58  ;;  %v4817_v30 = vpop.f32.mrb[158].mxu0  ;;  %v4858_v4 = vpop.f32.mrb[158].mxu1 }
 0xa6e   :  { %v4861_v19 = vadd.f32 %v4814_v9, %v7518_v3  ;;  %v4818_v16 = vpop.f32.mrb[159].mxu0  ;;  %v4859_v27 = vpop.f32.mrb[159].mxu1  ;;  %v4863_v11 = vadd.f32 %v4855_v31, %v7540_v42 }
 0xa6f   :  { %v4862_v12 = vadd.f32 %v4816_v40, %v7523_v22  ;;  %v4864_v51 = vadd.f32 %v4857_v54, %v7529_v48 }
 0xa70   :  { %v4865_v33 = vmul.f32 0.5, %v4861_v19  ;;  %v4867_v1 = vmul.f32 0.5, %v4863_v11 }
 0xa71   :  { %v4866_v23 = vmul.f32 0.5, %v4862_v12 }
 0xa72   :  { %6082 = vtanh.f32 %v4865_v33 }
 0xa73   :  { %6084 = vtanh.f32 %v4866_v23 }
 0xa74   :  { %6086 = vtanh.f32 %v4864_v51 }
 0xa75   :  { %6088 = vtanh.f32 %v4867_v1 }
 0xa7c   :  { %v6083_v2 = vpop.eup %6082 }
 0xa7d   :  { %v4871_v34 = vmul.f32 0.5, %v6083_v2  ;;  %v6085_v52 = vpop.eup %6084 }
 0xa7e   :  { %v4872_v3 = vmul.f32 0.5, %v6085_v52  ;;  %v6087_v37 = vpop.eup %6086 }
 0xa7f   :  { %v4874_v28 = vadd.f32 0.5, %v4871_v34  ;;  %v6089_v41 = vpop.eup %6088 }
 0xa80   :  { %v4875_v44 = vadd.f32 0.5, %v4872_v3  ;;  %v4873_v43 = vmul.f32 0.5, %v6089_v41 }
 0xa81   :  { %v4879_v60 = vmul.f32 %v6087_v37, %v4874_v28 }
 0xa82   :  { %v4878_v22 = vmul.f32 %v4875_v44, %v9670_v5  ;;  %v4876_v15 = vadd.f32 0.5, %v4873_v43 }
 0xa84   :  { %v4880_v26 = vadd.f32 %v4879_v60, %v4878_v22 }
 0xa86   :  { %6090 = vtanh.f32 %v4880_v26 }
 0xa8b   :  { %v4918_v48 = vpop.f32.mrb[160].mxu0  ;;  %v4959_v46 = vpop.f32.mrb[160].mxu1 }
 0xa8c   :  { %v4920_v58 = vpop.f32.mrb[161].mxu0  ;;  %v4961_v42 = vpop.f32.mrb[161].mxu1 }
 0xa8d   :  { %v4922_v49 = vpop.f32.mrb[162].mxu0  ;;  %v4963_v14 = vpop.f32.mrb[162].mxu1 }
 0xa8e   :  { %v4923_v55 = vpop.f32.mrb[163].mxu0  ;;  %v4964_v63 = vpop.f32.mrb[163].mxu1 }
 0xa8f   :  { %v5870_v55 = vld [vmem:[%s10056_s10 + $0x30] sm:$0xff]   ;;  %v5871_v63 = vld [vmem:[%s10056_s10 + $0x38] sm:$0xff]  }
 0xa90   :  { %v6091_v24 = vpop.eup %6090 }
 0xa91   :  { %v9958_v9 = vmul.f32 %v6091_v24, %v4876_v15 }
 0xaab   :  { %v5000_v31 = vpop.f32.mrb[164].mxu0  ;;  %v5041_v39 = vpop.f32.mrb[164].mxu1 }
 0xaac   :  { %v5001_v25 = vadd.f32 %v5000_v31, %v4918_v48  ;;  %v5042_v5 = vadd.f32 %v5041_v39, %v4959_v46  ;;  %v5002_v40 = vpop.f32.mrb[165].mxu0  ;;  %v5043_v54 = vpop.f32.mrb[165].mxu1 }
 0xaad   :  { %v5003_v30 = vadd.f32 %v5002_v40, %v4920_v58  ;;  %v5044_v4 = vadd.f32 %v5043_v54, %v4961_v42  ;;  %v5004_v19 = vpop.f32.mrb[166].mxu0  ;;  %v5045_v16 = vpop.f32.mrb[166].mxu1 }
 0xaae   :  { %v5048_v27 = vadd.f32 %v5001_v25, %v8052_v38  ;;  %v5005_v12 = vpop.f32.mrb[167].mxu0  ;;  %v5046_v33 = vpop.f32.mrb[167].mxu1  ;;  %v5050_v2 = vadd.f32 %v5042_v5, %v8092_v17 }
 0xaaf   :  { %v5049_v23 = vadd.f32 %v5003_v30, %v8061_v0  ;;  %v5051_v1 = vadd.f32 %v5044_v4, %v8075_v20 }
 0xab0   :  { %v5052_v51 = vmul.f32 0.5, %v5048_v27  ;;  %v5054_v34 = vmul.f32 0.5, %v5050_v2 }
 0xab1   :  { %v5053_v11 = vmul.f32 0.5, %v5049_v23 }
 0xab2   :  { %6092 = vtanh.f32 %v5052_v51 }
 0xab3   :  { %6094 = vtanh.f32 %v5053_v11 }
 0xab4   :  { %6096 = vtanh.f32 %v5051_v1 }
 0xab5   :  { %6098 = vtanh.f32 %v5054_v34 }
 0xabc   :  { %v6093_v52 = vpop.eup %6092 }
 0xabd   :  { %v5058_v28 = vmul.f32 0.5, %v6093_v52  ;;  %v6095_v3 = vpop.eup %6094 }
 0xabe   :  { %v5059_v44 = vmul.f32 0.5, %v6095_v3  ;;  %v6097_v60 = vpop.eup %6096 }
 0xabf   :  { %v5061_v37 = vadd.f32 0.5, %v5058_v28  ;;  %v6099_v46 = vpop.eup %6098 }
 0xac0   :  { %v5062_v22 = vadd.f32 0.5, %v5059_v44  ;;  %v5060_v43 = vmul.f32 0.5, %v6099_v46 }
 0xac1   :  { %v5066_v26 = vmul.f32 %v6097_v60, %v5061_v37 }
 0xac2   :  { %v5065_v41 = vmul.f32 %v5062_v22, %v9772_v21  ;;  %v5063_v58 = vadd.f32 0.5, %v5060_v43  ;;  %v11158_v21 = vld [vmem:[#allocation113_spill] sm:$0xff] }
 0xac4   :  { %v9965_v48 = vadd.f32 %v5066_v26, %v5065_v41 }
 0xac6   :  { %6100 = vtanh.f32 %v9965_v48 }
 0xad0   :  { %v6101_v42 = vpop.eup %6100 }
 0xad1   :  { %v5069_v49 = vmul.f32 %v6101_v42, %v5063_v58 }
 0xad3   :  { %v5070_v14 = vpack.c.bf16 %v5069_v49, %v5069_v49 }
 0xad5   :  { %5104 = vmatmul.mubr.bf16.vlgmr.msra.gmra.mrb[168].mxu0 %v5070_v14  ;;  %5145 = vmatmul.mubr.bf16.vlgmr.msra.gmra.mrb[168].mxu1 %v5070_v14 }
 0xad6   :  { %5154 = vmatpush1.bf16.msra.mxu0 %v9823_v18  ;;  %5195 = vmatpush1.bf16.msra.mxu1 %v9826_v47  ;;  %v11159_v18 = vld [vmem:[#allocation114_spill] sm:$0xff]  ;;  %v11161_v47 = vld [vmem:[#allocation116_spill] sm:$0xff] }
 0xad7   :  { %5155 = vmatprep.subr.bf16.mxu0 %v9829_v7  ;;  %5196 = vmatprep.subr.bf16.mxu1 %v9832_v56  ;;  %v11162_v7 = vld [vmem:[#allocation117_spill] sm:$0xff]  ;;  %v11163_v56 = vld [vmem:[#allocation118_spill] sm:$0xff] }
 0xad8   :  { %5185 = vmatprep.mubr.bf16.mxu0 %v10440_v50  ;;  %5226 = vmatprep.mubr.bf16.mxu1 %v10440_v50  ;;  %v11160_v50 = vld [vmem:[#allocation115_spill] sm:$0xff] }
 0xada   :  { %5156 = vmatpush1.bf16.msra.mxu0 %v9837_v6  ;;  %5197 = vmatpush1.bf16.msra.mxu1 %v9840_v61  ;;  %v11164_v6 = vld [vmem:[#allocation119_spill] sm:$0xff]  ;;  %v11165_v61 = vld [vmem:[#allocation120_spill] sm:$0xff] }
 0xadb   :  { %5157 = vmatprep.subr.bf16.mxu0 %v9843_v29  ;;  %5198 = vmatprep.subr.bf16.mxu1 %v9846_v57  ;;  %v11166_v29 = vld [vmem:[#allocation121_spill] sm:$0xff]  ;;  %v11167_v57 = vld [vmem:[#allocation122_spill] sm:$0xff] }
 0xade   :  { %5158 = vmatpush1.bf16.msra.mxu0 %v9849_v10  ;;  %5199 = vmatpush1.bf16.msra.mxu1 %v9852_v36  ;;  %v11168_v10 = vld [vmem:[#allocation123_spill] sm:$0xff]  ;;  %v11169_v36 = vld [vmem:[#allocation124_spill] sm:$0xff] }
 0xadf   :  { %5159 = vmatprep.subr.bf16.mxu0 %v9855_v53  ;;  %5200 = vmatprep.subr.bf16.mxu1 %v9858_v8  ;;  %v4883_v53 = vpack.c.bf16 %v9958_v9, %v9958_v9  ;;  %v5864_v8 = vld [vmem:[%s10056_s10] sm:$0xff]  }
 0xae2   :  { %5160 = vmatpush1.bf16.msra.mxu0 %v11158_v21  ;;  %5201 = vmatpush1.bf16.msra.mxu1 %v11159_v18 }
 0xae3   :  { %5161 = vmatprep.subr.bf16.mxu0 %v11160_v50  ;;  %5202 = vmatprep.subr.bf16.mxu1 %v11161_v47  ;;  %v5564_v50 = vld [vmem:[%s10057_s11] ss:$0 sm:$0xff] }
 0xae6   :  { %5162 = vmatpush1.bf16.msra.mxu0 %v11162_v7  ;;  %5203 = vmatpush1.bf16.msra.mxu1 %v11163_v56 }
 0xae7   :  { %5163 = vmatprep.subr.bf16.mxu0 %v11164_v6  ;;  %5204 = vmatprep.subr.bf16.mxu1 %v11165_v61 }
 0xaea   :  { %5164 = vmatpush1.bf16.msra.mxu0 %v11166_v29  ;;  %5205 = vmatpush1.bf16.msra.mxu1 %v11167_v57 }
 0xaeb   :  { %5165 = vmatprep.subr.bf16.mxu0 %v11168_v10  ;;  %5206 = vmatprep.subr.bf16.mxu1 %v11169_v36 }
 0xaee   :  { %5166 = vmatpush1.bf16.msra.mxu0 %v9897_v13  ;;  %5207 = vmatpush1.bf16.msra.mxu1 %v9900_v45  ;;  %v6765_v13 = vmov 0.0   ;;  %v5865_v45 = vld [vmem:[%s10056_s10 + $0x8] sm:$0xff]  }
 0xaef   :  { %5167 = vmatprep.subr.bf16.mxu0 %v9903_v35  ;;  %5208 = vmatprep.subr.bf16.mxu1 %v9906_v32  ;;  %v5866_v35 = vld [vmem:[%s10056_s10 + $0x10] sm:$0xff]   ;;  %v5867_v32 = vld [vmem:[%s10056_s10 + $0x18] sm:$0xff]  }
 0xaf2   :  { %5168 = vmatpush1.bf16.msra.mxu0 %v9909_v62  ;;  %5209 = vmatpush1.bf16.msra.mxu1 %v9912_v59  ;;  %v5868_v62 = vld [vmem:[%s10056_s10 + $0x20] sm:$0xff]   ;;  %v5869_v59 = vld [vmem:[%s10056_s10 + $0x28] sm:$0xff]  }
 0xaf3   :  { %5582 = vmatprep.subr.bf16.mxu0 %v6765_v13 }
 0xaf5   :  { %5186 = vmatmul.mubr.bf16.vlgmr.msra.gmra.mrb[172].mxu0 %v4883_v53  ;;  %5227 = vmatmul.mubr.bf16.vlgmr.msra.gmra.mrb[172].mxu1 %v4883_v53 }
 0xaf6   :  { %5583 = vmatpush3.bf16.msra.mxu0 %v5864_v8  ;;  %5598 = vmatprep.mubr.msk.bf16.mxu0 %vm6766_vm1, %v6765_v13 }
 0xaf7   :  { %5584 = vmatprep.subr.bf16.mxu0 %v6765_v13 }
 0xafa   :  { %5585 = vmatpush3.bf16.msra.mxu0 %v5865_v45 }
 0xafb   :  { %5586 = vmatprep.subr.bf16.mxu0 %v6765_v13 }
 0xafe   :  { %5587 = vmatpush3.bf16.msra.mxu0 %v5866_v35 }
 0xaff   :  { %5588 = vmatprep.subr.bf16.mxu0 %v6765_v13 }
 0xb02   :  { %5589 = vmatpush3.bf16.msra.mxu0 %v5867_v32 }
 0xb03   :  { %5590 = vmatprep.subr.bf16.mxu0 %v6765_v13 }
 0xb06   :  { %5591 = vmatpush3.bf16.msra.mxu0 %v5868_v62 }
 0xb07   :  { %5592 = vmatprep.subr.bf16.mxu0 %v6765_v13 }
 0xb0a   :  { %5593 = vmatpush3.bf16.msra.mxu0 %v5869_v59 }
 0xb0b   :  { %5594 = vmatprep.subr.bf16.mxu0 %v6765_v13 }
 0xb0e   :  { %5595 = vmatpush3.bf16.msra.mxu0 %v5870_v55 }
 0xb0f   :  { %5596 = vmatprep.subr.bf16.mxu0 %v6765_v13 }
 0xb12   :  { %5597 = vmatpush3.bf16.msra.mxu0 %v5871_v63 }
 0xba8   :  { %v5105_v15 = vpop.f32.mrb[168].mxu0  ;;  %v5146_v24 = vpop.f32.mrb[168].mxu1 }
 0xba9   :  { %v5107_v9 = vpop.f32.mrb[169].mxu0  ;;  %v5148_v31 = vpop.f32.mrb[169].mxu1 }
 0xbaa   :  { %v5109_v39 = vpop.f32.mrb[170].mxu0  ;;  %v5150_v25 = vpop.f32.mrb[170].mxu1 }
 0xbab   :  { %v5110_v5 = vpop.f32.mrb[171].mxu0  ;;  %v5151_v40 = vpop.f32.mrb[171].mxu1 }
 0xbc8   :  { %v5187_v54 = vpop.f32.mrb[172].mxu0  ;;  %v5228_v30 = vpop.f32.mrb[172].mxu1 }
 0xbc9   :  { %v5188_v4 = vadd.f32 %v5187_v54, %v5105_v15  ;;  %v5229_v19 = vadd.f32 %v5228_v30, %v5146_v24  ;;  %v5189_v16 = vpop.f32.mrb[173].mxu0  ;;  %v5230_v27 = vpop.f32.mrb[173].mxu1 }
 0xbca   :  { %v5190_v12 = vadd.f32 %v5189_v16, %v5107_v9  ;;  %v5231_v33 = vadd.f32 %v5230_v27, %v5148_v31  ;;  %v5191_v23 = vpop.f32.mrb[174].mxu0  ;;  %v5232_v51 = vpop.f32.mrb[174].mxu1 }
 0xbcb   :  { %v5235_v11 = vadd.f32 %v5188_v4, %v8052_v38  ;;  %v5192_v1 = vpop.f32.mrb[175].mxu0  ;;  %v5233_v2 = vpop.f32.mrb[175].mxu1  ;;  %v5237_v37 = vadd.f32 %v5229_v19, %v8092_v17 }
 0xbcc   :  { %v5236_v34 = vadd.f32 %v5190_v12, %v8061_v0  ;;  %v5238_v3 = vadd.f32 %v5231_v33, %v8075_v20 }
 0xbcd   :  { %v5239_v52 = vmul.f32 0.5, %v5235_v11  ;;  %v5241_v44 = vmul.f32 0.5, %v5237_v37 }
 0xbce   :  { %v5240_v28 = vmul.f32 0.5, %v5236_v34 }
 0xbcf   :  { %6102 = vtanh.f32 %v5239_v52 }
 0xbd0   :  { %6104 = vtanh.f32 %v5240_v28 }
 0xbd1   :  { %6106 = vtanh.f32 %v5238_v3 }
 0xbd2   :  { %6108 = vtanh.f32 %v5241_v44 }
 0xbd9   :  { %v6103_v60 = vpop.eup %6102 }
 0xbda   :  { %v5245_v22 = vmul.f32 0.5, %v6103_v60  ;;  %v6105_v26 = vpop.eup %6104 }
 0xbdb   :  { %v5246_v38 = vmul.f32 0.5, %v6105_v26  ;;  %v6107_v46 = vpop.eup %6106 }
 0xbdc   :  { %v5248_v41 = vadd.f32 0.5, %v5245_v22  ;;  %v6109_v49 = vpop.eup %6108 }
 0xbdd   :  { %v5249_v43 = vadd.f32 0.5, %v5246_v38  ;;  %v5247_v20 = vmul.f32 0.5, %v6109_v49 }
 0xbde   :  { %v5253_v58 = vmul.f32 %v6107_v46, %v5248_v41 }
 0xbdf   :  { %v5252_v0 = vmul.f32 %v5249_v43, %v9965_v48  ;;  %v5250_v14 = vadd.f32 0.5, %v5247_v20 }
 0xbe1   :  { %v5254_v42 = vadd.f32 %v5253_v58, %v5252_v0 }
 0xbe3   :  { %6110 = vtanh.f32 %v5254_v42 }
 0xbed   :  { %v6111_v21 = vpop.eup %6110 }
 0xbee   :  { %v5256_v18 = vmul.f32 %v6111_v21, %v5250_v14 }
 0xbf0   :  { %v5257_v17 = vpack.c.bf16 %v5256_v18, %v5256_v18 }
 0xbf2   :  { %5599 = vmatmul.mubr.bf16.vlgmr.msra.gmra.mrb[176].mxu0 %v5257_v17 }
 0xcc5   :  { %v5363_v47 = vpop.f32.mrb[176].mxu0 }
 0xcc6   :  { %v5364_v7 = vadd.f32 %v5564_v50, %v5363_v47  ;;  %v5600_v56 = vpop.f32.mrb[177].mxu0 }
 0xcc7   :  { %v5366_v48 = vpop.f32.mrb[178].mxu0 }
 0xcc8   :  { %5369 = vst [vmem:[#allocation14] sm:$0xff] %v5364_v7  ;;  %v5601_v6 = vpop.f32.mrb[179].mxu0 }
 0xcc9   :  { %6735 = shalt.err (!%p6732_p10)
}
 0xcca   :  { %s6736_s11 = scalar_lea.hbm %s10058_s12, 128 }
 0xccb   :  { %p6737_p11 = scmp.ne.s32.totalorder %s10058_s12, %s6736_s11  ;;  %p6740_p12 = scmp.lt.u32.totalorder %s6736_s11, %s10058_s12 }
 0xccd   :  { %p6742_p13 = pnand %p6740_p12, %p6737_p11 }
 0xccf   :  { %6745 = shalt.err (!%p6742_p13)
}
 0xcd0   :  { %5379 = dma.vmem_to_hbm [thread:$0]  %s5377_s25, 128, %s10058_s12, [#allocation5]  }
 0xcd1   :  { %6754 = dma.done.wait [#allocation5], 128  }
 0xcd2   :  { %6755 = vsyncadd [#allocation5], 4294967168 }
 0xcd3   :  { %5383 = vsyncpa [#allocation4], 1 }
 0xcd4   :  { %5384 = vsyncpa [#allocation7], 1 }
 0xcd5   :  { %5385 = vsyncpa [#allocation10], 1 }
 0xcd6   :  { %5386 = vsyncpa [#allocation13], 1 }
 0xcd7   :  { %5387 = vsyncpa [#allocation5], 1 }

</bundles_post_ra>
